<compile_context>
chip_gen: v5e
topology: v5e:2x2
jax: 0.10.0
libtpu: 0.0.40
codegen_flags: <defaults>
</compile_context>

<pallas_src>
import functools

import numpy as np
import jax
import jax.numpy as jnp
from jax.experimental import pallas as pl
from jax.experimental.pallas import tpu as pltpu

LRELU_SLOPE = 0.2
BN_EPS = 1e-5
IN_EPS = 1e-5
_PAD_L = 8                        # sublane-aligned start column of conv interior
_VMEM_LIMIT = 48 * 1024 * 1024    # safe on v7x (64 MiB physical) and v5e/v6e


def _conv_bn_stats_kernel(x_ref, scale_ref, shift_ref, w_ref,
                          y_ref, st_ref, xp_ref, *, apply_lrelu):
    """One image per grid step.

      a  = x * scale + shift        (previous stage's BatchNorm affine, f32)
      a  = leaky_relu(a)            (optional)
      y  = conv3x3(a, w)            (9 per-tap MXU matmuls, f32 accumulate)
      st = (per-image channel mean, per-image centered sum-of-squares)

    x_ref : (1, H, W, Cp)             input dtype (f32 for stage 1, mxu dtype after)
    scale/shift : (1, Cp) f32
    w_ref : (9, Cp, Cp)               mxu dtype, tap-major HWIO layout
    y_ref : (1, H, W, Cp)             mxu dtype
    st_ref: (1, 2, Cp) f32
    xp_ref: (H+2, W_scr, Cp)          mxu dtype halo scratch
    """
    _, H, W, Cp = x_ref.shape
    W_scr = xp_ref.shape[1]
    f32 = jnp.float32

    # Pre-conv affine + optional LeakyReLU in f32 on the VPU (2-D lane layout).
    a = x_ref[0].astype(f32).reshape(H * W, Cp) * scale_ref[...] + shift_ref[...]
    if apply_lrelu:
        a = jnp.where(a > 0, a, LRELU_SLOPE * a)

    # Halo buffer: zero only the 1-px border (aligned 8-wide column slabs and
    # two full rows); interior written once at a sublane-aligned column.
    xp_ref[0:1, :, :] = jnp.zeros((1, W_scr, Cp), xp_ref.dtype)
    xp_ref[H + 1:H + 2, :, :] = jnp.zeros((1, W_scr, Cp), xp_ref.dtype)
    xp_ref[1:H + 1, 0:_PAD_L, :] = jnp.zeros((H, _PAD_L, Cp), xp_ref.dtype)
    xp_ref[1:H + 1, _PAD_L + W:W_scr, :] = jnp.zeros(
        (H, W_scr - _PAD_L - W, Cp), xp_ref.dtype)
    xp_ref[1:H + 1, _PAD_L:_PAD_L + W, :] = (
        a.reshape(H, W, Cp).astype(xp_ref.dtype))

    # 3x3 conv as 9 accumulated per-tap matmuls; no im2col materialization.
    acc = jnp.zeros((H * W, Cp), f32)
    for dh in range(3):
        for dw in range(3):
            c0 = _PAD_L - 1 + dw
            view = xp_ref[dh:dh + H, c0:c0 + W, :].reshape(H * W, Cp)
            acc = acc + jnp.dot(view, w_ref[dh * 3 + dw],
                                preferred_element_type=jnp.float32)

    y_ref[...] = acc.reshape(1, H, W, Cp).astype(y_ref.dtype)

    # Per-image BatchNorm partial statistics (two-pass inside the image; the
    # wrapper combines across images with Chan's formula -> no cancellation).
    m = jnp.mean(acc, axis=0, keepdims=True)            # (1, Cp)
    d = acc - m
    css = jnp.sum(d * d, axis=0, keepdims=True)         # (1, Cp)
    st_ref[0:1, 0:1, :] = m.reshape(1, 1, Cp)
    st_ref[0:1, 1:2, :] = css.reshape(1, 1, Cp)


def _bn_in_residual_kernel(y_ref, scale_ref, shift_ref, gi_ref, bi_ref,
                           x_ref, o_ref):
    """One image per grid step: bn2 affine -> instance norm -> residual add."""
    _, H, W, Cp = y_ref.shape
    z = (y_ref[0].astype(jnp.float32).reshape(H * W, Cp) * scale_ref[...]
         + shift_ref[...])
    mu = jnp.mean(z, axis=0, keepdims=True)
    d = z - mu
    v = jnp.mean(d * d, axis=0, keepdims=True)
    z = d * jax.lax.rsqrt(v + IN_EPS) * gi_ref[...] + bi_ref[...]
    o_ref[...] = (z.reshape(H, W, Cp) + x_ref[0]).reshape(1, H, W, Cp)


def basic_block_forward(x_nchw, params, *, mxu_dtype=jnp.bfloat16):
    """x_nchw: (N, C, H, W) float32.  Returns (N, C, H, W) float32.

    params: (w1, g1, b1, w2, g2, b2, gi, bi) with conv weights in HWIO layout.
    mxu_dtype: MXU operand / intermediate-activation dtype.  bf16 (default) is
    MXU-native on v5e/v6e/v7x; float32 reproduces the reference bit-closely.
    All accumulation and normalization statistics stay in float32 either way.
    """
    w1, g1, b1, w2, g2, b2, gi, bi = params
    N, C, H, W = x_nchw.shape
    Cp = ((C + 127) // 128) * 128            # lane-dense channel padding
    pc = Cp - C
    W_scr = ((W + _PAD_L + 2 + 7) // 8) * 8  # halo-buffer width, /8-aligned
    mxu_isize = int(np.dtype(mxu_dtype).itemsize)

    x = jnp.transpose(x_nchw, (0, 2, 3, 1)).astype(jnp.float32)      # NHWC
    x = jnp.pad(x, ((0, 0), (0, 0), (0, 0), (0, pc)))

    def pad_w(w):  # (3,3,C,C) HWIO -> (9, Cp, Cp) tap-major, pre-cast once
        wp = jnp.pad(w.astype(jnp.float32), ((0, 0), (0, 0), (0, pc), (0, pc)))
        return wp.reshape(9, Cp, Cp).astype(mxu_dtype)

    def pad_v(v):  # (C,) -> (1, Cp); zeros in padded lanes keep them inert
        return jnp.pad(v.astype(jnp.float32), (0, pc)).reshape(1, Cp)

    ones = jnp.ones((1, Cp), jnp.float32)
    zeros = jnp.zeros((1, Cp), jnp.float32)

    def conv_stage(inp, scale, shift, w_taps, apply_lrelu):
        conv_flops = 2 * N * H * W * 9 * Cp * Cp
        bytes_io = (inp.size * inp.dtype.itemsize
                    + 9 * Cp * Cp * mxu_isize
                    + N * H * W * Cp * mxu_isize
                    + N * 2 * Cp * 4)
        return pl.pallas_call(
            functools.partial(_conv_bn_stats_kernel, apply_lrelu=apply_lrelu),
            grid_spec=pltpu.PrefetchScalarGridSpec(
                num_scalar_prefetch=0,
                grid=(N,),
                in_specs=[
                    pl.BlockSpec((1, H, W, Cp), lambda n: (n, 0, 0, 0)),
                    pl.BlockSpec((1, Cp), lambda n: (0, 0)),
                    pl.BlockSpec((1, Cp), lambda n: (0, 0)),
                    pl.BlockSpec((9, Cp, Cp), lambda n: (0, 0, 0)),
                ],
                out_specs=[
                    pl.BlockSpec((1, H, W, Cp), lambda n: (n, 0, 0, 0)),
                    pl.BlockSpec((1, 2, Cp), lambda n: (n, 0, 0)),
                ],
                scratch_shapes=[pltpu.VMEM((H + 2, W_scr, Cp), mxu_dtype)],
            ),
            out_shape=(jax.ShapeDtypeStruct((N, H, W, Cp), mxu_dtype),
                       jax.ShapeDtypeStruct((N, 2, Cp), jnp.float32)),
            compiler_params=pltpu.CompilerParams(
                dimension_semantics=("parallel",),
                vmem_limit_bytes=_VMEM_LIMIT),
            cost_estimate=pl.CostEstimate(
                flops=conv_flops, transcendentals=0, bytes_accessed=bytes_io),
        )(inp, scale, shift, w_taps)

    def bn_scale_shift(stats, gamma, beta):
        # Combine per-image (mean, centered SSQ) across the batch (Chan's
        # parallel formula) -> biased variance, matches training-mode BN.
        m_i = stats[:, 0, :]                              # (N, Cp)
        css = stats[:, 1, :]                              # (N, Cp)
        mean = jnp.mean(m_i, axis=0)                      # (Cp,)
        var = (jnp.mean(css, axis=0) / (H * W)
               + jnp.mean((m_i - mean[None, :]) ** 2, axis=0))
        scale = gamma.reshape(Cp) * jax.lax.rsqrt(var + BN_EPS)
        shift = beta.reshape(Cp) - mean * scale
        return scale.reshape(1, Cp), shift.reshape(1, Cp)

    g1p, b1p, g2p, b2p, gip, bip = map(pad_v, (g1, b1, g2, b2, gi, bi))

    # Stage 1: conv1 (+ BN1 partial stats).
    y1, st1 = conv_stage(x, ones, zeros, pad_w(w1), apply_lrelu=False)
    s1, t1 = bn_scale_shift(st1, g1p, b1p)

    # Stage 2: bn1 -> leaky_relu -> conv2 (+ BN2 partial stats), fused.
    y2, st2 = conv_stage(y1, s1, t1, pad_w(w2), apply_lrelu=True)
    s2, t2 = bn_scale_shift(st2, g2p, b2p)

    # Stage 3: bn2 -> instance norm -> residual add, fused.
    out = pl.pallas_call(
        _bn_in_residual_kernel,
        grid_spec=pltpu.PrefetchScalarGridSpec(
            num_scalar_prefetch=0,
            grid=(N,),
            in_specs=[
                pl.BlockSpec((1, H, W, Cp), lambda n: (n, 0, 0, 0)),
                pl.BlockSpec((1, Cp), lambda n: (0, 0)),
                pl.BlockSpec((1, Cp), lambda n: (0, 0)),
                pl.BlockSpec((1, Cp), lambda n: (0, 0)),
                pl.BlockSpec((1, Cp), lambda n: (0, 0)),
                pl.BlockSpec((1, H, W, Cp), lambda n: (n, 0, 0, 0)),
            ],
            out_specs=pl.BlockSpec((1, H, W, Cp), lambda n: (n, 0, 0, 0)),
        ),
        out_shape=jax.ShapeDtypeStruct((N, H, W, Cp), jnp.float32),
        compiler_params=pltpu.CompilerParams(
            dimension_semantics=("parallel",),
            vmem_limit_bytes=_VMEM_LIMIT),
    )(y2, s2, t2, gip, bip, x)

    out = out[..., :C]                          # drop channel padding
    return jnp.transpose(out, (0, 3, 1, 2))     # back to NCHW


def reference_forward(x_nchw, params):
    """Pure-JAX reference (same math, XLA ops) for validation."""
    w1, g1, b1, w2, g2, b2, gi, bi = params
    x = jnp.transpose(x_nchw, (0, 2, 3, 1)).astype(jnp.float32)

    def conv(a, w):
        return jax.lax.conv_general_dilated(
            a, w, (1, 1), 'SAME',
            dimension_numbers=('NHWC', 'HWIO', 'NHWC'))

    def bn(a, g, b):
        m = jnp.mean(a, axis=(0, 1, 2), keepdims=True)
        v = jnp.var(a, axis=(0, 1, 2), keepdims=True)
        return (a - m) / jnp.sqrt(v + BN_EPS) * g + b

    def inorm(a, g, b):
        m = jnp.mean(a, axis=(1, 2), keepdims=True)
        v = jnp.var(a, axis=(1, 2), keepdims=True)
        return (a - m) / jnp.sqrt(v + IN_EPS) * g + b

    y = conv(x, w1)
    y = bn(y, g1, b1)
    y = jnp.where(y > 0, y, LRELU_SLOPE * y)
    y = conv(y, w2)
    y = bn(y, g2, b2)
    y = inorm(y, gi, bi)
    y = y + x
    return jnp.transpose(y, (0, 3, 1, 2))


if __name__ == "__main__":
    N, C, H, W = 2, 8, 16, 16   # small demo shapes (module default channels=64)

    key = jax.random.PRNGKey(0)
    ks = jax.random.split(key, 9)
    x = jax.random.normal(ks[0], (N, C, H, W), jnp.float32)
    # conv weights in HWIO (3, 3, Cin, Cout)
    w1 = jax.random.normal(ks[1], (3, 3, C, C), jnp.float32) * 0.1
    w2 = jax.random.normal(ks[2], (3, 3, C, C), jnp.float32) * 0.1
    g1 = 1.0 + 0.1 * jax.random.normal(ks[3], (C,), jnp.float32)
    b1 = 0.1 * jax.random.normal(ks[4], (C,), jnp.float32)
    g2 = 1.0 + 0.1 * jax.random.normal(ks[5], (C,), jnp.float32)
    b2 = 0.1 * jax.random.normal(ks[6], (C,), jnp.float32)
    gi = 1.0 + 0.1 * jax.random.normal(ks[7], (C,), jnp.float32)
    bi = 0.1 * jax.random.normal(ks[8], (C,), jnp.float32)
    params = (w1, g1, b1, w2, g2, b2, gi, bi)

    ref = jax.block_until_ready(reference_forward(x, params))

    # f32 MXU-operand path: tight validation against the f32 reference.
    fwd_f32 = jax.jit(functools.partial(basic_block_forward,
                                        mxu_dtype=jnp.float32))
    out_f32 = jax.block_until_ready(fwd_f32(x, params))
    assert out_f32.shape == (N, C, H, W)
    err32 = jnp.max(jnp.abs(out_f32 - ref))
    assert jnp.allclose(out_f32, ref, rtol=5e-3, atol=5e-3), (
        f"f32 path max abs err {err32}")

    # Default bf16 MXU-operand path (f32 accumulate/stats): bf16 tolerance.
    fwd_bf16 = jax.jit(basic_block_forward)
    out_bf16 = jax.block_until_ready(fwd_bf16(x, params))
    assert out_bf16.shape == (N, C, H, W)
    errbf = jnp.max(jnp.abs(out_bf16 - ref))
    assert jnp.allclose(out_bf16, ref, rtol=5e-2, atol=5e-2), (
        f"bf16 path max abs err {errbf}")

    print("KERNEL_OK")
</pallas_src>

<mosaic_0001>
module attributes {stable_mosaic.version = 11 : i64} {
  func.func @_conv_bn_stats_kernel(%arg0: i32, %arg1: memref<1x16x16x128xf32, #tpu.memory_space<vmem>>, %arg2: memref<1x128xf32, #tpu.memory_space<vmem>>, %arg3: memref<1x128xf32, #tpu.memory_space<vmem>>, %arg4: memref<9x128x128xf32, #tpu.memory_space<vmem>>, %arg5: memref<1x16x16x128xf32, #tpu.memory_space<vmem>>, %arg6: memref<1x2x128xf32, #tpu.memory_space<vmem>>, %arg7: memref<18x32x128xf32, #tpu.memory_space<vmem>>) attributes {dimension_semantics = [#tpu.dimension_semantics<parallel>], iteration_bounds = array<i64: 2>, scalar_prefetch = 0 : i64, scratch_operands = 1 : i64, tpu.core_type = #tpu.core_type<tc>, window_params = [{transform_indices = @transform_0, window_bounds = array<i64: 1, 16, 16, 128>}, {pipeline_mode = #tpu.pipeline_mode<synchronous>, transform_indices = @transform_1, window_bounds = array<i64: 1, 128>}, {pipeline_mode = #tpu.pipeline_mode<synchronous>, transform_indices = @transform_2, window_bounds = array<i64: 1, 128>}, {pipeline_mode = #tpu.pipeline_mode<synchronous>, transform_indices = @transform_3, window_bounds = array<i64: 9, 128, 128>}, {transform_indices = @transform_4, window_bounds = array<i64: 1, 16, 16, 128>}, {transform_indices = @transform_5, window_bounds = array<i64: 1, 2, 128>}]} {
    %c0 = arith.constant 0 : index
    %c0_0 = arith.constant 0 : index
    %c0_1 = arith.constant 0 : index
    %c0_2 = arith.constant 0 : index
    %0 = vector.load %arg1[%c0, %c0_0, %c0_1, %c0_2] : memref<1x16x16x128xf32, #tpu.memory_space<vmem>>, vector<1x16x16x128xf32>
    %1 = vector.shape_cast %0 : vector<1x16x16x128xf32> to vector<16x16x128xf32>
    %2 = vector.shape_cast %1 : vector<16x16x128xf32> to vector<256x128xf32>
    %c0_3 = arith.constant 0 : index
    %c0_4 = arith.constant 0 : index
    %3 = vector.load %arg2[%c0_3, %c0_4] : memref<1x128xf32, #tpu.memory_space<vmem>>, vector<1x128xf32>
    %4 = vector.broadcast %3 : vector<1x128xf32> to vector<256x128xf32>
    %5 = arith.mulf %2, %4 : vector<256x128xf32>
    %c0_5 = arith.constant 0 : index
    %c0_6 = arith.constant 0 : index
    %6 = vector.load %arg3[%c0_5, %c0_6] : memref<1x128xf32, #tpu.memory_space<vmem>>, vector<1x128xf32>
    %7 = vector.broadcast %6 : vector<1x128xf32> to vector<256x128xf32>
    %8 = arith.addf %5, %7 : vector<256x128xf32>
    %cst = arith.constant 0.000000e+00 : f32
    %9 = vector.broadcast %cst : f32 to vector<1x32x128xf32>
    %c0_7 = arith.constant 0 : index
    %c0_8 = arith.constant 0 : index
    %c0_9 = arith.constant 0 : index
    %10 = vector.load %arg7[%c0_7, %c0_8, %c0_9] : memref<18x32x128xf32, #tpu.memory_space<vmem>>, vector<1x32x128xf32>
    tpu.vector_store %arg7[%c0_7, %c0_8, %c0_9], %9 {strides = array<i32>} : memref<18x32x128xf32, #tpu.memory_space<vmem>>, vector<1x32x128xf32>,
    %cst_10 = arith.constant 0.000000e+00 : f32
    %11 = vector.broadcast %cst_10 : f32 to vector<1x32x128xf32>
    %c17 = arith.constant 17 : index
    %c0_11 = arith.constant 0 : index
    %c0_12 = arith.constant 0 : index
    %12 = vector.load %arg7[%c17, %c0_11, %c0_12] : memref<18x32x128xf32, #tpu.memory_space<vmem>>, vector<1x32x128xf32>
    tpu.vector_store %arg7[%c17, %c0_11, %c0_12], %11 {strides = array<i32>} : memref<18x32x128xf32, #tpu.memory_space<vmem>>, vector<1x32x128xf32>,
    %cst_13 = arith.constant 0.000000e+00 : f32
    %13 = vector.broadcast %cst_13 : f32 to vector<16x8x128xf32>
    %c1 = arith.constant 1 : index
    %c0_14 = arith.constant 0 : index
    %c0_15 = arith.constant 0 : index
    %14 = vector.load %arg7[%c1, %c0_14, %c0_15] : memref<18x32x128xf32, #tpu.memory_space<vmem>>, vector<16x8x128xf32>
    tpu.vector_store %arg7[%c1, %c0_14, %c0_15], %13 {strides = array<i32>} : memref<18x32x128xf32, #tpu.memory_space<vmem>>, vector<16x8x128xf32>,
    %cst_16 = arith.constant 0.000000e+00 : f32
    %15 = vector.broadcast %cst_16 : f32 to vector<16x8x128xf32>
    %c1_17 = arith.constant 1 : index
    %c24 = arith.constant 24 : index
    %c0_18 = arith.constant 0 : index
    %16 = vector.load %arg7[%c1_17, %c24, %c0_18] : memref<18x32x128xf32, #tpu.memory_space<vmem>>, vector<16x8x128xf32>
    tpu.vector_store %arg7[%c1_17, %c24, %c0_18], %15 {strides = array<i32>} : memref<18x32x128xf32, #tpu.memory_space<vmem>>, vector<16x8x128xf32>,
    %17 = vector.shape_cast %8 : vector<256x128xf32> to vector<16x16x128xf32>
    %c1_19 = arith.constant 1 : index
    %c8 = arith.constant 8 : index
    %c0_20 = arith.constant 0 : index
    %18 = vector.load %arg7[%c1_19, %c8, %c0_20] : memref<18x32x128xf32, #tpu.memory_space<vmem>>, vector<16x16x128xf32>
    tpu.vector_store %arg7[%c1_19, %c8, %c0_20], %17 {strides = array<i32>} : memref<18x32x128xf32, #tpu.memory_space<vmem>>, vector<16x16x128xf32>,
    %cst_21 = arith.constant 0.000000e+00 : f32
    %19 = vector.broadcast %cst_21 : f32 to vector<256x128xf32>
    %c0_22 = arith.constant 0 : index
    %c7 = arith.constant 7 : index
    %c0_23 = arith.constant 0 : index
    %20 = vector.load %arg7[%c0_22, %c7, %c0_23] : memref<18x32x128xf32, #tpu.memory_space<vmem>>, vector<16x16x128xf32>
    %21 = vector.shape_cast %20 : vector<16x16x128xf32> to vector<256x128xf32>
    %c0_24 = arith.constant 0 : index
    %c0_25 = arith.constant 0 : index
    %c0_26 = arith.constant 0 : index
    %22 = vector.load %arg4[%c0_24, %c0_25, %c0_26] : memref<9x128x128xf32, #tpu.memory_space<vmem>>, vector<1x128x128xf32>
    %23 = vector.shape_cast %22 : vector<1x128x128xf32> to vector<128x128xf32>
    %cst_27 = arith.constant dense<0.000000e+00> : vector<256x128xf32>
    %24 = tpu.matmul %21, %23, %cst_27 {dimension_numbers = #tpu.dot_dimension_numbers<[1], [0], [0], [1], [0, 0, 1, 1], [], []>} : vector<256x128xf32>, vector<128x128xf32>, vector<256x128xf32> -> vector<256x128xf32>
    %25 = arith.addf %19, %24 : vector<256x128xf32>
    %c0_28 = arith.constant 0 : index
    %c8_29 = arith.constant 8 : index
    %c0_30 = arith.constant 0 : index
    %26 = vector.load %arg7[%c0_28, %c8_29, %c0_30] : memref<18x32x128xf32, #tpu.memory_space<vmem>>, vector<16x16x128xf32>
    %27 = vector.shape_cast %26 : vector<16x16x128xf32> to vector<256x128xf32>
    %c1_31 = arith.constant 1 : index
    %c0_32 = arith.constant 0 : index
    %c0_33 = arith.constant 0 : index
    %28 = vector.load %arg4[%c1_31, %c0_32, %c0_33] : memref<9x128x128xf32, #tpu.memory_space<vmem>>, vector<1x128x128xf32>
    %29 = vector.shape_cast %28 : vector<1x128x128xf32> to vector<128x128xf32>
    %cst_34 = arith.constant dense<0.000000e+00> : vector<256x128xf32>
    %30 = tpu.matmul %27, %29, %cst_34 {dimension_numbers = #tpu.dot_dimension_numbers<[1], [0], [0], [1], [0, 0, 1, 1], [], []>} : vector<256x128xf32>, vector<128x128xf32>, vector<256x128xf32> -> vector<256x128xf32>
    %31 = arith.addf %25, %30 : vector<256x128xf32>
    %c0_35 = arith.constant 0 : index
    %c9 = arith.constant 9 : index
    %c0_36 = arith.constant 0 : index
    %32 = vector.load %arg7[%c0_35, %c9, %c0_36] : memref<18x32x128xf32, #tpu.memory_space<vmem>>, vector<16x16x128xf32>
    %33 = vector.shape_cast %32 : vector<16x16x128xf32> to vector<256x128xf32>
    %c2 = arith.constant 2 : index
    %c0_37 = arith.constant 0 : index
    %c0_38 = arith.constant 0 : index
    %34 = vector.load %arg4[%c2, %c0_37, %c0_38] : memref<9x128x128xf32, #tpu.memory_space<vmem>>, vector<1x128x128xf32>
    %35 = vector.shape_cast %34 : vector<1x128x128xf32> to vector<128x128xf32>
    %cst_39 = arith.constant dense<0.000000e+00> : vector<256x128xf32>
    %36 = tpu.matmul %33, %35, %cst_39 {dimension_numbers = #tpu.dot_dimension_numbers<[1], [0], [0], [1], [0, 0, 1, 1], [], []>} : vector<256x128xf32>, vector<128x128xf32>, vector<256x128xf32> -> vector<256x128xf32>
    %37 = arith.addf %31, %36 : vector<256x128xf32>
    %c1_40 = arith.constant 1 : index
    %c7_41 = arith.constant 7 : index
    %c0_42 = arith.constant 0 : index
    %38 = vector.load %arg7[%c1_40, %c7_41, %c0_42] : memref<18x32x128xf32, #tpu.memory_space<vmem>>, vector<16x16x128xf32>
    %39 = vector.shape_cast %38 : vector<16x16x128xf32> to vector<256x128xf32>
    %c3 = arith.constant 3 : index
    %c0_43 = arith.constant 0 : index
    %c0_44 = arith.constant 0 : index
    %40 = vector.load %arg4[%c3, %c0_43, %c0_44] : memref<9x128x128xf32, #tpu.memory_space<vmem>>, vector<1x128x128xf32>
    %41 = vector.shape_cast %40 : vector<1x128x128xf32> to vector<128x128xf32>
    %cst_45 = arith.constant dense<0.000000e+00> : vector<256x128xf32>
    %42 = tpu.matmul %39, %41, %cst_45 {dimension_numbers = #tpu.dot_dimension_numbers<[1], [0], [0], [1], [0, 0, 1, 1], [], []>} : vector<256x128xf32>, vector<128x128xf32>, vector<256x128xf32> -> vector<256x128xf32>
    %43 = arith.addf %37, %42 : vector<256x128xf32>
    %c1_46 = arith.constant 1 : index
    %c8_47 = arith.constant 8 : index
    %c0_48 = arith.constant 0 : index
    %44 = vector.load %arg7[%c1_46, %c8_47, %c0_48] : memref<18x32x128xf32, #tpu.memory_space<vmem>>, vector<16x16x128xf32>
    %45 = vector.shape_cast %44 : vector<16x16x128xf32> to vector<256x128xf32>
    %c4 = arith.constant 4 : index
    %c0_49 = arith.constant 0 : index
    %c0_50 = arith.constant 0 : index
    %46 = vector.load %arg4[%c4, %c0_49, %c0_50] : memref<9x128x128xf32, #tpu.memory_space<vmem>>, vector<1x128x128xf32>
    %47 = vector.shape_cast %46 : vector<1x128x128xf32> to vector<128x128xf32>
    %cst_51 = arith.constant dense<0.000000e+00> : vector<256x128xf32>
    %48 = tpu.matmul %45, %47, %cst_51 {dimension_numbers = #tpu.dot_dimension_numbers<[1], [0], [0], [1], [0, 0, 1, 1], [], []>} : vector<256x128xf32>, vector<128x128xf32>, vector<256x128xf32> -> vector<256x128xf32>
    %49 = arith.addf %43, %48 : vector<256x128xf32>
    %c1_52 = arith.constant 1 : index
    %c9_53 = arith.constant 9 : index
    %c0_54 = arith.constant 0 : index
    %50 = vector.load %arg7[%c1_52, %c9_53, %c0_54] : memref<18x32x128xf32, #tpu.memory_space<vmem>>, vector<16x16x128xf32>
    %51 = vector.shape_cast %50 : vector<16x16x128xf32> to vector<256x128xf32>
    %c5 = arith.constant 5 : index
    %c0_55 = arith.constant 0 : index
    %c0_56 = arith.constant 0 : index
    %52 = vector.load %arg4[%c5, %c0_55, %c0_56] : memref<9x128x128xf32, #tpu.memory_space<vmem>>, vector<1x128x128xf32>
    %53 = vector.shape_cast %52 : vector<1x128x128xf32> to vector<128x128xf32>
    %cst_57 = arith.constant dense<0.000000e+00> : vector<256x128xf32>
    %54 = tpu.matmul %51, %53, %cst_57 {dimension_numbers = #tpu.dot_dimension_numbers<[1], [0], [0], [1], [0, 0, 1, 1], [], []>} : vector<256x128xf32>, vector<128x128xf32>, vector<256x128xf32> -> vector<256x128xf32>
    %55 = arith.addf %49, %54 : vector<256x128xf32>
    %c2_58 = arith.constant 2 : index
    %c7_59 = arith.constant 7 : index
    %c0_60 = arith.constant 0 : index
    %56 = vector.load %arg7[%c2_58, %c7_59, %c0_60] : memref<18x32x128xf32, #tpu.memory_space<vmem>>, vector<16x16x128xf32>
    %57 = vector.shape_cast %56 : vector<16x16x128xf32> to vector<256x128xf32>
    %c6 = arith.constant 6 : index
    %c0_61 = arith.constant 0 : index
    %c0_62 = arith.constant 0 : index
    %58 = vector.load %arg4[%c6, %c0_61, %c0_62] : memref<9x128x128xf32, #tpu.memory_space<vmem>>, vector<1x128x128xf32>
    %59 = vector.shape_cast %58 : vector<1x128x128xf32> to vector<128x128xf32>
    %cst_63 = arith.constant dense<0.000000e+00> : vector<256x128xf32>
    %60 = tpu.matmul %57, %59, %cst_63 {dimension_numbers = #tpu.dot_dimension_numbers<[1], [0], [0], [1], [0, 0, 1, 1], [], []>} : vector<256x128xf32>, vector<128x128xf32>, vector<256x128xf32> -> vector<256x128xf32>
    %61 = arith.addf %55, %60 : vector<256x128xf32>
    %c2_64 = arith.constant 2 : index
    %c8_65 = arith.constant 8 : index
    %c0_66 = arith.constant 0 : index
    %62 = vector.load %arg7[%c2_64, %c8_65, %c0_66] : memref<18x32x128xf32, #tpu.memory_space<vmem>>, vector<16x16x128xf32>
    %63 = vector.shape_cast %62 : vector<16x16x128xf32> to vector<256x128xf32>
    %c7_67 = arith.constant 7 : index
    %c0_68 = arith.constant 0 : index
    %c0_69 = arith.constant 0 : index
    %64 = vector.load %arg4[%c7_67, %c0_68, %c0_69] : memref<9x128x128xf32, #tpu.memory_space<vmem>>, vector<1x128x128xf32>
    %65 = vector.shape_cast %64 : vector<1x128x128xf32> to vector<128x128xf32>
    %cst_70 = arith.constant dense<0.000000e+00> : vector<256x128xf32>
    %66 = tpu.matmul %63, %65, %cst_70 {dimension_numbers = #tpu.dot_dimension_numbers<[1], [0], [0], [1], [0, 0, 1, 1], [], []>} : vector<256x128xf32>, vector<128x128xf32>, vector<256x128xf32> -> vector<256x128xf32>
    %67 = arith.addf %61, %66 : vector<256x128xf32>
    %c2_71 = arith.constant 2 : index
    %c9_72 = arith.constant 9 : index
    %c0_73 = arith.constant 0 : index
    %68 = vector.load %arg7[%c2_71, %c9_72, %c0_73] : memref<18x32x128xf32, #tpu.memory_space<vmem>>, vector<16x16x128xf32>
    %69 = vector.shape_cast %68 : vector<16x16x128xf32> to vector<256x128xf32>
    %c8_74 = arith.constant 8 : index
    %c0_75 = arith.constant 0 : index
    %c0_76 = arith.constant 0 : index
    %70 = vector.load %arg4[%c8_74, %c0_75, %c0_76] : memref<9x128x128xf32, #tpu.memory_space<vmem>>, vector<1x128x128xf32>
    %71 = vector.shape_cast %70 : vector<1x128x128xf32> to vector<128x128xf32>
    %cst_77 = arith.constant dense<0.000000e+00> : vector<256x128xf32>
    %72 = tpu.matmul %69, %71, %cst_77 {dimension_numbers = #tpu.dot_dimension_numbers<[1], [0], [0], [1], [0, 0, 1, 1], [], []>} : vector<256x128xf32>, vector<128x128xf32>, vector<256x128xf32> -> vector<256x128xf32>
    %73 = arith.addf %67, %72 : vector<256x128xf32>
    %74 = vector.shape_cast %73 : vector<256x128xf32> to vector<1x16x16x128xf32>
    %c0_78 = arith.constant 0 : index
    %c0_79 = arith.constant 0 : index
    %c0_80 = arith.constant 0 : index
    %c0_81 = arith.constant 0 : index
    %75 = vector.load %arg5[%c0_78, %c0_79, %c0_80, %c0_81] : memref<1x16x16x128xf32, #tpu.memory_space<vmem>>, vector<1x16x16x128xf32>
    tpu.vector_store %arg5[%c0_78, %c0_79, %c0_80, %c0_81], %74 {strides = array<i32>} : memref<1x16x16x128xf32, #tpu.memory_space<vmem>>, vector<1x16x16x128xf32>,
    %cst_82 = arith.constant dense<0.000000e+00> : vector<128xf32>
    %76 = vector.multi_reduction <add>, %73, %cst_82 [0] : vector<256x128xf32> to vector<128xf32>
    %77 = vector.shape_cast %76 : vector<128xf32> to vector<1x128xf32>
    %cst_83 = arith.constant 2.560000e+02 : f32
    %78 = vector.broadcast %cst_83 : f32 to vector<1x128xf32>
    %79 = arith.divf %77, %78 : vector<1x128xf32>
    %80 = vector.broadcast %79 : vector<1x128xf32> to vector<256x128xf32>
    %81 = arith.subf %73, %80 : vector<256x128xf32>
    %82 = arith.mulf %81, %81 : vector<256x128xf32>
    %cst_84 = arith.constant dense<0.000000e+00> : vector<128xf32>
    %83 = vector.multi_reduction <add>, %82, %cst_84 [0] : vector<256x128xf32> to vector<128xf32>
    %84 = vector.shape_cast %83 : vector<128xf32> to vector<1x128xf32>
    %85 = vector.shape_cast %79 : vector<1x128xf32> to vector<1x1x128xf32>
    %c0_85 = arith.constant 0 : index
    %c0_86 = arith.constant 0 : index
    %c0_87 = arith.constant 0 : index
    %86 = vector.load %arg6[%c0_85, %c0_86, %c0_87] : memref<1x2x128xf32, #tpu.memory_space<vmem>>, vector<1x1x128xf32>
    tpu.vector_store %arg6[%c0_85, %c0_86, %c0_87], %85 {strides = array<i32>} : memref<1x2x128xf32, #tpu.memory_space<vmem>>, vector<1x1x128xf32>,
    %87 = vector.shape_cast %84 : vector<1x128xf32> to vector<1x1x128xf32>
    %c0_88 = arith.constant 0 : index
    %c1_89 = arith.constant 1 : index
    %c0_90 = arith.constant 0 : index
    %88 = vector.load %arg6[%c0_88, %c1_89, %c0_90] : memref<1x2x128xf32, #tpu.memory_space<vmem>>, vector<1x1x128xf32>
    tpu.vector_store %arg6[%c0_88, %c1_89, %c0_90], %87 {strides = array<i32>} : memref<1x2x128xf32, #tpu.memory_space<vmem>>, vector<1x1x128xf32>,
    return
  }
  func.func @transform_0(%arg0: i32) -> (i32, i32, i32, i32) {
    %c0_i32 = arith.constant 0 : i32
    %c0_i32_0 = arith.constant 0 : i32
    %c0_i32_1 = arith.constant 0 : i32
    %c0_i32_2 = arith.constant 0 : i32
    return %arg0, %c0_i32, %c0_i32_0, %c0_i32_1 : i32, i32, i32, i32
  }
  func.func @transform_1(%arg0: i32) -> (i32, i32) {
    %c0_i32 = arith.constant 0 : i32
    %c0_i32_0 = arith.constant 0 : i32
    %c0_i32_1 = arith.constant 0 : i32
    return %c0_i32, %c0_i32_0 : i32, i32
  }
  func.func @transform_2(%arg0: i32) -> (i32, i32) {
    %c0_i32 = arith.constant 0 : i32
    %c0_i32_0 = arith.constant 0 : i32
    %c0_i32_1 = arith.constant 0 : i32
    return %c0_i32, %c0_i32_0 : i32, i32
  }
  func.func @transform_3(%arg0: i32) -> (i32, i32, i32) {
    %c0_i32 = arith.constant 0 : i32
    %c0_i32_0 = arith.constant 0 : i32
    %c0_i32_1 = arith.constant 0 : i32
    %c0_i32_2 = arith.constant 0 : i32
    return %c0_i32, %c0_i32_0, %c0_i32_1 : i32, i32, i32
  }
  func.func @transform_4(%arg0: i32) -> (i32, i32, i32, i32) {
    %c0_i32 = arith.constant 0 : i32
    %c0_i32_0 = arith.constant 0 : i32
    %c0_i32_1 = arith.constant 0 : i32
    %c0_i32_2 = arith.constant 0 : i32
    return %arg0, %c0_i32, %c0_i32_0, %c0_i32_1 : i32, i32, i32, i32
  }
  func.func @transform_5(%arg0: i32) -> (i32, i32, i32) {
    %c0_i32 = arith.constant 0 : i32
    %c0_i32_0 = arith.constant 0 : i32
    %c0_i32_1 = arith.constant 0 : i32
    return %arg0, %c0_i32, %c0_i32_0 : i32, i32, i32
  }
}

module attributes {stable_mosaic.version = 11 : i64} {
  func.func @_conv_bn_stats_kernel(%arg0: i32, %arg1: memref<1x16x16x128xf32, #tpu.memory_space<vmem>>, %arg2: memref<1x128xf32, #tpu.memory_space<vmem>>, %arg3: memref<1x128xf32, #tpu.memory_space<vmem>>, %arg4: memref<9x128x128xf32, #tpu.memory_space<vmem>>, %arg5: memref<1x16x16x128xf32, #tpu.memory_space<vmem>>, %arg6: memref<1x2x128xf32, #tpu.memory_space<vmem>>, %arg7: memref<18x32x128xf32, #tpu.memory_space<vmem>>) attributes {dimension_semantics = [#tpu.dimension_semantics<parallel>], iteration_bounds = array<i64: 2>, scalar_prefetch = 0 : i64, scratch_operands = 1 : i64, tpu.core_type = #tpu.core_type<tc>, window_params = [{transform_indices = @transform_0, window_bounds = array<i64: 1, 16, 16, 128>}, {pipeline_mode = #tpu.pipeline_mode<synchronous>, transform_indices = @transform_1, window_bounds = array<i64: 1, 128>}, {pipeline_mode = #tpu.pipeline_mode<synchronous>, transform_indices = @transform_2, window_bounds = array<i64: 1, 128>}, {pipeline_mode = #tpu.pipeline_mode<synchronous>, transform_indices = @transform_3, window_bounds = array<i64: 9, 128, 128>}, {transform_indices = @transform_4, window_bounds = array<i64: 1, 16, 16, 128>}, {transform_indices = @transform_5, window_bounds = array<i64: 1, 2, 128>}]} {
    %c0 = arith.constant 0 : index
    %c0_0 = arith.constant 0 : index
    %c0_1 = arith.constant 0 : index
    %c0_2 = arith.constant 0 : index
    %0 = vector.load %arg1[%c0, %c0_0, %c0_1, %c0_2] : memref<1x16x16x128xf32, #tpu.memory_space<vmem>>, vector<1x16x16x128xf32>
    %1 = vector.shape_cast %0 : vector<1x16x16x128xf32> to vector<16x16x128xf32>
    %2 = vector.shape_cast %1 : vector<16x16x128xf32> to vector<256x128xf32>
    %c0_3 = arith.constant 0 : index
    %c0_4 = arith.constant 0 : index
    %3 = vector.load %arg2[%c0_3, %c0_4] : memref<1x128xf32, #tpu.memory_space<vmem>>, vector<1x128xf32>
    %4 = vector.broadcast %3 : vector<1x128xf32> to vector<256x128xf32>
    %5 = arith.mulf %2, %4 : vector<256x128xf32>
    %c0_5 = arith.constant 0 : index
    %c0_6 = arith.constant 0 : index
    %6 = vector.load %arg3[%c0_5, %c0_6] : memref<1x128xf32, #tpu.memory_space<vmem>>, vector<1x128xf32>
    %7 = vector.broadcast %6 : vector<1x128xf32> to vector<256x128xf32>
    %8 = arith.addf %5, %7 : vector<256x128xf32>
    %cst = arith.constant 0.000000e+00 : f32
    %9 = vector.broadcast %cst : f32 to vector<256x128xf32>
    %10 = arith.cmpf ogt, %8, %9 : vector<256x128xf32>
    %cst_7 = arith.constant 2.000000e-01 : f32
    %11 = vector.broadcast %cst_7 : f32 to vector<256x128xf32>
    %12 = arith.mulf %11, %8 : vector<256x128xf32>
    %13 = arith.select %10, %8, %12 : vector<256x128xi1>, vector<256x128xf32>
    %cst_8 = arith.constant 0.000000e+00 : f32
    %14 = vector.broadcast %cst_8 : f32 to vector<1x32x128xf32>
    %c0_9 = arith.constant 0 : index
    %c0_10 = arith.constant 0 : index
    %c0_11 = arith.constant 0 : index
    %15 = vector.load %arg7[%c0_9, %c0_10, %c0_11] : memref<18x32x128xf32, #tpu.memory_space<vmem>>, vector<1x32x128xf32>
    tpu.vector_store %arg7[%c0_9, %c0_10, %c0_11], %14 {strides = array<i32>} : memref<18x32x128xf32, #tpu.memory_space<vmem>>, vector<1x32x128xf32>,
    %cst_12 = arith.constant 0.000000e+00 : f32
    %16 = vector.broadcast %cst_12 : f32 to vector<1x32x128xf32>
    %c17 = arith.constant 17 : index
    %c0_13 = arith.constant 0 : index
    %c0_14 = arith.constant 0 : index
    %17 = vector.load %arg7[%c17, %c0_13, %c0_14] : memref<18x32x128xf32, #tpu.memory_space<vmem>>, vector<1x32x128xf32>
    tpu.vector_store %arg7[%c17, %c0_13, %c0_14], %16 {strides = array<i32>} : memref<18x32x128xf32, #tpu.memory_space<vmem>>, vector<1x32x128xf32>,
    %cst_15 = arith.constant 0.000000e+00 : f32
    %18 = vector.broadcast %cst_15 : f32 to vector<16x8x128xf32>
    %c1 = arith.constant 1 : index
    %c0_16 = arith.constant 0 : index
    %c0_17 = arith.constant 0 : index
    %19 = vector.load %arg7[%c1, %c0_16, %c0_17] : memref<18x32x128xf32, #tpu.memory_space<vmem>>, vector<16x8x128xf32>
    tpu.vector_store %arg7[%c1, %c0_16, %c0_17], %18 {strides = array<i32>} : memref<18x32x128xf32, #tpu.memory_space<vmem>>, vector<16x8x128xf32>,
    %cst_18 = arith.constant 0.000000e+00 : f32
    %20 = vector.broadcast %cst_18 : f32 to vector<16x8x128xf32>
    %c1_19 = arith.constant 1 : index
    %c24 = arith.constant 24 : index
    %c0_20 = arith.constant 0 : index
    %21 = vector.load %arg7[%c1_19, %c24, %c0_20] : memref<18x32x128xf32, #tpu.memory_space<vmem>>, vector<16x8x128xf32>
    tpu.vector_store %arg7[%c1_19, %c24, %c0_20], %20 {strides = array<i32>} : memref<18x32x128xf32, #tpu.memory_space<vmem>>, vector<16x8x128xf32>,
    %22 = vector.shape_cast %13 : vector<256x128xf32> to vector<16x16x128xf32>
    %c1_21 = arith.constant 1 : index
    %c8 = arith.constant 8 : index
    %c0_22 = arith.constant 0 : index
    %23 = vector.load %arg7[%c1_21, %c8, %c0_22] : memref<18x32x128xf32, #tpu.memory_space<vmem>>, vector<16x16x128xf32>
    tpu.vector_store %arg7[%c1_21, %c8, %c0_22], %22 {strides = array<i32>} : memref<18x32x128xf32, #tpu.memory_space<vmem>>, vector<16x16x128xf32>,
    %cst_23 = arith.constant 0.000000e+00 : f32
    %24 = vector.broadcast %cst_23 : f32 to vector<256x128xf32>
    %c0_24 = arith.constant 0 : index
    %c7 = arith.constant 7 : index
    %c0_25 = arith.constant 0 : index
    %25 = vector.load %arg7[%c0_24, %c7, %c0_25] : memref<18x32x128xf32, #tpu.memory_space<vmem>>, vector<16x16x128xf32>
    %26 = vector.shape_cast %25 : vector<16x16x128xf32> to vector<256x128xf32>
    %c0_26 = arith.constant 0 : index
    %c0_27 = arith.constant 0 : index
    %c0_28 = arith.constant 0 : index
    %27 = vector.load %arg4[%c0_26, %c0_27, %c0_28] : memref<9x128x128xf32, #tpu.memory_space<vmem>>, vector<1x128x128xf32>
    %28 = vector.shape_cast %27 : vector<1x128x128xf32> to vector<128x128xf32>
    %cst_29 = arith.constant dense<0.000000e+00> : vector<256x128xf32>
    %29 = tpu.matmul %26, %28, %cst_29 {dimension_numbers = #tpu.dot_dimension_numbers<[1], [0], [0], [1], [0, 0, 1, 1], [], []>} : vector<256x128xf32>, vector<128x128xf32>, vector<256x128xf32> -> vector<256x128xf32>
    %30 = arith.addf %24, %29 : vector<256x128xf32>
    %c0_30 = arith.constant 0 : index
    %c8_31 = arith.constant 8 : index
    %c0_32 = arith.constant 0 : index
    %31 = vector.load %arg7[%c0_30, %c8_31, %c0_32] : memref<18x32x128xf32, #tpu.memory_space<vmem>>, vector<16x16x128xf32>
    %32 = vector.shape_cast %31 : vector<16x16x128xf32> to vector<256x128xf32>
    %c1_33 = arith.constant 1 : index
    %c0_34 = arith.constant 0 : index
    %c0_35 = arith.constant 0 : index
    %33 = vector.load %arg4[%c1_33, %c0_34, %c0_35] : memref<9x128x128xf32, #tpu.memory_space<vmem>>, vector<1x128x128xf32>
    %34 = vector.shape_cast %33 : vector<1x128x128xf32> to vector<128x128xf32>
    %cst_36 = arith.constant dense<0.000000e+00> : vector<256x128xf32>
    %35 = tpu.matmul %32, %34, %cst_36 {dimension_numbers = #tpu.dot_dimension_numbers<[1], [0], [0], [1], [0, 0, 1, 1], [], []>} : vector<256x128xf32>, vector<128x128xf32>, vector<256x128xf32> -> vector<256x128xf32>
    %36 = arith.addf %30, %35 : vector<256x128xf32>
    %c0_37 = arith.constant 0 : index
    %c9 = arith.constant 9 : index
    %c0_38 = arith.constant 0 : index
    %37 = vector.load %arg7[%c0_37, %c9, %c0_38] : memref<18x32x128xf32, #tpu.memory_space<vmem>>, vector<16x16x128xf32>
    %38 = vector.shape_cast %37 : vector<16x16x128xf32> to vector<256x128xf32>
    %c2 = arith.constant 2 : index
    %c0_39 = arith.constant 0 : index
    %c0_40 = arith.constant 0 : index
    %39 = vector.load %arg4[%c2, %c0_39, %c0_40] : memref<9x128x128xf32, #tpu.memory_space<vmem>>, vector<1x128x128xf32>
    %40 = vector.shape_cast %39 : vector<1x128x128xf32> to vector<128x128xf32>
    %cst_41 = arith.constant dense<0.000000e+00> : vector<256x128xf32>
    %41 = tpu.matmul %38, %40, %cst_41 {dimension_numbers = #tpu.dot_dimension_numbers<[1], [0], [0], [1], [0, 0, 1, 1], [], []>} : vector<256x128xf32>, vector<128x128xf32>, vector<256x128xf32> -> vector<256x128xf32>
    %42 = arith.addf %36, %41 : vector<256x128xf32>
    %c1_42 = arith.constant 1 : index
    %c7_43 = arith.constant 7 : index
    %c0_44 = arith.constant 0 : index
    %43 = vector.load %arg7[%c1_42, %c7_43, %c0_44] : memref<18x32x128xf32, #tpu.memory_space<vmem>>, vector<16x16x128xf32>
    %44 = vector.shape_cast %43 : vector<16x16x128xf32> to vector<256x128xf32>
    %c3 = arith.constant 3 : index
    %c0_45 = arith.constant 0 : index
    %c0_46 = arith.constant 0 : index
    %45 = vector.load %arg4[%c3, %c0_45, %c0_46] : memref<9x128x128xf32, #tpu.memory_space<vmem>>, vector<1x128x128xf32>
    %46 = vector.shape_cast %45 : vector<1x128x128xf32> to vector<128x128xf32>
    %cst_47 = arith.constant dense<0.000000e+00> : vector<256x128xf32>
    %47 = tpu.matmul %44, %46, %cst_47 {dimension_numbers = #tpu.dot_dimension_numbers<[1], [0], [0], [1], [0, 0, 1, 1], [], []>} : vector<256x128xf32>, vector<128x128xf32>, vector<256x128xf32> -> vector<256x128xf32>
    %48 = arith.addf %42, %47 : vector<256x128xf32>
    %c1_48 = arith.constant 1 : index
    %c8_49 = arith.constant 8 : index
    %c0_50 = arith.constant 0 : index
    %49 = vector.load %arg7[%c1_48, %c8_49, %c0_50] : memref<18x32x128xf32, #tpu.memory_space<vmem>>, vector<16x16x128xf32>
    %50 = vector.shape_cast %49 : vector<16x16x128xf32> to vector<256x128xf32>
    %c4 = arith.constant 4 : index
    %c0_51 = arith.constant 0 : index
    %c0_52 = arith.constant 0 : index
    %51 = vector.load %arg4[%c4, %c0_51, %c0_52] : memref<9x128x128xf32, #tpu.memory_space<vmem>>, vector<1x128x128xf32>
    %52 = vector.shape_cast %51 : vector<1x128x128xf32> to vector<128x128xf32>
    %cst_53 = arith.constant dense<0.000000e+00> : vector<256x128xf32>
    %53 = tpu.matmul %50, %52, %cst_53 {dimension_numbers = #tpu.dot_dimension_numbers<[1], [0], [0], [1], [0, 0, 1, 1], [], []>} : vector<256x128xf32>, vector<128x128xf32>, vector<256x128xf32> -> vector<256x128xf32>
    %54 = arith.addf %48, %53 : vector<256x128xf32>
    %c1_54 = arith.constant 1 : index
    %c9_55 = arith.constant 9 : index
    %c0_56 = arith.constant 0 : index
    %55 = vector.load %arg7[%c1_54, %c9_55, %c0_56] : memref<18x32x128xf32, #tpu.memory_space<vmem>>, vector<16x16x128xf32>
    %56 = vector.shape_cast %55 : vector<16x16x128xf32> to vector<256x128xf32>
    %c5 = arith.constant 5 : index
    %c0_57 = arith.constant 0 : index
    %c0_58 = arith.constant 0 : index
    %57 = vector.load %arg4[%c5, %c0_57, %c0_58] : memref<9x128x128xf32, #tpu.memory_space<vmem>>, vector<1x128x128xf32>
    %58 = vector.shape_cast %57 : vector<1x128x128xf32> to vector<128x128xf32>
    %cst_59 = arith.constant dense<0.000000e+00> : vector<256x128xf32>
    %59 = tpu.matmul %56, %58, %cst_59 {dimension_numbers = #tpu.dot_dimension_numbers<[1], [0], [0], [1], [0, 0, 1, 1], [], []>} : vector<256x128xf32>, vector<128x128xf32>, vector<256x128xf32> -> vector<256x128xf32>
    %60 = arith.addf %54, %59 : vector<256x128xf32>
    %c2_60 = arith.constant 2 : index
    %c7_61 = arith.constant 7 : index
    %c0_62 = arith.constant 0 : index
    %61 = vector.load %arg7[%c2_60, %c7_61, %c0_62] : memref<18x32x128xf32, #tpu.memory_space<vmem>>, vector<16x16x128xf32>
    %62 = vector.shape_cast %61 : vector<16x16x128xf32> to vector<256x128xf32>
    %c6 = arith.constant 6 : index
    %c0_63 = arith.constant 0 : index
    %c0_64 = arith.constant 0 : index
    %63 = vector.load %arg4[%c6, %c0_63, %c0_64] : memref<9x128x128xf32, #tpu.memory_space<vmem>>, vector<1x128x128xf32>
    %64 = vector.shape_cast %63 : vector<1x128x128xf32> to vector<128x128xf32>
    %cst_65 = arith.constant dense<0.000000e+00> : vector<256x128xf32>
    %65 = tpu.matmul %62, %64, %cst_65 {dimension_numbers = #tpu.dot_dimension_numbers<[1], [0], [0], [1], [0, 0, 1, 1], [], []>} : vector<256x128xf32>, vector<128x128xf32>, vector<256x128xf32> -> vector<256x128xf32>
    %66 = arith.addf %60, %65 : vector<256x128xf32>
    %c2_66 = arith.constant 2 : index
    %c8_67 = arith.constant 8 : index
    %c0_68 = arith.constant 0 : index
    %67 = vector.load %arg7[%c2_66, %c8_67, %c0_68] : memref<18x32x128xf32, #tpu.memory_space<vmem>>, vector<16x16x128xf32>
    %68 = vector.shape_cast %67 : vector<16x16x128xf32> to vector<256x128xf32>
    %c7_69 = arith.constant 7 : index
    %c0_70 = arith.constant 0 : index
    %c0_71 = arith.constant 0 : index
    %69 = vector.load %arg4[%c7_69, %c0_70, %c0_71] : memref<9x128x128xf32, #tpu.memory_space<vmem>>, vector<1x128x128xf32>
    %70 = vector.shape_cast %69 : vector<1x128x128xf32> to vector<128x128xf32>
    %cst_72 = arith.constant dense<0.000000e+00> : vector<256x128xf32>
    %71 = tpu.matmul %68, %70, %cst_72 {dimension_numbers = #tpu.dot_dimension_numbers<[1], [0], [0], [1], [0, 0, 1, 1], [], []>} : vector<256x128xf32>, vector<128x128xf32>, vector<256x128xf32> -> vector<256x128xf32>
    %72 = arith.addf %66, %71 : vector<256x128xf32>
    %c2_73 = arith.constant 2 : index
    %c9_74 = arith.constant 9 : index
    %c0_75 = arith.constant 0 : index
    %73 = vector.load %arg7[%c2_73, %c9_74, %c0_75] : memref<18x32x128xf32, #tpu.memory_space<vmem>>, vector<16x16x128xf32>
    %74 = vector.shape_cast %73 : vector<16x16x128xf32> to vector<256x128xf32>
    %c8_76 = arith.constant 8 : index
    %c0_77 = arith.constant 0 : index
    %c0_78 = arith.constant 0 : index
    %75 = vector.load %arg4[%c8_76, %c0_77, %c0_78] : memref<9x128x128xf32, #tpu.memory_space<vmem>>, vector<1x128x128xf32>
    %76 = vector.shape_cast %75 : vector<1x128x128xf32> to vector<128x128xf32>
    %cst_79 = arith.constant dense<0.000000e+00> : vector<256x128xf32>
    %77 = tpu.matmul %74, %76, %cst_79 {dimension_numbers = #tpu.dot_dimension_numbers<[1], [0], [0], [1], [0, 0, 1, 1], [], []>} : vector<256x128xf32>, vector<128x128xf32>, vector<256x128xf32> -> vector<256x128xf32>
    %78 = arith.addf %72, %77 : vector<256x128xf32>
    %79 = vector.shape_cast %78 : vector<256x128xf32> to vector<1x16x16x128xf32>
    %c0_80 = arith.constant 0 : index
    %c0_81 = arith.constant 0 : index
    %c0_82 = arith.constant 0 : index
    %c0_83 = arith.constant 0 : index
    %80 = vector.load %arg5[%c0_80, %c0_81, %c0_82, %c0_83] : memref<1x16x16x128xf32, #tpu.memory_space<vmem>>, vector<1x16x16x128xf32>
    tpu.vector_store %arg5[%c0_80, %c0_81, %c0_82, %c0_83], %79 {strides = array<i32>} : memref<1x16x16x128xf32, #tpu.memory_space<vmem>>, vector<1x16x16x128xf32>,
    %cst_84 = arith.constant dense<0.000000e+00> : vector<128xf32>
    %81 = vector.multi_reduction <add>, %78, %cst_84 [0] : vector<256x128xf32> to vector<128xf32>
    %82 = vector.shape_cast %81 : vector<128xf32> to vector<1x128xf32>
    %cst_85 = arith.constant 2.560000e+02 : f32
    %83 = vector.broadcast %cst_85 : f32 to vector<1x128xf32>
    %84 = arith.divf %82, %83 : vector<1x128xf32>
    %85 = vector.broadcast %84 : vector<1x128xf32> to vector<256x128xf32>
    %86 = arith.subf %78, %85 : vector<256x128xf32>
    %87 = arith.mulf %86, %86 : vector<256x128xf32>
    %cst_86 = arith.constant dense<0.000000e+00> : vector<128xf32>
    %88 = vector.multi_reduction <add>, %87, %cst_86 [0] : vector<256x128xf32> to vector<128xf32>
    %89 = vector.shape_cast %88 : vector<128xf32> to vector<1x128xf32>
    %90 = vector.shape_cast %84 : vector<1x128xf32> to vector<1x1x128xf32>
    %c0_87 = arith.constant 0 : index
    %c0_88 = arith.constant 0 : index
    %c0_89 = arith.constant 0 : index
    %91 = vector.load %arg6[%c0_87, %c0_88, %c0_89] : memref<1x2x128xf32, #tpu.memory_space<vmem>>, vector<1x1x128xf32>
    tpu.vector_store %arg6[%c0_87, %c0_88, %c0_89], %90 {strides = array<i32>} : memref<1x2x128xf32, #tpu.memory_space<vmem>>, vector<1x1x128xf32>,
    %92 = vector.shape_cast %89 : vector<1x128xf32> to vector<1x1x128xf32>
    %c0_90 = arith.constant 0 : index
    %c1_91 = arith.constant 1 : index
    %c0_92 = arith.constant 0 : index
    %93 = vector.load %arg6[%c0_90, %c1_91, %c0_92] : memref<1x2x128xf32, #tpu.memory_space<vmem>>, vector<1x1x128xf32>
    tpu.vector_store %arg6[%c0_90, %c1_91, %c0_92], %92 {strides = array<i32>} : memref<1x2x128xf32, #tpu.memory_space<vmem>>, vector<1x1x128xf32>,
    return
  }
  func.func @transform_0(%arg0: i32) -> (i32, i32, i32, i32) {
    %c0_i32 = arith.constant 0 : i32
    %c0_i32_0 = arith.constant 0 : i32
    %c0_i32_1 = arith.constant 0 : i32
    %c0_i32_2 = arith.constant 0 : i32
    return %arg0, %c0_i32, %c0_i32_0, %c0_i32_1 : i32, i32, i32, i32
  }
  func.func @transform_1(%arg0: i32) -> (i32, i32) {
    %c0_i32 = arith.constant 0 : i32
    %c0_i32_0 = arith.constant 0 : i32
    %c0_i32_1 = arith.constant 0 : i32
    return %c0_i32, %c0_i32_0 : i32, i32
  }
  func.func @transform_2(%arg0: i32) -> (i32, i32) {
    %c0_i32 = arith.constant 0 : i32
    %c0_i32_0 = arith.constant 0 : i32
    %c0_i32_1 = arith.constant 0 : i32
    return %c0_i32, %c0_i32_0 : i32, i32
  }
  func.func @transform_3(%arg0: i32) -> (i32, i32, i32) {
    %c0_i32 = arith.constant 0 : i32
    %c0_i32_0 = arith.constant 0 : i32
    %c0_i32_1 = arith.constant 0 : i32
    %c0_i32_2 = arith.constant 0 : i32
    return %c0_i32, %c0_i32_0, %c0_i32_1 : i32, i32, i32
  }
  func.func @transform_4(%arg0: i32) -> (i32, i32, i32, i32) {
    %c0_i32 = arith.constant 0 : i32
    %c0_i32_0 = arith.constant 0 : i32
    %c0_i32_1 = arith.constant 0 : i32
    %c0_i32_2 = arith.constant 0 : i32
    return %arg0, %c0_i32, %c0_i32_0, %c0_i32_1 : i32, i32, i32, i32
  }
  func.func @transform_5(%arg0: i32) -> (i32, i32, i32) {
    %c0_i32 = arith.constant 0 : i32
    %c0_i32_0 = arith.constant 0 : i32
    %c0_i32_1 = arith.constant 0 : i32
    return %arg0, %c0_i32, %c0_i32_0 : i32, i32, i32
  }
}

module attributes {stable_mosaic.version = 11 : i64} {
  func.func @_bn_in_residual_kernel(%arg0: i32, %arg1: memref<1x16x16x128xf32, #tpu.memory_space<vmem>>, %arg2: memref<1x128xf32, #tpu.memory_space<vmem>>, %arg3: memref<1x128xf32, #tpu.memory_space<vmem>>, %arg4: memref<1x128xf32, #tpu.memory_space<vmem>>, %arg5: memref<1x128xf32, #tpu.memory_space<vmem>>, %arg6: memref<1x16x16x128xf32, #tpu.memory_space<vmem>>, %arg7: memref<1x16x16x128xf32, #tpu.memory_space<vmem>>) attributes {dimension_semantics = [#tpu.dimension_semantics<parallel>], iteration_bounds = array<i64: 2>, scalar_prefetch = 0 : i64, scratch_operands = 0 : i64, tpu.core_type = #tpu.core_type<tc>, window_params = [{transform_indices = @transform_0, window_bounds = array<i64: 1, 16, 16, 128>}, {pipeline_mode = #tpu.pipeline_mode<synchronous>, transform_indices = @transform_1, window_bounds = array<i64: 1, 128>}, {pipeline_mode = #tpu.pipeline_mode<synchronous>, transform_indices = @transform_2, window_bounds = array<i64: 1, 128>}, {pipeline_mode = #tpu.pipeline_mode<synchronous>, transform_indices = @transform_3, window_bounds = array<i64: 1, 128>}, {pipeline_mode = #tpu.pipeline_mode<synchronous>, transform_indices = @transform_4, window_bounds = array<i64: 1, 128>}, {transform_indices = @transform_5, window_bounds = array<i64: 1, 16, 16, 128>}, {transform_indices = @transform_6, window_bounds = array<i64: 1, 16, 16, 128>}]} {
    %c0 = arith.constant 0 : index
    %c0_0 = arith.constant 0 : index
    %c0_1 = arith.constant 0 : index
    %c0_2 = arith.constant 0 : index
    %0 = vector.load %arg1[%c0, %c0_0, %c0_1, %c0_2] : memref<1x16x16x128xf32, #tpu.memory_space<vmem>>, vector<1x16x16x128xf32>
    %1 = vector.shape_cast %0 : vector<1x16x16x128xf32> to vector<16x16x128xf32>
    %2 = vector.shape_cast %1 : vector<16x16x128xf32> to vector<256x128xf32>
    %c0_3 = arith.constant 0 : index
    %c0_4 = arith.constant 0 : index
    %3 = vector.load %arg2[%c0_3, %c0_4] : memref<1x128xf32, #tpu.memory_space<vmem>>, vector<1x128xf32>
    %4 = vector.broadcast %3 : vector<1x128xf32> to vector<256x128xf32>
    %5 = arith.mulf %2, %4 : vector<256x128xf32>
    %c0_5 = arith.constant 0 : index
    %c0_6 = arith.constant 0 : index
    %6 = vector.load %arg3[%c0_5, %c0_6] : memref<1x128xf32, #tpu.memory_space<vmem>>, vector<1x128xf32>
    %7 = vector.broadcast %6 : vector<1x128xf32> to vector<256x128xf32>
    %8 = arith.addf %5, %7 : vector<256x128xf32>
    %cst = arith.constant dense<0.000000e+00> : vector<128xf32>
    %9 = vector.multi_reduction <add>, %8, %cst [0] : vector<256x128xf32> to vector<128xf32>
    %10 = vector.shape_cast %9 : vector<128xf32> to vector<1x128xf32>
    %cst_7 = arith.constant 2.560000e+02 : f32
    %11 = vector.broadcast %cst_7 : f32 to vector<1x128xf32>
    %12 = arith.divf %10, %11 : vector<1x128xf32>
    %13 = vector.broadcast %12 : vector<1x128xf32> to vector<256x128xf32>
    %14 = arith.subf %8, %13 : vector<256x128xf32>
    %15 = arith.mulf %14, %14 : vector<256x128xf32>
    %cst_8 = arith.constant dense<0.000000e+00> : vector<128xf32>
    %16 = vector.multi_reduction <add>, %15, %cst_8 [0] : vector<256x128xf32> to vector<128xf32>
    %17 = vector.shape_cast %16 : vector<128xf32> to vector<1x128xf32>
    %cst_9 = arith.constant 2.560000e+02 : f32
    %18 = vector.broadcast %cst_9 : f32 to vector<1x128xf32>
    %19 = arith.divf %17, %18 : vector<1x128xf32>
    %cst_10 = arith.constant 9.99999974E-6 : f32
    %20 = vector.broadcast %cst_10 : f32 to vector<1x128xf32>
    %21 = arith.addf %19, %20 : vector<1x128xf32>
    %22 = math.rsqrt %21 : vector<1x128xf32>
    %23 = vector.broadcast %22 : vector<1x128xf32> to vector<256x128xf32>
    %24 = arith.mulf %14, %23 : vector<256x128xf32>
    %c0_11 = arith.constant 0 : index
    %c0_12 = arith.constant 0 : index
    %25 = vector.load %arg4[%c0_11, %c0_12] : memref<1x128xf32, #tpu.memory_space<vmem>>, vector<1x128xf32>
    %26 = vector.broadcast %25 : vector<1x128xf32> to vector<256x128xf32>
    %27 = arith.mulf %24, %26 : vector<256x128xf32>
    %c0_13 = arith.constant 0 : index
    %c0_14 = arith.constant 0 : index
    %28 = vector.load %arg5[%c0_13, %c0_14] : memref<1x128xf32, #tpu.memory_space<vmem>>, vector<1x128xf32>
    %29 = vector.broadcast %28 : vector<1x128xf32> to vector<256x128xf32>
    %30 = arith.addf %27, %29 : vector<256x128xf32>
    %31 = vector.shape_cast %30 : vector<256x128xf32> to vector<16x16x128xf32>
    %c0_15 = arith.constant 0 : index
    %c0_16 = arith.constant 0 : index
    %c0_17 = arith.constant 0 : index
    %c0_18 = arith.constant 0 : index
    %32 = vector.load %arg6[%c0_15, %c0_16, %c0_17, %c0_18] : memref<1x16x16x128xf32, #tpu.memory_space<vmem>>, vector<1x16x16x128xf32>
    %33 = vector.shape_cast %32 : vector<1x16x16x128xf32> to vector<16x16x128xf32>
    %34 = arith.addf %31, %33 : vector<16x16x128xf32>
    %35 = vector.shape_cast %34 : vector<16x16x128xf32> to vector<1x16x16x128xf32>
    %c0_19 = arith.constant 0 : index
    %c0_20 = arith.constant 0 : index
    %c0_21 = arith.constant 0 : index
    %c0_22 = arith.constant 0 : index
    %36 = vector.load %arg7[%c0_19, %c0_20, %c0_21, %c0_22] : memref<1x16x16x128xf32, #tpu.memory_space<vmem>>, vector<1x16x16x128xf32>
    tpu.vector_store %arg7[%c0_19, %c0_20, %c0_21, %c0_22], %35 {strides = array<i32>} : memref<1x16x16x128xf32, #tpu.memory_space<vmem>>, vector<1x16x16x128xf32>,
    return
  }
  func.func @transform_0(%arg0: i32) -> (i32, i32, i32, i32) {
    %c0_i32 = arith.constant 0 : i32
    %c0_i32_0 = arith.constant 0 : i32
    %c0_i32_1 = arith.constant 0 : i32
    %c0_i32_2 = arith.constant 0 : i32
    return %arg0, %c0_i32, %c0_i32_0, %c0_i32_1 : i32, i32, i32, i32
  }
  func.func @transform_1(%arg0: i32) -> (i32, i32) {
    %c0_i32 = arith.constant 0 : i32
    %c0_i32_0 = arith.constant 0 : i32
    %c0_i32_1 = arith.constant 0 : i32
    return %c0_i32, %c0_i32_0 : i32, i32
  }
  func.func @transform_2(%arg0: i32) -> (i32, i32) {
    %c0_i32 = arith.constant 0 : i32
    %c0_i32_0 = arith.constant 0 : i32
    %c0_i32_1 = arith.constant 0 : i32
    return %c0_i32, %c0_i32_0 : i32, i32
  }
  func.func @transform_3(%arg0: i32) -> (i32, i32) {
    %c0_i32 = arith.constant 0 : i32
    %c0_i32_0 = arith.constant 0 : i32
    %c0_i32_1 = arith.constant 0 : i32
    return %c0_i32, %c0_i32_0 : i32, i32
  }
  func.func @transform_4(%arg0: i32) -> (i32, i32) {
    %c0_i32 = arith.constant 0 : i32
    %c0_i32_0 = arith.constant 0 : i32
    %c0_i32_1 = arith.constant 0 : i32
    return %c0_i32, %c0_i32_0 : i32, i32
  }
  func.func @transform_5(%arg0: i32) -> (i32, i32, i32, i32) {
    %c0_i32 = arith.constant 0 : i32
    %c0_i32_0 = arith.constant 0 : i32
    %c0_i32_1 = arith.constant 0 : i32
    %c0_i32_2 = arith.constant 0 : i32
    return %arg0, %c0_i32, %c0_i32_0, %c0_i32_1 : i32, i32, i32, i32
  }
  func.func @transform_6(%arg0: i32) -> (i32, i32, i32, i32) {
    %c0_i32 = arith.constant 0 : i32
    %c0_i32_0 = arith.constant 0 : i32
    %c0_i32_1 = arith.constant 0 : i32
    %c0_i32_2 = arith.constant 0 : i32
    return %arg0, %c0_i32, %c0_i32_0, %c0_i32_1 : i32, i32, i32, i32
  }
}

</mosaic_0001>

<bundles_post_ra>
// kernel: basic_block_forward.5
= control target key start
LH: loop header
LB: loop body
LE: loop exit
PB: predicated region body
PF: predicated region fallthrough
CT: control target
= control target key end

     0   :  { %s878_s21 = smov 0   ;;  %s1513_s0 = inlined_call_operand.vmem [shape: f32[2,16,16,128], index: 0, kind: input, shape index: {}]   ;;  %s1514_s1 = inlined_call_operand.vmem [shape: f32[1,128], index: 1, kind: input, shape index: {}]   ;;  %s1515_s2 = inlined_call_operand.vmem [shape: f32[1,128], index: 2, kind: input, shape index: {}]   ;;  %s1516_s3 = inlined_call_operand.vmem [shape: f32[1,128], index: 3, kind: input, shape index: {}]   ;;  %s1517_s4 = inlined_call_operand.vmem [shape: f32[1,128], index: 4, kind: input, shape index: {}]   ;;  %s1518_s5 = inlined_call_operand.vmem [shape: f32[2,16,16,128], index: 5, kind: input, shape index: {}]   ;;  %s1519_s6 = inlined_call_operand.vmem [shape: f32[2,16,16,128], index: 6, kind: output, shape index: {}]  }
   0x1 LB: > { %s801_s22 = sadd.s32 4294967295, %s840_s21   ;;  %p805_p0 = scmp.ge.s32.totalorder %s840_s21, 1  ;;  %s840_s21 = sphi %s878_s21, %s16_s21  }
   0x2   : > { %p222_p1 = scmp.lt.s32.totalorder %s840_s21, 3 }
   0x4   : > { %p223_p2 = pnand %p805_p0, %p222_p1 }
   0x5   : > { %p257_p3 = scmp.lt.s32.totalorder (!%p223_p2), %s801_s22, 1 }
   0x6   : > { %226 = sbr.rel (%p223_p2) target bundleno = 235 (0xeb), region = 44 }
   0xb   : > { %s1521_s22 = smov (!%p257_p3, %s801_s22), 1  ;;  %v897_v0 = vld [vmem:[%s1514_s1] ss:$0 sm:$0xff] }
   0xc   : > { %s886_s23 = sshll.u32 %s1521_s22, 8  ;;  %v907_v6 = vld [vmem:[%s1515_s2] ss:$0 sm:$0xff] }
   0xd   : > { %s892_s26 = scalar_lea.vmem %s1513_s0, %s886_s23  ;;  %s1303_s11 = scalar_lea.vmem %s1518_s5, %s886_s23 }
   0xe   : > { %v272_v1 = vld [vmem:[%s892_s26] sm:$0xff]  ;;  %v273_v2 = vld [vmem:[%s892_s26 + $0x8] sm:$0xff]  ;;  %v274_v3 = vld [vmem:[%s892_s26 + $0x10] sm:$0xff]  ;;  %s1352_s16 = scalar_lea.vmem %s1519_s6, %s886_s23 }
   0xf   : > { %v308_v4 = vmul.f32 %v897_v0, %v272_v1  ;;  %v309_v5 = vmul.f32 %v897_v0, %v273_v2  ;;  %v275_v7 = vld [vmem:[%s892_s26 + $0x18] sm:$0xff]  ;;  %v310_v8 = vmul.f32 %v897_v0, %v274_v3  ;;  %v276_v9 = vld [vmem:[%s892_s26 + $0x20] sm:$0xff]  ;;  %v277_v13 = vld [vmem:[%s892_s26 + $0x28] sm:$0xff] }
  0x10   : > { %v311_v10 = vmul.f32 %v897_v0, %v275_v7  ;;  %v312_v14 = vmul.f32 %v897_v0, %v276_v9  ;;  %v278_v16 = vld [vmem:[%s892_s26 + $0x30] sm:$0xff]  ;;  %v313_v17 = vmul.f32 %v897_v0, %v277_v13  ;;  %v279_v20 = vld [vmem:[%s892_s26 + $0x38] sm:$0xff]  ;;  %v280_v24 = vld [vmem:[%s892_s26 + $0x40] sm:$0xff] }
  0x11   : > { %v914_v11 = vadd.f32 %v907_v6, %v308_v4  ;;  %v917_v12 = vadd.f32 %v907_v6, %v309_v5  ;;  %v922_v15 = vadd.f32 %v907_v6, %v310_v8  ;;  %v314_v21 = vmul.f32 %v897_v0, %v278_v16  ;;  %v281_v28 = vld [vmem:[%s892_s26 + $0x48] sm:$0xff]  ;;  %v282_v32 = vld [vmem:[%s892_s26 + $0x50] sm:$0xff]  ;;  %v283_v36 = vld [vmem:[%s892_s26 + $0x58] sm:$0xff] }
  0x12   : > { %v927_v18 = vadd.f32 %v907_v6, %v311_v10  ;;  %v934_v22 = vadd.f32 %v907_v6, %v312_v14  ;;  %v315_v25 = vmul.f32 %v897_v0, %v279_v20  ;;  %v940_v26 = vadd.f32 %v907_v6, %v313_v17  ;;  %v284_v40 = vld [vmem:[%s892_s26 + $0x60] sm:$0xff]  ;;  %v285_v44 = vld [vmem:[%s892_s26 + $0x68] sm:$0xff]  ;;  %v286_v48 = vld [vmem:[%s892_s26 + $0x70] sm:$0xff] }
  0x13   : > { %v376_v19 = vadd.f32 %v917_v12, %v914_v11  ;;  %v316_v29 = vmul.f32 %v897_v0, %v280_v24  ;;  %v946_v30 = vadd.f32 %v907_v6, %v314_v21  ;;  %v317_v33 = vmul.f32 %v897_v0, %v281_v28  ;;  %v287_v52 = vld [vmem:[%s892_s26 + $0x78] sm:$0xff]  ;;  %v288_v56 = vld [vmem:[%s892_s26 + $0x80] sm:$0xff]  ;;  %v289_v60 = vld [vmem:[%s892_s26 + $0x88] sm:$0xff] }
  0x14   : > { %v952_v34 = vadd.f32 %v907_v6, %v315_v25  ;;  %v318_v37 = vmul.f32 %v897_v0, %v282_v32  ;;  %v319_v41 = vmul.f32 %v897_v0, %v283_v36  ;;  %v320_v45 = vmul.f32 %v897_v0, %v284_v40  ;;  %v290_v1 = vld [vmem:[%s892_s26 + $0x90] sm:$0xff]  ;;  %v291_v5 = vld [vmem:[%s892_s26 + $0x98] sm:$0xff]  ;;  %v292_v10 = vld [vmem:[%s892_s26 + $0xa0] sm:$0xff] }
  0x15   : > { %v377_v23 = vadd.f32 %v376_v19, %v922_v15  ;;  %v958_v38 = vadd.f32 %v907_v6, %v316_v29  ;;  %v964_v42 = vadd.f32 %v907_v6, %v317_v33  ;;  %v321_v49 = vmul.f32 %v897_v0, %v285_v44  ;;  %v293_v17 = vld [vmem:[%s892_s26 + $0xa8] sm:$0xff]  ;;  %v295_v28 = vld [vmem:[%s892_s26 + $0xb8] sm:$0xff]  ;;  %v296_v33 = vld [vmem:[%s892_s26 + $0xc0] sm:$0xff] }
  0x16   : > { %v970_v46 = vadd.f32 %v907_v6, %v318_v37  ;;  %v976_v50 = vadd.f32 %v907_v6, %v319_v41  ;;  %v322_v53 = vmul.f32 %v897_v0, %v286_v48  ;;  %v982_v54 = vadd.f32 %v907_v6, %v320_v45  ;;  %v298_v44 = vld [vmem:[%s892_s26 + $0xd0] sm:$0xff] }
  0x17   : > { %v378_v27 = vadd.f32 %v377_v23, %v927_v18  ;;  %v323_v57 = vmul.f32 %v897_v0, %v287_v52  ;;  %v988_v58 = vadd.f32 %v907_v6, %v321_v49  ;;  %v324_v61 = vmul.f32 %v897_v0, %v288_v56  ;;  %v294_v23 = vld [vmem:[%s892_s26 + $0xb0] sm:$0xff]  ;;  %v299_v49 = vld [vmem:[%s892_s26 + $0xd8] sm:$0xff] }
  0x18   : > { %v994_v62 = vadd.f32 %v907_v6, %v322_v53  ;;  %v325_v2 = vmul.f32 %v897_v0, %v289_v60  ;;  %v326_v7 = vmul.f32 %v897_v0, %v290_v1  ;;  %v327_v13 = vmul.f32 %v897_v0, %v291_v5  ;;  %v301_v60 = vld [vmem:[%s892_s26 + $0xe8] sm:$0xff] }
  0x19   : > { %v379_v31 = vadd.f32 %v378_v27, %v934_v22  ;;  %v1000_v3 = vadd.f32 %v907_v6, %v323_v57  ;;  %v1006_v8 = vadd.f32 %v907_v6, %v324_v61  ;;  %v328_v19 = vmul.f32 %v897_v0, %v292_v10 }
  0x1a   : > { %v1012_v14 = vadd.f32 %v907_v6, %v325_v2  ;;  %v1018_v20 = vadd.f32 %v907_v6, %v326_v7  ;;  %v329_v24 = vmul.f32 %v897_v0, %v293_v17  ;;  %v1024_v25 = vadd.f32 %v907_v6, %v327_v13  ;;  %v302_v2 = vld [vmem:[%s892_s26 + $0xf0] sm:$0xff] }
  0x1b   : > { %v380_v35 = vadd.f32 %v379_v31, %v940_v26  ;;  %v330_v29 = vmul.f32 %v897_v0, %v294_v23  ;;  %v1030_v31 = vadd.f32 %v907_v6, %v328_v19  ;;  %v332_v40 = vmul.f32 %v897_v0, %v296_v33 }
  0x1c   : > { %v1036_v36 = vadd.f32 %v907_v6, %v329_v24  ;;  %v335_v56 = vmul.f32 %v897_v0, %v299_v49  ;;  %v338_v10 = vmul.f32 %v897_v0, %v302_v2  ;;  %v842_v23 = vmov 256.0  }
  0x1d   : > { %v381_v39 = vadd.f32 %v380_v35, %v946_v30  ;;  %v331_v35 = vmul.f32 %v897_v0, %v295_v28  ;;  %v1042_v41 = vadd.f32 %v907_v6, %v330_v29  ;;  %v1054_v52 = vadd.f32 %v907_v6, %v332_v40 }
  0x1e   : > { %v1072_v5 = vadd.f32 %v907_v6, %v335_v56  ;;  %830 = vrcp.f32 %v842_v23  ;;  %v1087_v24 = vadd.f32 %v907_v6, %v338_v10 }
  0x1f   : > { %v382_v43 = vadd.f32 %v381_v39, %v952_v34  ;;  %v297_v39 = vld [vmem:[%s892_s26 + $0xc8] sm:$0xff] }
  0x20   : > { %v333_v45 = vmul.f32 %v897_v0, %v297_v39 }
  0x21   : > { %v383_v47 = vadd.f32 %v382_v43, %v958_v38 }
  0x22   : > { %v1060_v57 = vadd.f32 %v907_v6, %v333_v45 }
  0x23   : > { %v384_v51 = vadd.f32 %v383_v47, %v964_v42  ;;  %v1048_v47 = vadd.f32 %v907_v6, %v331_v35 }
  0x25   : > { %v385_v55 = vadd.f32 %v384_v51, %v970_v46  ;;  %v334_v51 = vmul.f32 %v897_v0, %v298_v44 }
  0x27   : > { %v386_v59 = vadd.f32 %v385_v55, %v976_v50  ;;  %v300_v55 = vld [vmem:[%s892_s26 + $0xe0] sm:$0xff] }
  0x28   : > { %v336_v61 = vmul.f32 %v897_v0, %v300_v55 }
  0x29   : > { %v387_v63 = vadd.f32 %v386_v59, %v982_v54 }
  0x2a   : > { %v1078_v13 = vadd.f32 %v907_v6, %v336_v61 }
  0x2b   : > { %v388_v4 = vadd.f32 %v387_v63, %v988_v58  ;;  %v1066_v63 = vadd.f32 %v907_v6, %v334_v51 }
  0x2d   : > { %v389_v9 = vadd.f32 %v388_v4, %v994_v62  ;;  %v337_v4 = vmul.f32 %v897_v0, %v301_v60 }
  0x2f   : > { %v390_v16 = vadd.f32 %v389_v9, %v1000_v3  ;;  %v303_v9 = vld [vmem:[%s892_s26 + $0xf8] sm:$0xff]  ;;  %v1083_v19 = vadd.f32 %v907_v6, %v337_v4 }
  0x30   : > { %v339_v17 = vmul.f32 %v897_v0, %v303_v9 }
  0x31   : > { %v391_v21 = vadd.f32 %v390_v16, %v1006_v8 }
  0x32   : > { %v1091_v28 = vadd.f32 %v907_v6, %v339_v17 }
  0x33   : > { %v392_v27 = vadd.f32 %v391_v21, %v1012_v14 }
  0x35   : > { %v393_v32 = vadd.f32 %v392_v27, %v1018_v20 }
  0x37   : > { %v394_v37 = vadd.f32 %v393_v32, %v1024_v25  ;;  %v831_v32 = vpop.eup %830 }
  0x38   : > { %v414_v35 = vmul.f32 256.0, %v831_v32  ;;  %vm418_vm0 = vweird.f32 %v831_v32 }
  0x39   : > { %v395_v43 = vadd.f32 %v394_v37, %v1030_v31 }
  0x3a   : > { %v415_v40 = vsub.f32 1.0, %v414_v35 }
  0x3b   : > { %v396_v48 = vadd.f32 %v395_v43, %v1036_v36 }
  0x3c   : > { %v416_v45 = vmul.f32 %v831_v32, %v415_v40 }
  0x3d   : > { %v397_v53 = vadd.f32 %v396_v48, %v1042_v41 }
  0x3e   : > { %v417_v49 = vadd.f32 %v831_v32, %v416_v45 }
  0x3f   : > { %v398_v59 = vadd.f32 %v397_v53, %v1048_v47 }
  0x40   : > { %v1096_v6 = vsel %vm418_vm0, %v831_v32, %v417_v49 }
  0x41   : > { %v399_v1 = vadd.f32 %v398_v59, %v1054_v52 }
  0x43   : > { %v400_v7 = vadd.f32 %v399_v1, %v1060_v57 }
  0x45   : > { %v401_v16 = vadd.f32 %v400_v7, %v1066_v63 }
  0x47   : > { %v402_v21 = vadd.f32 %v401_v16, %v1072_v5 }
  0x49   : > { %v403_v27 = vadd.f32 %v402_v21, %v1078_v13 }
  0x4b   : > { %v404_v29 = vadd.f32 %v403_v27, %v1083_v19 }
  0x4d   : > { %v405_v0 = vadd.f32 %v404_v29, %v1087_v24 }
  0x4f   : > { %v406_v33 = vadd.f32 %v405_v0, %v1091_v28 }
  0x51   : > { %v407_v37 = vrot.slane %v406_v33, 4 }
  0x53   : > { %v408_v39 = vadd.f32 %v407_v37, %v406_v33 }
  0x55   : > { %v409_v43 = vrot.slane %v408_v39, 2 }
  0x57   : > { %v410_v44 = vadd.f32 %v409_v43, %v408_v39 }
  0x59   : > { %v411_v48 = vrot.slane %v410_v44, 1 }
  0x5b   : > { %v412_v51 = vadd.f32 %v411_v48, %v410_v44 }
  0x5d   : > { %v1099_v53 = vmul.f32 %v1096_v6, %v412_v51 }
  0x5f   : > { %v1103_v55 = vsub.f32 %v914_v11, %v1099_v53  ;;  %v1107_v56 = vsub.f32 %v917_v12, %v1099_v53  ;;  %v1111_v59 = vsub.f32 %v922_v15, %v1099_v53  ;;  %v1115_v60 = vsub.f32 %v927_v18, %v1099_v53 }
  0x60   : > { %v1123_v11 = vsub.f32 %v934_v22, %v1099_v53  ;;  %v1129_v15 = vsub.f32 %v940_v26, %v1099_v53  ;;  %v1135_v4 = vsub.f32 %v946_v30, %v1099_v53  ;;  %v1141_v9 = vsub.f32 %v952_v34, %v1099_v53 }
  0x61   : > { %v453_v61 = vmul.f32 %v1103_v55, %v1103_v55  ;;  %v454_v1 = vmul.f32 %v1107_v56, %v1107_v56  ;;  %v455_v12 = vmul.f32 %v1111_v59, %v1111_v59  ;;  %v456_v18 = vmul.f32 %v1115_v60, %v1115_v60 }
  0x62   : > { %v457_v7 = vmul.f32 %v1123_v11, %v1123_v11  ;;  %v458_v26 = vmul.f32 %v1129_v15, %v1129_v15  ;;  %v1147_v16 = vsub.f32 %v958_v38, %v1099_v53  ;;  %v459_v30 = vmul.f32 %v1135_v4, %v1135_v4 }
  0x63   : > { %v485_v2 = vadd.f32 %v454_v1, %v453_v61  ;;  %v1153_v21 = vsub.f32 %v964_v42, %v1099_v53  ;;  %v460_v34 = vmul.f32 %v1141_v9, %v1141_v9  ;;  %v1159_v27 = vsub.f32 %v970_v46, %v1099_v53 }
  0x64   : > { %v461_v38 = vmul.f32 %v1147_v16, %v1147_v16  ;;  %v1165_v32 = vsub.f32 %v976_v50, %v1099_v53  ;;  %v1171_v33 = vsub.f32 %v982_v54, %v1099_v53  ;;  %v1177_v37 = vsub.f32 %v988_v58, %v1099_v53 }
  0x65   : > { %v486_v22 = vadd.f32 %v485_v2, %v455_v12  ;;  %v462_v42 = vmul.f32 %v1153_v21, %v1153_v21  ;;  %v463_v46 = vmul.f32 %v1159_v27, %v1159_v27  ;;  %v1183_v40 = vsub.f32 %v994_v62, %v1099_v53 }
  0x66   : > { %v464_v50 = vmul.f32 %v1165_v32, %v1165_v32  ;;  %v465_v54 = vmul.f32 %v1171_v33, %v1171_v33  ;;  %v1189_v44 = vsub.f32 %v1000_v3, %v1099_v53  ;;  %v466_v58 = vmul.f32 %v1177_v37, %v1177_v37 }
  0x67   : > { %v487_v10 = vadd.f32 %v486_v22, %v456_v18  ;;  %v1195_v48 = vsub.f32 %v1006_v8, %v1099_v53  ;;  %v467_v62 = vmul.f32 %v1183_v40, %v1183_v40  ;;  %v1201_v51 = vsub.f32 %v1012_v14, %v1099_v53 }
  0x68   : > { %v468_v3 = vmul.f32 %v1189_v44, %v1189_v44  ;;  %v1207_v1 = vsub.f32 %v1018_v20, %v1099_v53  ;;  %v1213_v18 = vsub.f32 %v1024_v25, %v1099_v53 }
  0x69   : > { %v488_v17 = vadd.f32 %v487_v10, %v457_v7  ;;  %v469_v8 = vmul.f32 %v1195_v48, %v1195_v48  ;;  %v470_v14 = vmul.f32 %v1201_v51, %v1201_v51  ;;  %v1219_v7 = vsub.f32 %v1030_v31, %v1099_v53 }
  0x6a   : > { %v471_v20 = vmul.f32 %v1207_v1, %v1207_v1  ;;  %v472_v25 = vmul.f32 %v1213_v18, %v1213_v18 }
  0x6b   : > { %v489_v23 = vadd.f32 %v488_v17, %v458_v26  ;;  %v1225_v26 = vsub.f32 %v1036_v36, %v1099_v53  ;;  %v473_v31 = vmul.f32 %v1219_v7, %v1219_v7 }
  0x6d   : > { %v490_v29 = vadd.f32 %v489_v23, %v459_v30  ;;  %v1231_v30 = vsub.f32 %v1042_v41, %v1099_v53  ;;  %v474_v36 = vmul.f32 %v1225_v26, %v1225_v26 }
  0x6f   : > { %v491_v0 = vadd.f32 %v490_v29, %v460_v34  ;;  %v1237_v34 = vsub.f32 %v1048_v47, %v1099_v53  ;;  %v475_v41 = vmul.f32 %v1231_v30, %v1231_v30 }
  0x71   : > { %v492_v35 = vadd.f32 %v491_v0, %v461_v38  ;;  %v1243_v38 = vsub.f32 %v1054_v52, %v1099_v53  ;;  %v476_v47 = vmul.f32 %v1237_v34, %v1237_v34 }
  0x73   : > { %v493_v39 = vadd.f32 %v492_v35, %v462_v42  ;;  %v1249_v42 = vsub.f32 %v1060_v57, %v1099_v53  ;;  %v477_v52 = vmul.f32 %v1243_v38, %v1243_v38 }
  0x75   : > { %v494_v43 = vadd.f32 %v493_v39, %v463_v46  ;;  %v1255_v46 = vsub.f32 %v1066_v63, %v1099_v53  ;;  %v478_v57 = vmul.f32 %v1249_v42, %v1249_v42 }
  0x77   : > { %v495_v45 = vadd.f32 %v494_v43, %v464_v50  ;;  %v1261_v50 = vsub.f32 %v1072_v5, %v1099_v53  ;;  %v479_v63 = vmul.f32 %v1255_v46, %v1255_v46 }
  0x79   : > { %v496_v49 = vadd.f32 %v495_v45, %v465_v54  ;;  %v1267_v54 = vsub.f32 %v1078_v13, %v1099_v53  ;;  %v480_v5 = vmul.f32 %v1261_v50, %v1261_v50 }
  0x7b   : > { %v497_v61 = vadd.f32 %v496_v49, %v466_v58  ;;  %v1273_v58 = vsub.f32 %v1083_v19, %v1099_v53  ;;  %v481_v13 = vmul.f32 %v1267_v54, %v1267_v54 }
  0x7d   : > { %v498_v12 = vadd.f32 %v497_v61, %v467_v62  ;;  %v1279_v62 = vsub.f32 %v1087_v24, %v1099_v53  ;;  %v482_v19 = vmul.f32 %v1273_v58, %v1273_v58 }
  0x7f   : > { %v499_v2 = vadd.f32 %v498_v12, %v468_v3  ;;  %v1285_v3 = vsub.f32 %v1091_v28, %v1099_v53 }
  0x81   : > { %v500_v22 = vadd.f32 %v499_v2, %v469_v8  ;;  %v483_v8 = vmul.f32 %v1279_v62, %v1279_v62  ;;  %v484_v24 = vmul.f32 %v1285_v3, %v1285_v3 }
  0x83   : > { %v501_v10 = vadd.f32 %v500_v22, %v470_v14 }
  0x85   : > { %v502_v17 = vadd.f32 %v501_v10, %v471_v20 }
  0x87   : > { %v503_v23 = vadd.f32 %v502_v17, %v472_v25 }
  0x89   : > { %v504_v29 = vadd.f32 %v503_v23, %v473_v31 }
  0x8b   : > { %v505_v0 = vadd.f32 %v504_v29, %v474_v36 }
  0x8d   : > { %v506_v35 = vadd.f32 %v505_v0, %v475_v41 }
  0x8f   : > { %v507_v39 = vadd.f32 %v506_v35, %v476_v47  ;;  %v1297_v35 = vld [vmem:[%s1516_s3] ss:$0 sm:$0xff] }
  0x91   : > { %v508_v43 = vadd.f32 %v507_v39, %v477_v52  ;;  %v1312_v39 = vld [vmem:[%s1517_s4] ss:$0 sm:$0xff] }
  0x93   : > { %v509_v45 = vadd.f32 %v508_v43, %v478_v57 }
  0x95   : > { %v510_v49 = vadd.f32 %v509_v45, %v479_v63 }
  0x97   : > { %v511_v61 = vadd.f32 %v510_v49, %v480_v5 }
  0x99   : > { %v512_v12 = vadd.f32 %v511_v61, %v481_v13  ;;  %v640_v61 = vld [vmem:[%s1303_s11 + $0x10] sm:$0xff] }
  0x9b   : > { %v513_v14 = vadd.f32 %v512_v12, %v482_v19  ;;  %v638_v19 = vld [vmem:[%s1303_s11] sm:$0xff] }
  0x9c   : > { %v642_v12 = vld [vmem:[%s1303_s11 + $0x20] sm:$0xff] }
  0x9d   : > { %v514_v2 = vadd.f32 %v513_v14, %v483_v8  ;;  %v641_v8 = vld [vmem:[%s1303_s11 + $0x18] sm:$0xff] }
  0x9f   : > { %v515_v20 = vadd.f32 %v514_v2, %v484_v24 }
  0xa1   : > { %v516_v22 = vrot.slane %v515_v20, 4 }
  0xa3   : > { %v517_v25 = vadd.f32 %v516_v22, %v515_v20 }
  0xa5   : > { %v518_v10 = vrot.slane %v517_v25, 2 }
  0xa7   : > { %v519_v31 = vadd.f32 %v518_v10, %v517_v25  ;;  %v643_v10 = vld [vmem:[%s1303_s11 + $0x28] sm:$0xff] }
  0xa9   : > { %v520_v28 = vrot.slane %v519_v31, 1 }
  0xab   : > { %v521_v53 = vadd.f32 %v520_v28, %v519_v31  ;;  %v644_v31 = vld [vmem:[%s1303_s11 + $0x30] sm:$0xff]  ;;  %v645_v28 = vld [vmem:[%s1303_s11 + $0x38] sm:$0xff] }
  0xad   : > { %v522_v17 = vmul.f32 %v521_v53, %v1096_v6 }
  0xaf   : > { %v523_v36 = vadd.f32 1e-05, %v522_v17 }
  0xb1   : > { %832 = vrsqrt.f32 %v523_v36  ;;  %vm530_vm1 = vweird.f32 %v523_v36 }
  0xb7   : > { %v833_v23 = vpop.eup %832 }
  0xb8   : > { %v525_v41 = vmul.f32 %v833_v23, %v523_v36  ;;  %vm531_vm2 = vweird.f32 %v833_v23 }
  0xb9   : > { %vm532_vm3 = vmor %vm530_vm1, %vm531_vm2 }
  0xba   : > { %v526_v29 = vmul.f32 %v833_v23, %v525_v41 }
  0xbc   : > { %v527_v47 = vmul.f32 0.5, %v526_v29 }
  0xbe   : > { %v528_v0 = vsub.f32 1.5, %v527_v47 }
  0xc0   : > { %v529_v52 = vmul.f32 %v833_v23, %v528_v0 }
  0xc2   : > { %v1305_v6 = vsel %vm532_vm3, %v833_v23, %v529_v52 }
  0xc3   : > { %v534_v57 = vmul.f32 %v1305_v6, %v1103_v55  ;;  %v535_v63 = vmul.f32 %v1305_v6, %v1107_v56  ;;  %v536_v43 = vmul.f32 %v1305_v6, %v1111_v59  ;;  %v537_v5 = vmul.f32 %v1305_v6, %v1115_v60  ;;  %v639_v60 = vld [vmem:[%s1303_s11 + $0x8] sm:$0xff] }
  0xc4   : > { %v538_v45 = vmul.f32 %v1305_v6, %v1123_v11  ;;  %v539_v55 = vmul.f32 %v1305_v6, %v1129_v15  ;;  %v540_v13 = vmul.f32 %v1305_v6, %v1135_v4  ;;  %v541_v49 = vmul.f32 %v1305_v6, %v1141_v9 }
  0xc5   : > { %v570_v56 = vmul.f32 %v1297_v35, %v534_v57  ;;  %v571_v59 = vmul.f32 %v1297_v35, %v535_v63  ;;  %v572_v11 = vmul.f32 %v1297_v35, %v536_v43  ;;  %v573_v15 = vmul.f32 %v1297_v35, %v537_v5 }
  0xc6   : > { %v574_v4 = vmul.f32 %v1297_v35, %v538_v45  ;;  %v575_v9 = vmul.f32 %v1297_v35, %v539_v55  ;;  %v576_v24 = vmul.f32 %v1297_v35, %v540_v13  ;;  %v577_v14 = vmul.f32 %v1297_v35, %v541_v49 }
  0xc7   : > { %v606_v2 = vadd.f32 %v1312_v39, %v570_v56  ;;  %v607_v20 = vadd.f32 %v1312_v39, %v571_v59  ;;  %v608_v22 = vadd.f32 %v1312_v39, %v572_v11  ;;  %v609_v25 = vadd.f32 %v1312_v39, %v573_v15  ;;  %v647_v59 = vld [vmem:[%s1303_s11 + $0x48] sm:$0xff]  ;;  %v650_v11 = vld [vmem:[%s1303_s11 + $0x60] sm:$0xff] }
  0xc8   : > { %v610_v53 = vadd.f32 %v1312_v39, %v574_v4  ;;  %v611_v17 = vadd.f32 %v1312_v39, %v575_v9  ;;  %v612_v36 = vadd.f32 %v1312_v39, %v576_v24  ;;  %v613_v23 = vadd.f32 %v1312_v39, %v577_v14  ;;  %v651_v14 = vld [vmem:[%s1303_s11 + $0x68] sm:$0xff] }
  0xc9   : > { %v670_v41 = vadd.f32 %v638_v19, %v606_v2  ;;  %v671_v29 = vadd.f32 %v639_v60, %v607_v20  ;;  %v672_v47 = vadd.f32 %v640_v61, %v608_v22  ;;  %v673_v0 = vadd.f32 %v641_v8, %v609_v25  ;;  %v646_v19 = vld [vmem:[%s1303_s11 + $0x40] sm:$0xff]  ;;  %v649_v60 = vld [vmem:[%s1303_s11 + $0x58] sm:$0xff]  ;;  %v652_v2 = vld [vmem:[%s1303_s11 + $0x70] sm:$0xff] }
  0xca   : > { %v674_v52 = vadd.f32 %v642_v12, %v610_v53  ;;  %v675_v57 = vadd.f32 %v643_v10, %v611_v17  ;;  %v676_v63 = vadd.f32 %v644_v31, %v612_v36  ;;  %v677_v43 = vadd.f32 %v645_v28, %v613_v23  ;;  %v653_v20 = vld [vmem:[%s1303_s11 + $0x78] sm:$0xff] }
  0xcb   : > { %702 = vst [vmem:[%s1352_s16] sm:$0xff] %v670_v41  ;;  %v542_v5 = vmul.f32 %v1305_v6, %v1147_v16  ;;  %v543_v45 = vmul.f32 %v1305_v6, %v1153_v21  ;;  %v544_v55 = vmul.f32 %v1305_v6, %v1159_v27  ;;  %v545_v13 = vmul.f32 %v1305_v6, %v1165_v32 }
  0xcc   : > { %703 = vst [vmem:[%s1352_s16 + $0x8] sm:$0xff] %v671_v29  ;;  %v546_v49 = vmul.f32 %v1305_v6, %v1171_v33  ;;  %v547_v16 = vmul.f32 %v1305_v6, %v1177_v37  ;;  %v548_v56 = vmul.f32 %v1305_v6, %v1183_v40  ;;  %v549_v21 = vmul.f32 %v1305_v6, %v1189_v44  ;;  %v648_v40 = vld [vmem:[%s1303_s11 + $0x50] sm:$0xff] }
  0xcd   : > { %704 = vst [vmem:[%s1352_s16 + $0x10] sm:$0xff] %v672_v47  ;;  %v578_v27 = vmul.f32 %v1297_v35, %v542_v5  ;;  %v579_v32 = vmul.f32 %v1297_v35, %v543_v45  ;;  %v580_v33 = vmul.f32 %v1297_v35, %v544_v55  ;;  %v581_v37 = vmul.f32 %v1297_v35, %v545_v13  ;;  %v654_v45 = vld [vmem:[%s1303_s11 + $0x80] sm:$0xff]  ;;  %v655_v55 = vld [vmem:[%s1303_s11 + $0x88] sm:$0xff]  ;;  %v657_v13 = vld [vmem:[%s1303_s11 + $0x98] sm:$0xff] }
  0xce   : > { %705 = vst [vmem:[%s1352_s16 + $0x18] sm:$0xff] %v673_v0  ;;  %v582_v44 = vmul.f32 %v1297_v35, %v546_v49  ;;  %v583_v15 = vmul.f32 %v1297_v35, %v547_v16  ;;  %v584_v61 = vmul.f32 %v1297_v35, %v548_v56  ;;  %v585_v8 = vmul.f32 %v1297_v35, %v549_v21  ;;  %v658_v49 = vld [vmem:[%s1303_s11 + $0xa0] sm:$0xff] }
  0xcf   : > { %706 = vst [vmem:[%s1352_s16 + $0x20] sm:$0xff] %v674_v52  ;;  %v614_v4 = vadd.f32 %v1312_v39, %v578_v27  ;;  %v615_v12 = vadd.f32 %v1312_v39, %v579_v32  ;;  %v616_v9 = vadd.f32 %v1312_v39, %v580_v33  ;;  %v617_v24 = vadd.f32 %v1312_v39, %v581_v37  ;;  %v659_v33 = vld [vmem:[%s1303_s11 + $0xa8] sm:$0xff]  ;;  %v660_v37 = vld [vmem:[%s1303_s11 + $0xb0] sm:$0xff] }
  0xd0   : > { %707 = vst [vmem:[%s1352_s16 + $0x28] sm:$0xff] %v675_v57  ;;  %v618_v22 = vadd.f32 %v1312_v39, %v582_v44  ;;  %v619_v25 = vadd.f32 %v1312_v39, %v583_v15  ;;  %v620_v10 = vadd.f32 %v1312_v39, %v584_v61  ;;  %v621_v31 = vadd.f32 %v1312_v39, %v585_v8 }
  0xd1   : > { %708 = vst [vmem:[%s1352_s16 + $0x30] sm:$0xff] %v676_v63  ;;  %v678_v28 = vadd.f32 %v646_v19, %v614_v4  ;;  %v679_v53 = vadd.f32 %v647_v59, %v615_v12  ;;  %v680_v17 = vadd.f32 %v648_v40, %v616_v9  ;;  %v681_v36 = vadd.f32 %v649_v60, %v617_v24  ;;  %v661_v40 = vld [vmem:[%s1303_s11 + $0xb8] sm:$0xff] }
  0xd2   : > { %709 = vst [vmem:[%s1352_s16 + $0x38] sm:$0xff] %v677_v43  ;;  %v682_v23 = vadd.f32 %v650_v11, %v618_v22  ;;  %v683_v41 = vadd.f32 %v651_v14, %v619_v25  ;;  %v684_v29 = vadd.f32 %v652_v2, %v620_v10  ;;  %v685_v47 = vadd.f32 %v653_v20, %v621_v31 }
  0xd3   : > { %710 = vst [vmem:[%s1352_s16 + $0x40] sm:$0xff] %v678_v28  ;;  %v550_v0 = vmul.f32 %v1305_v6, %v1195_v48  ;;  %v551_v52 = vmul.f32 %v1305_v6, %v1201_v51  ;;  %v552_v57 = vmul.f32 %v1305_v6, %v1207_v1  ;;  %v553_v63 = vmul.f32 %v1305_v6, %v1213_v18 }
  0xd4   : > { %711 = vst [vmem:[%s1352_s16 + $0x48] sm:$0xff] %v679_v53  ;;  %v554_v43 = vmul.f32 %v1305_v6, %v1219_v7  ;;  %v555_v48 = vmul.f32 %v1305_v6, %v1225_v26  ;;  %v556_v5 = vmul.f32 %v1305_v6, %v1231_v30  ;;  %v557_v51 = vmul.f32 %v1305_v6, %v1237_v34  ;;  %v656_v30 = vld [vmem:[%s1303_s11 + $0x90] sm:$0xff] }
  0xd5   : > { %712 = vst [vmem:[%s1352_s16 + $0x50] sm:$0xff] %v680_v17  ;;  %v586_v1 = vmul.f32 %v1297_v35, %v550_v0  ;;  %v587_v18 = vmul.f32 %v1297_v35, %v551_v52  ;;  %v588_v7 = vmul.f32 %v1297_v35, %v552_v57  ;;  %v589_v26 = vmul.f32 %v1297_v35, %v553_v63  ;;  %v663_v17 = vld [vmem:[%s1303_s11 + $0xc8] sm:$0xff]  ;;  %v665_v52 = vld [vmem:[%s1303_s11 + $0xd8] sm:$0xff]  ;;  %v666_v63 = vld [vmem:[%s1303_s11 + $0xe0] sm:$0xff] }
  0xd6   : > { %713 = vst [vmem:[%s1352_s16 + $0x58] sm:$0xff] %v681_v36  ;;  %v590_v34 = vmul.f32 %v1297_v35, %v554_v43  ;;  %v591_v16 = vmul.f32 %v1297_v35, %v555_v48  ;;  %v592_v56 = vmul.f32 %v1297_v35, %v556_v5  ;;  %v593_v21 = vmul.f32 %v1297_v35, %v557_v51  ;;  %v667_v51 = vld [vmem:[%s1303_s11 + $0xe8] sm:$0xff] }
  0xd7   : > { %714 = vst [vmem:[%s1352_s16 + $0x60] sm:$0xff] %v682_v23  ;;  %v622_v27 = vadd.f32 %v1312_v39, %v586_v1  ;;  %v623_v19 = vadd.f32 %v1312_v39, %v587_v18  ;;  %v624_v32 = vadd.f32 %v1312_v39, %v588_v7  ;;  %v625_v59 = vadd.f32 %v1312_v39, %v589_v26  ;;  %v668_v18 = vld [vmem:[%s1303_s11 + $0xf0] sm:$0xff]  ;;  %v669_v26 = vld [vmem:[%s1303_s11 + $0xf8] sm:$0xff] }
  0xd8   : > { %715 = vst [vmem:[%s1352_s16 + $0x68] sm:$0xff] %v683_v41  ;;  %v626_v60 = vadd.f32 %v1312_v39, %v590_v34  ;;  %v627_v44 = vadd.f32 %v1312_v39, %v591_v16  ;;  %v628_v11 = vadd.f32 %v1312_v39, %v592_v56  ;;  %v629_v15 = vadd.f32 %v1312_v39, %v593_v21 }
  0xd9   : > { %716 = vst [vmem:[%s1352_s16 + $0x70] sm:$0xff] %v684_v29  ;;  %v686_v61 = vadd.f32 %v654_v45, %v622_v27  ;;  %v687_v8 = vadd.f32 %v655_v55, %v623_v19  ;;  %v688_v4 = vadd.f32 %v656_v30, %v624_v32  ;;  %v689_v12 = vadd.f32 %v657_v13, %v625_v59 }
  0xda   : > { %717 = vst [vmem:[%s1352_s16 + $0x78] sm:$0xff] %v685_v47  ;;  %v690_v9 = vadd.f32 %v658_v49, %v626_v60  ;;  %v691_v24 = vadd.f32 %v659_v33, %v627_v44  ;;  %v692_v14 = vadd.f32 %v660_v37, %v628_v11  ;;  %v693_v2 = vadd.f32 %v661_v40, %v629_v15 }
  0xdb   : > { %718 = vst [vmem:[%s1352_s16 + $0x80] sm:$0xff] %v686_v61  ;;  %v558_v20 = vmul.f32 %v1305_v6, %v1243_v38  ;;  %v559_v22 = vmul.f32 %v1305_v6, %v1249_v42  ;;  %v560_v25 = vmul.f32 %v1305_v6, %v1255_v46  ;;  %v561_v10 = vmul.f32 %v1305_v6, %v1261_v50 }
  0xdc   : > { %719 = vst [vmem:[%s1352_s16 + $0x88] sm:$0xff] %v687_v8  ;;  %v562_v31 = vmul.f32 %v1305_v6, %v1267_v54  ;;  %v563_v28 = vmul.f32 %v1305_v6, %v1273_v58  ;;  %v564_v38 = vmul.f32 %v1305_v6, %v1279_v62  ;;  %v565_v42 = vmul.f32 %v1305_v6, %v1285_v3  ;;  %v662_v58 = vld [vmem:[%s1303_s11 + $0xc0] sm:$0xff]  ;;  %v664_v62 = vld [vmem:[%s1303_s11 + $0xd0] sm:$0xff] }
  0xdd   : > { %720 = vst [vmem:[%s1352_s16 + $0x90] sm:$0xff] %v688_v4  ;;  %v594_v46 = vmul.f32 %v1297_v35, %v558_v20  ;;  %v595_v53 = vmul.f32 %v1297_v35, %v559_v22  ;;  %v596_v50 = vmul.f32 %v1297_v35, %v560_v25  ;;  %v597_v54 = vmul.f32 %v1297_v35, %v561_v10 }
  0xde   : > { %721 = vst [vmem:[%s1352_s16 + $0x98] sm:$0xff] %v689_v12  ;;  %v598_v36 = vmul.f32 %v1297_v35, %v562_v31  ;;  %v599_v3 = vmul.f32 %v1297_v35, %v563_v28  ;;  %v600_v6 = vmul.f32 %v1297_v35, %v564_v38  ;;  %v601_v23 = vmul.f32 %v1297_v35, %v565_v42 }
  0xdf   : > { %722 = vst [vmem:[%s1352_s16 + $0xa0] sm:$0xff] %v690_v9  ;;  %v630_v41 = vadd.f32 %v1312_v39, %v594_v46  ;;  %v631_v29 = vadd.f32 %v1312_v39, %v595_v53  ;;  %v632_v47 = vadd.f32 %v1312_v39, %v596_v50  ;;  %v633_v0 = vadd.f32 %v1312_v39, %v597_v54 }
  0xe0   : > { %723 = vst [vmem:[%s1352_s16 + $0xa8] sm:$0xff] %v691_v24  ;;  %v634_v57 = vadd.f32 %v1312_v39, %v598_v36  ;;  %v635_v35 = vadd.f32 %v1312_v39, %v599_v3  ;;  %v636_v1 = vadd.f32 %v1312_v39, %v600_v6  ;;  %v637_v55 = vadd.f32 %v1312_v39, %v601_v23 }
  0xe1   : > { %724 = vst [vmem:[%s1352_s16 + $0xb0] sm:$0xff] %v692_v14  ;;  %v694_v43 = vadd.f32 %v662_v58, %v630_v41  ;;  %v695_v48 = vadd.f32 %v663_v17, %v631_v29  ;;  %v696_v5 = vadd.f32 %v664_v62, %v632_v47  ;;  %v697_v45 = vadd.f32 %v665_v52, %v633_v0 }
  0xe2   : > { %725 = vst [vmem:[%s1352_s16 + $0xb8] sm:$0xff] %v693_v2  ;;  %v698_v7 = vadd.f32 %v666_v63, %v634_v57  ;;  %v699_v30 = vadd.f32 %v667_v51, %v635_v35  ;;  %v700_v13 = vadd.f32 %v668_v18, %v636_v1  ;;  %v701_v34 = vadd.f32 %v669_v26, %v637_v55 }
  0xe3   : > { %726 = vst [vmem:[%s1352_s16 + $0xc0] sm:$0xff] %v694_v43 }
  0xe4   : > { %727 = vst [vmem:[%s1352_s16 + $0xc8] sm:$0xff] %v695_v48 }
  0xe5   : > { %728 = vst [vmem:[%s1352_s16 + $0xd0] sm:$0xff] %v696_v5 }
  0xe6   : > { %729 = vst [vmem:[%s1352_s16 + $0xd8] sm:$0xff] %v697_v45 }
  0xe7   : > { %730 = vst [vmem:[%s1352_s16 + $0xe0] sm:$0xff] %v698_v7 }
  0xe8   : > { %731 = vst [vmem:[%s1352_s16 + $0xe8] sm:$0xff] %v699_v30 }
  0xe9   : > { %732 = vst [vmem:[%s1352_s16 + $0xf0] sm:$0xff] %v700_v13 }
  0xea   : > { %733 = vst [vmem:[%s1352_s16 + $0xf8] sm:$0xff] %v701_v34 }
  0xeb PF: > { %s16_s21 = sadd.s32 1, %s840_s21  }
  0xec   : > { %p13_p4 = scmp.ge.s32.totalorder %s16_s21, 4  }
  0xee   :  { %15 = sbr.rel (!%p13_p4) target bundleno = 1 (0x1), region = 77 }

// kernel: basic_block_forward.3
= control target key start
LH: loop header
LB: loop body
LE: loop exit
PB: predicated region body
PF: predicated region fallthrough
CT: control target
= control target key end

     0   :  { %s2610_s18 = smov 0   ;;  %s3835_s0 = inlined_call_operand.vmem [shape: f32[2,16,16,128], index: 0, kind: input, shape index: {}]   ;;  %s3836_s1 = inlined_call_operand.vmem [shape: f32[1,128], index: 1, kind: input, shape index: {}]   ;;  %s3837_s2 = inlined_call_operand.vmem [shape: f32[1,128], index: 2, kind: input, shape index: {}]   ;;  %s3838_s3 = inlined_call_operand.vmem [shape: f32[9,128,128], index: 3, kind: input, shape index: {}]   ;;  %s3839_s4 = inlined_call_operand.vmem [shape: f32[2,16,16,128], index: 4, kind: output, shape index: {0}]   ;;  %s3840_s5 = inlined_call_operand.vmem [shape: f32[2,2,128], index: 5, kind: output, shape index: {1}]  }
   0x1 LB: > { %s2362_s19 = sadd.s32 4294967295, %s2576_s18   ;;  %p2366_p0 = scmp.ge.s32.totalorder %s2576_s18, 1  ;;  %s2576_s18 = sphi %s2610_s18, %s16_s18  }
   0x2   : > { %p190_p1 = scmp.lt.s32.totalorder %s2576_s18, 3 }
   0x4   : > { %p191_p2 = pnand %p2366_p0, %p190_p1 }
   0x6   : > { %194 = sbr.rel (%p191_p2) target bundleno = 845 (0x34d), region = 36 }
   0xb   : > { %v2387_v0 = vld [vmem:[%s3838_s3 + $0xf8] sm:$0xff]  ;;  %v2386_v1 = vld [vmem:[%s3838_s3 + $0xf0] sm:$0xff]  ;;  %p222_p3 = scmp.lt.s32.totalorder %s2362_s19, 1  ;;  %v2385_v2 = vld [vmem:[%s3838_s3 + $0xe8] sm:$0xff]  ;;  %v2578_v17 = vmov 0.0  }
   0xc   : > { %2504 = vmatpush.msra.mxu1 %v2387_v0  ;;  %2505 = vmatpush.msra.mxu2 %v2387_v0  ;;  %v2384_v3 = vld [vmem:[%s3838_s3 + $0xe0] sm:$0xff]  ;;  %v2383_v4 = vld [vmem:[%s3838_s3 + $0xd8] sm:$0xff]  ;;  %v2382_v11 = vld [vmem:[%s3838_s3 + $0xd0] sm:$0xff]  ;;  %341 = vst [vmem:[#allocation2 + $0x8] sm:$0xff] %v2578_v17 }
   0xd   : > { %2506 = vmatpush.msra.mxu3 %v2387_v0  ;;  %511 = vmatpush.msra.mxu0 %v2387_v0  ;;  %s3846_s19 = smov (!%p222_p3, %s2362_s19), 1  ;;  %v2646_v5 = vld [vmem:[%s3836_s1] ss:$0 sm:$0xff]  ;;  %v2381_v18 = vld [vmem:[%s3838_s3 + $0xc8] sm:$0xff]  ;;  %340 = vst [vmem:[#allocation2] sm:$0xff] %v2578_v17  ;;  %v2379_v26 = vld [vmem:[%s3838_s3 + $0xb8] sm:$0xff] }
   0xe   : > { %2507 = vmatpush.msra.mxu1 %v2386_v1  ;;  %2508 = vmatpush.msra.mxu2 %v2386_v1  ;;  %s2502_s28 = sshll.u32 %s3846_s19, 8  ;;  %v2652_v7 = vld [vmem:[%s3837_s2] ss:$0 sm:$0xff]  ;;  %v2378_v27 = vld [vmem:[%s3838_s3 + $0xb0] sm:$0xff]  ;;  %342 = vst [vmem:[#allocation2 + $0x10] sm:$0xff] %v2578_v17  ;;  %v2377_v28 = vld [vmem:[%s3838_s3 + $0xa8] sm:$0xff] }
   0xf   : > { %2509 = vmatpush.msra.mxu3 %v2386_v1  ;;  %512 = vmatpush.msra.mxu0 %v2386_v1  ;;  %s2641_s8 = scalar_lea.vmem %s3835_s0, %s2502_s28  ;;  %v2380_v23 = vld [vmem:[%s3838_s3 + $0xc0] sm:$0xff]  ;;  %343 = vst [vmem:[#allocation2 + $0x18] sm:$0xff] %v2578_v17  ;;  %v2375_v30 = vld [vmem:[%s3838_s3 + $0x98] sm:$0xff]  ;;  %v2374_v31 = vld [vmem:[%s3838_s3 + $0x90] sm:$0xff]  ;;  %s3549_s25 = scalar_lea.vmem %s3839_s4, %s2502_s28 }
  0x10   : > { %2510 = vmatpush.msra.mxu1 %v2385_v2  ;;  %2511 = vmatpush.msra.mxu2 %v2385_v2  ;;  %v242_v6 = vld [vmem:[%s2641_s8 + $0x30] sm:$0xff]  ;;  %v243_v15 = vld [vmem:[%s2641_s8 + $0x38] sm:$0xff]  ;;  %345 = vst [vmem:[#allocation2 + $0x220] sm:$0xff] %v2578_v17  ;;  %v2376_v29 = vld [vmem:[%s3838_s3 + $0xa0] sm:$0xff]  ;;  %s2371_s28 = sshll.u32 %s3846_s19, 1 }
  0x11   : > { %2512 = vmatpush.msra.mxu3 %v2385_v2  ;;  %513 = vmatpush.msra.mxu0 %v2385_v2  ;;  %v278_v8 = vmul.f32 %v2646_v5, %v242_v6  ;;  %v250_v9 = vld [vmem:[%s2641_s8 + $0x70] sm:$0xff]  ;;  %v251_v16 = vld [vmem:[%s2641_s8 + $0x78] sm:$0xff]  ;;  %v279_v20 = vmul.f32 %v2646_v5, %v243_v15  ;;  %346 = vst [vmem:[#allocation2 + $0x228] sm:$0xff] %v2578_v17  ;;  %v2373_v32 = vld [vmem:[%s3838_s3 + $0x88] sm:$0xff]  ;;  %s3742_s29 = scalar_lea.vmem %s3840_s5, %s2371_s28 }
  0x12   : > { %2513 = vmatpush.msra.mxu1 %v2384_v3  ;;  %2514 = vmatpush.msra.mxu2 %v2384_v3  ;;  %v258_v10 = vld [vmem:[%s2641_s8 + $0xb0] sm:$0xff]  ;;  %v286_v12 = vmul.f32 %v2646_v5, %v250_v9  ;;  %v287_v22 = vmul.f32 %v2646_v5, %v251_v16  ;;  %347 = vst [vmem:[#allocation2 + $0x230] sm:$0xff] %v2578_v17  ;;  %v2372_v33 = vld [vmem:[%s3838_s3 + $0x80] sm:$0xff]  ;;  %v2403_v34 = vld [vmem:[%s3838_s3 + $0x178] sm:$0xff] }
  0x13   : > { %2515 = vmatpush.msra.mxu3 %v2384_v3  ;;  %514 = vmatpush.msra.mxu0 %v2384_v3  ;;  %v294_v13 = vmul.f32 %v2646_v5, %v258_v10  ;;  %v2663_v14 = vadd.f32 %v2652_v7, %v278_v8  ;;  %v2686_v24 = vadd.f32 %v2652_v7, %v279_v20  ;;  %v461_v35 = vld [vmem:[%s3838_s3 + $0x78] sm:$0xff]  ;;  %v2402_v38 = vld [vmem:[%s3838_s3 + $0x170] sm:$0xff]  ;;  %v2401_v41 = vld [vmem:[%s3838_s3 + $0x168] sm:$0xff] }
  0x14   : > { %2516 = vmatpush.msra.mxu1 %v2383_v4  ;;  %2517 = vmatpush.msra.mxu2 %v2383_v4  ;;  %v2672_v19 = vadd.f32 %v2652_v7, %v286_v12  ;;  %v2690_v25 = vadd.f32 %v2652_v7, %v287_v22  ;;  %348 = vst [vmem:[#allocation2 + $0x238] sm:$0xff] %v2578_v17  ;;  %v259_v36 = vld [vmem:[%s2641_s8 + $0xb8] sm:$0xff]  ;;  %v460_v39 = vld [vmem:[%s3838_s3 + $0x70] sm:$0xff]  ;;  %v459_v43 = vld [vmem:[%s3838_s3 + $0x68] sm:$0xff] }
  0x15   : > { %2518 = vmatpush.msra.mxu3 %v2383_v4  ;;  %515 = vmatpush.msra.mxu0 %v2383_v4  ;;  %388 = vst [vmem:[#allocation2 + $0x88] sm:$0xff] %v2663_v14  ;;  %v2678_v21 = vadd.f32 %v2652_v7, %v294_v13  ;;  %v2419_v37 = vld [vmem:[%s3838_s3 + $0x1f8] sm:$0xff]  ;;  %v2418_v40 = vld [vmem:[%s3838_s3 + $0x1f0] sm:$0xff]  ;;  %v295_v42 = vmul.f32 %v2646_v5, %v259_v36  ;;  %v2417_v44 = vld [vmem:[%s3838_s3 + $0x1e8] sm:$0xff] }
  0x16   : > { %2519 = vmatpush.msra.mxu1 %v2382_v11  ;;  %2520 = vmatpush.msra.mxu2 %v2382_v11  ;;  %396 = vst [vmem:[#allocation2 + $0x108] sm:$0xff] %v2672_v19  ;;  %v2435_v45 = vld [vmem:[%s3838_s3 + $0x278] sm:$0xff]  ;;  %v244_v46 = vld [vmem:[%s2641_s8 + $0x40] sm:$0xff]  ;;  %v2434_v51 = vld [vmem:[%s3838_s3 + $0x270] sm:$0xff] }
  0x17   : > { %2521 = vmatpush.msra.mxu3 %v2382_v11  ;;  %516 = vmatpush.msra.mxu0 %v2382_v11  ;;  %404 = vst [vmem:[#allocation2 + $0x188] sm:$0xff] %v2678_v21  ;;  %v252_v47 = vld [vmem:[%s2641_s8 + $0x80] sm:$0xff]  ;;  %v2780_v48 = vadd.f32 %v2652_v7, %v295_v42  ;;  %v280_v53 = vmul.f32 %v2646_v5, %v244_v46  ;;  %v2399_v56 = vld [vmem:[%s3838_s3 + $0x158] sm:$0xff]  ;;  %v2433_v58 = vld [vmem:[%s3838_s3 + $0x268] sm:$0xff] }
  0x18   : > { %2522 = vmatpush.msra.mxu1 %v2381_v18  ;;  %2523 = vmatpush.msra.mxu2 %v2381_v18  ;;  %389 = vst [vmem:[#allocation2 + $0x90] sm:$0xff] %v2686_v24  ;;  %v2400_v49 = vld [vmem:[%s3838_s3 + $0x160] sm:$0xff]  ;;  %v288_v54 = vmul.f32 %v2646_v5, %v252_v47  ;;  %v2415_v57 = vld [vmem:[%s3838_s3 + $0x1d8] sm:$0xff]  ;;  %v2398_v61 = vld [vmem:[%s3838_s3 + $0x150] sm:$0xff] }
  0x19   : > { %2524 = vmatpush.msra.mxu3 %v2381_v18  ;;  %517 = vmatpush.msra.mxu0 %v2381_v18  ;;  %397 = vst [vmem:[#allocation2 + $0x110] sm:$0xff] %v2690_v25  ;;  %v2416_v50 = vld [vmem:[%s3838_s3 + $0x1e0] sm:$0xff]  ;;  %v457_v60 = vld [vmem:[%s3838_s3 + $0x58] sm:$0xff]  ;;  %v2414_v62 = vld [vmem:[%s3838_s3 + $0x1d0] sm:$0xff]  ;;  %v2827_v0 = vadd.f32 %v2652_v7, %v280_v53 }
  0x1a   : > { %2525 = vmatpush.msra.mxu1 %v2380_v23  ;;  %2526 = vmatpush.msra.mxu2 %v2380_v23  ;;  %350 = vst [vmem:[#allocation2 + $0x20] sm:$0xff] %v2578_v17  ;;  %v260_v52 = vld [vmem:[%s2641_s8 + $0xc0] sm:$0xff]  ;;  %v2830_v1 = vadd.f32 %v2652_v7, %v288_v54  ;;  %v456_v3 = vld [vmem:[%s3838_s3 + $0x50] sm:$0xff]  ;;  %v245_v4 = vld [vmem:[%s2641_s8 + $0x48] sm:$0xff] }
  0x1b   : > { %2527 = vmatpush.msra.mxu3 %v2380_v23  ;;  %518 = vmatpush.msra.mxu0 %v2380_v23  ;;  %351 = vst [vmem:[#allocation2 + $0x40] sm:$0xff] %v2578_v17  ;;  %v458_v55 = vld [vmem:[%s3838_s3 + $0x60] sm:$0xff]  ;;  %v296_v59 = vmul.f32 %v2646_v5, %v260_v52  ;;  %v253_v6 = vld [vmem:[%s2641_s8 + $0x88] sm:$0xff]  ;;  %v2431_v13 = vld [vmem:[%s3838_s3 + $0x258] sm:$0xff]  ;;  %v281_v15 = vmul.f32 %v2646_v5, %v245_v4 }
  0x1c   : > { %2528 = vmatpush.msra.mxu1 %v2379_v26  ;;  %2529 = vmatpush.msra.mxu2 %v2379_v26  ;;  %352 = vst [vmem:[#allocation2 + $0x60] sm:$0xff] %v2578_v17  ;;  %v236_v63 = vld [vmem:[%s2641_s8] sm:$0xff]  ;;  %v2397_v9 = vld [vmem:[%s3838_s3 + $0x148] sm:$0xff]  ;;  %v289_v16 = vmul.f32 %v2646_v5, %v253_v6  ;;  %v452_v42 = vld [vmem:[%s3838_s3 + $0x30] sm:$0xff] }
  0x1d   : > { %2530 = vmatpush.msra.mxu3 %v2379_v26  ;;  %519 = vmatpush.msra.mxu0 %v2379_v26  ;;  %353 = vst [vmem:[#allocation2 + $0x80] sm:$0xff] %v2578_v17  ;;  %v2432_v2 = vld [vmem:[%s3838_s3 + $0x260] sm:$0xff]  ;;  %v2844_v8 = vadd.f32 %v2652_v7, %v296_v59  ;;  %v272_v10 = vmul.f32 %v2646_v5, %v236_v63  ;;  %v2413_v11 = vld [vmem:[%s3838_s3 + $0x1c8] sm:$0xff]  ;;  %v2395_v26 = vld [vmem:[%s3838_s3 + $0x138] sm:$0xff] }
  0x1e   : > { %2531 = vmatpush.msra.mxu1 %v2378_v27  ;;  %2532 = vmatpush.msra.mxu2 %v2378_v27  ;;  %354 = vst [vmem:[#allocation2 + $0xa0] sm:$0xff] %v2578_v17  ;;  %v261_v12 = vld [vmem:[%s2641_s8 + $0xc8] sm:$0xff]  ;;  %v2412_v20 = vld [vmem:[%s3838_s3 + $0x1c0] sm:$0xff]  ;;  %v2427_v46 = vld [vmem:[%s3838_s3 + $0x238] sm:$0xff] }
  0x1f   : > { %2533 = vmatpush.msra.mxu3 %v2378_v27  ;;  %520 = vmatpush.msra.mxu0 %v2378_v27  ;;  %355 = vst [vmem:[#allocation2 + $0xc0] sm:$0xff] %v2578_v17  ;;  %v455_v18 = vld [vmem:[%s3838_s3 + $0x48] sm:$0xff]  ;;  %v2879_v22 = vadd.f32 %v2652_v7, %v272_v10  ;;  %v297_v23 = vmul.f32 %v2646_v5, %v261_v12  ;;  %v238_v52 = vld [vmem:[%s2641_s8 + $0x10] sm:$0xff]  ;;  %v2408_v53 = vld [vmem:[%s3838_s3 + $0x1a0] sm:$0xff] }
  0x20   : > { %2534 = vmatpush.msra.mxu1 %v2377_v28  ;;  %2535 = vmatpush.msra.mxu2 %v2377_v28  ;;  %356 = vst [vmem:[#allocation2 + $0xe0] sm:$0xff] %v2578_v17  ;;  %v237_v27 = vld [vmem:[%s2641_s8 + $0x8] sm:$0xff]  ;;  %v450_v59 = vld [vmem:[%s3838_s3 + $0x20] sm:$0xff]  ;;  %v274_v63 = vmul.f32 %v2646_v5, %v238_v52  ;;  %v2407_v4 = vld [vmem:[%s3838_s3 + $0x198] sm:$0xff] }
  0x21   : > { %2536 = vmatpush.msra.mxu3 %v2377_v28  ;;  %521 = vmatpush.msra.mxu0 %v2377_v28  ;;  %357 = vst [vmem:[#allocation2 + $0x100] sm:$0xff] %v2578_v17  ;;  %v2411_v28 = vld [vmem:[%s3838_s3 + $0x1b8] sm:$0xff]  ;;  %v273_v36 = vmul.f32 %v2646_v5, %v237_v27  ;;  %v264_v12 = vld [vmem:[%s2641_s8 + $0xe0] sm:$0xff]  ;;  %v448_v27 = vld [vmem:[%s3838_s3 + $0x10] sm:$0xff] }
  0x22   : > { %2537 = vmatpush.msra.mxu1 %v2376_v29  ;;  %2538 = vmatpush.msra.mxu2 %v2376_v29  ;;  %358 = vst [vmem:[#allocation2 + $0x120] sm:$0xff] %v2578_v17  ;;  %v2467_v52 = vld [vmem:[%s3838_s3 + $0x378] sm:$0xff] }
  0x23   : > { %2539 = vmatpush.msra.mxu3 %v2376_v29  ;;  %522 = vmatpush.msra.mxu0 %v2376_v29  ;;  %359 = vst [vmem:[#allocation2 + $0x140] sm:$0xff] %v2578_v17  ;;  %v2895_v29 = vadd.f32 %v2652_v7, %v281_v15  ;;  %v2945_v47 = vadd.f32 %v2652_v7, %v273_v36  ;;  %v2390_v15 = vld [vmem:[%s3838_s3 + $0x110] sm:$0xff] }
  0x24   : > { %2540 = vmatpush.msra.mxu1 %v2375_v30  ;;  %2541 = vmatpush.msra.mxu2 %v2375_v30  ;;  %360 = vst [vmem:[#allocation2 + $0x160] sm:$0xff] %v2578_v17 }
  0x25   : > { %2542 = vmatpush.msra.mxu3 %v2375_v30  ;;  %523 = vmatpush.msra.mxu0 %v2375_v30  ;;  %361 = vst [vmem:[#allocation2 + $0x180] sm:$0xff] %v2578_v17  ;;  %v2898_v30 = vadd.f32 %v2652_v7, %v289_v16 }
  0x26   : > { %2543 = vmatpush.msra.mxu1 %v2374_v31  ;;  %2544 = vmatpush.msra.mxu2 %v2374_v31  ;;  %362 = vst [vmem:[#allocation2 + $0x1a0] sm:$0xff] %v2578_v17 }
  0x27   : > { %2545 = vmatpush.msra.mxu3 %v2374_v31  ;;  %524 = vmatpush.msra.mxu0 %v2374_v31  ;;  %363 = vst [vmem:[#allocation2 + $0x1c0] sm:$0xff] %v2578_v17  ;;  %v2429_v31 = vld [vmem:[%s3838_s3 + $0x248] sm:$0xff] }
  0x28   : > { %2546 = vmatpush.msra.mxu1 %v2373_v32  ;;  %2547 = vmatpush.msra.mxu2 %v2373_v32  ;;  %364 = vst [vmem:[#allocation2 + $0x1e0] sm:$0xff] %v2578_v17 }
  0x29   : > { %2548 = vmatpush.msra.mxu3 %v2373_v32  ;;  %525 = vmatpush.msra.mxu0 %v2373_v32  ;;  %365 = vst [vmem:[#allocation2 + $0x200] sm:$0xff] %v2578_v17  ;;  %v453_v32 = vld [vmem:[%s3838_s3 + $0x38] sm:$0xff] }
  0x2a   : > { %2549 = vmatpush.msra.mxu1 %v2372_v33  ;;  %2550 = vmatpush.msra.mxu2 %v2372_v33  ;;  %366 = vst [vmem:[#allocation2 + $0x38] sm:$0xff] %v2578_v17 }
  0x2b   : > { %551 = vmatmul.f32.vlgmr.msra.gmra.mxu1 %v2663_v14  ;;  %575 = vmatmul.f32.vlgmr.msra.gmra.mxu2 %v2672_v19  ;;  %367 = vst [vmem:[#allocation2 + $0x58] sm:$0xff] %v2578_v17  ;;  %v2396_v19 = vld [vmem:[%s3838_s3 + $0x140] sm:$0xff] }
  0x2c   : > { %786 = vmatpush.msrb.mxu2 %v2403_v34  ;;  %2551 = vmatpush.msra.mxu3 %v2372_v33  ;;  %368 = vst [vmem:[#allocation2 + $0x78] sm:$0xff] %v2578_v17  ;;  %v254_v34 = vld [vmem:[%s2641_s8 + $0x90] sm:$0xff] }
  0x2d   : > { %599 = vmatmul.f32.vlgmr.msra.gmra.mxu3 %v2678_v21  ;;  %624 = vmatpush.msrb.mxu1 %v461_v35  ;;  %369 = vst [vmem:[#allocation2 + $0x98] sm:$0xff] %v2578_v17  ;;  %v2430_v21 = vld [vmem:[%s3838_s3 + $0x250] sm:$0xff]  ;;  %v333_v35 = vadd.f32 %v2652_v7, %v297_v23  ;;  %v3021_v23 = vadd.f32 %v2652_v7, %v274_v63  ;;  %v2499_v63 = vld [vmem:[%s3838_s3 + $0x478] sm:$0xff] }
  0x2e   : > { %980 = vmatpush.msrb.mxu3 %v2419_v37  ;;  %787 = vmatpush.msrb.mxu2 %v2402_v38  ;;  %370 = vst [vmem:[#allocation2 + $0xb8] sm:$0xff] %v2578_v17  ;;  %v2394_v37 = vld [vmem:[%s3838_s3 + $0x130] sm:$0xff] }
  0x2f   : > { %625 = vmatpush.msrb.mxu1 %v460_v39  ;;  %526 = vmatpush.msra.mxu0 %v2372_v33  ;;  %371 = vst [vmem:[#allocation2 + $0xd8] sm:$0xff] %v2578_v17  ;;  %v246_v33 = vld [vmem:[%s2641_s8 + $0x50] sm:$0xff]  ;;  %v2428_v39 = vld [vmem:[%s3838_s3 + $0x240] sm:$0xff] }
  0x30   : > { %981 = vmatpush.msrb.mxu3 %v2418_v40  ;;  %788 = vmatpush.msrb.mxu2 %v2401_v41  ;;  %372 = vst [vmem:[#allocation2 + $0xf8] sm:$0xff] %v2578_v17  ;;  %v262_v38 = vld [vmem:[%s2641_s8 + $0xd0] sm:$0xff]  ;;  %v282_v40 = vmul.f32 %v2646_v5, %v246_v33  ;;  %v290_v41 = vmul.f32 %v2646_v5, %v254_v34  ;;  %v240_v33 = vld [vmem:[%s2641_s8 + $0x20] sm:$0xff]  ;;  %v2405_v34 = vld [vmem:[%s3838_s3 + $0x188] sm:$0xff] }
  0x31   : > { %527 = vmatmul.f32.vlgmr.msra.gmra.mxu0 %v2578_v17  ;;  %626 = vmatpush.msrb.mxu1 %v459_v43  ;;  %373 = vst [vmem:[#allocation2 + $0x118] sm:$0xff] %v2578_v17  ;;  %v2393_v43 = vld [vmem:[%s3838_s3 + $0x128] sm:$0xff] }
  0x32   : > { %982 = vmatpush.msrb.mxu3 %v2417_v44  ;;  %1174 = vmatpush.msrb.mxu0 %v2435_v45  ;;  %374 = vst [vmem:[#allocation2 + $0x138] sm:$0xff] %v2578_v17  ;;  %v247_v44 = vld [vmem:[%s2641_s8 + $0x58] sm:$0xff]  ;;  %v2409_v45 = vld [vmem:[%s3838_s3 + $0x1a8] sm:$0xff]  ;;  %v2962_v54 = vadd.f32 %v2652_v7, %v282_v40 }
  0x33   : > { %554 = vmatmul.f32.gmra.mxu1 %v2686_v24  ;;  %578 = vmatmul.f32.gmra.mxu2 %v2690_v25  ;;  %375 = vst [vmem:[#allocation2 + $0x158] sm:$0xff] %v2578_v17  ;;  %v454_v25 = vld [vmem:[%s3838_s3 + $0x40] sm:$0xff] }
  0x34   : > { %789 = vmatpush.msrb.mxu2 %v2400_v49  ;;  %983 = vmatpush.msrb.mxu3 %v2416_v50  ;;  %376 = vst [vmem:[#allocation2 + $0x178] sm:$0xff] %v2578_v17  ;;  %v255_v49 = vld [vmem:[%s2641_s8 + $0x98] sm:$0xff]  ;;  %v451_v50 = vld [vmem:[%s3838_s3 + $0x28] sm:$0xff] }
  0x35   : > { %602 = vmatmul.f32.gmra.mxu3 %v2780_v48  ;;  %1175 = vmatpush.msrb.mxu0 %v2434_v51  ;;  %377 = vst [vmem:[#allocation2 + $0x198] sm:$0xff] %v2578_v17  ;;  %v2392_v51 = vld [vmem:[%s3838_s3 + $0x120] sm:$0xff] }
  0x36   : > { %627 = vmatpush.msrb.mxu1 %v458_v55  ;;  %790 = vmatpush.msrb.mxu2 %v2399_v56  ;;  %378 = vst [vmem:[#allocation2 + $0x1b8] sm:$0xff] %v2578_v17  ;;  %v2965_v55 = vadd.f32 %v2652_v7, %v290_v41  ;;  %v283_v56 = vmul.f32 %v2646_v5, %v247_v44  ;;  %v241_v41 = vld [vmem:[%s2641_s8 + $0x28] sm:$0xff]  ;;  %v2388_v44 = vld [vmem:[%s3838_s3 + $0x100] sm:$0xff] }
  0x37   : > { %984 = vmatpush.msrb.mxu3 %v2415_v57  ;;  %1176 = vmatpush.msrb.mxu0 %v2433_v58  ;;  %379 = vst [vmem:[#allocation2 + $0x1d8] sm:$0xff] %v2578_v17  ;;  %v263_v57 = vld [vmem:[%s2641_s8 + $0xd8] sm:$0xff]  ;;  %v2426_v58 = vld [vmem:[%s3838_s3 + $0x230] sm:$0xff] }
  0x38   : > { %628 = vmatpush.msrb.mxu1 %v457_v60  ;;  %791 = vmatpush.msrb.mxu2 %v2398_v61  ;;  %380 = vst [vmem:[#allocation2 + $0x1f8] sm:$0xff] %v2578_v17  ;;  %v291_v60 = vmul.f32 %v2646_v5, %v255_v49  ;;  %v248_v61 = vld [vmem:[%s2641_s8 + $0x60] sm:$0xff]  ;;  %v299_v6 = vmul.f32 %v2646_v5, %v263_v57  ;;  %v2422_v49 = vld [vmem:[%s3838_s3 + $0x210] sm:$0xff]  ;;  %v2421_v57 = vld [vmem:[%s3838_s3 + $0x208] sm:$0xff] }
  0x39   : > { %530 = vmatmul.f32.gmra.mxu0 %v2578_v17  ;;  %985 = vmatpush.msrb.mxu3 %v2414_v62  ;;  %381 = vst [vmem:[#allocation2 + $0x218] sm:$0xff] %v2578_v17  ;;  %v2410_v17 = vld [vmem:[%s3838_s3 + $0x1b0] sm:$0xff]  ;;  %v2998_v10 = vadd.f32 %v2652_v7, %v283_v56 }
  0x3a   : > { %1177 = vmatpush.msrb.mxu0 %v2432_v2  ;;  %629 = vmatpush.msrb.mxu1 %v456_v3  ;;  %405 = vst [vmem:[#allocation2 + $0x190] sm:$0xff] %v2780_v48  ;;  %v298_v48 = vmul.f32 %v2646_v5, %v262_v38  ;;  %v256_v2 = vld [vmem:[%s2641_s8 + $0xa0] sm:$0xff]  ;;  %v2391_v3 = vld [vmem:[%s3838_s3 + $0x118] sm:$0xff]  ;;  %v3009_v16 = vadd.f32 %v2652_v7, %v291_v60  ;;  %v447_v38 = vld [vmem:[%s3838_s3 + $0x8] sm:$0xff] }
  0x3b   : > { %557 = vmatmul.f32.gmra.mxu1 %v2827_v0  ;;  %581 = vmatmul.f32.gmra.mxu2 %v2830_v1  ;;  %390 = vst [vmem:[#allocation2 + $0xa8] sm:$0xff] %v2827_v0 }
  0x3c   : > { %792 = vmatpush.msrb.mxu2 %v2397_v9  ;;  %986 = vmatpush.msrb.mxu3 %v2413_v11  ;;  %398 = vst [vmem:[#allocation2 + $0x128] sm:$0xff] %v2830_v1  ;;  %v334_v62 = vadd.f32 %v2652_v7, %v298_v48  ;;  %v2425_v9 = vld [vmem:[%s3838_s3 + $0x228] sm:$0xff]  ;;  %v284_v11 = vmul.f32 %v2646_v5, %v248_v61 }
  0x3d   : > { %605 = vmatmul.f32.gmra.mxu3 %v2844_v8  ;;  %1178 = vmatpush.msrb.mxu0 %v2431_v13  ;;  %406 = vst [vmem:[#allocation2 + $0x1a8] sm:$0xff] %v2844_v8  ;;  %v239_v8 = vld [vmem:[%s2641_s8 + $0x18] sm:$0xff] }
  0x3e   : > { %630 = vmatpush.msrb.mxu1 %v455_v18  ;;  %793 = vmatpush.msrb.mxu2 %v2396_v19  ;;  %391 = vst [vmem:[#allocation2 + $0xb0] sm:$0xff] %v2895_v29  ;;  %v449_v13 = vld [vmem:[%s3838_s3 + $0x18] sm:$0xff]  ;;  %v292_v18 = vmul.f32 %v2646_v5, %v256_v2  ;;  %v2406_v19 = vld [vmem:[%s3838_s3 + $0x190] sm:$0xff] }
  0x3f   : > { %987 = vmatpush.msrb.mxu3 %v2412_v20  ;;  %1179 = vmatpush.msrb.mxu0 %v2430_v21  ;;  %399 = vst [vmem:[#allocation2 + $0x130] sm:$0xff] %v2898_v30  ;;  %v2424_v20 = vld [vmem:[%s3838_s3 + $0x220] sm:$0xff]  ;;  %v249_v21 = vld [vmem:[%s2641_s8 + $0x68] sm:$0xff]  ;;  %v2482_v2 = vld [vmem:[%s3838_s3 + $0x3f0] sm:$0xff] }
  0x40   : > { %631 = vmatpush.msrb.mxu1 %v454_v25  ;;  %794 = vmatpush.msrb.mxu2 %v2395_v26  ;;  %382 = vst [vmem:[#allocation2 + $0x28] sm:$0xff] %v2879_v22  ;;  %v275_v25 = vmul.f32 %v2646_v5, %v239_v8  ;;  %v257_v26 = vld [vmem:[%s2641_s8 + $0xa8] sm:$0xff]  ;;  %v285_v36 = vmul.f32 %v2646_v5, %v249_v21 }
  0x41   : > { %533 = vmatmul.f32.gmra.mxu0 %v2879_v22  ;;  %988 = vmatpush.msrb.mxu3 %v2411_v28  ;;  %407 = vst [vmem:[#allocation2 + $0x1b0] sm:$0xff] %v333_v35  ;;  %v2389_v28 = vld [vmem:[%s3838_s3 + $0x108] sm:$0xff]  ;;  %v293_v40 = vmul.f32 %v2646_v5, %v257_v26  ;;  %v2464_v26 = vld [vmem:[%s3838_s3 + $0x360] sm:$0xff] }
  0x42   : > { %1180 = vmatpush.msrb.mxu0 %v2429_v31  ;;  %632 = vmatpush.msrb.mxu1 %v453_v32  ;;  %392 = vst [vmem:[#allocation2 + $0xc8] sm:$0xff] %v2962_v54  ;;  %v335_v31 = vadd.f32 %v2652_v7, %v299_v6  ;;  %v300_v32 = vmul.f32 %v2646_v5, %v264_v12  ;;  %v414_v6 = vld [vmem:[#allocation2 + $0x7] sm:$0xff] }
  0x43   : > { %560 = vmatmul.f32.gmra.mxu1 %v2895_v29  ;;  %584 = vmatmul.f32.gmra.mxu2 %v2898_v30  ;;  %400 = vst [vmem:[#allocation2 + $0x148] sm:$0xff] %v2965_v55  ;;  %v3087_v56 = vadd.f32 %v2652_v7, %v293_v40  ;;  %v737_v8 = vld [vmem:[#allocation2 + $0x9] sm:$0xff] }
  0x44   : > { %795 = vmatpush.msrb.mxu2 %v2394_v37  ;;  %989 = vmatpush.msrb.mxu3 %v2410_v17  ;;  %383 = vst [vmem:[#allocation2 + $0x30] sm:$0xff] %v2945_v47  ;;  %v265_v37 = vld [vmem:[%s2641_s8 + $0xe8] sm:$0xff]  ;;  %v2423_v17 = vld [vmem:[%s3838_s3 + $0x218] sm:$0xff] }
  0x45   : > { %608 = vmatmul.f32.gmra.mxu3 %v333_v35  ;;  %1181 = vmatpush.msrb.mxu0 %v2428_v39  ;;  %408 = vst [vmem:[#allocation2 + $0x1c8] sm:$0xff] %v334_v62  ;;  %v3040_v35 = vadd.f32 %v2652_v7, %v284_v11  ;;  %v3051_v39 = vadd.f32 %v2652_v7, %v292_v18  ;;  %v2465_v11 = vld [vmem:[%s3838_s3 + $0x368] sm:$0xff]  ;;  %v738_v18 = vld [vmem:[#allocation2 + $0x11] sm:$0xff] }
  0x46   : > { %633 = vmatpush.msrb.mxu1 %v452_v42  ;;  %796 = vmatpush.msrb.mxu2 %v2393_v43  ;;  %393 = vst [vmem:[#allocation2 + $0xd0] sm:$0xff] %v2998_v10  ;;  %v3058_v42 = vadd.f32 %v2652_v7, %v275_v25  ;;  %v276_v43 = vmul.f32 %v2646_v5, %v240_v33  ;;  %v2481_v12 = vld [vmem:[%s3838_s3 + $0x3e8] sm:$0xff] }
  0x47   : > { %990 = vmatpush.msrb.mxu3 %v2409_v45  ;;  %1182 = vmatpush.msrb.mxu0 %v2427_v46  ;;  %401 = vst [vmem:[#allocation2 + $0x150] sm:$0xff] %v3009_v16  ;;  %v2404_v45 = vld [vmem:[%s3838_s3 + $0x180] sm:$0xff]  ;;  %v336_v46 = vadd.f32 %v2652_v7, %v300_v32  ;;  %v301_v48 = vmul.f32 %v2646_v5, %v265_v37 }
  0x48   : > { %634 = vmatpush.msrb.mxu1 %v451_v50  ;;  %797 = vmatpush.msrb.mxu2 %v2392_v51  ;;  %384 = vst [vmem:[#allocation2 + $0x48] sm:$0xff] %v3021_v23  ;;  %v3077_v50 = vadd.f32 %v2652_v7, %v285_v36  ;;  %v446_v51 = vld [vmem:[%s3838_s3] sm:$0xff]  ;;  %v2447_v36 = vld [vmem:[%s3838_s3 + $0x2d8] sm:$0xff] }
  0x49   : > { %536 = vmatmul.f32.gmra.mxu0 %v2945_v47  ;;  %991 = vmatpush.msrb.mxu3 %v2408_v53  ;;  %409 = vst [vmem:[#allocation2 + $0x1d0] sm:$0xff] %v335_v31  ;;  %v277_v53 = vmul.f32 %v2646_v5, %v241_v41  ;;  %v2451_v5 = vld [vmem:[%s3838_s3 + $0x2f8] sm:$0xff]  ;;  %v337_v60 = vadd.f32 %v2652_v7, %v301_v48  ;;  %v937_v41 = vld [vmem:[#allocation2 + $0x87] sm:$0xff]  ;;  %v2494_v48 = vld [vmem:[%s3838_s3 + $0x450] sm:$0xff] }
  0x4a   : > { %1183 = vmatpush.msrb.mxu0 %v2426_v58  ;;  %635 = vmatpush.msrb.mxu1 %v450_v59  ;;  %394 = vst [vmem:[#allocation2 + $0xe8] sm:$0xff] %v3040_v35  ;;  %v2483_v58 = vld [vmem:[%s3838_s3 + $0x3f8] sm:$0xff]  ;;  %v3097_v59 = vadd.f32 %v2652_v7, %v276_v43  ;;  %v2478_v43 = vld [vmem:[%s3838_s3 + $0x3d0] sm:$0xff] }
  0x4b   : > { %563 = vmatmul.f32.gmra.mxu1 %v2962_v54  ;;  %587 = vmatmul.f32.gmra.mxu2 %v2965_v55  ;;  %402 = vst [vmem:[#allocation2 + $0x168] sm:$0xff] %v3051_v39  ;;  %v3106_v61 = vadd.f32 %v2652_v7, %v277_v53  ;;  %v2466_v7 = vld [vmem:[%s3838_s3 + $0x370] sm:$0xff]  ;;  %v2477_v53 = vld [vmem:[%s3838_s3 + $0x3c8] sm:$0xff] }
  0x4c   : > { %798 = vmatpush.msrb.mxu2 %v2391_v3  ;;  %992 = vmatpush.msrb.mxu3 %v2407_v4  ;;  %385 = vst [vmem:[#allocation2 + $0x50] sm:$0xff] %v3058_v42  ;;  %v2450_v3 = vld [vmem:[%s3838_s3 + $0x2f0] sm:$0xff] }
  0x4d   : > { %611 = vmatmul.f32.gmra.mxu3 %v334_v62  ;;  %1184 = vmatpush.msrb.mxu0 %v2425_v9  ;;  %410 = vst [vmem:[#allocation2 + $0x1e8] sm:$0xff] %v336_v46  ;;  %v2420_v62 = vld [vmem:[%s3838_s3 + $0x200] sm:$0xff]  ;;  %v2498_v4 = vld [vmem:[%s3838_s3 + $0x470] sm:$0xff] }
  0x4e   : > { %636 = vmatpush.msrb.mxu1 %v449_v13  ;;  %799 = vmatpush.msrb.mxu2 %v2390_v15  ;;  %395 = vst [vmem:[#allocation2 + $0xf0] sm:$0xff] %v3077_v50  ;;  %v931_v9 = vld [vmem:[#allocation2 + $0x27] sm:$0xff]  ;;  %v415_v15 = vld [vmem:[#allocation2 + $0xf] sm:$0xff] }
  0x4f   : > { %993 = vmatpush.msrb.mxu3 %v2406_v19  ;;  %1185 = vmatpush.msrb.mxu0 %v2424_v20  ;;  %403 = vst [vmem:[#allocation2 + $0x170] sm:$0xff] %v3087_v56  ;;  %v2449_v13 = vld [vmem:[%s3838_s3 + $0x2e8] sm:$0xff] }
  0x50   : > { %637 = vmatpush.msrb.mxu1 %v448_v27  ;;  %800 = vmatpush.msrb.mxu2 %v2389_v28  ;;  %386 = vst [vmem:[#allocation2 + $0x68] sm:$0xff] %v3097_v59  ;;  %v932_v19 = vld [vmem:[#allocation2 + $0x2f] sm:$0xff]  ;;  %v933_v25 = vld [vmem:[#allocation2 + $0x47] sm:$0xff] }
  0x51   : > { %539 = vmatmul.f32.gmra.mxu0 %v3021_v23  ;;  %994 = vmatpush.msrb.mxu3 %v2405_v34  ;;  %411 = vst [vmem:[#allocation2 + $0x1f0] sm:$0xff] %v337_v60  ;;  %v2497_v20 = vld [vmem:[%s3838_s3 + $0x468] sm:$0xff]  ;;  %v2448_v27 = vld [vmem:[%s3838_s3 + $0x2e0] sm:$0xff]  ;;  %v2463_v34 = vld [vmem:[%s3838_s3 + $0x358] sm:$0xff] }
  0x52   : > { %1186 = vmatpush.msrb.mxu0 %v2423_v17  ;;  %638 = vmatpush.msrb.mxu1 %v447_v38  ;;  %387 = vst [vmem:[#allocation2 + $0x70] sm:$0xff] %v3106_v61  ;;  %v739_v21 = vld [vmem:[#allocation2 + $0x29] sm:$0xff]  ;;  %v2495_v38 = vld [vmem:[%s3838_s3 + $0x458] sm:$0xff] }
  0x53   : > { %566 = vmatmul.f32.gmra.mxu1 %v2998_v10  ;;  %590 = vmatmul.f32.gmra.mxu2 %v3009_v16  ;;  %v934_v28 = vld [vmem:[#allocation2 + $0x4f] sm:$0xff] }
  0x54   : > { %801 = vmatpush.msrb.mxu2 %v2388_v44  ;;  %995 = vmatpush.msrb.mxu3 %v2404_v45  ;;  %v741_v32 = vld [vmem:[#allocation2 + $0x49] sm:$0xff]  ;;  %v742_v37 = vld [vmem:[#allocation2 + $0x51] sm:$0xff] }
  0x55   : > { %614 = vmatmul.f32.gmra.mxu3 %v335_v31  ;;  %1187 = vmatpush.msrb.mxu0 %v2422_v49  ;;  %v2496_v31 = vld [vmem:[%s3838_s3 + $0x460] sm:$0xff]  ;;  %v2446_v44 = vld [vmem:[%s3838_s3 + $0x2d0] sm:$0xff] }
  0x56   : > { %639 = vmatpush.msrb.mxu1 %v446_v51  ;;  %1563 = vmatpush.msra.mxu2 %v2467_v52  ;;  %v745_v51 = vld [vmem:[#allocation2 + $0x89] sm:$0xff] }
  0x57   : > { %1188 = vmatpush.msrb.mxu0 %v2421_v57  ;;  %1757 = vmatpush.msra.mxu3 %v2483_v58  ;;  %v935_v33 = vld [vmem:[#allocation2 + $0x67] sm:$0xff] }
  0x58   : > { %1368 = vmatpush.msra.mxu1 %v2451_v5  ;;  %1564 = vmatpush.msra.mxu2 %v2466_v7  ;;  %v939_v52 = vld [vmem:[#allocation2 + $0xa7] sm:$0xff] }
  0x59   : > { %542 = vmatmul.f32.gmra.mxu0 %v3058_v42  ;;  %1758 = vmatpush.msra.mxu3 %v2482_v2  ;;  %v936_v17 = vld [vmem:[#allocation2 + $0x6f] sm:$0xff] }
  0x5a   : > { %1189 = vmatpush.msrb.mxu0 %v2420_v62  ;;  %1369 = vmatpush.msra.mxu1 %v2450_v3  ;;  %v743_v40 = vld [vmem:[#allocation2 + $0x69] sm:$0xff]  ;;  %v744_v45 = vld [vmem:[#allocation2 + $0x71] sm:$0xff] }
  0x5b   : > { %569 = vmatmul.f32.gmra.mxu1 %v3040_v35  ;;  %593 = vmatmul.f32.gmra.mxu2 %v3051_v39  ;;  %v2493_v62 = vld [vmem:[%s3838_s3 + $0x448] sm:$0xff] }
  0x5c   : > { %1951 = vmatpush.msra.mxu0 %v2499_v63  ;;  %1565 = vmatpush.msra.mxu2 %v2465_v11 }
  0x5d   : > { %617 = vmatmul.f32.gmra.mxu3 %v336_v46  ;;  %1370 = vmatpush.msra.mxu1 %v2449_v13  ;;  %v938_v46 = vld [vmem:[#allocation2 + $0x8f] sm:$0xff] }
  0x5e   : > { %1952 = vmatpush.msra.mxu0 %v2498_v4  ;;  %1759 = vmatpush.msra.mxu3 %v2481_v12  ;;  %v747_v4 = vld [vmem:[#allocation2 + $0xa9] sm:$0xff] }
  0x5f   : > { %1566 = vmatpush.msra.mxu2 %v2464_v26  ;;  %1371 = vmatpush.msra.mxu1 %v2448_v27  ;;  %v2459_v27 = vld [vmem:[%s3838_s3 + $0x338] sm:$0xff] }
  0x60   : > { %1953 = vmatpush.msra.mxu0 %v2497_v20 }
  0x61   : > { %545 = vmatmul.f32.gmra.mxu0 %v3097_v59  ;;  %1567 = vmatpush.msra.mxu2 %v2463_v34  ;;  %v750_v34 = vld [vmem:[#allocation2 + $0xd1] sm:$0xff] }
  0x62   : > { %1954 = vmatpush.msra.mxu0 %v2496_v31  ;;  %1372 = vmatpush.msra.mxu1 %v2447_v36  ;;  %v2491_v36 = vld [vmem:[%s3838_s3 + $0x438] sm:$0xff] }
  0x63   : > { %572 = vmatmul.f32.gmra.mxu1 %v3077_v50  ;;  %596 = vmatmul.f32.gmra.mxu2 %v3087_v56 }
  0x64   : > { %1955 = vmatpush.msra.mxu0 %v2495_v38  ;;  %1373 = vmatpush.msra.mxu1 %v2446_v44 }
  0x65   : > { %620 = vmatmul.f32.gmra.mxu3 %v337_v60  ;;  %v746_v60 = vld [vmem:[#allocation2 + $0x91] sm:$0xff] }
  0x66   : > { %1956 = vmatpush.msra.mxu0 %v2494_v48 }
  0x68   : > { %1957 = vmatpush.msra.mxu0 %v2493_v62 }
  0x69   : > { %548 = vmatmul.f32.gmra.mxu0 %v3106_v61 }
  0x6b   : > { %640 = vmatmul.f32.vlgmr.msrb.gmra.mxu1 %v414_v6  ;;  %802 = vmatmul.f32.vlgmr.msrb.gmra.mxu2 %v737_v8  ;;  %v2460_v6 = vld [vmem:[%s3838_s3 + $0x340] sm:$0xff] }
  0x6c   : > { %v2476_v8 = vld [vmem:[%s3838_s3 + $0x3c0] sm:$0xff] }
  0x6d   : > { %996 = vmatmul.f32.vlgmr.msrb.gmra.mxu3 %v931_v9 }
  0x71   : > { %1190 = vmatmul.f32.vlgmr.msrb.gmra.mxu0 %v2879_v22  ;;  %v2480_v22 = vld [vmem:[%s3838_s3 + $0x3e0] sm:$0xff] }
  0x72   : > { %1760 = vmatpush.msra.mxu3 %v2480_v22  ;;  %v749_v22 = vld [vmem:[#allocation2 + $0xc9] sm:$0xff] }
  0x73   : > { %643 = vmatmul.f32.gmra.mxu1 %v415_v15  ;;  %805 = vmatmul.f32.gmra.mxu2 %v738_v18  ;;  %v748_v15 = vld [vmem:[#allocation2 + $0xb1] sm:$0xff] }
  0x74   : > { %v942_v18 = vld [vmem:[#allocation2 + $0xcf] sm:$0xff] }
  0x75   : > { %999 = vmatmul.f32.gmra.mxu3 %v932_v19 }
  0x79   : > { %1193 = vmatmul.f32.gmra.mxu0 %v2945_v47  ;;  %v740_v47 = vld [vmem:[#allocation2 + $0x31] sm:$0xff] }
  0x7b   : > { %646 = vmatmul.f32.gmra.mxu1 %v931_v9  ;;  %808 = vmatmul.f32.gmra.mxu2 %v739_v21 }
  0x7d   : > { %1002 = vmatmul.f32.gmra.mxu3 %v933_v25 }
  0x81   : > { %1196 = vmatmul.f32.gmra.mxu0 %v3021_v23  ;;  %v2479_v23 = vld [vmem:[%s3838_s3 + $0x3d8] sm:$0xff] }
  0x82   : > { %1761 = vmatpush.msra.mxu3 %v2479_v23  ;;  %v944_v23 = vld [vmem:[#allocation2 + $0xef] sm:$0xff] }
  0x83   : > { %649 = vmatmul.f32.gmra.mxu1 %v932_v19  ;;  %811 = vmatmul.f32.gmra.mxu2 %v740_v47  ;;  %v2492_v19 = vld [vmem:[%s3838_s3 + $0x440] sm:$0xff]  ;;  %v2475_v47 = vld [vmem:[%s3838_s3 + $0x3b8] sm:$0xff] }
  0x84   : > { %1762 = vmatpush.msra.mxu3 %v2478_v43  ;;  %1958 = vmatpush.msra.mxu0 %v2492_v19  ;;  %v2474_v43 = vld [vmem:[%s3838_s3 + $0x3b0] sm:$0xff] }
  0x85   : > { %1005 = vmatmul.f32.gmra.mxu3 %v934_v28 }
  0x86   : > { %1763 = vmatpush.msra.mxu3 %v2477_v53  ;;  %1959 = vmatpush.msra.mxu0 %v2491_v36  ;;  %v2490_v53 = vld [vmem:[%s3838_s3 + $0x430] sm:$0xff] }
  0x88   : > { %1764 = vmatpush.msra.mxu3 %v2476_v8  ;;  %1960 = vmatpush.msra.mxu0 %v2490_v53  ;;  %v2457_v8 = vld [vmem:[%s3838_s3 + $0x328] sm:$0xff] }
  0x89   : > { %1199 = vmatmul.f32.gmra.mxu0 %v3058_v42  ;;  %v2462_v42 = vld [vmem:[%s3838_s3 + $0x350] sm:$0xff]  ;;  %v949_v53 = vld [vmem:[#allocation2 + $0x147] sm:$0xff] }
  0x8a   : > { %1568 = vmatpush.msra.mxu2 %v2462_v42  ;;  %1765 = vmatpush.msra.mxu3 %v2475_v47  ;;  %v2458_v42 = vld [vmem:[%s3838_s3 + $0x330] sm:$0xff] }
  0x8b   : > { %652 = vmatmul.f32.gmra.mxu1 %v933_v25  ;;  %814 = vmatmul.f32.gmra.mxu2 %v741_v32 }
  0x8c   : > { %1766 = vmatpush.msra.mxu3 %v2474_v43 }
  0x8d   : > { %1008 = vmatmul.f32.gmra.mxu3 %v935_v33 }
  0x91   : > { %1202 = vmatmul.f32.gmra.mxu0 %v3097_v59 }
  0x93   : > { %655 = vmatmul.f32.gmra.mxu1 %v934_v28  ;;  %817 = vmatmul.f32.gmra.mxu2 %v742_v37 }
  0x95   : > { %1011 = vmatmul.f32.gmra.mxu3 %v936_v17 }
  0x99   : > { %1205 = vmatmul.f32.gmra.mxu0 %v3106_v61  ;;  %v940_v61 = vld [vmem:[#allocation2 + $0xaf] sm:$0xff] }
  0x9b   : > { %658 = vmatmul.f32.gmra.mxu1 %v935_v33  ;;  %820 = vmatmul.f32.gmra.mxu2 %v743_v40 }
  0x9d   : > { %1014 = vmatmul.f32.gmra.mxu3 %v937_v41 }
  0xa1   : > { %1208 = vmatmul.f32.gmra.mxu0 %v2663_v14  ;;  %v2461_v14 = vld [vmem:[%s3838_s3 + $0x348] sm:$0xff] }
  0xa2   : > { %1569 = vmatpush.msra.mxu2 %v2461_v14  ;;  %v946_v14 = vld [vmem:[#allocation2 + $0x10f] sm:$0xff] }
  0xa3   : > { %661 = vmatmul.f32.gmra.mxu1 %v936_v17  ;;  %823 = vmatmul.f32.gmra.mxu2 %v744_v45 }
  0xa4   : > { %1570 = vmatpush.msra.mxu2 %v2460_v6  ;;  %v947_v6 = vld [vmem:[#allocation2 + $0x127] sm:$0xff] }
  0xa5   : > { %1017 = vmatmul.f32.gmra.mxu3 %v938_v46 }
  0xa6   : > { %1571 = vmatpush.msra.mxu2 %v2459_v27 }
  0xa8   : > { %v3189_v49 = vpop.f32.mrf.mxu1  ;;  %1572 = vmatpush.msra.mxu2 %v2458_v42 }
  0xa9   : > { %1211 = vmatmul.f32.gmra.mxu0 %v2686_v24  ;;  %v2445_v24 = vld [vmem:[%s3838_s3 + $0x2c8] sm:$0xff] }
  0xaa   : > { %1374 = vmatpush.msra.mxu1 %v2445_v24  ;;  %1573 = vmatpush.msra.mxu2 %v2457_v8 }
  0xab   : > { %664 = vmatmul.f32.gmra.mxu1 %v937_v41  ;;  %826 = vmatmul.f32.gmra.mxu2 %v745_v51  ;;  %v751_v41 = vld [vmem:[#allocation2 + $0xe9] sm:$0xff] }
  0xad   : > { %1020 = vmatmul.f32.gmra.mxu3 %v939_v52 }
  0xae   : > { %v3198_v57 = vpop.f32.mrf.mxu2  ;;  %v3200_v58 = vpop.f32.mrf.mxu0 }
  0xb0   : > { %v3205_v59 = vpop.f32.mrf.mxu1  ;;  %v3207_v5 = vpop.f32.mrf.mxu3 }
  0xb1   : > { %1214 = vmatmul.f32.gmra.mxu0 %v2827_v0  ;;  %v941_v0 = vld [vmem:[#allocation2 + $0xc7] sm:$0xff] }
  0xb3   : > { %667 = vmatmul.f32.gmra.mxu1 %v938_v46  ;;  %829 = vmatmul.f32.gmra.mxu2 %v746_v60  ;;  %v1139_v46 = vld [vmem:[#allocation2 + $0x108] sm:$0xff] }
  0xb5   : > { %1023 = vmatmul.f32.gmra.mxu3 %v940_v61 }
  0xb6   : > { %v3213_v63 = vpop.f32.mrf.mxu2  ;;  %v3215_v7 = vpop.f32.mrf.mxu0 }
  0xb8   : > { %v3217_v2 = vpop.f32.mrf.mxu1  ;;  %v3219_v3 = vpop.f32.mrf.mxu3 }
  0xb9   : > { %1217 = vmatmul.f32.gmra.mxu0 %v2895_v29  ;;  %v2444_v29 = vld [vmem:[%s3838_s3 + $0x2c0] sm:$0xff] }
  0xba   : > { %1375 = vmatpush.msra.mxu1 %v2444_v29 }
  0xbb   : > { %670 = vmatmul.f32.gmra.mxu1 %v939_v52  ;;  %832 = vmatmul.f32.gmra.mxu2 %v747_v4  ;;  %v752_v52 = vld [vmem:[#allocation2 + $0xf1] sm:$0xff] }
  0xbd   : > { %1026 = vmatmul.f32.gmra.mxu3 %v941_v0 }
  0xbe   : > { %v3228_v9 = vpop.f32.mrf.mxu2  ;;  %v3230_v11 = vpop.f32.mrf.mxu0 }
  0xc0   : > { %v3235_v12 = vpop.f32.mrf.mxu1  ;;  %v3237_v13 = vpop.f32.mrf.mxu3 }
  0xc1   : > { %1220 = vmatmul.f32.gmra.mxu0 %v2962_v54  ;;  %v943_v54 = vld [vmem:[#allocation2 + $0xe7] sm:$0xff] }
  0xc3   : > { %673 = vmatmul.f32.gmra.mxu1 %v940_v61  ;;  %835 = vmatmul.f32.gmra.mxu2 %v748_v15  ;;  %v1140_v61 = vld [vmem:[#allocation2 + $0x110] sm:$0xff]  ;;  %v2473_v15 = vld [vmem:[%s3838_s3 + $0x3a8] sm:$0xff] }
  0xc4   : > { %1767 = vmatpush.msra.mxu3 %v2473_v15 }
  0xc5   : > { %1029 = vmatmul.f32.gmra.mxu3 %v942_v18 }
  0xc6   : > { %v3243_v20 = vpop.f32.mrf.mxu2  ;;  %v3245_v21 = vpop.f32.mrf.mxu0 }
  0xc8   : > { %v3247_v25 = vpop.f32.mrf.mxu1  ;;  %v3249_v26 = vpop.f32.mrf.mxu3 }
  0xc9   : > { %1223 = vmatmul.f32.gmra.mxu0 %v2998_v10  ;;  %v2443_v10 = vld [vmem:[%s3838_s3 + $0x2b8] sm:$0xff] }
  0xca   : > { %1376 = vmatpush.msra.mxu1 %v2443_v10  ;;  %v754_v10 = vld [vmem:[#allocation2 + $0x111] sm:$0xff] }
  0xcb   : > { %676 = vmatmul.f32.gmra.mxu1 %v941_v0  ;;  %838 = vmatmul.f32.gmra.mxu2 %v749_v22  ;;  %v753_v0 = vld [vmem:[#allocation2 + $0x109] sm:$0xff] }
  0xcd   : > { %1032 = vmatmul.f32.gmra.mxu3 %v943_v54 }
  0xce   : > { %v3258_v28 = vpop.f32.mrf.mxu2  ;;  %v3260_v31 = vpop.f32.mrf.mxu0 }
  0xd0   : > { %v3265_v32 = vpop.f32.mrf.mxu1  ;;  %v3267_v33 = vpop.f32.mrf.mxu3 }
  0xd1   : > { %1226 = vmatmul.f32.gmra.mxu0 %v3040_v35  ;;  %v945_v35 = vld [vmem:[#allocation2 + $0x107] sm:$0xff] }
  0xd3   : > { %679 = vmatmul.f32.gmra.mxu1 %v942_v18  ;;  %841 = vmatmul.f32.gmra.mxu2 %v750_v34 }
  0xd5   : > { %1035 = vmatmul.f32.gmra.mxu3 %v944_v23 }
  0xd6   : > { %v3273_v37 = vpop.f32.mrf.mxu2  ;;  %v3275_v17 = vpop.f32.mrf.mxu0 }
  0xd8   : > { %v3277_v38 = vpop.f32.mrf.mxu1  ;;  %v3279_v40 = vpop.f32.mrf.mxu3 }
  0xd9   : > { %1229 = vmatmul.f32.gmra.mxu0 %v3077_v50  ;;  %v2442_v50 = vld [vmem:[%s3838_s3 + $0x2b0] sm:$0xff] }
  0xda   : > { %1377 = vmatpush.msra.mxu1 %v2442_v50 }
  0xdb   : > { %682 = vmatmul.f32.gmra.mxu1 %v943_v54  ;;  %844 = vmatmul.f32.gmra.mxu2 %v751_v41  ;;  %v2441_v54 = vld [vmem:[%s3838_s3 + $0x2a8] sm:$0xff] }
  0xdc   : > { %1378 = vmatpush.msra.mxu1 %v2441_v54  ;;  %v2489_v41 = vld [vmem:[%s3838_s3 + $0x428] sm:$0xff] }
  0xdd   : > { %1038 = vmatmul.f32.gmra.mxu3 %v945_v35  ;;  %1961 = vmatpush.msra.mxu0 %v2489_v41 }
  0xde   : > { %v3288_v44 = vpop.f32.mrf.mxu2  ;;  %v3290_v45 = vpop.f32.mrf.mxu0 }
  0xe0   : > { %v3295_v48 = vpop.f32.mrf.mxu1  ;;  %v3297_v51 = vpop.f32.mrf.mxu3 }
  0xe1   : > { %1232 = vmatmul.f32.gmra.mxu0 %v1139_v46 }
  0xe3   : > { %685 = vmatmul.f32.gmra.mxu1 %v944_v23  ;;  %847 = vmatmul.f32.gmra.mxu2 %v752_v52  ;;  %v755_v52 = vld [vmem:[#allocation2 + $0x129] sm:$0xff] }
  0xe5   : > { %1041 = vmatmul.f32.gmra.mxu3 %v946_v14 }
  0xe6   : > { %v3302_v24 = vpop.f32.mrf.mxu2  ;;  %v3304_v60 = vpop.f32.mrf.mxu0 }
  0xe8   : > { %v3306_v62 = vpop.f32.mrf.mxu3  ;;  %v641_v4 = vpop.f32.mrf.mxu1 }
  0xe9   : > { %1235 = vmatmul.f32.gmra.mxu0 %v1140_v61  ;;  %v642_v29 = vadd.f32 %v641_v4, %v3200_v58  ;;  %v948_v58 = vld [vmem:[#allocation2 + $0x12f] sm:$0xff]  ;;  %v2472_v4 = vld [vmem:[%s3838_s3 + $0x3a0] sm:$0xff] }
  0xea   : > { %1768 = vmatpush.msra.mxu3 %v2472_v4 }
  0xeb   : > { %688 = vmatmul.f32.gmra.mxu1 %v945_v35  ;;  %850 = vmatmul.f32.gmra.mxu2 %v753_v0 }
  0xed   : > { %1044 = vmatmul.f32.gmra.mxu3 %v947_v6 }
  0xee   : > { %v803_v18 = vpop.f32.mrf.mxu2  ;;  %v1191_v19 = vpop.f32.mrf.mxu0 }
  0xef   : > { %v899_v22 = vadd.f32 %v803_v18, %v642_v29  ;;  %v756_v18 = vld [vmem:[#allocation2 + $0x131] sm:$0xff] }
  0xf0   : > { %v644_v27 = vpop.f32.mrf.mxu1  ;;  %v997_v47 = vpop.f32.mrf.mxu3 }
  0xf1   : > { %v1093_v34 = vadd.f32 %v997_v47, %v899_v22  ;;  %1238 = vmatmul.f32.gmra.mxu0 %v2830_v1  ;;  %v645_v36 = vadd.f32 %v644_v27, %v3215_v7  ;;  %v2456_v7 = vld [vmem:[%s3838_s3 + $0x320] sm:$0xff] }
  0xf2   : > { %1574 = vmatpush.msra.mxu2 %v2456_v7  ;;  %v2488_v27 = vld [vmem:[%s3838_s3 + $0x420] sm:$0xff] }
  0xf3   : > { %v3319_v23 = vadd.f32 %v1191_v19, %v1093_v34  ;;  %691 = vmatmul.f32.gmra.mxu1 %v946_v14  ;;  %853 = vmatmul.f32.gmra.mxu2 %v754_v10 }
  0xf4   : > { %1962 = vmatpush.msra.mxu0 %v2488_v27  ;;  %v953_v27 = vld [vmem:[#allocation2 + $0x187] sm:$0xff] }
  0xf5   : > { %1047 = vmatmul.f32.gmra.mxu3 %v948_v58 }
  0xf6   : > { %v806_v35 = vpop.f32.mrf.mxu2  ;;  %v1194_v42 = vpop.f32.mrf.mxu0 }
  0xf7   : > { %v900_v43 = vadd.f32 %v806_v35, %v645_v36  ;;  %v757_v35 = vld [vmem:[#allocation2 + $0x149] sm:$0xff] }
  0xf8   : > { %v647_v46 = vpop.f32.mrf.mxu1  ;;  %v1000_v50 = vpop.f32.mrf.mxu3 }
  0xf9   : > { %v1094_v1 = vadd.f32 %v1000_v50, %v900_v43  ;;  %1241 = vmatmul.f32.gmra.mxu0 %v2898_v30  ;;  %v648_v61 = vadd.f32 %v647_v46, %v3230_v11  ;;  %v950_v11 = vld [vmem:[#allocation2 + $0x14f] sm:$0xff]  ;;  %v2471_v46 = vld [vmem:[%s3838_s3 + $0x398] sm:$0xff] }
  0xfa   : > { %1769 = vmatpush.msra.mxu3 %v2471_v46 }
  0xfb   : > { %v3326_v14 = vadd.f32 %v1194_v42, %v1094_v1  ;;  %694 = vmatmul.f32.gmra.mxu1 %v947_v6  ;;  %856 = vmatmul.f32.gmra.mxu2 %v755_v52  ;;  %v2440_v6 = vld [vmem:[%s3838_s3 + $0x2a0] sm:$0xff]  ;;  %v2439_v1 = vld [vmem:[%s3838_s3 + $0x298] sm:$0xff] }
  0xfc   : > { %1379 = vmatpush.msra.mxu1 %v2440_v6  ;;  %v951_v42 = vld [vmem:[#allocation2 + $0x167] sm:$0xff] }
  0xfd   : > { %1050 = vmatmul.f32.gmra.mxu3 %v949_v53 }
  0xfe   : > { %v809_v0 = vpop.f32.mrf.mxu2  ;;  %v1197_v8 = vpop.f32.mrf.mxu0  ;;  %1380 = vmatpush.msra.mxu1 %v2439_v1 }
  0xff   : > { %v901_v30 = vadd.f32 %v809_v0, %v648_v61  ;;  %v758_v61 = vld [vmem:[#allocation2 + $0x151] sm:$0xff] }
 0x100   : > { %v650_v29 = vpop.f32.mrf.mxu1  ;;  %v1003_v15 = vpop.f32.mrf.mxu3 }
 0x101   : > { %v1095_v19 = vadd.f32 %v1003_v15, %v901_v30  ;;  %1244 = vmatmul.f32.gmra.mxu0 %v2965_v55  ;;  %v651_v54 = vadd.f32 %v650_v29, %v3245_v21  ;;  %v2455_v21 = vld [vmem:[%s3838_s3 + $0x318] sm:$0xff] }
 0x102   : > { %1575 = vmatpush.msra.mxu2 %v2455_v21  ;;  %v2487_v30 = vld [vmem:[%s3838_s3 + $0x418] sm:$0xff] }
 0x103   : > { %v3339_v22 = vadd.f32 %v1197_v8, %v1095_v19  ;;  %697 = vmatmul.f32.gmra.mxu1 %v948_v58  ;;  %859 = vmatmul.f32.gmra.mxu2 %v756_v18  ;;  %v760_v21 = vld [vmem:[#allocation2 + $0x171] sm:$0xff] }
 0x104   : > { %1963 = vmatpush.msra.mxu0 %v2487_v30 }
 0x105   : > { %1053 = vmatmul.f32.gmra.mxu3 %v950_v11 }
 0x106   : > { %v812_v47 = vpop.f32.mrf.mxu2  ;;  %v1200_v10 = vpop.f32.mrf.mxu0 }
 0x107   : > { %v902_v34 = vadd.f32 %v812_v47, %v651_v54  ;;  %v759_v54 = vld [vmem:[#allocation2 + $0x169] sm:$0xff] }
 0x108   : > { %v653_v36 = vpop.f32.mrf.mxu1  ;;  %v1006_v41 = vpop.f32.mrf.mxu3 }
 0x109   : > { %v1096_v55 = vadd.f32 %v1006_v41, %v902_v34  ;;  %1247 = vmatmul.f32.gmra.mxu0 %v3009_v16  ;;  %v654_v43 = vadd.f32 %v653_v36, %v3260_v31  ;;  %v952_v31 = vld [vmem:[#allocation2 + $0x16f] sm:$0xff] }
 0x10b   : > { %v3346_v58 = vadd.f32 %v1200_v10, %v1096_v55  ;;  %700 = vmatmul.f32.gmra.mxu1 %v949_v53  ;;  %862 = vmatmul.f32.gmra.mxu2 %v757_v35  ;;  %v2470_v10 = vld [vmem:[%s3838_s3 + $0x390] sm:$0xff] }
 0x10c   : > { %1770 = vmatpush.msra.mxu3 %v2470_v10  ;;  %v2438_v35 = vld [vmem:[%s3838_s3 + $0x290] sm:$0xff] }
 0x10d   : > { %1056 = vmatmul.f32.gmra.mxu3 %v951_v42  ;;  %1381 = vmatpush.msra.mxu1 %v2438_v35  ;;  %v762_v10 = vld [vmem:[#allocation2 + $0x191] sm:$0xff] }
 0x10e   : > { %v815_v50 = vpop.f32.mrf.mxu2  ;;  %v1203_v52 = vpop.f32.mrf.mxu0  ;;  %v956_v35 = vld [vmem:[#allocation2 + $0x1af] sm:$0xff] }
 0x10f   : > { %v903_v16 = vadd.f32 %v815_v50, %v654_v43  ;;  %v954_v43 = vld [vmem:[#allocation2 + $0x18f] sm:$0xff] }
 0x110   : > { %v656_v53 = vpop.f32.mrf.mxu1  ;;  %v1009_v7 = vpop.f32.mrf.mxu3 }
 0x111   : > { %v1097_v4 = vadd.f32 %v1009_v7, %v903_v16  ;;  %1250 = vmatmul.f32.gmra.mxu0 %v3051_v39  ;;  %v657_v8 = vadd.f32 %v656_v53, %v3275_v17  ;;  %v2454_v17 = vld [vmem:[%s3838_s3 + $0x310] sm:$0xff] }
 0x112   : > { %1576 = vmatpush.msra.mxu2 %v2454_v17  ;;  %v3387_v53 = vld [vmem:[#allocation2 + $0x190] sm:$0xff] }
 0x113   : > { %v3359_v0 = vadd.f32 %v1203_v52, %v1097_v4  ;;  %703 = vmatmul.f32.gmra.mxu1 %v950_v11  ;;  %865 = vmatmul.f32.gmra.mxu2 %v758_v61  ;;  %v2486_v52 = vld [vmem:[%s3838_s3 + $0x410] sm:$0xff] }
 0x114   : > { %1964 = vmatpush.msra.mxu0 %v2486_v52 }
 0x115   : > { %1059 = vmatmul.f32.gmra.mxu3 %v952_v31 }
 0x116   : > { %v818_v6 = vpop.f32.mrf.mxu2  ;;  %v1206_v29 = vpop.f32.mrf.mxu0 }
 0x117   : > { %v904_v15 = vadd.f32 %v818_v6, %v657_v8  ;;  %v761_v8 = vld [vmem:[#allocation2 + $0x189] sm:$0xff] }
 0x118   : > { %v659_v18 = vpop.f32.mrf.mxu1  ;;  %v1012_v19 = vpop.f32.mrf.mxu3 }
 0x119   : > { %v1098_v39 = vadd.f32 %v1012_v19, %v904_v15  ;;  %1253 = vmatmul.f32.gmra.mxu0 %v3087_v56  ;;  %v660_v47 = vadd.f32 %v659_v18, %v3290_v45  ;;  %v3375_v56 = vld [vmem:[#allocation2 + $0x188] sm:$0xff] }
 0x11a   : > { %v2469_v15 = vld [vmem:[%s3838_s3 + $0x388] sm:$0xff] }
 0x11b   : > { %v3366_v11 = vadd.f32 %v1206_v29, %v1098_v39  ;;  %706 = vmatmul.f32.gmra.mxu1 %v951_v42  ;;  %868 = vmatmul.f32.gmra.mxu2 %v759_v54  ;;  %v3399_v54 = vld [vmem:[#allocation2 + $0x1a8] sm:$0xff] }
 0x11c   : > { %1771 = vmatpush.msra.mxu3 %v2469_v15  ;;  %v2452_v15 = vld [vmem:[%s3838_s3 + $0x300] sm:$0xff] }
 0x11d   : > { %1062 = vmatmul.f32.gmra.mxu3 %v953_v27 }
 0x11e   : > { %v821_v34 = vpop.f32.mrf.mxu2  ;;  %v1209_v36 = vpop.f32.mrf.mxu0 }
 0x11f   : > { %v905_v41 = vadd.f32 %v821_v34, %v660_v47 }
 0x120   : > { %v662_v55 = vpop.f32.mrf.mxu1  ;;  %v1015_v42 = vpop.f32.mrf.mxu3 }
 0x121   : > { %v1099_v45 = vadd.f32 %v1015_v42, %v905_v41  ;;  %1256 = vmatmul.f32.gmra.mxu0 %v3375_v56  ;;  %v663_v50 = vadd.f32 %v662_v55, %v3304_v60  ;;  %v2453_v60 = vld [vmem:[%s3838_s3 + $0x308] sm:$0xff]  ;;  %v2567_v42 = vld [vmem:[%s3837_s2] ss:$0 sm:$0xff] }
 0x122   : > { %1577 = vmatpush.msra.mxu2 %v2453_v60  ;;  %v957_v60 = vld [vmem:[#allocation2 + $0x1c7] sm:$0xff] }
 0x123   : > { %v3381_v46 = vadd.f32 %v1209_v36, %v1099_v45  ;;  %709 = vmatmul.f32.gmra.mxu1 %v952_v31  ;;  %871 = vmatmul.f32.gmra.mxu2 %v760_v21  ;;  %v955_v31 = vld [vmem:[#allocation2 + $0x1a7] sm:$0xff]  ;;  %v2566_v36 = vld [vmem:[%s3836_s1] ss:$0 sm:$0xff] }
 0x124   : > { %1578 = vmatpush.msra.mxu2 %v2452_v15 }
 0x125   : > { %1065 = vmatmul.f32.gmra.mxu3 %v954_v43 }
 0x126   : > { %v824_v16 = vpop.f32.mrf.mxu2  ;;  %v1212_v1 = vpop.f32.mrf.mxu0 }
 0x127   : > { %v906_v7 = vadd.f32 %v824_v16, %v663_v50  ;;  %v2485_v50 = vld [vmem:[%s3838_s3 + $0x408] sm:$0xff] }
 0x128   : > { %v665_v61 = vpop.f32.mrf.mxu1  ;;  %v1018_v4 = vpop.f32.mrf.mxu3  ;;  %1965 = vmatpush.msra.mxu0 %v2485_v50  ;;  %v2484_v50 = vld [vmem:[%s3838_s3 + $0x400] sm:$0xff] }
 0x129   : > { %v1100_v30 = vadd.f32 %v1018_v4, %v906_v7  ;;  %1259 = vmatmul.f32.gmra.mxu0 %v3387_v53  ;;  %v666_v29 = vadd.f32 %v665_v61, %v3189_v49  ;;  %v266_v49 = vld [vmem:[%s2641_s8 + $0xf0] sm:$0xff] }
 0x12a   : > { %v302_v41 = vmul.f32 %v2566_v36, %v266_v49  ;;  %v763_v4 = vld [vmem:[#allocation2 + $0x1a9] sm:$0xff]  ;;  %1966 = vmatpush.msra.mxu0 %v2484_v50 }
 0x12b   : > { %v3390_v6 = vadd.f32 %v1212_v1, %v1100_v30  ;;  %712 = vmatmul.f32.gmra.mxu1 %v953_v27  ;;  %874 = vmatmul.f32.gmra.mxu2 %v761_v8  ;;  %v2437_v27 = vld [vmem:[%s3838_s3 + $0x288] sm:$0xff]  ;;  %v267_v8 = vld [vmem:[%s2641_s8 + $0xf8] sm:$0xff]  ;;  %v3470_v50 = vld [vmem:[#allocation2 + $0x1f0] sm:$0xff] }
 0x12c   : > { %1382 = vmatpush.msra.mxu1 %v2437_v27  ;;  %v3414_v21 = vadd.f32 %v2567_v42, %v302_v41  ;;  %v958_v41 = vld [vmem:[#allocation2 + $0x1cf] sm:$0xff] }
 0x12d   : > { %1068 = vmatmul.f32.gmra.mxu3 %v955_v31 }
 0x12e   : > { %v827_v18 = vpop.f32.mrf.mxu2  ;;  %v1215_v19 = vpop.f32.mrf.mxu0  ;;  %412 = vst [vmem:[#allocation2 + $0x208] sm:$0xff] %v3414_v21 }
 0x12f   : > { %v907_v39 = vadd.f32 %v827_v18, %v666_v29 }
 0x130   : > { %v668_v17 = vpop.f32.mrf.mxu1  ;;  %v1021_v47 = vpop.f32.mrf.mxu3 }
 0x131   : > { %v1101_v34 = vadd.f32 %v1021_v47, %v907_v39  ;;  %1262 = vmatmul.f32.gmra.mxu0 %v3399_v54  ;;  %v669_v45 = vadd.f32 %v668_v17, %v3205_v59  ;;  %v303_v59 = vmul.f32 %v2566_v36, %v267_v8  ;;  %v2468_v39 = vld [vmem:[%s3838_s3 + $0x380] sm:$0xff]  ;;  %v3454_v8 = vld [vmem:[#allocation2 + $0x1c9] sm:$0xff] }
 0x132   : > { %1772 = vmatpush.msra.mxu3 %v2468_v39  ;;  %v3461_v39 = vld [vmem:[#allocation2 + $0x1e8] sm:$0xff] }
 0x133   : > { %v3409_v55 = vadd.f32 %v1215_v19, %v1101_v34  ;;  %715 = vmatmul.f32.gmra.mxu1 %v954_v43  ;;  %877 = vmatmul.f32.gmra.mxu2 %v762_v10  ;;  %v3421_v43 = vld [vmem:[#allocation2 + $0x1b0] sm:$0xff]  ;;  %v3430_v18 = vadd.f32 %v2567_v42, %v303_v59  ;;  %v2436_v10 = vld [vmem:[%s3838_s3 + $0x280] sm:$0xff] }
 0x134   : > { %1383 = vmatpush.msra.mxu1 %v2436_v10  ;;  %v3463_v10 = vld [vmem:[#allocation2 + $0x1d1] sm:$0xff] }
 0x135   : > { %1071 = vmatmul.f32.gmra.mxu3 %v956_v35  ;;  %413 = vst [vmem:[#allocation2 + $0x210] sm:$0xff] %v3430_v18 }
 0x136   : > { %v830_v52 = vpop.f32.mrf.mxu2  ;;  %v1218_v16 = vpop.f32.mrf.mxu0 }
 0x137   : > { %v908_v1 = vadd.f32 %v830_v52, %v669_v45 }
 0x138   : > { %v671_v7 = vpop.f32.mrf.mxu1  ;;  %v1024_v61 = vpop.f32.mrf.mxu3 }
 0x139   : > { %v1102_v30 = vadd.f32 %v1024_v61, %v908_v1  ;;  %1265 = vmatmul.f32.gmra.mxu0 %v3421_v43  ;;  %v672_v19 = vadd.f32 %v671_v7, %v3217_v2  ;;  %v3442_v2 = vld [vmem:[#allocation2 + $0x1b1] sm:$0xff] }
 0x13a   : > { %v3452_v1 = vld [vmem:[#allocation2 + $0x1d0] sm:$0xff] }
 0x13b   : > { %v3425_v29 = vadd.f32 %v1218_v16, %v1102_v30  ;;  %718 = vmatmul.f32.gmra.mxu1 %v955_v31  ;;  %880 = vmatmul.f32.gmra.mxu2 %v763_v4  ;;  %v3437_v31 = vld [vmem:[#allocation2 + $0x1c8] sm:$0xff] }
 0x13c   : > { %v959_v30 = vld [vmem:[#allocation2 + $0x1e7] sm:$0xff] }
 0x13d   : > { %1074 = vmatmul.f32.gmra.mxu3 %v957_v60 }
 0x13e   : > { %v833_v27 = vpop.f32.mrf.mxu2  ;;  %v1221_v17 = vpop.f32.mrf.mxu0 }
 0x13f   : > { %v909_v47 = vadd.f32 %v833_v27, %v672_v19 }
 0x140   : > { %v674_v49 = vpop.f32.mrf.mxu1  ;;  %v1027_v34 = vpop.f32.mrf.mxu3 }
 0x141   : > { %v1103_v36 = vadd.f32 %v1027_v34, %v909_v47  ;;  %1268 = vmatmul.f32.gmra.mxu0 %v3437_v31  ;;  %v675_v45 = vadd.f32 %v674_v49, %v3235_v12  ;;  %v960_v34 = vld [vmem:[#allocation2 + $0x1ef] sm:$0xff] }
 0x143   : > { %v3445_v42 = vadd.f32 %v1221_v17, %v1103_v36  ;;  %721 = vmatmul.f32.gmra.mxu1 %v956_v35  ;;  %883 = vmatmul.f32.gmra.mxu2 %v3442_v2 }
 0x145   : > { %1077 = vmatmul.f32.gmra.mxu3 %v958_v41 }
 0x146   : > { %v836_v52 = vpop.f32.mrf.mxu2  ;;  %v1224_v16 = vpop.f32.mrf.mxu0 }
 0x147   : > { %v910_v7 = vadd.f32 %v836_v52, %v675_v45 }
 0x148   : > { %v677_v61 = vpop.f32.mrf.mxu1  ;;  %v1030_v4 = vpop.f32.mrf.mxu3 }
 0x149   : > { %v1104_v35 = vadd.f32 %v1030_v4, %v910_v7  ;;  %1271 = vmatmul.f32.gmra.mxu0 %v3452_v1  ;;  %v678_v59 = vadd.f32 %v677_v61, %v3247_v25  ;;  %v3472_v61 = vld [vmem:[#allocation2 + $0x1e9] sm:$0xff] }
 0x14b   : > { %v3457_v12 = vadd.f32 %v1224_v16, %v1104_v35  ;;  %724 = vmatmul.f32.gmra.mxu1 %v957_v60  ;;  %886 = vmatmul.f32.gmra.mxu2 %v3454_v8  ;;  %v3475_v35 = vld [vmem:[#allocation2 + $0x207] sm:$0xff] }
 0x14d   : > { %1080 = vmatmul.f32.gmra.mxu3 %v959_v30 }
 0x14e   : > { %v839_v15 = vpop.f32.mrf.mxu2  ;;  %v1227_v19 = vpop.f32.mrf.mxu0 }
 0x14f   : > { %v911_v27 = vadd.f32 %v839_v15, %v678_v59 }
 0x150   : > { %v680_v17 = vpop.f32.mrf.mxu1  ;;  %v1033_v47 = vpop.f32.mrf.mxu3 }
 0x151   : > { %v1105_v49 = vadd.f32 %v1033_v47, %v911_v27  ;;  %1274 = vmatmul.f32.gmra.mxu0 %v3461_v39  ;;  %v681_v25 = vadd.f32 %v680_v17, %v3265_v32  ;;  %v3482_v47 = vld [vmem:[#allocation2 + $0x1f1] sm:$0xff] }
 0x153   : > { %v3466_v36 = vadd.f32 %v1227_v19, %v1105_v49  ;;  %727 = vmatmul.f32.gmra.mxu1 %v958_v41  ;;  %889 = vmatmul.f32.gmra.mxu2 %v3463_v10 }
 0x155   : > { %1083 = vmatmul.f32.gmra.mxu3 %v960_v34 }
 0x156   : > { %v842_v60 = vpop.f32.mrf.mxu2  ;;  %v1230_v45 = vpop.f32.mrf.mxu0 }
 0x157   : > { %v912_v52 = vadd.f32 %v842_v60, %v681_v25  ;;  %v3485_v25 = vld [vmem:[#allocation2 + $0x20f] sm:$0xff] }
 0x158   : > { %v683_v16 = vpop.f32.mrf.mxu1  ;;  %v1036_v7 = vpop.f32.mrf.mxu3 }
 0x159   : > { %v1106_v4 = vadd.f32 %v1036_v7, %v912_v52  ;;  %1277 = vmatmul.f32.gmra.mxu0 %v3470_v50  ;;  %v684_v32 = vadd.f32 %v683_v16, %v3277_v38 }
 0x15b   : > { %v3477_v41 = vadd.f32 %v1230_v45, %v1106_v4  ;;  %730 = vmatmul.f32.gmra.mxu1 %v959_v30  ;;  %892 = vmatmul.f32.gmra.mxu2 %v3472_v61  ;;  %v1319_v4 = vld [vmem:[#allocation2 + $0x29] sm:$0xff] }
 0x15d   : > { %3841 = vst [vmem:[#allocation3_spill] sm:$0xff] %v3477_v41  ;;  %1086 = vmatmul.f32.gmra.mxu3 %v3475_v35 }
 0x15e   : > { %v845_v59 = vpop.f32.mrf.mxu2  ;;  %v1233_v15 = vpop.f32.mrf.mxu0 }
 0x15f   : > { %v913_v19 = vadd.f32 %v845_v59, %v684_v32  ;;  %v1514_v32 = vld [vmem:[#allocation2 + $0x47] sm:$0xff] }
 0x160   : > { %v686_v27 = vpop.f32.mrf.mxu1  ;;  %v1039_v17 = vpop.f32.mrf.mxu3 }
 0x161   : > { %v1107_v49 = vadd.f32 %v1039_v17, %v913_v19  ;;  %1280 = vmatmul.f32.gmra.mxu0 %v3414_v21  ;;  %v687_v38 = vadd.f32 %v686_v27, %v3295_v48  ;;  %v1708_v21 = vld [vmem:[#allocation2 + $0x48] sm:$0xff] }
 0x162   : > { %v1902_v27 = vld [vmem:[#allocation2 + $0x49] sm:$0xff] }
 0x163   : > { %v3487_v60 = vadd.f32 %v1233_v15, %v1107_v49  ;;  %733 = vmatmul.f32.gmra.mxu1 %v960_v34  ;;  %895 = vmatmul.f32.gmra.mxu2 %v3482_v47 }
 0x165   : > { %3842 = vst [vmem:[#allocation4_spill] sm:$0xff] %v3487_v60  ;;  %1089 = vmatmul.f32.gmra.mxu3 %v3485_v25  ;;  %v1515_v60 = vld [vmem:[#allocation2 + $0x4f] sm:$0xff] }
 0x166   : > { %v848_v30 = vpop.f32.mrf.mxu2  ;;  %v1236_v45 = vpop.f32.mrf.mxu0 }
 0x167   : > { %v914_v52 = vadd.f32 %v848_v30, %v687_v38  ;;  %v1320_v30 = vld [vmem:[#allocation2 + $0x31] sm:$0xff] }
 0x168   : > { %v689_v16 = vpop.f32.mrf.mxu1  ;;  %v1042_v7 = vpop.f32.mrf.mxu3 }
 0x169   : > { %v1108_v59 = vadd.f32 %v1042_v7, %v914_v52  ;;  %1283 = vmatmul.f32.gmra.mxu0 %v3430_v18  ;;  %v690_v34 = vadd.f32 %v689_v16, %v3198_v57  ;;  %v1709_v52 = vld [vmem:[#allocation2 + $0x50] sm:$0xff] }
 0x16a   : > { %v1903_v7 = vld [vmem:[#allocation2 + $0x51] sm:$0xff] }
 0x16b   : > { %v3493_v15 = vadd.f32 %v1236_v45, %v1108_v59  ;;  %1384 = vmatmul.f32.vlgmr.msra.gmra.mxu1 %v1319_v4  ;;  %1579 = vmatmul.f32.vlgmr.msra.gmra.mxu2 %v1514_v32 }
 0x16d   : > { %1773 = vmatmul.f32.vlgmr.msra.gmra.mxu3 %v1708_v21  ;;  %v1516_v21 = vld [vmem:[#allocation2 + $0x67] sm:$0xff] }
 0x16e   : > { %v851_v48 = vpop.f32.mrf.mxu2  ;;  %v1239_v19 = vpop.f32.mrf.mxu0 }
 0x16f   : > { %v915_v17 = vadd.f32 %v851_v48, %v690_v34  ;;  %v1710_v48 = vld [vmem:[#allocation2 + $0x68] sm:$0xff] }
 0x170   : > { %v692_v49 = vpop.f32.mrf.mxu1  ;;  %v1045_v38 = vpop.f32.mrf.mxu3 }
 0x171   : > { %v1109_v41 = vadd.f32 %v1045_v38, %v915_v17  ;;  %1967 = vmatmul.f32.vlgmr.msra.gmra.mxu0 %v1902_v27  ;;  %v693_v45 = vadd.f32 %v692_v49, %v3213_v63 }
 0x173   : > { %v3496_v18 = vadd.f32 %v1239_v19, %v1109_v41  ;;  %1387 = vmatmul.f32.gmra.mxu1 %v1320_v30  ;;  %1582 = vmatmul.f32.gmra.mxu2 %v1515_v60  ;;  %v1904_v19 = vld [vmem:[#allocation2 + $0x69] sm:$0xff] }
 0x175   : > { %1776 = vmatmul.f32.gmra.mxu3 %v1709_v52  ;;  %v1517_v52 = vld [vmem:[#allocation2 + $0x6f] sm:$0xff] }
 0x176   : > { %v854_v57 = vpop.f32.mrf.mxu2  ;;  %v1242_v16 = vpop.f32.mrf.mxu0 }
 0x177   : > { %v916_v4 = vadd.f32 %v854_v57, %v693_v45  ;;  %v1711_v57 = vld [vmem:[#allocation2 + $0x70] sm:$0xff] }
 0x178   : > { %v695_v32 = vpop.f32.mrf.mxu1  ;;  %v1048_v59 = vpop.f32.mrf.mxu3 }
 0x179   : > { %v1110_v34 = vadd.f32 %v1048_v59, %v916_v4  ;;  %1970 = vmatmul.f32.gmra.mxu0 %v1903_v7  ;;  %v696_v41 = vadd.f32 %v695_v32, %v3228_v9  ;;  %v1905_v32 = vld [vmem:[#allocation2 + $0x71] sm:$0xff] }
 0x17b   : > { %v3499_v17 = vadd.f32 %v1242_v16, %v1110_v34  ;;  %1390 = vmatmul.f32.gmra.mxu1 %v1902_v27  ;;  %1585 = vmatmul.f32.gmra.mxu2 %v1516_v21 }
 0x17d   : > { %1779 = vmatmul.f32.gmra.mxu3 %v1710_v48  ;;  %v1518_v48 = vld [vmem:[#allocation2 + $0x87] sm:$0xff] }
 0x17e   : > { %v857_v60 = vpop.f32.mrf.mxu2  ;;  %v1245_v63 = vpop.f32.mrf.mxu0 }
 0x17f   : > { %v917_v49 = vadd.f32 %v857_v60, %v696_v41  ;;  %v1712_v60 = vld [vmem:[#allocation2 + $0x88] sm:$0xff] }
 0x180   : > { %v698_v38 = vpop.f32.mrf.mxu1  ;;  %v1051_v30 = vpop.f32.mrf.mxu3 }
 0x181   : > { %v1111_v45 = vadd.f32 %v1051_v30, %v917_v49  ;;  %1973 = vmatmul.f32.gmra.mxu0 %v1904_v19  ;;  %v699_v27 = vadd.f32 %v698_v38, %v3243_v20  ;;  %v1906_v38 = vld [vmem:[#allocation2 + $0x89] sm:$0xff] }
 0x183   : > { %v3502_v4 = vadd.f32 %v1245_v63, %v1111_v45  ;;  %1393 = vmatmul.f32.gmra.mxu1 %v1903_v7  ;;  %1588 = vmatmul.f32.gmra.mxu2 %v1517_v52 }
 0x185   : > { %1782 = vmatmul.f32.gmra.mxu3 %v1711_v57  ;;  %v1519_v57 = vld [vmem:[#allocation2 + $0x8f] sm:$0xff] }
 0x186   : > { %v860_v16 = vpop.f32.mrf.mxu2  ;;  %v1248_v9 = vpop.f32.mrf.mxu0 }
 0x187   : > { %v918_v59 = vadd.f32 %v860_v16, %v699_v27  ;;  %v1713_v16 = vld [vmem:[#allocation2 + $0x90] sm:$0xff] }
 0x188   : > { %v701_v21 = vpop.f32.mrf.mxu1  ;;  %v1054_v34 = vpop.f32.mrf.mxu3 }
 0x189   : > { %v1112_v41 = vadd.f32 %v1054_v34, %v918_v59  ;;  %1976 = vmatmul.f32.gmra.mxu0 %v1905_v32  ;;  %v702_v7 = vadd.f32 %v701_v21, %v3258_v28  ;;  %v1907_v21 = vld [vmem:[#allocation2 + $0x91] sm:$0xff] }
 0x18b   : > { %v3505_v49 = vadd.f32 %v1248_v9, %v1112_v41  ;;  %1396 = vmatmul.f32.gmra.mxu1 %v1904_v19  ;;  %1591 = vmatmul.f32.gmra.mxu2 %v1518_v48 }
 0x18d   : > { %1785 = vmatmul.f32.gmra.mxu3 %v1712_v60  ;;  %v1520_v60 = vld [vmem:[#allocation2 + $0xa7] sm:$0xff] }
 0x18e   : > { %v863_v63 = vpop.f32.mrf.mxu2  ;;  %v1251_v20 = vpop.f32.mrf.mxu0 }
 0x18f   : > { %v919_v30 = vadd.f32 %v863_v63, %v702_v7  ;;  %v1714_v63 = vld [vmem:[#allocation2 + $0xa8] sm:$0xff] }
 0x190   : > { %v704_v52 = vpop.f32.mrf.mxu1  ;;  %v1057_v45 = vpop.f32.mrf.mxu3 }
 0x191   : > { %v1113_v27 = vadd.f32 %v1057_v45, %v919_v30  ;;  %1979 = vmatmul.f32.gmra.mxu0 %v1906_v38  ;;  %v705_v19 = vadd.f32 %v704_v52, %v3273_v37  ;;  %v1908_v52 = vld [vmem:[#allocation2 + $0xa9] sm:$0xff] }
 0x193   : > { %v3508_v59 = vadd.f32 %v1251_v20, %v1113_v27  ;;  %1399 = vmatmul.f32.gmra.mxu1 %v1905_v32  ;;  %1594 = vmatmul.f32.gmra.mxu2 %v1519_v57 }
 0x195   : > { %1788 = vmatmul.f32.gmra.mxu3 %v1713_v16  ;;  %v1521_v16 = vld [vmem:[#allocation2 + $0xaf] sm:$0xff] }
 0x196   : > { %v866_v9 = vpop.f32.mrf.mxu2  ;;  %v1254_v28 = vpop.f32.mrf.mxu0 }
 0x197   : > { %v920_v34 = vadd.f32 %v866_v9, %v705_v19  ;;  %v1715_v9 = vld [vmem:[#allocation2 + $0xb0] sm:$0xff] }
 0x198   : > { %v707_v48 = vpop.f32.mrf.mxu1  ;;  %v1060_v41 = vpop.f32.mrf.mxu3 }
 0x199   : > { %v1114_v7 = vadd.f32 %v1060_v41, %v920_v34  ;;  %1982 = vmatmul.f32.gmra.mxu0 %v1907_v21  ;;  %v708_v32 = vadd.f32 %v707_v48, %v3288_v44  ;;  %v1909_v48 = vld [vmem:[#allocation2 + $0xb1] sm:$0xff] }
 0x19b   : > { %v3511_v30 = vadd.f32 %v1254_v28, %v1114_v7  ;;  %1402 = vmatmul.f32.gmra.mxu1 %v1906_v38  ;;  %1597 = vmatmul.f32.gmra.mxu2 %v1520_v60 }
 0x19d   : > { %1791 = vmatmul.f32.gmra.mxu3 %v1714_v63  ;;  %v1522_v63 = vld [vmem:[#allocation2 + $0xc7] sm:$0xff] }
 0x19e   : > { %v869_v20 = vpop.f32.mrf.mxu2  ;;  %v1257_v37 = vpop.f32.mrf.mxu0 }
 0x19f   : > { %v921_v45 = vadd.f32 %v869_v20, %v708_v32  ;;  %v1716_v20 = vld [vmem:[#allocation2 + $0xc8] sm:$0xff] }
 0x1a0   : > { %v710_v57 = vpop.f32.mrf.mxu1  ;;  %v1063_v27 = vpop.f32.mrf.mxu3 }
 0x1a1   : > { %v1115_v19 = vadd.f32 %v1063_v27, %v921_v45  ;;  %1985 = vmatmul.f32.gmra.mxu0 %v1908_v52  ;;  %v711_v38 = vadd.f32 %v710_v57, %v3302_v24  ;;  %v1910_v57 = vld [vmem:[#allocation2 + $0xc9] sm:$0xff] }
 0x1a3   : > { %v3514_v34 = vadd.f32 %v1257_v37, %v1115_v19  ;;  %1405 = vmatmul.f32.gmra.mxu1 %v1907_v21  ;;  %1600 = vmatmul.f32.gmra.mxu2 %v1521_v16 }
 0x1a5   : > { %1794 = vmatmul.f32.gmra.mxu3 %v1715_v9  ;;  %v1523_v9 = vld [vmem:[#allocation2 + $0xcf] sm:$0xff] }
 0x1a6   : > { %v872_v28 = vpop.f32.mrf.mxu2  ;;  %v1260_v44 = vpop.f32.mrf.mxu0 }
 0x1a7   : > { %v922_v41 = vadd.f32 %v872_v28, %v711_v38  ;;  %v1717_v28 = vld [vmem:[#allocation2 + $0xd0] sm:$0xff] }
 0x1a8   : > { %v713_v60 = vpop.f32.mrf.mxu1  ;;  %v1066_v7 = vpop.f32.mrf.mxu3 }
 0x1a9   : > { %v1116_v32 = vadd.f32 %v1066_v7, %v922_v41  ;;  %1988 = vmatmul.f32.gmra.mxu0 %v1909_v48  ;;  %v714_v21 = vadd.f32 %v713_v60, %v3207_v5  ;;  %v1911_v60 = vld [vmem:[#allocation2 + $0xd1] sm:$0xff] }
 0x1ab   : > { %v3517_v45 = vadd.f32 %v1260_v44, %v1116_v32  ;;  %1408 = vmatmul.f32.gmra.mxu1 %v1908_v52  ;;  %1603 = vmatmul.f32.gmra.mxu2 %v1522_v63 }
 0x1ad   : > { %1797 = vmatmul.f32.gmra.mxu3 %v1716_v20  ;;  %v1524_v20 = vld [vmem:[#allocation2 + $0xe7] sm:$0xff] }
 0x1ae   : > { %v875_v37 = vpop.f32.mrf.mxu2  ;;  %v1263_v24 = vpop.f32.mrf.mxu0 }
 0x1af   : > { %v923_v27 = vadd.f32 %v875_v37, %v714_v21  ;;  %v1718_v37 = vld [vmem:[#allocation2 + $0xe8] sm:$0xff] }
 0x1b0   : > { %v716_v16 = vpop.f32.mrf.mxu1  ;;  %v1069_v19 = vpop.f32.mrf.mxu3 }
 0x1b1   : > { %v1117_v38 = vadd.f32 %v1069_v19, %v923_v27  ;;  %1991 = vmatmul.f32.gmra.mxu0 %v1910_v57  ;;  %v717_v52 = vadd.f32 %v716_v16, %v3219_v3  ;;  %v1912_v16 = vld [vmem:[#allocation2 + $0xe9] sm:$0xff] }
 0x1b3   : > { %v3520_v41 = vadd.f32 %v1263_v24, %v1117_v38  ;;  %1411 = vmatmul.f32.gmra.mxu1 %v1909_v48  ;;  %1606 = vmatmul.f32.gmra.mxu2 %v1523_v9 }
 0x1b5   : > { %1800 = vmatmul.f32.gmra.mxu3 %v1717_v28  ;;  %v1525_v28 = vld [vmem:[#allocation2 + $0xef] sm:$0xff] }
 0x1b6   : > { %v878_v44 = vpop.f32.mrf.mxu2  ;;  %v1266_v5 = vpop.f32.mrf.mxu0 }
 0x1b7   : > { %v924_v7 = vadd.f32 %v878_v44, %v717_v52  ;;  %v1719_v44 = vld [vmem:[#allocation2 + $0xf0] sm:$0xff] }
 0x1b8   : > { %v719_v63 = vpop.f32.mrf.mxu1  ;;  %v1072_v32 = vpop.f32.mrf.mxu3 }
 0x1b9   : > { %v1118_v21 = vadd.f32 %v1072_v32, %v924_v7  ;;  %1994 = vmatmul.f32.gmra.mxu0 %v1911_v60  ;;  %v720_v48 = vadd.f32 %v719_v63, %v3237_v13  ;;  %v1913_v63 = vld [vmem:[#allocation2 + $0xf1] sm:$0xff] }
 0x1bb   : > { %v3523_v27 = vadd.f32 %v1266_v5, %v1118_v21  ;;  %1414 = vmatmul.f32.gmra.mxu1 %v1910_v57  ;;  %1609 = vmatmul.f32.gmra.mxu2 %v1524_v20 }
 0x1bd   : > { %1803 = vmatmul.f32.gmra.mxu3 %v1718_v37  ;;  %v1526_v37 = vld [vmem:[#allocation2 + $0x107] sm:$0xff] }
 0x1be   : > { %v881_v24 = vpop.f32.mrf.mxu2  ;;  %v1269_v3 = vpop.f32.mrf.mxu0 }
 0x1bf   : > { %v925_v19 = vadd.f32 %v881_v24, %v720_v48  ;;  %v1720_v24 = vld [vmem:[#allocation2 + $0x108] sm:$0xff] }
 0x1c0   : > { %v722_v9 = vpop.f32.mrf.mxu1  ;;  %v1075_v38 = vpop.f32.mrf.mxu3 }
 0x1c1   : > { %v1119_v52 = vadd.f32 %v1075_v38, %v925_v19  ;;  %1997 = vmatmul.f32.gmra.mxu0 %v1912_v16  ;;  %v723_v57 = vadd.f32 %v722_v9, %v3249_v26  ;;  %v1914_v9 = vld [vmem:[#allocation2 + $0x109] sm:$0xff] }
 0x1c3   : > { %v3526_v7 = vadd.f32 %v1269_v3, %v1119_v52  ;;  %1417 = vmatmul.f32.gmra.mxu1 %v1911_v60  ;;  %1612 = vmatmul.f32.gmra.mxu2 %v1525_v28 }
 0x1c5   : > { %1806 = vmatmul.f32.gmra.mxu3 %v1719_v44  ;;  %v1527_v44 = vld [vmem:[#allocation2 + $0x10f] sm:$0xff] }
 0x1c6   : > { %v884_v5 = vpop.f32.mrf.mxu2  ;;  %v1272_v13 = vpop.f32.mrf.mxu0 }
 0x1c7   : > { %v926_v32 = vadd.f32 %v884_v5, %v723_v57  ;;  %v1721_v5 = vld [vmem:[#allocation2 + $0x110] sm:$0xff] }
 0x1c8   : > { %v725_v20 = vpop.f32.mrf.mxu1  ;;  %v1078_v21 = vpop.f32.mrf.mxu3 }
 0x1c9   : > { %v1120_v48 = vadd.f32 %v1078_v21, %v926_v32  ;;  %2000 = vmatmul.f32.gmra.mxu0 %v1913_v63  ;;  %v726_v60 = vadd.f32 %v725_v20, %v3267_v33  ;;  %v1915_v20 = vld [vmem:[#allocation2 + $0x111] sm:$0xff] }
 0x1cb   : > { %v3529_v19 = vadd.f32 %v1272_v13, %v1120_v48  ;;  %1420 = vmatmul.f32.gmra.mxu1 %v1912_v16  ;;  %1615 = vmatmul.f32.gmra.mxu2 %v1526_v37 }
 0x1cd   : > { %1809 = vmatmul.f32.gmra.mxu3 %v1720_v24  ;;  %v1528_v24 = vld [vmem:[#allocation2 + $0x127] sm:$0xff] }
 0x1ce   : > { %v887_v3 = vpop.f32.mrf.mxu2  ;;  %v1275_v26 = vpop.f32.mrf.mxu0 }
 0x1cf   : > { %v927_v38 = vadd.f32 %v887_v3, %v726_v60  ;;  %v1722_v3 = vld [vmem:[#allocation2 + $0x128] sm:$0xff] }
 0x1d0   : > { %v728_v28 = vpop.f32.mrf.mxu1  ;;  %v1081_v52 = vpop.f32.mrf.mxu3 }
 0x1d1   : > { %v1121_v57 = vadd.f32 %v1081_v52, %v927_v38  ;;  %2003 = vmatmul.f32.gmra.mxu0 %v1914_v9  ;;  %v729_v16 = vadd.f32 %v728_v28, %v3279_v40  ;;  %v1916_v28 = vld [vmem:[#allocation2 + $0x129] sm:$0xff] }
 0x1d3   : > { %v3532_v32 = vadd.f32 %v1275_v26, %v1121_v57  ;;  %1423 = vmatmul.f32.gmra.mxu1 %v1913_v63  ;;  %1618 = vmatmul.f32.gmra.mxu2 %v1527_v44 }
 0x1d5   : > { %1812 = vmatmul.f32.gmra.mxu3 %v1721_v5  ;;  %v1529_v5 = vld [vmem:[#allocation2 + $0x12f] sm:$0xff] }
 0x1d6   : > { %v890_v13 = vpop.f32.mrf.mxu2  ;;  %v1278_v33 = vpop.f32.mrf.mxu0 }
 0x1d7   : > { %v928_v21 = vadd.f32 %v890_v13, %v729_v16  ;;  %v1723_v13 = vld [vmem:[#allocation2 + $0x130] sm:$0xff] }
 0x1d8   : > { %v731_v37 = vpop.f32.mrf.mxu1  ;;  %v1084_v48 = vpop.f32.mrf.mxu3 }
 0x1d9   : > { %v1122_v60 = vadd.f32 %v1084_v48, %v928_v21  ;;  %2006 = vmatmul.f32.gmra.mxu0 %v1915_v20  ;;  %v732_v63 = vadd.f32 %v731_v37, %v3297_v51  ;;  %v1917_v37 = vld [vmem:[#allocation2 + $0x131] sm:$0xff] }
 0x1db   : > { %v3535_v38 = vadd.f32 %v1278_v33, %v1122_v60  ;;  %1426 = vmatmul.f32.gmra.mxu1 %v1914_v9  ;;  %1621 = vmatmul.f32.gmra.mxu2 %v1528_v24 }
 0x1dd   : > { %1815 = vmatmul.f32.gmra.mxu3 %v1722_v3  ;;  %v1530_v3 = vld [vmem:[#allocation2 + $0x147] sm:$0xff] }
 0x1de   : > { %v893_v26 = vpop.f32.mrf.mxu2  ;;  %v1281_v40 = vpop.f32.mrf.mxu0 }
 0x1df   : > { %v929_v52 = vadd.f32 %v893_v26, %v732_v63  ;;  %v1724_v26 = vld [vmem:[#allocation2 + $0x148] sm:$0xff] }
 0x1e0   : > { %v734_v44 = vpop.f32.mrf.mxu1  ;;  %v1087_v57 = vpop.f32.mrf.mxu3 }
 0x1e1   : > { %v1123_v16 = vadd.f32 %v1087_v57, %v929_v52  ;;  %2009 = vmatmul.f32.gmra.mxu0 %v1916_v28  ;;  %v735_v9 = vadd.f32 %v734_v44, %v3306_v62  ;;  %v1918_v44 = vld [vmem:[#allocation2 + $0x149] sm:$0xff] }
 0x1e3   : > { %v3538_v21 = vadd.f32 %v1281_v40, %v1123_v16  ;;  %1429 = vmatmul.f32.gmra.mxu1 %v1915_v20  ;;  %1624 = vmatmul.f32.gmra.mxu2 %v1529_v5 }
 0x1e5   : > { %1818 = vmatmul.f32.gmra.mxu3 %v1723_v13  ;;  %v1531_v13 = vld [vmem:[#allocation2 + $0x14f] sm:$0xff] }
 0x1e6   : > { %v896_v33 = vpop.f32.mrf.mxu2  ;;  %v1284_v51 = vpop.f32.mrf.mxu0 }
 0x1e7   : > { %v930_v48 = vadd.f32 %v896_v33, %v735_v9 }
 0x1e8   : > { %v1090_v24 = vpop.f32.mrf.mxu3  ;;  %v1385_v60 = vpop.f32.mrf.mxu1 }
 0x1e9   : > { %v1124_v63 = vadd.f32 %v1090_v24, %v930_v48  ;;  %2012 = vmatmul.f32.gmra.mxu0 %v1917_v37  ;;  %v1481_v20 = vadd.f32 %v1385_v60, %v3319_v23  ;;  %v1919_v24 = vld [vmem:[#allocation2 + $0x151] sm:$0xff] }
 0x1eb   : > { %v3541_v52 = vadd.f32 %v1284_v51, %v1124_v63  ;;  %1432 = vmatmul.f32.gmra.mxu1 %v1916_v28  ;;  %1627 = vmatmul.f32.gmra.mxu2 %v1530_v3  ;;  %v1725_v28 = vld [vmem:[#allocation2 + $0x150] sm:$0xff] }
 0x1ed   : > { %1821 = vmatmul.f32.gmra.mxu3 %v1724_v26  ;;  %v1532_v26 = vld [vmem:[#allocation2 + $0x167] sm:$0xff] }
 0x1ee   : > { %v1580_v62 = vpop.f32.mrf.mxu2  ;;  %v1968_v40 = vpop.f32.mrf.mxu0 }
 0x1ef   : > { %v1676_v57 = vadd.f32 %v1580_v62, %v1481_v20  ;;  %v1726_v62 = vld [vmem:[#allocation2 + $0x168] sm:$0xff] }
 0x1f0   : > { %v1388_v5 = vpop.f32.mrf.mxu1  ;;  %v1774_v16 = vpop.f32.mrf.mxu3 }
 0x1f1   : > { %v1870_v9 = vadd.f32 %v1774_v16, %v1676_v57  ;;  %2015 = vmatmul.f32.gmra.mxu0 %v1918_v44  ;;  %v1482_v23 = vadd.f32 %v1388_v5, %v3326_v14  ;;  %v1920_v5 = vld [vmem:[#allocation2 + $0x169] sm:$0xff] }
 0x1f3   : > { %v3551_v33 = vadd.f32 %v1968_v40, %v1870_v9  ;;  %1435 = vmatmul.f32.gmra.mxu1 %v1917_v37  ;;  %1630 = vmatmul.f32.gmra.mxu2 %v1531_v13 }
 0x1f5   : > { %2096 = vst [vmem:[%s3549_s25] sm:$0xff] %v3551_v33  ;;  %1824 = vmatmul.f32.gmra.mxu3 %v1725_v28  ;;  %v1533_v28 = vld [vmem:[#allocation2 + $0x16f] sm:$0xff] }
 0x1f6   : > { %v1583_v51 = vpop.f32.mrf.mxu2  ;;  %v1971_v48 = vpop.f32.mrf.mxu0 }
 0x1f7   : > { %v1677_v60 = vadd.f32 %v1583_v51, %v1482_v23  ;;  %v1727_v51 = vld [vmem:[#allocation2 + $0x170] sm:$0xff] }
 0x1f8   : > { %v1391_v3 = vpop.f32.mrf.mxu1  ;;  %v1777_v63 = vpop.f32.mrf.mxu3 }
 0x1f9   : > { %v1871_v20 = vadd.f32 %v1777_v63, %v1677_v60  ;;  %2018 = vmatmul.f32.gmra.mxu0 %v1919_v24  ;;  %v1483_v14 = vadd.f32 %v1391_v3, %v3339_v22  ;;  %v1921_v3 = vld [vmem:[#allocation2 + $0x171] sm:$0xff] }
 0x1fb   : > { %v3556_v40 = vadd.f32 %v1971_v48, %v1871_v20  ;;  %1438 = vmatmul.f32.gmra.mxu1 %v1918_v44  ;;  %1633 = vmatmul.f32.gmra.mxu2 %v1532_v26 }
 0x1fd   : > { %2097 = vst [vmem:[%s3549_s25 + $0x8] sm:$0xff] %v3556_v40  ;;  %1827 = vmatmul.f32.gmra.mxu3 %v1726_v62  ;;  %v1534_v62 = vld [vmem:[#allocation2 + $0x187] sm:$0xff] }
 0x1fe   : > { %v1586_v37 = vpop.f32.mrf.mxu2  ;;  %v1974_v57 = vpop.f32.mrf.mxu0 }
 0x1ff   : > { %v1678_v16 = vadd.f32 %v1586_v37, %v1483_v14 }
 0x200   : > { %v1394_v13 = vpop.f32.mrf.mxu1  ;;  %v1780_v9 = vpop.f32.mrf.mxu3 }
 0x201   : > { %v1872_v23 = vadd.f32 %v1780_v9, %v1678_v16  ;;  %2021 = vmatmul.f32.gmra.mxu0 %v1920_v5  ;;  %v1484_v22 = vadd.f32 %v1394_v13, %v3346_v58  ;;  %v1922_v16 = vld [vmem:[#allocation2 + $0x189] sm:$0xff] }
 0x203   : > { %v3561_v48 = vadd.f32 %v1974_v57, %v1872_v23  ;;  %1441 = vmatmul.f32.gmra.mxu1 %v1919_v24  ;;  %1636 = vmatmul.f32.gmra.mxu2 %v1533_v28  ;;  %v1535_v23 = vld [vmem:[#allocation2 + $0x18f] sm:$0xff] }
 0x205   : > { %2098 = vst [vmem:[%s3549_s25 + $0x10] sm:$0xff] %v3561_v48  ;;  %1830 = vmatmul.f32.gmra.mxu3 %v1727_v51 }
 0x206   : > { %v1589_v44 = vpop.f32.mrf.mxu2  ;;  %v1977_v60 = vpop.f32.mrf.mxu0 }
 0x207   : > { %v1679_v63 = vadd.f32 %v1589_v44, %v1484_v22  ;;  %v1923_v44 = vld [vmem:[#allocation2 + $0x191] sm:$0xff] }
 0x208   : > { %v1397_v26 = vpop.f32.mrf.mxu1  ;;  %v1783_v20 = vpop.f32.mrf.mxu3 }
 0x209   : > { %v1873_v14 = vadd.f32 %v1783_v20, %v1679_v63  ;;  %2024 = vmatmul.f32.gmra.mxu0 %v1921_v3  ;;  %v1485_v24 = vadd.f32 %v1397_v26, %v3359_v0  ;;  %v1536_v20 = vld [vmem:[#allocation2 + $0x1a7] sm:$0xff] }
 0x20b   : > { %v3566_v37 = vadd.f32 %v1977_v60, %v1873_v14  ;;  %1444 = vmatmul.f32.gmra.mxu1 %v1920_v5  ;;  %1639 = vmatmul.f32.gmra.mxu2 %v1534_v62 }
 0x20d   : > { %2099 = vst [vmem:[%s3549_s25 + $0x18] sm:$0xff] %v3566_v37  ;;  %1833 = vmatmul.f32.gmra.mxu3 %v3375_v56 }
 0x20e   : > { %v1592_v58 = vpop.f32.mrf.mxu2  ;;  %v1980_v57 = vpop.f32.mrf.mxu0 }
 0x20f   : > { %v1680_v13 = vadd.f32 %v1592_v58, %v1485_v24  ;;  %v1924_v24 = vld [vmem:[#allocation2 + $0x1a9] sm:$0xff] }
 0x210   : > { %v1400_v9 = vpop.f32.mrf.mxu1  ;;  %v1786_v28 = vpop.f32.mrf.mxu3 }
 0x211   : > { %v1874_v51 = vadd.f32 %v1786_v28, %v1680_v13  ;;  %2027 = vmatmul.f32.gmra.mxu0 %v1922_v16  ;;  %v1486_v0 = vadd.f32 %v1400_v9, %v3366_v11  ;;  %v1537_v9 = vld [vmem:[#allocation2 + $0x1af] sm:$0xff] }
 0x213   : > { %v3572_v22 = vadd.f32 %v1980_v57, %v1874_v51  ;;  %1447 = vmatmul.f32.gmra.mxu1 %v1921_v3  ;;  %1642 = vmatmul.f32.gmra.mxu2 %v1535_v23 }
 0x215   : > { %2100 = vst [vmem:[%s3549_s25 + $0x20] sm:$0xff] %v3572_v22  ;;  %1836 = vmatmul.f32.gmra.mxu3 %v3387_v53 }
 0x216   : > { %v1595_v56 = vpop.f32.mrf.mxu2  ;;  %v1983_v5 = vpop.f32.mrf.mxu0 }
 0x217   : > { %v1681_v60 = vadd.f32 %v1595_v56, %v1486_v0 }
 0x218   : > { %v1403_v63 = vpop.f32.mrf.mxu1  ;;  %v1789_v26 = vpop.f32.mrf.mxu3 }
 0x219   : > { %v1875_v62 = vadd.f32 %v1789_v26, %v1681_v60  ;;  %2030 = vmatmul.f32.gmra.mxu0 %v1923_v44  ;;  %v1487_v11 = vadd.f32 %v1403_v63, %v3381_v46 }
 0x21b   : > { %v3578_v14 = vadd.f32 %v1983_v5, %v1875_v62  ;;  %1450 = vmatmul.f32.gmra.mxu1 %v1922_v16  ;;  %1645 = vmatmul.f32.gmra.mxu2 %v1536_v20  ;;  %v1538_v5 = vld [vmem:[#allocation2 + $0x1c7] sm:$0xff] }
 0x21d   : > { %2101 = vst [vmem:[%s3549_s25 + $0x28] sm:$0xff] %v3578_v14  ;;  %1839 = vmatmul.f32.gmra.mxu3 %v3399_v54 }
 0x21e   : > { %v1598_v53 = vpop.f32.mrf.mxu2  ;;  %v1986_v3 = vpop.f32.mrf.mxu0 }
 0x21f   : > { %v1682_v58 = vadd.f32 %v1598_v53, %v1487_v11  ;;  %v1344_v11 = vld [vmem:[#allocation2 + $0x1b1] sm:$0xff] }
 0x220   : > { %v1406_v57 = vpop.f32.mrf.mxu1  ;;  %v1792_v13 = vpop.f32.mrf.mxu3  ;;  %v1539_v53 = vld [vmem:[#allocation2 + $0x1cf] sm:$0xff] }
 0x221   : > { %v1876_v28 = vadd.f32 %v1792_v13, %v1682_v58  ;;  %2033 = vmatmul.f32.gmra.mxu0 %v1924_v24  ;;  %v1488_v46 = vadd.f32 %v1406_v57, %v3390_v6 }
 0x223   : > { %v3584_v23 = vadd.f32 %v1986_v3, %v1876_v28  ;;  %1453 = vmatmul.f32.gmra.mxu1 %v1923_v44  ;;  %1648 = vmatmul.f32.gmra.mxu2 %v1537_v9  ;;  %v1345_v9 = vld [vmem:[#allocation2 + $0x1c9] sm:$0xff] }
 0x224   : > { %v1540_v28 = vld [vmem:[#allocation2 + $0x1e7] sm:$0xff] }
 0x225   : > { %2102 = vst [vmem:[%s3549_s25 + $0x30] sm:$0xff] %v3584_v23  ;;  %1842 = vmatmul.f32.gmra.mxu3 %v3421_v43 }
 0x226   : > { %v1601_v54 = vpop.f32.mrf.mxu2  ;;  %v1989_v16 = vpop.f32.mrf.mxu0 }
 0x227   : > { %v1683_v51 = vadd.f32 %v1601_v54, %v1488_v46 }
 0x228   : > { %v1409_v0 = vpop.f32.mrf.mxu1  ;;  %v1795_v56 = vpop.f32.mrf.mxu3 }
 0x229   : > { %v1877_v60 = vadd.f32 %v1795_v56, %v1683_v51  ;;  %2036 = vmatmul.f32.gmra.mxu0 %v3442_v2  ;;  %v1489_v44 = vadd.f32 %v1409_v0, %v3409_v55  ;;  %v1346_v56 = vld [vmem:[#allocation2 + $0x1d1] sm:$0xff] }
 0x22b   : > { %v3591_v63 = vadd.f32 %v1989_v16, %v1877_v60  ;;  %1456 = vmatmul.f32.gmra.mxu1 %v1924_v24  ;;  %1651 = vmatmul.f32.gmra.mxu2 %v1538_v5  ;;  %v1541_v5 = vld [vmem:[#allocation2 + $0x1ef] sm:$0xff] }
 0x22d   : > { %2103 = vst [vmem:[%s3549_s25 + $0x38] sm:$0xff] %v3591_v63  ;;  %1845 = vmatmul.f32.gmra.mxu3 %v3437_v31 }
 0x22e   : > { %v1604_v6 = vpop.f32.mrf.mxu2  ;;  %v1992_v43 = vpop.f32.mrf.mxu0 }
 0x22f   : > { %v1684_v26 = vadd.f32 %v1604_v6, %v1489_v44 }
 0x230   : > { %v1412_v20 = vpop.f32.mrf.mxu1  ;;  %v1798_v62 = vpop.f32.mrf.mxu3 }
 0x231   : > { %v1878_v3 = vadd.f32 %v1798_v62, %v1684_v26  ;;  %2039 = vmatmul.f32.gmra.mxu0 %v3454_v8  ;;  %v1490_v55 = vadd.f32 %v1412_v20, %v3425_v29  ;;  %v1347_v20 = vld [vmem:[#allocation2 + $0x1e9] sm:$0xff] }
 0x233   : > { %v3598_v2 = vadd.f32 %v1992_v43, %v1878_v3  ;;  %1459 = vmatmul.f32.gmra.mxu1 %v1344_v11  ;;  %1654 = vmatmul.f32.gmra.mxu2 %v1539_v53  ;;  %v1930_v3 = vld [vmem:[#allocation2 + $0x209] sm:$0xff] }
 0x235   : > { %2104 = vst [vmem:[%s3549_s25 + $0x40] sm:$0xff] %v3598_v2  ;;  %1848 = vmatmul.f32.gmra.mxu3 %v3452_v1 }
 0x236   : > { %v1607_v31 = vpop.f32.mrf.mxu2  ;;  %v1995_v24 = vpop.f32.mrf.mxu0 }
 0x237   : > { %v1685_v58 = vadd.f32 %v1607_v31, %v1490_v55 }
 0x238   : > { %v1415_v57 = vpop.f32.mrf.mxu1  ;;  %v1801_v13 = vpop.f32.mrf.mxu3 }
 0x239   : > { %v1879_v46 = vadd.f32 %v1801_v13, %v1685_v58  ;;  %2042 = vmatmul.f32.gmra.mxu0 %v3463_v10  ;;  %v1491_v29 = vadd.f32 %v1415_v57, %v3445_v42 }
 0x23b   : > { %v3605_v8 = vadd.f32 %v1995_v24, %v1879_v46  ;;  %1462 = vmatmul.f32.gmra.mxu1 %v1345_v9  ;;  %1657 = vmatmul.f32.gmra.mxu2 %v1540_v28  ;;  %v1931_v46 = vld [vmem:[#allocation2 + $0x211] sm:$0xff] }
 0x23d   : > { %2105 = vst [vmem:[%s3549_s25 + $0x48] sm:$0xff] %v3605_v8  ;;  %1851 = vmatmul.f32.gmra.mxu3 %v3461_v39 }
 0x23e   : > { %v1610_v1 = vpop.f32.mrf.mxu2  ;;  %v1998_v54 = vpop.f32.mrf.mxu0 }
 0x23f   : > { %v1686_v16 = vadd.f32 %v1610_v1, %v1491_v29 }
 0x240   : > { %v1418_v51 = vpop.f32.mrf.mxu1  ;;  %v1804_v0 = vpop.f32.mrf.mxu3 }
 0x241   : > { %v1880_v60 = vadd.f32 %v1804_v0, %v1686_v16  ;;  %2045 = vmatmul.f32.gmra.mxu0 %v3472_v61  ;;  %v1492_v42 = vadd.f32 %v1418_v51, %v3457_v12  ;;  %v1736_v61 = vld [vmem:[#allocation2 + $0x208] sm:$0xff] }
 0x242   : > { %v1544_v16 = vld [vmem:[#allocation2 + $0x227] sm:$0xff] }
 0x243   : > { %v3612_v10 = vadd.f32 %v1998_v54, %v1880_v60  ;;  %1465 = vmatmul.f32.gmra.mxu1 %v1346_v56  ;;  %1660 = vmatmul.f32.gmra.mxu2 %v1541_v5  ;;  %v2569_v56 = vld [vmem:[#allocation2 + $0x8] sm:$0xff] }
 0x245   : > { %2106 = vst [vmem:[%s3549_s25 + $0x50] sm:$0xff] %v3612_v10  ;;  %1854 = vmatmul.f32.gmra.mxu3 %v3470_v50 }
 0x246   : > { %v1613_v39 = vpop.f32.mrf.mxu2  ;;  %v2001_v44 = vpop.f32.mrf.mxu0 }
 0x247   : > { %v1687_v6 = vadd.f32 %v1613_v39, %v1492_v42  ;;  %v1932_v42 = vld [vmem:[#allocation2 + $0x229] sm:$0xff] }
 0x248   : > { %v1421_v43 = vpop.f32.mrf.mxu1  ;;  %v1807_v26 = vpop.f32.mrf.mxu3 }
 0x249   : > { %v1881_v62 = vadd.f32 %v1807_v26, %v1687_v6  ;;  %2048 = vmatmul.f32.gmra.mxu0 %v3482_v47  ;;  %v1493_v12 = vadd.f32 %v1421_v43, %v3466_v36  ;;  %v2568_v36 = vld [vmem:[#allocation2 + $0x210] sm:$0xff] }
 0x24a   : > { %v1545_v43 = vld [vmem:[#allocation2 + $0x22f] sm:$0xff] }
 0x24b   : > { %v3619_v11 = vadd.f32 %v2001_v44, %v1881_v62  ;;  %1468 = vmatmul.f32.gmra.mxu1 %v1347_v20  ;;  %1663 = vmatmul.f32.gmra.mxu2 %v3475_v35  ;;  %v3843_v35 = vld [vmem:[#allocation3_spill] sm:$0xff] }
 0x24d   : > { %2107 = vst [vmem:[%s3549_s25 + $0x58] sm:$0xff] %v3619_v11  ;;  %1857 = vmatmul.f32.gmra.mxu3 %v1736_v61 }
 0x24e   : > { %v1616_v50 = vpop.f32.mrf.mxu2  ;;  %v2004_v53 = vpop.f32.mrf.mxu0 }
 0x24f   : > { %v1688_v55 = vadd.f32 %v1616_v50, %v1493_v12  ;;  %v1933_v50 = vld [vmem:[#allocation2 + $0x231] sm:$0xff] }
 0x250   : > { %v1424_v31 = vpop.f32.mrf.mxu1  ;;  %v1810_v24 = vpop.f32.mrf.mxu3 }
 0x251   : > { %v1882_v58 = vadd.f32 %v1810_v24, %v1688_v55  ;;  %2051 = vmatmul.f32.gmra.mxu0 %v1930_v3  ;;  %v1494_v13 = vadd.f32 %v1424_v31, %v3843_v35 }
 0x253   : > { %v3625_v57 = vadd.f32 %v2004_v53, %v1882_v58  ;;  %1471 = vmatmul.f32.gmra.mxu1 %v3482_v47  ;;  %1666 = vmatmul.f32.gmra.mxu2 %v3485_v25  ;;  %v3844_v47 = vld [vmem:[#allocation4_spill] sm:$0xff] }
 0x255   : > { %2108 = vst [vmem:[%s3549_s25 + $0x60] sm:$0xff] %v3625_v57  ;;  %1860 = vmatmul.f32.gmra.mxu3 %v2568_v36 }
 0x256   : > { %v1619_v9 = vpop.f32.mrf.mxu2  ;;  %v2007_v28 = vpop.f32.mrf.mxu0 }
 0x257   : > { %v1689_v29 = vadd.f32 %v1619_v9, %v1494_v13 }
 0x258   : > { %v1427_v1 = vpop.f32.mrf.mxu1  ;;  %v1813_v54 = vpop.f32.mrf.mxu3 }
 0x259   : > { %v1883_v51 = vadd.f32 %v1813_v54, %v1689_v29  ;;  %2054 = vmatmul.f32.gmra.mxu0 %v1931_v46  ;;  %v1495_v25 = vadd.f32 %v1427_v1, %v3844_v47 }
 0x25b   : > { %v3632_v0 = vadd.f32 %v2007_v28, %v1883_v51  ;;  %1474 = vmatmul.f32.gmra.mxu1 %v1930_v3  ;;  %1669 = vmatmul.f32.gmra.mxu2 %v1544_v16 }
 0x25d   : > { %2109 = vst [vmem:[%s3549_s25 + $0x68] sm:$0xff] %v3632_v0  ;;  %1863 = vmatmul.f32.gmra.mxu3 %v2569_v56 }
 0x25e   : > { %v1622_v5 = vpop.f32.mrf.mxu2  ;;  %v2010_v60 = vpop.f32.mrf.mxu0 }
 0x25f   : > { %v1690_v39 = vadd.f32 %v1622_v5, %v1495_v25 }
 0x260   : > { %v1430_v44 = vpop.f32.mrf.mxu1  ;;  %v1816_v6 = vpop.f32.mrf.mxu3 }
 0x261   : > { %v1884_v26 = vadd.f32 %v1816_v6, %v1690_v39  ;;  %2057 = vmatmul.f32.gmra.mxu0 %v1932_v42  ;;  %v1496_v62 = vadd.f32 %v1430_v44, %v3493_v15 }
 0x263   : > { %v3637_v20 = vadd.f32 %v2010_v60, %v1884_v26  ;;  %1477 = vmatmul.f32.gmra.mxu1 %v1931_v46  ;;  %1672 = vmatmul.f32.gmra.mxu2 %v1545_v43 }
 0x265   : > { %2110 = vst [vmem:[%s3549_s25 + $0x70] sm:$0xff] %v3637_v20  ;;  %1866 = vmatmul.f32.gmra.mxu3 %v2569_v56 }
 0x266   : > { %v1625_v61 = vpop.f32.mrf.mxu2  ;;  %v2013_v12 = vpop.f32.mrf.mxu0 }
 0x267   : > { %v1691_v53 = vadd.f32 %v1625_v61, %v1496_v62 }
 0x268   : > { %v1433_v3 = vpop.f32.mrf.mxu1  ;;  %v1819_v55 = vpop.f32.mrf.mxu3 }
 0x269   : > { %v1885_v31 = vadd.f32 %v1819_v55, %v1691_v53  ;;  %2060 = vmatmul.f32.gmra.mxu0 %v1933_v50  ;;  %v1497_v58 = vadd.f32 %v1433_v3, %v3496_v18 }
 0x26b   : > { %v3642_v24 = vadd.f32 %v2013_v12, %v1885_v31 }
 0x26d   : > { %2111 = vst [vmem:[%s3549_s25 + $0x78] sm:$0xff] %v3642_v24 }
 0x26e   : > { %v1628_v35 = vpop.f32.mrf.mxu2  ;;  %v2016_v15 = vpop.f32.mrf.mxu0 }
 0x26f   : > { %v1692_v13 = vadd.f32 %v1628_v35, %v1497_v58 }
 0x270   : > { %v1436_v36 = vpop.f32.mrf.mxu1  ;;  %v1822_v9 = vpop.f32.mrf.mxu3 }
 0x271   : > { %v1886_v28 = vadd.f32 %v1822_v9, %v1692_v13  ;;  %v1498_v29 = vadd.f32 %v1436_v36, %v3499_v17 }
 0x273   : > { %v3647_v46 = vadd.f32 %v2016_v15, %v1886_v28 }
 0x275   : > { %2112 = vst [vmem:[%s3549_s25 + $0x80] sm:$0xff] %v3647_v46 }
 0x276   : > { %v1631_v1 = vpop.f32.mrf.mxu2  ;;  %v2019_v54 = vpop.f32.mrf.mxu0 }
 0x277   : > { %v1693_v16 = vadd.f32 %v1631_v1, %v1498_v29 }
 0x278   : > { %v1439_v18 = vpop.f32.mrf.mxu1  ;;  %v1825_v51 = vpop.f32.mrf.mxu3 }
 0x279   : > { %v1887_v47 = vadd.f32 %v1825_v51, %v1693_v16  ;;  %v1499_v56 = vadd.f32 %v1439_v18, %v3502_v4 }
 0x27b   : > { %v3652_v25 = vadd.f32 %v2019_v54, %v1887_v47  ;;  %v2128_v54 = vadd.f32 %v3556_v40, %v3551_v33 }
 0x27d   : > { %2113 = vst [vmem:[%s3549_s25 + $0x88] sm:$0xff] %v3652_v25  ;;  %v2129_v18 = vadd.f32 %v2128_v54, %v3561_v48 }
 0x27e   : > { %v1634_v5 = vpop.f32.mrf.mxu2  ;;  %v2022_v60 = vpop.f32.mrf.mxu0 }
 0x27f   : > { %v1694_v42 = vadd.f32 %v1634_v5, %v1499_v56  ;;  %v2130_v47 = vadd.f32 %v2129_v18, %v3566_v37 }
 0x280   : > { %v1442_v17 = vpop.f32.mrf.mxu1  ;;  %v1828_v39 = vpop.f32.mrf.mxu3 }
 0x281   : > { %v1888_v44 = vadd.f32 %v1828_v39, %v1694_v42  ;;  %v1500_v43 = vadd.f32 %v1442_v17, %v3505_v49 }
 0x283   : > { %v3657_v6 = vadd.f32 %v2022_v60, %v1888_v44  ;;  %v2131_v60 = vadd.f32 %v2130_v47, %v3572_v22 }
 0x285   : > { %2114 = vst [vmem:[%s3549_s25 + $0x90] sm:$0xff] %v3657_v6  ;;  %v2132_v44 = vadd.f32 %v2131_v60, %v3578_v14 }
 0x286   : > { %v1637_v26 = vpop.f32.mrf.mxu2  ;;  %v2025_v62 = vpop.f32.mrf.mxu0 }
 0x287   : > { %v1695_v61 = vadd.f32 %v1637_v26, %v1500_v43  ;;  %v2133_v26 = vadd.f32 %v2132_v44, %v3584_v23 }
 0x288   : > { %v1445_v4 = vpop.f32.mrf.mxu1  ;;  %v1831_v12 = vpop.f32.mrf.mxu3 }
 0x289   : > { %v1889_v50 = vadd.f32 %v1831_v12, %v1695_v61  ;;  %v1501_v3 = vadd.f32 %v1445_v4, %v3508_v59  ;;  %v2134_v61 = vadd.f32 %v2133_v26, %v3591_v63 }
 0x28b   : > { %v3662_v53 = vadd.f32 %v2025_v62, %v1889_v50  ;;  %v2135_v50 = vadd.f32 %v2134_v61, %v3598_v2 }
 0x28d   : > { %2115 = vst [vmem:[%s3549_s25 + $0x98] sm:$0xff] %v3662_v53 }
 0x28e   : > { %v1640_v55 = vpop.f32.mrf.mxu2  ;;  %v2028_v31 = vpop.f32.mrf.mxu0 }
 0x28f   : > { %v1696_v58 = vadd.f32 %v1640_v55, %v1501_v3 }
 0x290   : > { %v1448_v35 = vpop.f32.mrf.mxu1  ;;  %v1834_v49 = vpop.f32.mrf.mxu3 }
 0x291   : > { %v1890_v15 = vadd.f32 %v1834_v49, %v1696_v58  ;;  %v1502_v36 = vadd.f32 %v1448_v35, %v3511_v30  ;;  %v2136_v58 = vadd.f32 %v2135_v50, %v3605_v8 }
 0x293   : > { %v3667_v13 = vadd.f32 %v2028_v31, %v1890_v15  ;;  %v2137_v49 = vadd.f32 %v2136_v58, %v3612_v10 }
 0x295   : > { %2116 = vst [vmem:[%s3549_s25 + $0xa0] sm:$0xff] %v3667_v13 }
 0x296   : > { %v1643_v9 = vpop.f32.mrf.mxu2  ;;  %v2031_v28 = vpop.f32.mrf.mxu0 }
 0x297   : > { %v1697_v29 = vadd.f32 %v1643_v9, %v1502_v36  ;;  %v2138_v36 = vadd.f32 %v2137_v49, %v3619_v11 }
 0x298   : > { %v1451_v1 = vpop.f32.mrf.mxu1  ;;  %v1837_v59 = vpop.f32.mrf.mxu3 }
 0x299   : > { %v1891_v16 = vadd.f32 %v1837_v59, %v1697_v29  ;;  %v1503_v30 = vadd.f32 %v1451_v1, %v3514_v34  ;;  %v2139_v29 = vadd.f32 %v2138_v36, %v3625_v57 }
 0x29b   : > { %v3675_v51 = vadd.f32 %v2031_v28, %v1891_v16  ;;  %v2140_v16 = vadd.f32 %v2139_v29, %v3632_v0 }
 0x29d   : > { %2117 = vst [vmem:[%s3549_s25 + $0xa8] sm:$0xff] %v3675_v51  ;;  %v2141_v47 = vadd.f32 %v2140_v16, %v3637_v20 }
 0x29e   : > { %v1646_v56 = vpop.f32.mrf.mxu2  ;;  %v2034_v5 = vpop.f32.mrf.mxu0 }
 0x29f   : > { %v1698_v42 = vadd.f32 %v1646_v56, %v1503_v30  ;;  %v2142_v56 = vadd.f32 %v2141_v47, %v3642_v24 }
 0x2a0   : > { %v1454_v17 = vpop.f32.mrf.mxu1  ;;  %v1840_v39 = vpop.f32.mrf.mxu3 }
 0x2a1   : > { %v1892_v43 = vadd.f32 %v1840_v39, %v1698_v42  ;;  %v1504_v34 = vadd.f32 %v1454_v17, %v3517_v45  ;;  %v2143_v42 = vadd.f32 %v2142_v56, %v3647_v46 }
 0x2a3   : > { %v3684_v62 = vadd.f32 %v2034_v5, %v1892_v43  ;;  %v2144_v43 = vadd.f32 %v2143_v42, %v3652_v25 }
 0x2a5   : > { %2118 = vst [vmem:[%s3549_s25 + $0xb0] sm:$0xff] %v3684_v62  ;;  %v2145_v61 = vadd.f32 %v2144_v43, %v3657_v6 }
 0x2a6   : > { %v1649_v4 = vpop.f32.mrf.mxu2  ;;  %v2037_v12 = vpop.f32.mrf.mxu0 }
 0x2a7   : > { %v1699_v3 = vadd.f32 %v1649_v4, %v1504_v34  ;;  %v2146_v4 = vadd.f32 %v2145_v61, %v3662_v53 }
 0x2a8   : > { %v1457_v55 = vpop.f32.mrf.mxu1  ;;  %v1843_v31 = vpop.f32.mrf.mxu3 }
 0x2a9   : > { %v1893_v35 = vadd.f32 %v1843_v31, %v1699_v3  ;;  %v1505_v45 = vadd.f32 %v1457_v55, %v3520_v41  ;;  %v2147_v3 = vadd.f32 %v2146_v4, %v3667_v13 }
 0x2ab   : > { %v3693_v15 = vadd.f32 %v2037_v12, %v1893_v35  ;;  %v2148_v35 = vadd.f32 %v2147_v3, %v3675_v51 }
 0x2ad   : > { %2119 = vst [vmem:[%s3549_s25 + $0xb8] sm:$0xff] %v3693_v15  ;;  %v2149_v36 = vadd.f32 %v2148_v35, %v3684_v62 }
 0x2ae   : > { %v1652_v9 = vpop.f32.mrf.mxu2  ;;  %v2040_v28 = vpop.f32.mrf.mxu0 }
 0x2af   : > { %v1700_v1 = vadd.f32 %v1652_v9, %v1505_v45  ;;  %v2150_v9 = vadd.f32 %v2149_v36, %v3693_v15 }
 0x2b0   : > { %v1460_v59 = vpop.f32.mrf.mxu1  ;;  %v1846_v54 = vpop.f32.mrf.mxu3 }
 0x2b1   : > { %v1894_v18 = vadd.f32 %v1846_v54, %v1700_v1  ;;  %v1506_v41 = vadd.f32 %v1460_v59, %v3523_v27 }
 0x2b3   : > { %v3702_v30 = vadd.f32 %v2040_v28, %v1894_v18 }
 0x2b5   : > { %2120 = vst [vmem:[%s3549_s25 + $0xc0] sm:$0xff] %v3702_v30  ;;  %v2151_v1 = vadd.f32 %v2150_v9, %v3702_v30 }
 0x2b6   : > { %v1655_v5 = vpop.f32.mrf.mxu2  ;;  %v2043_v60 = vpop.f32.mrf.mxu0 }
 0x2b7   : > { %v1701_v17 = vadd.f32 %v1655_v5, %v1506_v41 }
 0x2b8   : > { %v1463_v39 = vpop.f32.mrf.mxu1  ;;  %v1849_v44 = vpop.f32.mrf.mxu3 }
 0x2b9   : > { %v1895_v26 = vadd.f32 %v1849_v44, %v1701_v17  ;;  %v1507_v27 = vadd.f32 %v1463_v39, %v3526_v7 }
 0x2bb   : > { %v3711_v34 = vadd.f32 %v2043_v60, %v1895_v26 }
 0x2bd   : > { %2121 = vst [vmem:[%s3549_s25 + $0xc8] sm:$0xff] %v3711_v34  ;;  %v2152_v18 = vadd.f32 %v2151_v1, %v3711_v34 }
 0x2be   : > { %v1658_v12 = vpop.f32.mrf.mxu2  ;;  %v2046_v50 = vpop.f32.mrf.mxu0 }
 0x2bf   : > { %v1702_v55 = vadd.f32 %v1658_v12, %v1507_v27 }
 0x2c0   : > { %v1466_v31 = vpop.f32.mrf.mxu1  ;;  %v1852_v58 = vpop.f32.mrf.mxu3 }
 0x2c1   : > { %v1896_v49 = vadd.f32 %v1852_v58, %v1702_v55  ;;  %v1508_v7 = vadd.f32 %v1466_v31, %v3529_v19 }
 0x2c3   : > { %v3720_v45 = vadd.f32 %v2046_v50, %v1896_v49 }
 0x2c5   : > { %2122 = vst [vmem:[%s3549_s25 + $0xd0] sm:$0xff] %v3720_v45  ;;  %v2153_v56 = vadd.f32 %v2152_v18, %v3720_v45 }
 0x2c6   : > { %v1661_v28 = vpop.f32.mrf.mxu2  ;;  %v2049_v29 = vpop.f32.mrf.mxu0 }
 0x2c7   : > { %v1703_v59 = vadd.f32 %v1661_v28, %v1508_v7  ;;  %v2579_v7 = vmov 256.0  }
 0x2c8   : > { %v1469_v54 = vpop.f32.mrf.mxu1  ;;  %v1855_v16 = vpop.f32.mrf.mxu3  ;;  %2564 = vrcp.f32 %v2579_v7 }
 0x2c9   : > { %v1897_v47 = vadd.f32 %v1855_v16, %v1703_v59  ;;  %v1509_v5 = vadd.f32 %v1469_v54, %v3532_v32 }
 0x2cb   : > { %v2091_v41 = vadd.f32 %v2049_v29, %v1897_v47 }
 0x2cd   : > { %2123 = vst [vmem:[%s3549_s25 + $0xd8] sm:$0xff] %v2091_v41  ;;  %v2154_v19 = vadd.f32 %v2153_v56, %v2091_v41 }
 0x2ce   : > { %v1664_v60 = vpop.f32.mrf.mxu2  ;;  %v2052_v42 = vpop.f32.mrf.mxu0 }
 0x2cf   : > { %v1704_v17 = vadd.f32 %v1664_v60, %v1509_v5  ;;  %v2565_v59 = vpop.eup %2564 }
 0x2d0   : > { %v1472_v39 = vpop.f32.mrf.mxu1  ;;  %v1858_v44 = vpop.f32.mrf.mxu3  ;;  %v2166_v5 = vmul.f32 256.0, %v2565_v59  ;;  %vm2170_vm0 = vweird.f32 %v2565_v59 }
 0x2d1   : > { %v1898_v43 = vadd.f32 %v1858_v44, %v1704_v17  ;;  %v1510_v61 = vadd.f32 %v1472_v39, %v3535_v38 }
 0x2d3   : > { %v2092_v26 = vadd.f32 %v2052_v42, %v1898_v43  ;;  %v2167_v42 = vsub.f32 1.0, %v2166_v5 }
 0x2d5   : > { %2124 = vst [vmem:[%s3549_s25 + $0xe0] sm:$0xff] %v2092_v26  ;;  %v2155_v4 = vadd.f32 %v2154_v19, %v2092_v26  ;;  %v2168_v44 = vmul.f32 %v2565_v59, %v2167_v42 }
 0x2d6   : > { %v1667_v27 = vpop.f32.mrf.mxu2  ;;  %v2055_v12 = vpop.f32.mrf.mxu0 }
 0x2d7   : > { %v1705_v50 = vadd.f32 %v1667_v27, %v1510_v61 }
 0x2d8   : > { %v1475_v3 = vpop.f32.mrf.mxu1  ;;  %v1861_v55 = vpop.f32.mrf.mxu3 }
 0x2d9   : > { %v1899_v32 = vadd.f32 %v1861_v55, %v1705_v50  ;;  %v1511_v58 = vadd.f32 %v1475_v3, %v3538_v21 }
 0x2db   : > { %v2093_v31 = vadd.f32 %v2055_v12, %v1899_v32 }
 0x2dd   : > { %2125 = vst [vmem:[%s3549_s25 + $0xe8] sm:$0xff] %v2093_v31  ;;  %v2156_v35 = vadd.f32 %v2155_v4, %v2093_v31  ;;  %v2169_v4 = vadd.f32 %v2565_v59, %v2168_v44 }
 0x2de   : > { %v1670_v49 = vpop.f32.mrf.mxu2  ;;  %v2058_v36 = vpop.f32.mrf.mxu0 }
 0x2df   : > { %v1706_v9 = vadd.f32 %v1670_v49, %v1511_v58  ;;  %v2171_v12 = vsel %vm2170_vm0, %v2565_v59, %v2169_v4 }
 0x2e0   : > { %v1864_v38 = vpop.f32.mrf.mxu3  ;;  %v1478_v29 = vpop.f32.mrf.mxu1 }
 0x2e1   : > { %v1900_v28 = vadd.f32 %v1864_v38, %v1706_v9  ;;  %v1512_v54 = vadd.f32 %v1478_v29, %v3541_v52 }
 0x2e3   : > { %v2094_v1 = vadd.f32 %v2058_v36, %v1900_v28 }
 0x2e5   : > { %2126 = vst [vmem:[%s3549_s25 + $0xf0] sm:$0xff] %v2094_v1  ;;  %v2157_v16 = vadd.f32 %v2156_v35, %v2094_v1 }
 0x2e6   : > { %v1673_v18 = vpop.f32.mrf.mxu2  ;;  %v2061_v56 = vpop.f32.mrf.mxu0 }
 0x2e7   : > { %v1707_v47 = vadd.f32 %v1673_v18, %v1512_v54 }
 0x2e8   : > { %v1867_v21 = vpop.f32.mrf.mxu3 }
 0x2e9   : > { %v1901_v19 = vadd.f32 %v1867_v21, %v1707_v47 }
 0x2eb   : > { %v2095_v60 = vadd.f32 %v2061_v56, %v1901_v19 }
 0x2ed   : > { %2127 = vst [vmem:[%s3549_s25 + $0xf8] sm:$0xff] %v2095_v60  ;;  %v2158_v17 = vadd.f32 %v2157_v16, %v2095_v60 }
 0x2ef   : > { %v2159_v39 = vrot.slane %v2158_v17, 4 }
 0x2f1   : > { %v2160_v43 = vadd.f32 %v2159_v39, %v2158_v17 }
 0x2f3   : > { %v2161_v61 = vrot.slane %v2160_v43, 2 }
 0x2f5   : > { %v2162_v27 = vadd.f32 %v2161_v61, %v2160_v43 }
 0x2f7   : > { %v2163_v52 = vrot.slane %v2162_v27, 1 }
 0x2f9   : > { %v2164_v50 = vadd.f32 %v2163_v52, %v2162_v27 }
 0x2fb   : > { %v3744_v3 = vmul.f32 %v2171_v12, %v2164_v50 }
 0x2fd   : > { %2274 = vst [vmem:[%s3742_s29] sm:$0x1] %v3744_v3  ;;  %v3750_v55 = vsub.f32 %v3720_v45, %v3744_v3  ;;  %v3753_v32 = vsub.f32 %v2091_v41, %v3744_v3  ;;  %v3756_v58 = vsub.f32 %v2092_v26, %v3744_v3  ;;  %v3759_v35 = vsub.f32 %v2093_v31, %v3744_v3 }
 0x2fe   : > { %v3762_v49 = vsub.f32 %v2094_v1, %v3744_v3  ;;  %v3765_v36 = vsub.f32 %v2095_v60, %v3744_v3  ;;  %v2173_v9 = vsub.f32 %v3551_v33, %v3744_v3  ;;  %v2174_v45 = vsub.f32 %v3556_v40, %v3744_v3 }
 0x2ff   : > { %v2175_v41 = vsub.f32 %v3561_v48, %v3744_v3  ;;  %v2176_v31 = vsub.f32 %v3566_v37, %v3744_v3  ;;  %v2177_v38 = vsub.f32 %v3572_v22, %v3744_v3  ;;  %v2178_v1 = vsub.f32 %v3578_v14, %v3744_v3 }
 0x300   : > { %v2205_v26 = vmul.f32 %v2173_v9, %v2173_v9  ;;  %v2206_v7 = vmul.f32 %v2174_v45, %v2174_v45  ;;  %v2179_v40 = vsub.f32 %v3584_v23, %v3744_v3  ;;  %v2180_v16 = vsub.f32 %v3591_v63, %v3744_v3 }
 0x301   : > { %v2207_v28 = vmul.f32 %v2175_v41, %v2175_v41  ;;  %v2208_v33 = vmul.f32 %v2176_v31, %v2176_v31  ;;  %v2209_v54 = vmul.f32 %v2177_v38, %v2177_v38  ;;  %v2210_v18 = vmul.f32 %v2178_v1, %v2178_v1 }
 0x302   : > { %v2237_v29 = vadd.f32 %v2206_v7, %v2205_v26  ;;  %v2181_v22 = vsub.f32 %v3598_v2, %v3744_v3  ;;  %v2211_v47 = vmul.f32 %v2179_v40, %v2179_v40  ;;  %v2182_v14 = vsub.f32 %v3605_v8, %v3744_v3 }
 0x303   : > { %v2212_v56 = vmul.f32 %v2180_v16, %v2180_v16  ;;  %v2183_v23 = vsub.f32 %v3612_v10, %v3744_v3  ;;  %v2184_v63 = vsub.f32 %v3619_v11, %v3744_v3  ;;  %v2185_v2 = vsub.f32 %v3625_v57, %v3744_v3 }
 0x304   : > { %v2238_v59 = vadd.f32 %v2237_v29, %v2207_v28  ;;  %v2213_v19 = vmul.f32 %v2181_v22, %v2181_v22  ;;  %v2214_v42 = vmul.f32 %v2182_v14, %v2182_v14  ;;  %v2186_v8 = vsub.f32 %v3632_v0, %v3744_v3 }
 0x305   : > { %v2215_v39 = vmul.f32 %v2183_v23, %v2183_v23  ;;  %v2216_v43 = vmul.f32 %v2184_v63, %v2184_v63  ;;  %v2187_v10 = vsub.f32 %v3637_v20, %v3744_v3  ;;  %v2217_v4 = vmul.f32 %v2185_v2, %v2185_v2 }
 0x306   : > { %v2239_v48 = vadd.f32 %v2238_v59, %v2208_v33  ;;  %v2188_v11 = vsub.f32 %v3642_v24, %v3744_v3  ;;  %v2218_v52 = vmul.f32 %v2186_v8, %v2186_v8  ;;  %v2189_v57 = vsub.f32 %v3647_v46, %v3744_v3 }
 0x307   : > { %v2219_v50 = vmul.f32 %v2187_v10, %v2187_v10  ;;  %v2190_v0 = vsub.f32 %v3652_v25, %v3744_v3  ;;  %v2191_v20 = vsub.f32 %v3657_v6, %v3744_v3  ;;  %v2192_v24 = vsub.f32 %v3662_v53, %v3744_v3 }
 0x308   : > { %v2240_v37 = vadd.f32 %v2239_v48, %v2209_v54  ;;  %v2220_v45 = vmul.f32 %v2188_v11, %v2188_v11  ;;  %v2221_v26 = vmul.f32 %v2189_v57, %v2189_v57  ;;  %v2193_v46 = vsub.f32 %v3667_v13, %v3744_v3 }
 0x309   : > { %v2222_v31 = vmul.f32 %v2190_v0, %v2190_v0  ;;  %v2223_v28 = vmul.f32 %v2191_v20, %v2191_v20  ;;  %v2194_v25 = vsub.f32 %v3675_v51, %v3744_v3  ;;  %v2224_v1 = vmul.f32 %v2192_v24, %v2192_v24 }
 0x30a   : > { %v2241_v21 = vadd.f32 %v2240_v37, %v2210_v18  ;;  %v2195_v6 = vsub.f32 %v3684_v62, %v3744_v3  ;;  %v2225_v59 = vmul.f32 %v2193_v46, %v2193_v46  ;;  %v2196_v53 = vsub.f32 %v3693_v15, %v3744_v3 }
 0x30b   : > { %v2226_v54 = vmul.f32 %v2194_v25, %v2194_v25  ;;  %v2197_v13 = vsub.f32 %v3702_v30, %v3744_v3  ;;  %v2198_v51 = vsub.f32 %v3711_v34, %v3744_v3  ;;  %v2233_v30 = vmul.f32 %v3756_v58, %v3756_v58 }
 0x30c   : > { %v2242_v5 = vadd.f32 %v2241_v21, %v2211_v47  ;;  %v2227_v16 = vmul.f32 %v2195_v6, %v2195_v6  ;;  %v2228_v37 = vmul.f32 %v2196_v53, %v2196_v53  ;;  %v2234_v34 = vmul.f32 %v3759_v35, %v3759_v35 }
 0x30d   : > { %v2229_v47 = vmul.f32 %v2197_v13, %v2197_v13  ;;  %v2230_v62 = vmul.f32 %v2198_v51, %v2198_v51 }
 0x30e   : > { %v2243_v60 = vadd.f32 %v2242_v5, %v2212_v56  ;;  %v2231_v56 = vmul.f32 %v3750_v55, %v3750_v55  ;;  %v2232_v5 = vmul.f32 %v3753_v32, %v3753_v32  ;;  %v2236_v55 = vmul.f32 %v3765_v36, %v3765_v36 }
 0x310   : > { %v2244_v17 = vadd.f32 %v2243_v60, %v2213_v19  ;;  %v2235_v60 = vmul.f32 %v3762_v49, %v3762_v49 }
 0x312   : > { %v2245_v44 = vadd.f32 %v2244_v17, %v2214_v42 }
 0x314   : > { %v2246_v61 = vadd.f32 %v2245_v44, %v2215_v39 }
 0x316   : > { %v2247_v27 = vadd.f32 %v2246_v61, %v2216_v43 }
 0x318   : > { %v2248_v12 = vadd.f32 %v2247_v27, %v2217_v4 }
 0x31a   : > { %v2249_v9 = vadd.f32 %v2248_v12, %v2218_v52 }
 0x31c   : > { %v2250_v41 = vadd.f32 %v2249_v9, %v2219_v50 }
 0x31e   : > { %v2251_v7 = vadd.f32 %v2250_v41, %v2220_v45 }
 0x320   : > { %v2252_v38 = vadd.f32 %v2251_v7, %v2221_v26 }
 0x322   : > { %v2253_v29 = vadd.f32 %v2252_v38, %v2222_v31 }
 0x324   : > { %v2254_v33 = vadd.f32 %v2253_v29, %v2223_v28 }
 0x326   : > { %v2255_v40 = vadd.f32 %v2254_v33, %v2224_v1 }
 0x328   : > { %v2256_v48 = vadd.f32 %v2255_v40, %v2225_v59 }
 0x32a   : > { %v2257_v18 = vadd.f32 %v2256_v48, %v2226_v54 }
 0x32c   : > { %v2258_v22 = vadd.f32 %v2257_v18, %v2227_v16 }
 0x32e   : > { %v2259_v21 = vadd.f32 %v2258_v22, %v2228_v37 }
 0x330   : > { %v2260_v14 = vadd.f32 %v2259_v21, %v2229_v47 }
 0x332   : > { %v2261_v15 = vadd.f32 %v2260_v14, %v2230_v62 }
 0x334   : > { %v2262_v23 = vadd.f32 %v2261_v15, %v2231_v56 }
 0x336   : > { %v2263_v19 = vadd.f32 %v2262_v23, %v2232_v5 }
 0x338   : > { %v2264_v3 = vadd.f32 %v2263_v19, %v2233_v30 }
 0x33a   : > { %v2265_v63 = vadd.f32 %v2264_v3, %v2234_v34 }
 0x33c   : > { %v2266_v42 = vadd.f32 %v2265_v63, %v2235_v60 }
 0x33e   : > { %v2267_v17 = vadd.f32 %v2266_v42, %v2236_v55 }
 0x340   : > { %v2268_v32 = vrot.slane %v2267_v17, 4 }
 0x342   : > { %v2269_v2 = vadd.f32 %v2268_v32, %v2267_v17 }
 0x344   : > { %v2270_v39 = vrot.slane %v2269_v2, 2 }
 0x346   : > { %v2271_v44 = vadd.f32 %v2270_v39, %v2269_v2 }
 0x348   : > { %v2272_v8 = vrot.slane %v2271_v44, 1 }
 0x34a   : > { %v2273_v58 = vadd.f32 %v2272_v8, %v2271_v44 }
 0x34c   : > { %2275 = vst [vmem:[%s3742_s29 + $0x1] sm:$0x1] %v2273_v58 }
 0x34d PF: > { %s16_s18 = sadd.s32 1, %s2576_s18  }
 0x34e   : > { %p13_p4 = scmp.ge.s32.totalorder %s16_s18, 4  }
 0x350   :  { %15 = sbr.rel (!%p13_p4) target bundleno = 1 (0x1), region = 89 }

// kernel: basic_block_forward.4
= control target key start
LH: loop header
LB: loop body
LE: loop exit
PB: predicated region body
PF: predicated region fallthrough
CT: control target
= control target key end

     0   :  { %s2706_s18 = smov 0   ;;  %s4007_s0 = inlined_call_operand.vmem [shape: f32[2,16,16,128], index: 0, kind: input, shape index: {}]   ;;  %s4008_s1 = inlined_call_operand.vmem [shape: f32[1,128], index: 1, kind: input, shape index: {}]   ;;  %s4009_s2 = inlined_call_operand.vmem [shape: f32[1,128], index: 2, kind: input, shape index: {}]   ;;  %s4010_s3 = inlined_call_operand.vmem [shape: f32[9,128,128], index: 3, kind: input, shape index: {}]   ;;  %s4011_s4 = inlined_call_operand.vmem [shape: f32[2,16,16,128], index: 4, kind: output, shape index: {0}]   ;;  %s4012_s5 = inlined_call_operand.vmem [shape: f32[2,2,128], index: 5, kind: output, shape index: {1}]  }
   0x1 LB: > { %s2458_s19 = sadd.s32 4294967295, %s2672_s18   ;;  %p2462_p0 = scmp.ge.s32.totalorder %s2672_s18, 1  ;;  %s2672_s18 = sphi %s2706_s18, %s16_s18  }
   0x2   : > { %p190_p1 = scmp.lt.s32.totalorder %s2672_s18, 3 }
   0x4   : > { %p191_p2 = pnand %p2462_p0, %p190_p1 }
   0x5   : > { %p222_p3 = scmp.lt.s32.totalorder (!%p191_p2), %s2458_s19, 1 }
   0x6   : > { %194 = sbr.rel (%p191_p2) target bundleno = 845 (0x34d), region = 36 }
   0xb   : > { %v2483_v0 = vld [vmem:[%s4010_s3 + $0xf8] sm:$0xff]  ;;  %v2482_v1 = vld [vmem:[%s4010_s3 + $0xf0] sm:$0xff]  ;;  %v2481_v2 = vld [vmem:[%s4010_s3 + $0xe8] sm:$0xff]  ;;  %s4014_s19 = smov (!%p222_p3, %s2458_s19), 1  ;;  %v2674_v17 = vmov 0.0  }
   0xc   : > { %2600 = vmatpush.msra.mxu1 %v2483_v0  ;;  %2601 = vmatpush.msra.mxu2 %v2483_v0  ;;  %v2480_v3 = vld [vmem:[%s4010_s3 + $0xe0] sm:$0xff]  ;;  %s2598_s28 = sshll.u32 %s4014_s19, 8  ;;  %v2479_v4 = vld [vmem:[%s4010_s3 + $0xd8] sm:$0xff]  ;;  %v2478_v11 = vld [vmem:[%s4010_s3 + $0xd0] sm:$0xff]  ;;  %437 = vst [vmem:[#allocation2 + $0x8] sm:$0xff] %v2674_v17 }
   0xd   : > { %2602 = vmatpush.msra.mxu3 %v2483_v0  ;;  %607 = vmatpush.msra.mxu0 %v2483_v0  ;;  %s2737_s8 = scalar_lea.vmem %s4007_s0, %s2598_s28  ;;  %v2742_v5 = vld [vmem:[%s4008_s1] ss:$0 sm:$0xff]  ;;  %v2477_v18 = vld [vmem:[%s4010_s3 + $0xc8] sm:$0xff]  ;;  %436 = vst [vmem:[#allocation2] sm:$0xff] %v2674_v17  ;;  %v2475_v30 = vld [vmem:[%s4010_s3 + $0xb8] sm:$0xff]  ;;  %s3728_s25 = scalar_lea.vmem %s4011_s4, %s2598_s28 }
   0xe   : > { %2603 = vmatpush.msra.mxu1 %v2482_v1  ;;  %2604 = vmatpush.msra.mxu2 %v2482_v1  ;;  %v242_v6 = vld [vmem:[%s2737_s8 + $0x30] sm:$0xff]  ;;  %v2748_v7 = vld [vmem:[%s4009_s2] ss:$0 sm:$0xff]  ;;  %v243_v15 = vld [vmem:[%s2737_s8 + $0x38] sm:$0xff]  ;;  %438 = vst [vmem:[#allocation2 + $0x10] sm:$0xff] %v2674_v17  ;;  %s2467_s28 = sshll.u32 %s4014_s19, 1 }
   0xf   : > { %2605 = vmatpush.msra.mxu3 %v2482_v1  ;;  %608 = vmatpush.msra.mxu0 %v2482_v1  ;;  %v278_v8 = vmul.f32 %v2742_v5, %v242_v6  ;;  %v250_v9 = vld [vmem:[%s2737_s8 + $0x70] sm:$0xff]  ;;  %v251_v16 = vld [vmem:[%s2737_s8 + $0x78] sm:$0xff]  ;;  %v279_v21 = vmul.f32 %v2742_v5, %v243_v15  ;;  %v2476_v22 = vld [vmem:[%s4010_s3 + $0xc0] sm:$0xff]  ;;  %439 = vst [vmem:[#allocation2 + $0x18] sm:$0xff] %v2674_v17  ;;  %s3914_s29 = scalar_lea.vmem %s4012_s5, %s2467_s28 }
  0x10   : > { %2606 = vmatpush.msra.mxu1 %v2481_v2  ;;  %2607 = vmatpush.msra.mxu2 %v2481_v2  ;;  %v258_v10 = vld [vmem:[%s2737_s8 + $0xb0] sm:$0xff]  ;;  %v286_v12 = vmul.f32 %v2742_v5, %v250_v9  ;;  %v287_v24 = vmul.f32 %v2742_v5, %v251_v16  ;;  %441 = vst [vmem:[#allocation2 + $0x220] sm:$0xff] %v2674_v17  ;;  %v2473_v37 = vld [vmem:[%s4010_s3 + $0xa8] sm:$0xff]  ;;  %v2472_v39 = vld [vmem:[%s4010_s3 + $0xa0] sm:$0xff] }
  0x11   : > { %2608 = vmatpush.msra.mxu3 %v2481_v2  ;;  %609 = vmatpush.msra.mxu0 %v2481_v2  ;;  %v294_v13 = vmul.f32 %v2742_v5, %v258_v10  ;;  %v314_v14 = vadd.f32 %v2748_v7, %v278_v8  ;;  %v315_v28 = vadd.f32 %v2748_v7, %v279_v21  ;;  %v2474_v34 = vld [vmem:[%s4010_s3 + $0xb0] sm:$0xff]  ;;  %v2471_v40 = vld [vmem:[%s4010_s3 + $0x98] sm:$0xff]  ;;  %v2469_v43 = vld [vmem:[%s4010_s3 + $0x88] sm:$0xff] }
  0x12   : > { %2609 = vmatpush.msra.mxu1 %v2480_v3  ;;  %2610 = vmatpush.msra.mxu2 %v2480_v3  ;;  %v322_v19 = vadd.f32 %v2748_v7, %v286_v12  ;;  %v323_v29 = vadd.f32 %v2748_v7, %v287_v24  ;;  %442 = vst [vmem:[#allocation2 + $0x228] sm:$0xff] %v2674_v17  ;;  %v2470_v41 = vld [vmem:[%s4010_s3 + $0x90] sm:$0xff]  ;;  %v259_v42 = vld [vmem:[%s2737_s8 + $0xb8] sm:$0xff]  ;;  %v2468_v45 = vld [vmem:[%s4010_s3 + $0x80] sm:$0xff] }
  0x13   : > { %2611 = vmatpush.msra.mxu3 %v2480_v3  ;;  %610 = vmatpush.msra.mxu0 %v2480_v3  ;;  %v330_v20 = vadd.f32 %v2748_v7, %v294_v13  ;;  %vm346_vm0 = vcmp.gt.f32.partialorder %v314_v14, 0.0  ;;  %v378_v23 = vmul.f32 0.2, %v314_v14  ;;  %vm347_vm3 = vcmp.gt.f32.partialorder %v315_v28, 0.0  ;;  %443 = vst [vmem:[#allocation2 + $0x230] sm:$0xff] %v2674_v17  ;;  %v244_v46 = vld [vmem:[%s2737_s8 + $0x40] sm:$0xff] }
  0x14   : > { %2612 = vmatpush.msra.mxu1 %v2479_v4  ;;  %2613 = vmatpush.msra.mxu2 %v2479_v4  ;;  %vm354_vm1 = vcmp.gt.f32.partialorder %v322_v19, 0.0  ;;  %v386_v25 = vmul.f32 0.2, %v322_v19  ;;  %v379_v33 = vmul.f32 0.2, %v315_v28  ;;  %vm355_vm4 = vcmp.gt.f32.partialorder %v323_v29, 0.0 }
  0x15   : > { %2614 = vmatpush.msra.mxu3 %v2479_v4  ;;  %611 = vmatpush.msra.mxu0 %v2479_v4  ;;  %vm362_vm2 = vcmp.gt.f32.partialorder %v330_v20, 0.0  ;;  %v394_v26 = vmul.f32 0.2, %v330_v20  ;;  %v2774_v27 = vsel %vm346_vm0, %v314_v14, %v378_v23  ;;  %v387_v35 = vmul.f32 0.2, %v323_v29  ;;  %444 = vst [vmem:[#allocation2 + $0x238] sm:$0xff] %v2674_v17 }
  0x16   : > { %2615 = vmatpush.msra.mxu1 %v2478_v11  ;;  %2616 = vmatpush.msra.mxu2 %v2478_v11  ;;  %484 = vst [vmem:[#allocation2 + $0x88] sm:$0xff] %v2774_v27  ;;  %v2783_v31 = vsel %vm354_vm1, %v322_v19, %v386_v25  ;;  %v2793_v36 = vsel %vm347_vm3, %v315_v28, %v379_v33  ;;  %v252_v47 = vld [vmem:[%s2737_s8 + $0x80] sm:$0xff]  ;;  %v2499_v48 = vld [vmem:[%s4010_s3 + $0x178] sm:$0xff]  ;;  %v2498_v54 = vld [vmem:[%s4010_s3 + $0x170] sm:$0xff] }
  0x17   : > { %2617 = vmatpush.msra.mxu3 %v2478_v11  ;;  %612 = vmatpush.msra.mxu0 %v2478_v11  ;;  %492 = vst [vmem:[#allocation2 + $0x108] sm:$0xff] %v2783_v31  ;;  %v2787_v32 = vsel %vm362_vm2, %v330_v20, %v394_v26  ;;  %v2800_v38 = vsel %vm355_vm4, %v323_v29, %v387_v35  ;;  %v557_v49 = vld [vmem:[%s4010_s3 + $0x78] sm:$0xff]  ;;  %v260_v52 = vld [vmem:[%s2737_s8 + $0xc0] sm:$0xff]  ;;  %v556_v56 = vld [vmem:[%s4010_s3 + $0x70] sm:$0xff] }
  0x18   : > { %2618 = vmatpush.msra.mxu1 %v2477_v18  ;;  %2619 = vmatpush.msra.mxu2 %v2477_v18  ;;  %500 = vst [vmem:[#allocation2 + $0x188] sm:$0xff] %v2787_v32  ;;  %v295_v44 = vmul.f32 %v2742_v5, %v259_v42  ;;  %v280_v51 = vmul.f32 %v2742_v5, %v244_v46  ;;  %v2515_v53 = vld [vmem:[%s4010_s3 + $0x1f8] sm:$0xff]  ;;  %v2514_v57 = vld [vmem:[%s4010_s3 + $0x1f0] sm:$0xff]  ;;  %v2497_v58 = vld [vmem:[%s4010_s3 + $0x168] sm:$0xff] }
  0x19   : > { %2620 = vmatpush.msra.mxu3 %v2477_v18  ;;  %613 = vmatpush.msra.mxu0 %v2477_v18  ;;  %485 = vst [vmem:[#allocation2 + $0x90] sm:$0xff] %v2793_v36  ;;  %v288_v55 = vmul.f32 %v2742_v5, %v252_v47  ;;  %v296_v59 = vmul.f32 %v2742_v5, %v260_v52  ;;  %v555_v61 = vld [vmem:[%s4010_s3 + $0x68] sm:$0xff]  ;;  %v2531_v0 = vld [vmem:[%s4010_s3 + $0x278] sm:$0xff]  ;;  %v236_v2 = vld [vmem:[%s2737_s8] sm:$0xff] }
  0x1a   : > { %2621 = vmatpush.msra.mxu1 %v2476_v22  ;;  %2622 = vmatpush.msra.mxu2 %v2476_v22  ;;  %493 = vst [vmem:[#allocation2 + $0x110] sm:$0xff] %v2800_v38  ;;  %v331_v50 = vadd.f32 %v2748_v7, %v295_v44  ;;  %v316_v62 = vadd.f32 %v2748_v7, %v280_v51  ;;  %v2513_v63 = vld [vmem:[%s4010_s3 + $0x1e8] sm:$0xff]  ;;  %v2496_v4 = vld [vmem:[%s4010_s3 + $0x160] sm:$0xff]  ;;  %v2530_v11 = vld [vmem:[%s4010_s3 + $0x270] sm:$0xff] }
  0x1b   : > { %2623 = vmatpush.msra.mxu3 %v2476_v22  ;;  %614 = vmatpush.msra.mxu0 %v2476_v22  ;;  %446 = vst [vmem:[#allocation2 + $0x20] sm:$0xff] %v2674_v17  ;;  %v2879_v1 = vadd.f32 %v2748_v7, %v288_v55  ;;  %v245_v3 = vld [vmem:[%s2737_s8 + $0x48] sm:$0xff]  ;;  %v2512_v6 = vld [vmem:[%s4010_s3 + $0x1e0] sm:$0xff]  ;;  %v332_v8 = vadd.f32 %v2748_v7, %v296_v59  ;;  %v2495_v16 = vld [vmem:[%s4010_s3 + $0x158] sm:$0xff] }
  0x1c   : > { %2624 = vmatpush.msra.mxu1 %v2475_v30  ;;  %2625 = vmatpush.msra.mxu2 %v2475_v30  ;;  %447 = vst [vmem:[#allocation2 + $0x40] sm:$0xff] %v2674_v17  ;;  %v395_v60 = vmul.f32 0.2, %v331_v50  ;;  %vm363_vm5 = vcmp.gt.f32.partialorder %v331_v50, 0.0  ;;  %v253_v9 = vld [vmem:[%s2737_s8 + $0x88] sm:$0xff]  ;;  %vm348_vm6 = vcmp.gt.f32.partialorder %v316_v62, 0.0  ;;  %v272_v12 = vmul.f32 %v2742_v5, %v236_v2 }
  0x1d   : > { %2626 = vmatpush.msra.mxu3 %v2475_v30  ;;  %615 = vmatpush.msra.mxu0 %v2475_v30  ;;  %448 = vst [vmem:[#allocation2 + $0x60] sm:$0xff] %v2674_v17  ;;  %v261_v13 = vld [vmem:[%s2737_s8 + $0xc8] sm:$0xff]  ;;  %v380_v14 = vmul.f32 0.2, %v316_v62  ;;  %vm356_vm7 = vcmp.gt.f32.partialorder %v2879_v1, 0.0  ;;  %v554_v15 = vld [vmem:[%s4010_s3 + $0x60] sm:$0xff]  ;;  %v281_v18 = vmul.f32 %v2742_v5, %v245_v3  ;;  %v289_v22 = vmul.f32 %v2742_v5, %v253_v9 }
  0x1e   : > { %2627 = vmatpush.msra.mxu1 %v2474_v34  ;;  %2628 = vmatpush.msra.mxu2 %v2474_v34  ;;  %449 = vst [vmem:[#allocation2 + $0x80] sm:$0xff] %v2674_v17  ;;  %v2896_v10 = vsel %vm363_vm5, %v331_v50, %v395_v60  ;;  %v388_v19 = vmul.f32 0.2, %v2879_v1  ;;  %v2511_v20 = vld [vmem:[%s4010_s3 + $0x1d8] sm:$0xff]  ;;  %v2529_v21 = vld [vmem:[%s4010_s3 + $0x268] sm:$0xff]  ;;  %v246_v23 = vld [vmem:[%s2737_s8 + $0x50] sm:$0xff]  ;;  %v308_v29 = vadd.f32 %v2748_v7, %v272_v12 }
  0x1f   : > { %2629 = vmatpush.msra.mxu3 %v2474_v34  ;;  %616 = vmatpush.msra.mxu0 %v2474_v34  ;;  %450 = vst [vmem:[#allocation2 + $0xa0] sm:$0xff] %v2674_v17  ;;  %v396_v24 = vmul.f32 0.2, %v332_v8  ;;  %v553_v25 = vld [vmem:[%s4010_s3 + $0x58] sm:$0xff]  ;;  %v2494_v26 = vld [vmem:[%s4010_s3 + $0x150] sm:$0xff]  ;;  %vm364_vm8 = vcmp.gt.f32.partialorder %v332_v8, 0.0  ;;  %v297_v30 = vmul.f32 %v2742_v5, %v261_v13  ;;  %v317_v34 = vadd.f32 %v2748_v7, %v281_v18 }
  0x20   : > { %2630 = vmatpush.msra.mxu1 %v2473_v37  ;;  %2631 = vmatpush.msra.mxu2 %v2473_v37  ;;  %451 = vst [vmem:[#allocation2 + $0xc0] sm:$0xff] %v2674_v17  ;;  %v2510_v28 = vld [vmem:[%s4010_s3 + $0x1d0] sm:$0xff]  ;;  %v2528_v33 = vld [vmem:[%s4010_s3 + $0x260] sm:$0xff]  ;;  %v247_v42 = vld [vmem:[%s2737_s8 + $0x58] sm:$0xff]  ;;  %v372_v47 = vmul.f32 0.2, %v308_v29 }
  0x21   : > { %2632 = vmatpush.msra.mxu3 %v2473_v37  ;;  %617 = vmatpush.msra.mxu0 %v2473_v37  ;;  %452 = vst [vmem:[#allocation2 + $0xe0] sm:$0xff] %v2674_v17  ;;  %v552_v35 = vld [vmem:[%s4010_s3 + $0x50] sm:$0xff]  ;;  %v282_v37 = vmul.f32 %v2742_v5, %v246_v23  ;;  %v2493_v44 = vld [vmem:[%s4010_s3 + $0x148] sm:$0xff]  ;;  %v255_v51 = vld [vmem:[%s2737_s8 + $0x98] sm:$0xff]  ;;  %v381_v52 = vmul.f32 0.2, %v317_v34 }
  0x22   : > { %2633 = vmatpush.msra.mxu1 %v2472_v39  ;;  %2634 = vmatpush.msra.mxu2 %v2472_v39  ;;  %453 = vst [vmem:[#allocation2 + $0x100] sm:$0xff] %v2674_v17  ;;  %vm340_vm9 = vcmp.gt.f32.partialorder %v308_v29, 0.0  ;;  %vm349_vm10 = vcmp.gt.f32.partialorder %v317_v34, 0.0  ;;  %v2526_v59 = vld [vmem:[%s4010_s3 + $0x250] sm:$0xff]  ;;  %v549_v9 = vld [vmem:[%s4010_s3 + $0x38] sm:$0xff]  ;;  %v2524_v23 = vld [vmem:[%s4010_s3 + $0x240] sm:$0xff] }
  0x23   : > { %2635 = vmatpush.msra.mxu3 %v2472_v39  ;;  %618 = vmatpush.msra.mxu0 %v2472_v39  ;;  %454 = vst [vmem:[#allocation2 + $0x120] sm:$0xff] %v2674_v17  ;;  %v2957_v39 = vsel %vm356_vm7, %v2879_v1, %v388_v19  ;;  %v2993_v55 = vadd.f32 %v2748_v7, %v282_v37  ;;  %v238_v12 = vld [vmem:[%s2737_s8 + $0x10] sm:$0xff] }
  0x24   : > { %2636 = vmatpush.msra.mxu1 %v2471_v40  ;;  %2637 = vmatpush.msra.mxu2 %v2471_v40  ;;  %455 = vst [vmem:[#allocation2 + $0x140] sm:$0xff] %v2674_v17  ;;  %v3020_v1 = vsel %vm340_vm9, %v308_v29, %v372_v47  ;;  %v2490_v18 = vld [vmem:[%s4010_s3 + $0x130] sm:$0xff] }
  0x25   : > { %2638 = vmatpush.msra.mxu3 %v2471_v40  ;;  %619 = vmatpush.msra.mxu0 %v2471_v40  ;;  %456 = vst [vmem:[#allocation2 + $0x160] sm:$0xff] %v2674_v17  ;;  %v325_v40 = vadd.f32 %v2748_v7, %v289_v22  ;;  %vm350_vm13 = vcmp.gt.f32.partialorder %v2993_v55, 0.0  ;;  %v2506_v19 = vld [vmem:[%s4010_s3 + $0x1b0] sm:$0xff] }
  0x26   : > { %2639 = vmatpush.msra.mxu1 %v2470_v41  ;;  %2640 = vmatpush.msra.mxu2 %v2470_v41  ;;  %457 = vst [vmem:[#allocation2 + $0x180] sm:$0xff] %v2674_v17 }
  0x27   : > { %2641 = vmatpush.msra.mxu3 %v2470_v41  ;;  %620 = vmatpush.msra.mxu0 %v2470_v41  ;;  %458 = vst [vmem:[#allocation2 + $0x1a0] sm:$0xff] %v2674_v17  ;;  %vm357_vm11 = vcmp.gt.f32.partialorder %v325_v40, 0.0 }
  0x28   : > { %2642 = vmatpush.msra.mxu1 %v2469_v43  ;;  %2643 = vmatpush.msra.mxu2 %v2469_v43  ;;  %459 = vst [vmem:[#allocation2 + $0x1c0] sm:$0xff] %v2674_v17 }
  0x29   : > { %2644 = vmatpush.msra.mxu3 %v2469_v43  ;;  %621 = vmatpush.msra.mxu0 %v2469_v43  ;;  %460 = vst [vmem:[#allocation2 + $0x1e0] sm:$0xff] %v2674_v17  ;;  %v2965_v43 = vsel %vm364_vm8, %v332_v8, %v396_v24  ;;  %v2525_v8 = vld [vmem:[%s4010_s3 + $0x248] sm:$0xff]  ;;  %v274_v24 = vmul.f32 %v2742_v5, %v238_v12 }
  0x2a   : > { %2645 = vmatpush.msra.mxu1 %v2468_v45  ;;  %2646 = vmatpush.msra.mxu2 %v2468_v45  ;;  %461 = vst [vmem:[#allocation2 + $0x200] sm:$0xff] %v2674_v17 }
  0x2b   : > { %647 = vmatmul.f32.vlgmr.msra.gmra.mxu1 %v2774_v27  ;;  %671 = vmatmul.f32.vlgmr.msra.gmra.mxu2 %v2783_v31  ;;  %462 = vst [vmem:[#allocation2 + $0x38] sm:$0xff] %v2674_v17  ;;  %v254_v27 = vld [vmem:[%s2737_s8 + $0x90] sm:$0xff]  ;;  %v237_v31 = vld [vmem:[%s2737_s8 + $0x8] sm:$0xff] }
  0x2c   : > { %882 = vmatpush.msrb.mxu2 %v2499_v48  ;;  %2647 = vmatpush.msra.mxu3 %v2468_v45  ;;  %463 = vst [vmem:[#allocation2 + $0x58] sm:$0xff] %v2674_v17  ;;  %v290_v41 = vmul.f32 %v2742_v5, %v254_v27  ;;  %v273_v46 = vmul.f32 %v2742_v5, %v237_v31  ;;  %v256_v27 = vld [vmem:[%s2737_s8 + $0xa0] sm:$0xff]  ;;  %v2505_v31 = vld [vmem:[%s4010_s3 + $0x1a8] sm:$0xff] }
  0x2d   : > { %695 = vmatmul.f32.vlgmr.msra.gmra.mxu3 %v2787_v32  ;;  %720 = vmatpush.msrb.mxu1 %v557_v49  ;;  %464 = vst [vmem:[#allocation2 + $0x78] sm:$0xff] %v2674_v17  ;;  %v2942_v32 = vsel %vm348_vm6, %v316_v62, %v380_v14  ;;  %v2976_v48 = vadd.f32 %v2748_v7, %v297_v30  ;;  %v2527_v49 = vld [vmem:[%s4010_s3 + $0x258] sm:$0xff]  ;;  %v382_v14 = vmul.f32 0.2, %v2993_v55 }
  0x2e   : > { %1076 = vmatpush.msrb.mxu3 %v2515_v53  ;;  %883 = vmatpush.msrb.mxu2 %v2498_v54  ;;  %465 = vst [vmem:[#allocation2 + $0x98] sm:$0xff] %v2674_v17  ;;  %v551_v53 = vld [vmem:[%s4010_s3 + $0x48] sm:$0xff]  ;;  %v2492_v54 = vld [vmem:[%s4010_s3 + $0x140] sm:$0xff]  ;;  %v3004_v60 = vadd.f32 %v2748_v7, %v290_v41  ;;  %v2491_v62 = vld [vmem:[%s4010_s3 + $0x138] sm:$0xff] }
  0x2f   : > { %721 = vmatpush.msrb.mxu1 %v556_v56  ;;  %622 = vmatpush.msra.mxu0 %v2468_v45  ;;  %466 = vst [vmem:[#allocation2 + $0xb8] sm:$0xff] %v2674_v17  ;;  %v2509_v45 = vld [vmem:[%s4010_s3 + $0x1c8] sm:$0xff]  ;;  %v283_v56 = vmul.f32 %v2742_v5, %v247_v42  ;;  %v397_v2 = vmul.f32 0.2, %v2976_v48  ;;  %vm365_vm12 = vcmp.gt.f32.partialorder %v2976_v48, 0.0  ;;  %v264_v41 = vld [vmem:[%s2737_s8 + $0xe0] sm:$0xff]  ;;  %v3118_v42 = vadd.f32 %v2748_v7, %v274_v24 }
  0x30   : > { %1077 = vmatpush.msrb.mxu3 %v2514_v57  ;;  %884 = vmatpush.msrb.mxu2 %v2497_v58  ;;  %467 = vst [vmem:[#allocation2 + $0xd8] sm:$0xff] %v2674_v17  ;;  %v389_v57 = vmul.f32 0.2, %v325_v40  ;;  %v2508_v58 = vld [vmem:[%s4010_s3 + $0x1c0] sm:$0xff]  ;;  %vm358_vm14 = vcmp.gt.f32.partialorder %v3004_v60, 0.0 }
  0x31   : > { %623 = vmatmul.f32.vlgmr.msra.gmra.mxu0 %v2674_v17  ;;  %722 = vmatpush.msrb.mxu1 %v555_v61  ;;  %468 = vst [vmem:[#allocation2 + $0xf8] sm:$0xff] %v2674_v17  ;;  %v550_v61 = vld [vmem:[%s4010_s3 + $0x40] sm:$0xff]  ;;  %vm342_vm3 = vcmp.gt.f32.partialorder %v3118_v42, 0.0 }
  0x32   : > { %1078 = vmatpush.msrb.mxu3 %v2513_v63  ;;  %1270 = vmatpush.msrb.mxu0 %v2531_v0  ;;  %469 = vst [vmem:[#allocation2 + $0x118] sm:$0xff] %v2674_v17  ;;  %v3015_v63 = vadd.f32 %v2748_v7, %v273_v46  ;;  %v291_v0 = vmul.f32 %v2742_v5, %v255_v51  ;;  %v257_v51 = vld [vmem:[%s2737_s8 + $0xa8] sm:$0xff] }
  0x33   : > { %650 = vmatmul.f32.gmra.mxu1 %v2793_v36  ;;  %674 = vmatmul.f32.gmra.mxu2 %v2800_v38  ;;  %v262_v38 = vld [vmem:[%s2737_s8 + $0xd0] sm:$0xff]  ;;  %470 = vst [vmem:[#allocation2 + $0x138] sm:$0xff] %v2674_v17  ;;  %v421_v13 = vsel %vm357_vm11, %v325_v40, %v389_v57 }
  0x34   : > { %885 = vmatpush.msrb.mxu2 %v2496_v4  ;;  %1079 = vmatpush.msrb.mxu3 %v2512_v6  ;;  %v298_v50 = vmul.f32 %v2742_v5, %v262_v38  ;;  %471 = vst [vmem:[#allocation2 + $0x158] sm:$0xff] %v2674_v17  ;;  %v2507_v4 = vld [vmem:[%s4010_s3 + $0x1b8] sm:$0xff]  ;;  %v3031_v6 = vsel %vm349_vm10, %v317_v34, %v381_v52  ;;  %vm341_vm15 = vcmp.gt.f32.partialorder %v3015_v63, 0.0  ;;  %v547_v38 = vld [vmem:[%s4010_s3 + $0x28] sm:$0xff] }
  0x35   : > { %698 = vmatmul.f32.gmra.mxu3 %v2896_v10  ;;  %1271 = vmatpush.msrb.mxu0 %v2530_v11  ;;  %472 = vst [vmem:[#allocation2 + $0x178] sm:$0xff] %v2674_v17  ;;  %v3042_v11 = vadd.f32 %v2748_v7, %v283_v56  ;;  %v239_v34 = vld [vmem:[%s2737_s8 + $0x18] sm:$0xff] }
  0x36   : > { %723 = vmatpush.msrb.mxu1 %v554_v15  ;;  %886 = vmatpush.msrb.mxu2 %v2495_v16  ;;  %473 = vst [vmem:[#allocation2 + $0x198] sm:$0xff] %v2674_v17  ;;  %v3024_v3 = vadd.f32 %v2748_v7, %v298_v50  ;;  %v390_v15 = vmul.f32 0.2, %v3004_v60  ;;  %v373_v16 = vmul.f32 0.2, %v3015_v63  ;;  %v275_v50 = vmul.f32 %v2742_v5, %v239_v34 }
  0x37   : > { %1080 = vmatpush.msrb.mxu3 %v2511_v20  ;;  %1272 = vmatpush.msrb.mxu0 %v2529_v21  ;;  %474 = vst [vmem:[#allocation2 + $0x1b8] sm:$0xff] %v2674_v17  ;;  %v3060_v20 = vadd.f32 %v2748_v7, %v291_v0  ;;  %v263_v21 = vld [vmem:[%s2737_s8 + $0xd8] sm:$0xff]  ;;  %vm351_vm1 = vcmp.gt.f32.partialorder %v3042_v11, 0.0  ;;  %v383_v29 = vmul.f32 0.2, %v3042_v11  ;;  %v2521_v0 = vld [vmem:[%s4010_s3 + $0x228] sm:$0xff] }
  0x38   : > { %724 = vmatpush.msrb.mxu1 %v553_v25  ;;  %887 = vmatpush.msrb.mxu2 %v2494_v26  ;;  %475 = vst [vmem:[#allocation2 + $0x1d8] sm:$0xff] %v2674_v17  ;;  %v398_v22 = vmul.f32 0.2, %v3024_v3  ;;  %v248_v25 = vld [vmem:[%s2737_s8 + $0x60] sm:$0xff]  ;;  %vm366_vm0 = vcmp.gt.f32.partialorder %v3024_v3, 0.0  ;;  %v2489_v26 = vld [vmem:[%s4010_s3 + $0x128] sm:$0xff]  ;;  %v299_v30 = vmul.f32 %v2742_v5, %v263_v21  ;;  %v3128_v46 = vsel %vm358_vm14, %v3004_v60, %v390_v15 }
  0x39   : > { %626 = vmatmul.f32.gmra.mxu0 %v2674_v17  ;;  %1081 = vmatpush.msrb.mxu3 %v2510_v28  ;;  %476 = vst [vmem:[#allocation2 + $0x1f8] sm:$0xff] %v2674_v17  ;;  %v3089_v28 = vsel %vm350_vm13, %v2993_v55, %v382_v14  ;;  %v391_v37 = vmul.f32 0.2, %v3060_v20  ;;  %v284_v40 = vmul.f32 %v2742_v5, %v248_v25  ;;  %vm359_vm2 = vcmp.gt.f32.partialorder %v3060_v20, 0.0  ;;  %v240_v55 = vld [vmem:[%s2737_s8 + $0x20] sm:$0xff]  ;;  %v2502_v14 = vld [vmem:[%s4010_s3 + $0x190] sm:$0xff] }
  0x3a   : > { %1273 = vmatpush.msrb.mxu0 %v2528_v33  ;;  %725 = vmatpush.msrb.mxu1 %v552_v35  ;;  %477 = vst [vmem:[#allocation2 + $0x218] sm:$0xff] %v2674_v17  ;;  %v429_v17 = vsel %vm365_vm12, %v2976_v48, %v397_v2  ;;  %v2523_v33 = vld [vmem:[%s4010_s3 + $0x238] sm:$0xff]  ;;  %v3104_v35 = vsel %vm341_vm15, %v3015_v63, %v373_v16  ;;  %v2522_v48 = vld [vmem:[%s4010_s3 + $0x230] sm:$0xff]  ;;  %v2520_v15 = vld [vmem:[%s4010_s3 + $0x220] sm:$0xff] }
  0x3b   : > { %653 = vmatmul.f32.gmra.mxu1 %v2942_v32  ;;  %677 = vmatmul.f32.gmra.mxu2 %v2957_v39  ;;  %501 = vst [vmem:[#allocation2 + $0x190] sm:$0xff] %v2896_v10  ;;  %v548_v10 = vld [vmem:[%s4010_s3 + $0x30] sm:$0xff]  ;;  %v430_v47 = vsel %vm366_vm0, %v3024_v3, %v398_v22  ;;  %v3145_v52 = vsel %vm351_vm1, %v3042_v11, %v383_v29  ;;  %v241_v3 = vld [vmem:[%s2737_s8 + $0x28] sm:$0xff] }
  0x3c   : > { %888 = vmatpush.msrb.mxu2 %v2493_v44  ;;  %1082 = vmatpush.msrb.mxu3 %v2509_v45  ;;  %486 = vst [vmem:[#allocation2 + $0xa8] sm:$0xff] %v2942_v32  ;;  %v292_v44 = vmul.f32 %v2742_v5, %v256_v27  ;;  %v249_v45 = vld [vmem:[%s2737_s8 + $0x68] sm:$0xff]  ;;  %v3156_v56 = vsel %vm359_vm2, %v3060_v20, %v391_v37  ;;  %v544_v20 = vld [vmem:[%s4010_s3 + $0x10] sm:$0xff]  ;;  %v2484_v37 = vld [vmem:[%s4010_s3 + $0x100] sm:$0xff] }
  0x3d   : > { %701 = vmatmul.f32.gmra.mxu3 %v2965_v43  ;;  %1274 = vmatpush.msrb.mxu0 %v2527_v49  ;;  %494 = vst [vmem:[#allocation2 + $0x128] sm:$0xff] %v2957_v39  ;;  %v2488_v39 = vld [vmem:[%s4010_s3 + $0x120] sm:$0xff]  ;;  %v3159_v57 = vadd.f32 %v2748_v7, %v284_v40  ;;  %v285_v60 = vmul.f32 %v2742_v5, %v249_v45  ;;  %v2485_v21 = vld [vmem:[%s4010_s3 + $0x108] sm:$0xff]  ;;  %v2563_v45 = vld [vmem:[%s4010_s3 + $0x378] sm:$0xff] }
  0x3e   : > { %726 = vmatpush.msrb.mxu1 %v551_v53  ;;  %889 = vmatpush.msrb.mxu2 %v2492_v54  ;;  %502 = vst [vmem:[#allocation2 + $0x1a8] sm:$0xff] %v2965_v43  ;;  %v2504_v43 = vld [vmem:[%s4010_s3 + $0x1a0] sm:$0xff]  ;;  %v3148_v53 = vadd.f32 %v2748_v7, %v299_v30  ;;  %v300_v54 = vmul.f32 %v2742_v5, %v264_v41  ;;  %v2501_v25 = vld [vmem:[%s4010_s3 + $0x188] sm:$0xff] }
  0x3f   : > { %1083 = vmatpush.msrb.mxu3 %v2508_v58  ;;  %1275 = vmatpush.msrb.mxu0 %v2526_v59  ;;  %487 = vst [vmem:[#allocation2 + $0xb0] sm:$0xff] %v3031_v6  ;;  %v546_v49 = vld [vmem:[%s4010_s3 + $0x20] sm:$0xff]  ;;  %v2487_v58 = vld [vmem:[%s4010_s3 + $0x118] sm:$0xff]  ;;  %v3172_v63 = vadd.f32 %v2748_v7, %v292_v44  ;;  %v293_v2 = vmul.f32 %v2742_v5, %v257_v51  ;;  %vm352_vm5 = vcmp.gt.f32.partialorder %v3159_v57, 0.0  ;;  %v543_v27 = vld [vmem:[%s4010_s3 + $0x8] sm:$0xff] }
  0x40   : > { %727 = vmatpush.msrb.mxu1 %v550_v61  ;;  %890 = vmatpush.msrb.mxu2 %v2491_v62  ;;  %495 = vst [vmem:[#allocation2 + $0x130] sm:$0xff] %v421_v13  ;;  %v2503_v59 = vld [vmem:[%s4010_s3 + $0x198] sm:$0xff]  ;;  %v265_v61 = vld [vmem:[%s2737_s8 + $0xe8] sm:$0xff]  ;;  %v374_v62 = vmul.f32 0.2, %v3118_v42  ;;  %v276_v11 = vmul.f32 %v2742_v5, %v240_v55  ;;  %vm367_vm4 = vcmp.gt.f32.partialorder %v3148_v53, 0.0 }
  0x41   : > { %629 = vmatmul.f32.gmra.mxu0 %v3020_v1  ;;  %1084 = vmatpush.msrb.mxu3 %v2507_v4  ;;  %478 = vst [vmem:[#allocation2 + $0x28] sm:$0xff] %v3020_v1  ;;  %v3184_v4 = vadd.f32 %v2748_v7, %v275_v50  ;;  %v399_v12 = vmul.f32 0.2, %v3148_v53  ;;  %v301_v16 = vmul.f32 %v2742_v5, %v265_v61  ;;  %vm360_vm6 = vcmp.gt.f32.partialorder %v3172_v63, 0.0  ;;  %v542_v44 = vld [vmem:[%s4010_s3] sm:$0xff]  ;;  %v2579_v50 = vld [vmem:[%s4010_s3 + $0x3f8] sm:$0xff] }
  0x42   : > { %1276 = vmatpush.msrb.mxu0 %v2525_v8  ;;  %728 = vmatpush.msrb.mxu1 %v549_v9  ;;  %503 = vst [vmem:[#allocation2 + $0x1b0] sm:$0xff] %v429_v17  ;;  %v545_v8 = vld [vmem:[%s4010_s3 + $0x18] sm:$0xff]  ;;  %v2486_v9 = vld [vmem:[%s4010_s3 + $0x110] sm:$0xff]  ;;  %v3219_v22 = vsel %vm342_vm3, %v3118_v42, %v374_v62  ;;  %v329_v24 = vadd.f32 %v2748_v7, %v293_v2 }
  0x43   : > { %656 = vmatmul.f32.gmra.mxu1 %v3031_v6  ;;  %680 = vmatmul.f32.gmra.mxu2 %v421_v13  ;;  %488 = vst [vmem:[#allocation2 + $0xc8] sm:$0xff] %v3089_v28  ;;  %v3196_v13 = vadd.f32 %v2748_v7, %v300_v54  ;;  %v431_v29 = vsel %vm367_vm4, %v3148_v53, %v399_v12  ;;  %vm343_vm7 = vcmp.gt.f32.partialorder %v3184_v4, 0.0  ;;  %v2518_v42 = vld [vmem:[%s4010_s3 + $0x210] sm:$0xff]  ;;  %v2547_v54 = vld [vmem:[%s4010_s3 + $0x2f8] sm:$0xff]  ;;  %v2545_v12 = vld [vmem:[%s4010_s3 + $0x2e8] sm:$0xff] }
  0x44   : > { %891 = vmatpush.msrb.mxu2 %v2490_v18  ;;  %1085 = vmatpush.msrb.mxu3 %v2506_v19  ;;  %496 = vst [vmem:[#allocation2 + $0x148] sm:$0xff] %v3128_v46  ;;  %v384_v18 = vmul.f32 0.2, %v3159_v57  ;;  %v321_v19 = vadd.f32 %v2748_v7, %v285_v60  ;;  %v393_v41 = vmul.f32 0.2, %v329_v24  ;;  %vm361_vm10 = vcmp.gt.f32.partialorder %v329_v24, 0.0 }
  0x45   : > { %704 = vmatmul.f32.gmra.mxu3 %v429_v17  ;;  %1277 = vmatpush.msrb.mxu0 %v2524_v23  ;;  %479 = vst [vmem:[#allocation2 + $0x30] sm:$0xff] %v3104_v35  ;;  %v277_v17 = vmul.f32 %v2742_v5, %v241_v3  ;;  %v392_v23 = vmul.f32 0.2, %v3172_v63  ;;  %v375_v5 = vmul.f32 0.2, %v3184_v4  ;;  %vm368_vm8 = vcmp.gt.f32.partialorder %v3196_v13, 0.0 }
  0x46   : > { %729 = vmatpush.msrb.mxu1 %v548_v10  ;;  %892 = vmatpush.msrb.mxu2 %v2489_v26  ;;  %504 = vst [vmem:[#allocation2 + $0x1c8] sm:$0xff] %v430_v47  ;;  %v312_v10 = vadd.f32 %v2748_v7, %v276_v11  ;;  %v2519_v26 = vld [vmem:[%s4010_s3 + $0x218] sm:$0xff]  ;;  %v400_v30 = vmul.f32 0.2, %v3196_v13  ;;  %v385_v34 = vmul.f32 0.2, %v321_v19  ;;  %v3299_v55 = vsel %vm361_vm10, %v329_v24, %v393_v41 }
  0x47   : > { %1086 = vmatpush.msrb.mxu3 %v2505_v31  ;;  %1278 = vmatpush.msrb.mxu0 %v2523_v33  ;;  %489 = vst [vmem:[#allocation2 + $0xd0] sm:$0xff] %v3145_v52  ;;  %v337_v31 = vadd.f32 %v2748_v7, %v301_v16  ;;  %v3248_v33 = vsel %vm352_vm5, %v3159_v57, %v384_v18  ;;  %vm353_vm9 = vcmp.gt.f32.partialorder %v321_v19, 0.0  ;;  %v2595_v61 = vld [vmem:[%s4010_s3 + $0x478] sm:$0xff]  ;;  %v2562_v62 = vld [vmem:[%s4010_s3 + $0x370] sm:$0xff]  ;;  %v510_v3 = vld [vmem:[#allocation2 + $0x7] sm:$0xff] }
  0x48   : > { %730 = vmatpush.msrb.mxu1 %v547_v38  ;;  %893 = vmatpush.msrb.mxu2 %v2488_v39  ;;  %497 = vst [vmem:[#allocation2 + $0x150] sm:$0xff] %v3156_v56  ;;  %v2500_v38 = vld [vmem:[%s4010_s3 + $0x180] sm:$0xff]  ;;  %v313_v39 = vadd.f32 %v2748_v7, %v277_v17  ;;  %v3262_v40 = vsel %vm360_vm6, %v3172_v63, %v392_v23  ;;  %vm344_vm11 = vcmp.gt.f32.partialorder %v312_v10, 0.0  ;;  %v2578_v63 = vld [vmem:[%s4010_s3 + $0x3f0] sm:$0xff]  ;;  %v2577_v11 = vld [vmem:[%s4010_s3 + $0x3e8] sm:$0xff] }
  0x49   : > { %632 = vmatmul.f32.gmra.mxu0 %v3104_v35  ;;  %1087 = vmatpush.msrb.mxu3 %v2504_v43  ;;  %480 = vst [vmem:[#allocation2 + $0x48] sm:$0xff] %v3219_v22  ;;  %v3273_v7 = vsel %vm343_vm7, %v3184_v4, %v375_v5  ;;  %v376_v43 = vmul.f32 0.2, %v312_v10  ;;  %v3292_v51 = vsel %vm353_vm9, %v321_v19, %v385_v34  ;;  %vm369_vm12 = vcmp.gt.f32.partialorder %v337_v31, 0.0  ;;  %v2594_v2 = vld [vmem:[%s4010_s3 + $0x470] sm:$0xff]  ;;  %v2593_v16 = vld [vmem:[%s4010_s3 + $0x468] sm:$0xff] }
  0x4a   : > { %1279 = vmatpush.msrb.mxu0 %v2522_v48  ;;  %731 = vmatpush.msrb.mxu1 %v546_v49  ;;  %505 = vst [vmem:[#allocation2 + $0x1d0] sm:$0xff] %v431_v29  ;;  %v401_v48 = vmul.f32 0.2, %v337_v31  ;;  %v2517_v49 = vld [vmem:[%s4010_s3 + $0x208] sm:$0xff]  ;;  %v377_v53 = vmul.f32 0.2, %v313_v39 }
  0x4b   : > { %659 = vmatmul.f32.gmra.mxu1 %v3089_v28  ;;  %683 = vmatmul.f32.gmra.mxu2 %v3128_v46  ;;  %490 = vst [vmem:[#allocation2 + $0xe8] sm:$0xff] %v3248_v33  ;;  %vm345_vm13 = vcmp.gt.f32.partialorder %v313_v39, 0.0  ;;  %v3303_v57 = vsel %vm344_vm11, %v312_v10, %v376_v43  ;;  %v833_v4 = vld [vmem:[#allocation2 + $0x9] sm:$0xff]  ;;  %v2592_v23 = vld [vmem:[%s4010_s3 + $0x460] sm:$0xff]  ;;  %v2559_v5 = vld [vmem:[%s4010_s3 + $0x358] sm:$0xff] }
  0x4c   : > { %894 = vmatpush.msrb.mxu2 %v2487_v58  ;;  %1088 = vmatpush.msrb.mxu3 %v2503_v59  ;;  %498 = vst [vmem:[#allocation2 + $0x168] sm:$0xff] %v3262_v40  ;;  %v2516_v58 = vld [vmem:[%s4010_s3 + $0x200] sm:$0xff]  ;;  %v433_v59 = vsel %vm369_vm12, %v337_v31, %v401_v48  ;;  %v3310_v60 = vsel %vm345_vm13, %v313_v39, %v377_v53  ;;  %v835_v18 = vld [vmem:[#allocation2 + $0x29] sm:$0xff]  ;;  %v2543_v10 = vld [vmem:[%s4010_s3 + $0x2d8] sm:$0xff] }
  0x4d   : > { %707 = vmatmul.f32.gmra.mxu3 %v430_v47  ;;  %1280 = vmatpush.msrb.mxu0 %v2521_v0  ;;  %481 = vst [vmem:[#allocation2 + $0x50] sm:$0xff] %v3273_v7  ;;  %v432_v47 = vsel %vm368_vm8, %v3196_v13, %v400_v30  ;;  %v2546_v0 = vld [vmem:[%s4010_s3 + $0x2f0] sm:$0xff]  ;;  %v1033_v31 = vld [vmem:[#allocation2 + $0x87] sm:$0xff] }
  0x4e   : > { %732 = vmatpush.msrb.mxu1 %v545_v8  ;;  %895 = vmatpush.msrb.mxu2 %v2486_v9  ;;  %506 = vst [vmem:[#allocation2 + $0x1e8] sm:$0xff] %v432_v47  ;;  %v1027_v8 = vld [vmem:[#allocation2 + $0x27] sm:$0xff]  ;;  %v511_v13 = vld [vmem:[#allocation2 + $0xf] sm:$0xff] }
  0x4f   : > { %1089 = vmatpush.msrb.mxu3 %v2502_v14  ;;  %1281 = vmatpush.msrb.mxu0 %v2520_v15  ;;  %491 = vst [vmem:[#allocation2 + $0xf0] sm:$0xff] %v3292_v51  ;;  %v2561_v9 = vld [vmem:[%s4010_s3 + $0x368] sm:$0xff]  ;;  %v834_v14 = vld [vmem:[#allocation2 + $0x11] sm:$0xff] }
  0x50   : > { %733 = vmatpush.msrb.mxu1 %v544_v20  ;;  %896 = vmatpush.msrb.mxu2 %v2485_v21  ;;  %499 = vst [vmem:[#allocation2 + $0x170] sm:$0xff] %v3299_v55  ;;  %v1028_v15 = vld [vmem:[#allocation2 + $0x2f] sm:$0xff]  ;;  %v1029_v19 = vld [vmem:[#allocation2 + $0x47] sm:$0xff] }
  0x51   : > { %635 = vmatmul.f32.gmra.mxu0 %v3219_v22  ;;  %1090 = vmatpush.msrb.mxu3 %v2501_v25  ;;  %482 = vst [vmem:[#allocation2 + $0x68] sm:$0xff] %v3303_v57  ;;  %v2560_v20 = vld [vmem:[%s4010_s3 + $0x360] sm:$0xff]  ;;  %v2558_v34 = vld [vmem:[%s4010_s3 + $0x350] sm:$0xff]  ;;  %v2573_v48 = vld [vmem:[%s4010_s3 + $0x3c8] sm:$0xff] }
  0x52   : > { %1282 = vmatpush.msrb.mxu0 %v2519_v26  ;;  %734 = vmatpush.msrb.mxu1 %v543_v27  ;;  %507 = vst [vmem:[#allocation2 + $0x1f0] sm:$0xff] %v433_v59  ;;  %v2544_v21 = vld [vmem:[%s4010_s3 + $0x2e0] sm:$0xff]  ;;  %v2542_v39 = vld [vmem:[%s4010_s3 + $0x2d0] sm:$0xff] }
  0x53   : > { %662 = vmatmul.f32.gmra.mxu1 %v3145_v52  ;;  %686 = vmatmul.f32.gmra.mxu2 %v3156_v56  ;;  %483 = vst [vmem:[#allocation2 + $0x70] sm:$0xff] %v3310_v60 }
  0x54   : > { %897 = vmatpush.msrb.mxu2 %v2484_v37  ;;  %1091 = vmatpush.msrb.mxu3 %v2500_v38  ;;  %v1030_v17 = vld [vmem:[#allocation2 + $0x4f] sm:$0xff] }
  0x55   : > { %710 = vmatmul.f32.gmra.mxu3 %v431_v29  ;;  %1283 = vmatpush.msrb.mxu0 %v2518_v42  ;;  %v837_v24 = vld [vmem:[#allocation2 + $0x49] sm:$0xff]  ;;  %v838_v26 = vld [vmem:[#allocation2 + $0x51] sm:$0xff] }
  0x56   : > { %735 = vmatpush.msrb.mxu1 %v542_v44  ;;  %1659 = vmatpush.msra.mxu2 %v2563_v45  ;;  %v2591_v29 = vld [vmem:[%s4010_s3 + $0x458] sm:$0xff]  ;;  %v2574_v37 = vld [vmem:[%s4010_s3 + $0x3d0] sm:$0xff]  ;;  %v1227_v38 = vld [vmem:[#allocation2 + $0x88] sm:$0xff] }
  0x57   : > { %1284 = vmatpush.msrb.mxu0 %v2517_v49  ;;  %1853 = vmatpush.msra.mxu3 %v2579_v50  ;;  %v1034_v42 = vld [vmem:[#allocation2 + $0x8f] sm:$0xff]  ;;  %v1035_v45 = vld [vmem:[#allocation2 + $0xa7] sm:$0xff] }
  0x58   : > { %1464 = vmatpush.msra.mxu1 %v2547_v54  ;;  %1660 = vmatpush.msra.mxu2 %v2562_v62  ;;  %v1031_v25 = vld [vmem:[#allocation2 + $0x67] sm:$0xff] }
  0x59   : > { %638 = vmatmul.f32.gmra.mxu0 %v3273_v7  ;;  %1854 = vmatpush.msra.mxu3 %v2578_v63  ;;  %v841_v44 = vld [vmem:[#allocation2 + $0x89] sm:$0xff] }
  0x5a   : > { %1285 = vmatpush.msrb.mxu0 %v2516_v58  ;;  %1465 = vmatpush.msra.mxu1 %v2546_v0  ;;  %v1032_v27 = vld [vmem:[#allocation2 + $0x6f] sm:$0xff] }
  0x5b   : > { %665 = vmatmul.f32.gmra.mxu1 %v3248_v33  ;;  %689 = vmatmul.f32.gmra.mxu2 %v3262_v40  ;;  %v839_v30 = vld [vmem:[#allocation2 + $0x69] sm:$0xff]  ;;  %v840_v41 = vld [vmem:[#allocation2 + $0x71] sm:$0xff] }
  0x5c   : > { %2047 = vmatpush.msra.mxu0 %v2595_v61  ;;  %1661 = vmatpush.msra.mxu2 %v2561_v9  ;;  %v1036_v58 = vld [vmem:[#allocation2 + $0xaf] sm:$0xff] }
  0x5d   : > { %713 = vmatmul.f32.gmra.mxu3 %v432_v47  ;;  %1466 = vmatpush.msra.mxu1 %v2545_v12  ;;  %v2557_v47 = vld [vmem:[%s4010_s3 + $0x348] sm:$0xff]  ;;  %v844_v12 = vld [vmem:[#allocation2 + $0xb1] sm:$0xff] }
  0x5e   : > { %2048 = vmatpush.msra.mxu0 %v2594_v2  ;;  %1855 = vmatpush.msra.mxu3 %v2577_v11  ;;  %v843_v0 = vld [vmem:[#allocation2 + $0xa9] sm:$0xff]  ;;  %v2556_v2 = vld [vmem:[%s4010_s3 + $0x340] sm:$0xff] }
  0x5f   : > { %1662 = vmatpush.msra.mxu2 %v2560_v20  ;;  %1467 = vmatpush.msra.mxu1 %v2544_v21  ;;  %v845_v20 = vld [vmem:[#allocation2 + $0xc9] sm:$0xff]  ;;  %v2571_v21 = vld [vmem:[%s4010_s3 + $0x3b8] sm:$0xff] }
  0x60   : > { %2049 = vmatpush.msra.mxu0 %v2593_v16 }
  0x61   : > { %641 = vmatmul.f32.gmra.mxu0 %v3303_v57  ;;  %1663 = vmatpush.msra.mxu2 %v2559_v5  ;;  %v1040_v5 = vld [vmem:[#allocation2 + $0xef] sm:$0xff] }
  0x62   : > { %2050 = vmatpush.msra.mxu0 %v2592_v23  ;;  %1468 = vmatpush.msra.mxu1 %v2543_v10 }
  0x63   : > { %668 = vmatmul.f32.gmra.mxu1 %v3292_v51  ;;  %692 = vmatmul.f32.gmra.mxu2 %v3299_v55 }
  0x64   : > { %2051 = vmatpush.msra.mxu0 %v2591_v29  ;;  %1664 = vmatpush.msra.mxu2 %v2558_v34  ;;  %v2570_v34 = vld [vmem:[%s4010_s3 + $0x3b0] sm:$0xff] }
  0x65   : > { %716 = vmatmul.f32.gmra.mxu3 %v433_v59  ;;  %1469 = vmatpush.msra.mxu1 %v2542_v39  ;;  %v2589_v59 = vld [vmem:[%s4010_s3 + $0x448] sm:$0xff] }
  0x66   : > { %1665 = vmatpush.msra.mxu2 %v2557_v47  ;;  %v1235_v39 = vld [vmem:[#allocation2 + $0x108] sm:$0xff] }
  0x68   : > { %1666 = vmatpush.msra.mxu2 %v2556_v2 }
  0x69   : > { %644 = vmatmul.f32.gmra.mxu0 %v3310_v60 }
  0x6b   : > { %736 = vmatmul.f32.vlgmr.msrb.gmra.mxu1 %v510_v3  ;;  %898 = vmatmul.f32.vlgmr.msrb.gmra.mxu2 %v833_v4  ;;  %v2572_v3 = vld [vmem:[%s4010_s3 + $0x3c0] sm:$0xff] }
  0x6d   : > { %1092 = vmatmul.f32.vlgmr.msrb.gmra.mxu3 %v1027_v8 }
  0x71   : > { %1286 = vmatmul.f32.vlgmr.msrb.gmra.mxu0 %v3020_v1  ;;  %v2576_v1 = vld [vmem:[%s4010_s3 + $0x3e0] sm:$0xff] }
  0x72   : > { %1856 = vmatpush.msra.mxu3 %v2576_v1  ;;  %v2555_v1 = vld [vmem:[%s4010_s3 + $0x338] sm:$0xff] }
  0x73   : > { %739 = vmatmul.f32.gmra.mxu1 %v511_v13  ;;  %901 = vmatmul.f32.gmra.mxu2 %v834_v14  ;;  %v1038_v13 = vld [vmem:[#allocation2 + $0xcf] sm:$0xff]  ;;  %v2588_v14 = vld [vmem:[%s4010_s3 + $0x440] sm:$0xff] }
  0x74   : > { %1667 = vmatpush.msra.mxu2 %v2555_v1 }
  0x75   : > { %1095 = vmatmul.f32.gmra.mxu3 %v1028_v15 }
  0x79   : > { %1289 = vmatmul.f32.gmra.mxu0 %v3104_v35  ;;  %v836_v35 = vld [vmem:[#allocation2 + $0x31] sm:$0xff] }
  0x7b   : > { %742 = vmatmul.f32.gmra.mxu1 %v1027_v8  ;;  %904 = vmatmul.f32.gmra.mxu2 %v835_v18 }
  0x7d   : > { %1098 = vmatmul.f32.gmra.mxu3 %v1029_v19 }
  0x81   : > { %1292 = vmatmul.f32.gmra.mxu0 %v3219_v22  ;;  %v2575_v22 = vld [vmem:[%s4010_s3 + $0x3d8] sm:$0xff] }
  0x82   : > { %1857 = vmatpush.msra.mxu3 %v2575_v22  ;;  %v2587_v22 = vld [vmem:[%s4010_s3 + $0x438] sm:$0xff] }
  0x83   : > { %745 = vmatmul.f32.gmra.mxu1 %v1028_v15  ;;  %907 = vmatmul.f32.gmra.mxu2 %v836_v35 }
  0x84   : > { %1858 = vmatpush.msra.mxu3 %v2574_v37 }
  0x85   : > { %1101 = vmatmul.f32.gmra.mxu3 %v1030_v17 }
  0x86   : > { %1859 = vmatpush.msra.mxu3 %v2573_v48 }
  0x88   : > { %1860 = vmatpush.msra.mxu3 %v2572_v3  ;;  %v2569_v3 = vld [vmem:[%s4010_s3 + $0x3a8] sm:$0xff] }
  0x89   : > { %1295 = vmatmul.f32.gmra.mxu0 %v3273_v7  ;;  %v2590_v7 = vld [vmem:[%s4010_s3 + $0x450] sm:$0xff] }
  0x8a   : > { %2052 = vmatpush.msra.mxu0 %v2590_v7  ;;  %1861 = vmatpush.msra.mxu3 %v2571_v21  ;;  %v848_v7 = vld [vmem:[#allocation2 + $0xf1] sm:$0xff] }
  0x8b   : > { %748 = vmatmul.f32.gmra.mxu1 %v1029_v19  ;;  %910 = vmatmul.f32.gmra.mxu2 %v837_v24  ;;  %v850_v21 = vld [vmem:[#allocation2 + $0x111] sm:$0xff] }
  0x8c   : > { %2053 = vmatpush.msra.mxu0 %v2589_v59  ;;  %1862 = vmatpush.msra.mxu3 %v2570_v34  ;;  %v849_v59 = vld [vmem:[#allocation2 + $0x109] sm:$0xff] }
  0x8d   : > { %1104 = vmatmul.f32.gmra.mxu3 %v1031_v25 }
  0x8e   : > { %2054 = vmatpush.msra.mxu0 %v2588_v14  ;;  %1863 = vmatpush.msra.mxu3 %v2569_v3 }
  0x90   : > { %2055 = vmatpush.msra.mxu0 %v2587_v22  ;;  %v2585_v22 = vld [vmem:[%s4010_s3 + $0x428] sm:$0xff] }
  0x91   : > { %1298 = vmatmul.f32.gmra.mxu0 %v3303_v57  ;;  %v842_v57 = vld [vmem:[#allocation2 + $0x91] sm:$0xff] }
  0x93   : > { %751 = vmatmul.f32.gmra.mxu1 %v1030_v17  ;;  %913 = vmatmul.f32.gmra.mxu2 %v838_v26 }
  0x95   : > { %1107 = vmatmul.f32.gmra.mxu3 %v1032_v27 }
  0x99   : > { %1301 = vmatmul.f32.gmra.mxu0 %v3310_v60 }
  0x9b   : > { %754 = vmatmul.f32.gmra.mxu1 %v1031_v25  ;;  %916 = vmatmul.f32.gmra.mxu2 %v839_v30  ;;  %v846_v25 = vld [vmem:[#allocation2 + $0xd1] sm:$0xff]  ;;  %v847_v30 = vld [vmem:[#allocation2 + $0xe9] sm:$0xff] }
  0x9d   : > { %1110 = vmatmul.f32.gmra.mxu3 %v1033_v31 }
  0xa1   : > { %1304 = vmatmul.f32.gmra.mxu0 %v1227_v38 }
  0xa3   : > { %757 = vmatmul.f32.gmra.mxu1 %v1032_v27  ;;  %919 = vmatmul.f32.gmra.mxu2 %v840_v41 }
  0xa5   : > { %1113 = vmatmul.f32.gmra.mxu3 %v1034_v42 }
  0xa8   : > { %v3388_v43 = vpop.f32.mrf.mxu1 }
  0xa9   : > { %1307 = vmatmul.f32.gmra.mxu0 %v2793_v36  ;;  %v2541_v36 = vld [vmem:[%s4010_s3 + $0x2c8] sm:$0xff] }
  0xaa   : > { %1470 = vmatpush.msra.mxu1 %v2541_v36  ;;  %v1236_v36 = vld [vmem:[#allocation2 + $0x110] sm:$0xff] }
  0xab   : > { %760 = vmatmul.f32.gmra.mxu1 %v1033_v31  ;;  %922 = vmatmul.f32.gmra.mxu2 %v841_v44  ;;  %v2554_v31 = vld [vmem:[%s4010_s3 + $0x330] sm:$0xff] }
  0xac   : > { %1668 = vmatpush.msra.mxu2 %v2554_v31  ;;  %v1042_v44 = vld [vmem:[#allocation2 + $0x10f] sm:$0xff] }
  0xad   : > { %1116 = vmatmul.f32.gmra.mxu3 %v1035_v45  ;;  %v1238_v31 = vld [vmem:[#allocation2 + $0x130] sm:$0xff] }
  0xae   : > { %v3397_v49 = vpop.f32.mrf.mxu2  ;;  %v3399_v50 = vpop.f32.mrf.mxu0 }
  0xb0   : > { %v3404_v53 = vpop.f32.mrf.mxu1  ;;  %v3406_v54 = vpop.f32.mrf.mxu3 }
  0xb1   : > { %1310 = vmatmul.f32.gmra.mxu0 %v2942_v32  ;;  %v1037_v32 = vld [vmem:[#allocation2 + $0xc7] sm:$0xff] }
  0xb3   : > { %763 = vmatmul.f32.gmra.mxu1 %v1034_v42  ;;  %925 = vmatmul.f32.gmra.mxu2 %v842_v57 }
  0xb5   : > { %1119 = vmatmul.f32.gmra.mxu3 %v1036_v58 }
  0xb6   : > { %v3412_v60 = vpop.f32.mrf.mxu2  ;;  %v3414_v61 = vpop.f32.mrf.mxu0 }
  0xb8   : > { %v3416_v62 = vpop.f32.mrf.mxu1  ;;  %v3418_v63 = vpop.f32.mrf.mxu3 }
  0xb9   : > { %1313 = vmatmul.f32.gmra.mxu0 %v3031_v6  ;;  %v2540_v6 = vld [vmem:[%s4010_s3 + $0x2c0] sm:$0xff] }
  0xba   : > { %1471 = vmatpush.msra.mxu1 %v2540_v6 }
  0xbb   : > { %766 = vmatmul.f32.gmra.mxu1 %v1035_v45  ;;  %928 = vmatmul.f32.gmra.mxu2 %v843_v0  ;;  %v2586_v45 = vld [vmem:[%s4010_s3 + $0x430] sm:$0xff]  ;;  %v1043_v0 = vld [vmem:[#allocation2 + $0x127] sm:$0xff] }
  0xbc   : > { %2056 = vmatpush.msra.mxu0 %v2586_v45 }
  0xbd   : > { %1122 = vmatmul.f32.gmra.mxu3 %v1037_v32 }
  0xbe   : > { %v3427_v4 = vpop.f32.mrf.mxu2  ;;  %v3429_v8 = vpop.f32.mrf.mxu0  ;;  %2057 = vmatpush.msra.mxu0 %v2585_v22 }
  0xc0   : > { %v3434_v9 = vpop.f32.mrf.mxu1  ;;  %v3436_v11 = vpop.f32.mrf.mxu3 }
  0xc1   : > { %1316 = vmatmul.f32.gmra.mxu0 %v3089_v28  ;;  %v1039_v28 = vld [vmem:[#allocation2 + $0xe7] sm:$0xff] }
  0xc3   : > { %769 = vmatmul.f32.gmra.mxu1 %v1036_v58  ;;  %931 = vmatmul.f32.gmra.mxu2 %v844_v12 }
  0xc5   : > { %1125 = vmatmul.f32.gmra.mxu3 %v1038_v13 }
  0xc6   : > { %v3442_v15 = vpop.f32.mrf.mxu2  ;;  %v3444_v16 = vpop.f32.mrf.mxu0 }
  0xc8   : > { %v3446_v18 = vpop.f32.mrf.mxu1  ;;  %v3448_v19 = vpop.f32.mrf.mxu3 }
  0xc9   : > { %1319 = vmatmul.f32.gmra.mxu0 %v3145_v52  ;;  %v2539_v52 = vld [vmem:[%s4010_s3 + $0x2b8] sm:$0xff] }
  0xca   : > { %1472 = vmatpush.msra.mxu1 %v2539_v52 }
  0xcb   : > { %772 = vmatmul.f32.gmra.mxu1 %v1037_v32  ;;  %934 = vmatmul.f32.gmra.mxu2 %v845_v20  ;;  %v2553_v32 = vld [vmem:[%s4010_s3 + $0x328] sm:$0xff] }
  0xcc   : > { %1669 = vmatpush.msra.mxu2 %v2553_v32  ;;  %v2537_v20 = vld [vmem:[%s4010_s3 + $0x2a8] sm:$0xff] }
  0xcd   : > { %1128 = vmatmul.f32.gmra.mxu3 %v1039_v28 }
  0xce   : > { %v3457_v35 = vpop.f32.mrf.mxu2  ;;  %v3459_v17 = vpop.f32.mrf.mxu0 }
  0xd0   : > { %v3464_v23 = vpop.f32.mrf.mxu1  ;;  %v3466_v24 = vpop.f32.mrf.mxu3 }
  0xd1   : > { %1322 = vmatmul.f32.gmra.mxu0 %v3248_v33  ;;  %v1041_v33 = vld [vmem:[#allocation2 + $0x107] sm:$0xff] }
  0xd3   : > { %775 = vmatmul.f32.gmra.mxu1 %v1038_v13  ;;  %937 = vmatmul.f32.gmra.mxu2 %v846_v25  ;;  %v1237_v13 = vld [vmem:[#allocation2 + $0x128] sm:$0xff] }
  0xd5   : > { %1131 = vmatmul.f32.gmra.mxu3 %v1040_v5 }
  0xd6   : > { %v3472_v10 = vpop.f32.mrf.mxu2  ;;  %v3474_v26 = vpop.f32.mrf.mxu0 }
  0xd8   : > { %v3476_v27 = vpop.f32.mrf.mxu1  ;;  %v3478_v29 = vpop.f32.mrf.mxu3 }
  0xd9   : > { %1325 = vmatmul.f32.gmra.mxu0 %v3292_v51  ;;  %v2538_v51 = vld [vmem:[%s4010_s3 + $0x2b0] sm:$0xff] }
  0xda   : > { %1473 = vmatpush.msra.mxu1 %v2538_v51 }
  0xdb   : > { %778 = vmatmul.f32.gmra.mxu1 %v1039_v28  ;;  %940 = vmatmul.f32.gmra.mxu2 %v847_v30 }
  0xdc   : > { %1474 = vmatpush.msra.mxu1 %v2537_v20 }
  0xdd   : > { %1134 = vmatmul.f32.gmra.mxu3 %v1041_v33 }
  0xde   : > { %v3487_v37 = vpop.f32.mrf.mxu2  ;;  %v3489_v38 = vpop.f32.mrf.mxu0 }
  0xe0   : > { %v3494_v41 = vpop.f32.mrf.mxu1  ;;  %v3496_v42 = vpop.f32.mrf.mxu3 }
  0xe1   : > { %1328 = vmatmul.f32.gmra.mxu0 %v1235_v39 }
  0xe3   : > { %781 = vmatmul.f32.gmra.mxu1 %v1040_v5  ;;  %943 = vmatmul.f32.gmra.mxu2 %v848_v7  ;;  %v851_v7 = vld [vmem:[#allocation2 + $0x129] sm:$0xff] }
  0xe5   : > { %1137 = vmatmul.f32.gmra.mxu3 %v1042_v44 }
  0xe6   : > { %v3501_v47 = vpop.f32.mrf.mxu2  ;;  %v3503_v48 = vpop.f32.mrf.mxu0 }
  0xe8   : > { %v3505_v57 = vpop.f32.mrf.mxu3  ;;  %v737_v58 = vpop.f32.mrf.mxu1 }
  0xe9   : > { %1331 = vmatmul.f32.gmra.mxu0 %v1236_v36  ;;  %v738_v2 = vadd.f32 %v737_v58, %v3399_v50  ;;  %v1044_v50 = vld [vmem:[#allocation2 + $0x12f] sm:$0xff]  ;;  %v1045_v36 = vld [vmem:[#allocation2 + $0x147] sm:$0xff] }
  0xeb   : > { %784 = vmatmul.f32.gmra.mxu1 %v1041_v33  ;;  %946 = vmatmul.f32.gmra.mxu2 %v849_v59  ;;  %v2568_v59 = vld [vmem:[%s4010_s3 + $0x3a0] sm:$0xff] }
  0xec   : > { %1864 = vmatpush.msra.mxu3 %v2568_v59 }
  0xed   : > { %1140 = vmatmul.f32.gmra.mxu3 %v1043_v0 }
  0xee   : > { %v899_v6 = vpop.f32.mrf.mxu2  ;;  %v1287_v12 = vpop.f32.mrf.mxu0 }
  0xef   : > { %v995_v14 = vadd.f32 %v899_v6, %v738_v2 }
  0xf0   : > { %v740_v28 = vpop.f32.mrf.mxu1  ;;  %v1093_v1 = vpop.f32.mrf.mxu3 }
  0xf1   : > { %v1189_v52 = vadd.f32 %v1093_v1, %v995_v14  ;;  %1334 = vmatmul.f32.gmra.mxu0 %v1237_v13  ;;  %v741_v5 = vadd.f32 %v740_v28, %v3414_v61  ;;  %v2552_v61 = vld [vmem:[%s4010_s3 + $0x320] sm:$0xff]  ;;  %v852_v13 = vld [vmem:[#allocation2 + $0x131] sm:$0xff] }
  0xf2   : > { %1670 = vmatpush.msra.mxu2 %v2552_v61  ;;  %v2584_v1 = vld [vmem:[%s4010_s3 + $0x420] sm:$0xff] }
  0xf3   : > { %v3517_v25 = vadd.f32 %v1287_v12, %v1189_v52  ;;  %787 = vmatmul.f32.gmra.mxu1 %v1042_v44  ;;  %949 = vmatmul.f32.gmra.mxu2 %v850_v21 }
  0xf4   : > { %2058 = vmatpush.msra.mxu0 %v2584_v1  ;;  %v1049_v1 = vld [vmem:[#allocation2 + $0x187] sm:$0xff] }
  0xf5   : > { %1143 = vmatmul.f32.gmra.mxu3 %v1044_v50 }
  0xf6   : > { %v902_v30 = vpop.f32.mrf.mxu2  ;;  %v1290_v33 = vpop.f32.mrf.mxu0 }
  0xf7   : > { %v996_v34 = vadd.f32 %v902_v30, %v741_v5 }
  0xf8   : > { %v743_v39 = vpop.f32.mrf.mxu1  ;;  %v1096_v51 = vpop.f32.mrf.mxu3 }
  0xf9   : > { %v1190_v45 = vadd.f32 %v1096_v51, %v996_v34  ;;  %1337 = vmatmul.f32.gmra.mxu0 %v1238_v31  ;;  %v744_v58 = vadd.f32 %v743_v39, %v3429_v8  ;;  %v1046_v8 = vld [vmem:[#allocation2 + $0x14f] sm:$0xff]  ;;  %v1047_v31 = vld [vmem:[#allocation2 + $0x167] sm:$0xff]  ;;  %v2567_v39 = vld [vmem:[%s4010_s3 + $0x398] sm:$0xff] }
  0xfa   : > { %1865 = vmatpush.msra.mxu3 %v2567_v39 }
  0xfb   : > { %v3523_v44 = vadd.f32 %v1290_v33, %v1190_v45  ;;  %790 = vmatmul.f32.gmra.mxu1 %v1043_v0  ;;  %952 = vmatmul.f32.gmra.mxu2 %v851_v7  ;;  %v2536_v0 = vld [vmem:[%s4010_s3 + $0x2a0] sm:$0xff]  ;;  %v853_v33 = vld [vmem:[#allocation2 + $0x149] sm:$0xff]  ;;  %v2535_v45 = vld [vmem:[%s4010_s3 + $0x298] sm:$0xff] }
  0xfc   : > { %1475 = vmatpush.msra.mxu1 %v2536_v0 }
  0xfd   : > { %1146 = vmatmul.f32.gmra.mxu3 %v1045_v36 }
  0xfe   : > { %v905_v32 = vpop.f32.mrf.mxu2  ;;  %v1293_v2 = vpop.f32.mrf.mxu0  ;;  %1476 = vmatpush.msra.mxu1 %v2535_v45 }
  0xff   : > { %v997_v3 = vadd.f32 %v905_v32, %v744_v58  ;;  %v854_v58 = vld [vmem:[#allocation2 + $0x151] sm:$0xff] }
 0x100   : > { %v746_v6 = vpop.f32.mrf.mxu1  ;;  %v1099_v12 = vpop.f32.mrf.mxu3 }
 0x101   : > { %v1191_v14 = vadd.f32 %v1099_v12, %v997_v3  ;;  %1340 = vmatmul.f32.gmra.mxu0 %v3128_v46  ;;  %v747_v28 = vadd.f32 %v746_v6, %v3444_v16  ;;  %v2551_v16 = vld [vmem:[%s4010_s3 + $0x318] sm:$0xff] }
 0x102   : > { %1671 = vmatpush.msra.mxu2 %v2551_v16  ;;  %v2583_v3 = vld [vmem:[%s4010_s3 + $0x418] sm:$0xff] }
 0x103   : > { %v3536_v20 = vadd.f32 %v1293_v2, %v1191_v14  ;;  %793 = vmatmul.f32.gmra.mxu1 %v1044_v50  ;;  %955 = vmatmul.f32.gmra.mxu2 %v852_v13  ;;  %v856_v16 = vld [vmem:[#allocation2 + $0x171] sm:$0xff] }
 0x104   : > { %2059 = vmatpush.msra.mxu0 %v2583_v3 }
 0x105   : > { %1149 = vmatmul.f32.gmra.mxu3 %v1046_v8 }
 0x106   : > { %v908_v21 = vpop.f32.mrf.mxu2  ;;  %v1296_v52 = vpop.f32.mrf.mxu0 }
 0x107   : > { %v998_v5 = vadd.f32 %v908_v21, %v747_v28  ;;  %v855_v28 = vld [vmem:[#allocation2 + $0x169] sm:$0xff] }
 0x108   : > { %v749_v22 = vpop.f32.mrf.mxu1  ;;  %v1102_v30 = vpop.f32.mrf.mxu3 }
 0x109   : > { %v1192_v46 = vadd.f32 %v1102_v30, %v998_v5  ;;  %1343 = vmatmul.f32.gmra.mxu0 %v3156_v56  ;;  %v750_v34 = vadd.f32 %v749_v22, %v3459_v17  ;;  %v1048_v17 = vld [vmem:[#allocation2 + $0x16f] sm:$0xff] }
 0x10b   : > { %v3543_v50 = vadd.f32 %v1296_v52, %v1192_v46  ;;  %796 = vmatmul.f32.gmra.mxu1 %v1045_v36  ;;  %958 = vmatmul.f32.gmra.mxu2 %v853_v33  ;;  %v2566_v52 = vld [vmem:[%s4010_s3 + $0x390] sm:$0xff] }
 0x10c   : > { %1866 = vmatpush.msra.mxu3 %v2566_v52  ;;  %v2534_v33 = vld [vmem:[%s4010_s3 + $0x290] sm:$0xff] }
 0x10d   : > { %1152 = vmatmul.f32.gmra.mxu3 %v1047_v31  ;;  %1477 = vmatpush.msra.mxu1 %v2534_v33 }
 0x10e   : > { %v911_v51 = vpop.f32.mrf.mxu2  ;;  %v1299_v7 = vpop.f32.mrf.mxu0 }
 0x10f   : > { %v999_v56 = vadd.f32 %v911_v51, %v750_v34 }
 0x110   : > { %v752_v36 = vpop.f32.mrf.mxu1  ;;  %v1105_v61 = vpop.f32.mrf.mxu3 }
 0x111   : > { %v1193_v59 = vadd.f32 %v1105_v61, %v999_v56  ;;  %1346 = vmatmul.f32.gmra.mxu0 %v3262_v40  ;;  %v753_v2 = vadd.f32 %v752_v36, %v3474_v26  ;;  %v2550_v26 = vld [vmem:[%s4010_s3 + $0x310] sm:$0xff] }
 0x112   : > { %1672 = vmatpush.msra.mxu2 %v2550_v26  ;;  %v1244_v36 = vld [vmem:[#allocation2 + $0x190] sm:$0xff] }
 0x113   : > { %v3556_v32 = vadd.f32 %v1299_v7, %v1193_v59  ;;  %799 = vmatmul.f32.gmra.mxu1 %v1046_v8  ;;  %961 = vmatmul.f32.gmra.mxu2 %v854_v58  ;;  %v2582_v7 = vld [vmem:[%s4010_s3 + $0x410] sm:$0xff] }
 0x114   : > { %2060 = vmatpush.msra.mxu0 %v2582_v7  ;;  %v2581_v7 = vld [vmem:[%s4010_s3 + $0x408] sm:$0xff] }
 0x115   : > { %1155 = vmatmul.f32.gmra.mxu3 %v1048_v17 }
 0x116   : > { %v914_v0 = vpop.f32.mrf.mxu2  ;;  %v1302_v6 = vpop.f32.mrf.mxu0  ;;  %2061 = vmatpush.msra.mxu0 %v2581_v7 }
 0x117   : > { %v1000_v12 = vadd.f32 %v914_v0, %v753_v2  ;;  %v857_v2 = vld [vmem:[#allocation2 + $0x189] sm:$0xff] }
 0x118   : > { %v755_v13 = vpop.f32.mrf.mxu1  ;;  %v1108_v14 = vpop.f32.mrf.mxu3 }
 0x119   : > { %v1194_v40 = vadd.f32 %v1108_v14, %v1000_v12  ;;  %1349 = vmatmul.f32.gmra.mxu0 %v3299_v55  ;;  %v756_v21 = vadd.f32 %v755_v13, %v3489_v38  ;;  %v1243_v55 = vld [vmem:[#allocation2 + $0x188] sm:$0xff]  ;;  %v266_v13 = vld [vmem:[%s2737_s8 + $0xf0] sm:$0xff] }
 0x11a   : > { %v1050_v38 = vld [vmem:[#allocation2 + $0x18f] sm:$0xff] }
 0x11b   : > { %v3563_v8 = vadd.f32 %v1302_v6, %v1194_v40  ;;  %802 = vmatmul.f32.gmra.mxu1 %v1047_v31  ;;  %964 = vmatmul.f32.gmra.mxu2 %v855_v28  ;;  %v2565_v12 = vld [vmem:[%s4010_s3 + $0x388] sm:$0xff] }
 0x11c   : > { %v1245_v40 = vld [vmem:[#allocation2 + $0x1a8] sm:$0xff]  ;;  %1867 = vmatpush.msra.mxu3 %v2565_v12 }
 0x11d   : > { %1158 = vmatmul.f32.gmra.mxu3 %v1049_v1 }
 0x11e   : > { %v917_v5 = vpop.f32.mrf.mxu2  ;;  %v1305_v22 = vpop.f32.mrf.mxu0 }
 0x11f   : > { %v1001_v30 = vadd.f32 %v917_v5, %v756_v21 }
 0x120   : > { %v758_v46 = vpop.f32.mrf.mxu1  ;;  %v1111_v31 = vpop.f32.mrf.mxu3 }
 0x121   : > { %v1195_v34 = vadd.f32 %v1111_v31, %v1001_v30  ;;  %1352 = vmatmul.f32.gmra.mxu0 %v1243_v55  ;;  %v759_v51 = vadd.f32 %v758_v46, %v3503_v48  ;;  %v2549_v48 = vld [vmem:[%s4010_s3 + $0x308] sm:$0xff]  ;;  %v2663_v55 = vld [vmem:[%s4009_s2] ss:$0 sm:$0xff] }
 0x122   : > { %1673 = vmatpush.msra.mxu2 %v2549_v48  ;;  %v1052_v46 = vld [vmem:[#allocation2 + $0x1af] sm:$0xff] }
 0x123   : > { %v3575_v39 = vadd.f32 %v1305_v22, %v1195_v34  ;;  %805 = vmatmul.f32.gmra.mxu1 %v1048_v17  ;;  %967 = vmatmul.f32.gmra.mxu2 %v856_v16  ;;  %v1051_v17 = vld [vmem:[#allocation2 + $0x1a7] sm:$0xff]  ;;  %v858_v22 = vld [vmem:[#allocation2 + $0x191] sm:$0xff] }
 0x125   : > { %1161 = vmatmul.f32.gmra.mxu3 %v1050_v38 }
 0x126   : > { %v920_v56 = vpop.f32.mrf.mxu2  ;;  %v1308_v45 = vpop.f32.mrf.mxu0 }
 0x127   : > { %v1002_v61 = vadd.f32 %v920_v56, %v759_v51  ;;  %v267_v56 = vld [vmem:[%s2737_s8 + $0xf8] sm:$0xff] }
 0x128   : > { %v761_v58 = vpop.f32.mrf.mxu1  ;;  %v1114_v59 = vpop.f32.mrf.mxu3 }
 0x129   : > { %v1196_v3 = vadd.f32 %v1114_v59, %v1002_v61  ;;  %1355 = vmatmul.f32.gmra.mxu0 %v1244_v36  ;;  %v762_v6 = vadd.f32 %v761_v58, %v3388_v43  ;;  %v2533_v43 = vld [vmem:[%s4010_s3 + $0x288] sm:$0xff]  ;;  %v3610_v61 = vld [vmem:[#allocation2 + $0x1b0] sm:$0xff] }
 0x12a   : > { %1478 = vmatpush.msra.mxu1 %v2533_v43 }
 0x12b   : > { %v3581_v0 = vadd.f32 %v1308_v45, %v1196_v3  ;;  %808 = vmatmul.f32.gmra.mxu1 %v1049_v1  ;;  %970 = vmatmul.f32.gmra.mxu2 %v857_v2  ;;  %v2662_v1 = vld [vmem:[%s4008_s1] ss:$0 sm:$0xff]  ;;  %v859_v3 = vld [vmem:[#allocation2 + $0x1a9] sm:$0xff] }
 0x12c   : > { %v302_v26 = vmul.f32 %v2662_v1, %v266_v13 }
 0x12d   : > { %1164 = vmatmul.f32.gmra.mxu3 %v1051_v17 }
 0x12e   : > { %v923_v14 = vpop.f32.mrf.mxu2  ;;  %v1311_v28 = vpop.f32.mrf.mxu0  ;;  %v338_v30 = vadd.f32 %v2663_v55, %v302_v26 }
 0x12f   : > { %v1003_v21 = vadd.f32 %v923_v14, %v762_v6  ;;  %v1053_v6 = vld [vmem:[#allocation2 + $0x1c7] sm:$0xff] }
 0x130   : > { %v764_v52 = vpop.f32.mrf.mxu1  ;;  %v1117_v5 = vpop.f32.mrf.mxu3  ;;  %v402_v31 = vmul.f32 0.2, %v338_v30  ;;  %vm370_vm14 = vcmp.gt.f32.partialorder %v338_v30, 0.0  ;;  %v2548_v14 = vld [vmem:[%s4010_s3 + $0x300] sm:$0xff] }
 0x131   : > { %v1197_v33 = vadd.f32 %v1117_v5, %v1003_v21  ;;  %1358 = vmatmul.f32.gmra.mxu0 %v1245_v40  ;;  %v765_v51 = vadd.f32 %v764_v52, %v3404_v53  ;;  %1674 = vmatpush.msra.mxu2 %v2548_v14  ;;  %v3625_v21 = vld [vmem:[#allocation2 + $0x1c8] sm:$0xff]  ;;  %v2532_v52 = vld [vmem:[%s4010_s3 + $0x280] sm:$0xff] }
 0x132   : > { %v3602_v34 = vsel %vm370_vm14, %v338_v30, %v402_v31  ;;  %1479 = vmatpush.msra.mxu1 %v2532_v52  ;;  %v1054_v30 = vld [vmem:[#allocation2 + $0x1cf] sm:$0xff] }
 0x133   : > { %v3600_v16 = vadd.f32 %v1311_v28, %v1197_v33  ;;  %811 = vmatmul.f32.gmra.mxu1 %v1050_v38  ;;  %973 = vmatmul.f32.gmra.mxu2 %v858_v22  ;;  %508 = vst [vmem:[#allocation2 + $0x208] sm:$0xff] %v3602_v34  ;;  %v303_v38 = vmul.f32 %v2662_v1, %v267_v56  ;;  %v2564_v1 = vld [vmem:[%s4010_s3 + $0x380] sm:$0xff] }
 0x134   : > { %1868 = vmatpush.msra.mxu3 %v2564_v1 }
 0x135   : > { %1167 = vmatmul.f32.gmra.mxu3 %v1052_v46  ;;  %v339_v48 = vadd.f32 %v2663_v55, %v303_v38 }
 0x136   : > { %v926_v45 = vpop.f32.mrf.mxu2  ;;  %v1314_v36 = vpop.f32.mrf.mxu0 }
 0x137   : > { %v1004_v58 = vadd.f32 %v926_v45, %v765_v51  ;;  %v403_v12 = vmul.f32 0.2, %v339_v48  ;;  %vm371_vm15 = vcmp.gt.f32.partialorder %v339_v48, 0.0  ;;  %v2580_v51 = vld [vmem:[%s4010_s3 + $0x400] sm:$0xff]  ;;  %v3637_v45 = vld [vmem:[#allocation2 + $0x1d0] sm:$0xff] }
 0x138   : > { %v767_v59 = vpop.f32.mrf.mxu1  ;;  %v1120_v2 = vpop.f32.mrf.mxu3  ;;  %2062 = vmatpush.msra.mxu0 %v2580_v51  ;;  %v3654_v51 = vld [vmem:[#allocation2 + $0x1e9] sm:$0xff] }
 0x139   : > { %v1198_v53 = vadd.f32 %v1120_v2, %v1004_v58  ;;  %1361 = vmatmul.f32.gmra.mxu0 %v3610_v61  ;;  %v3618_v28 = vsel %vm371_vm15, %v339_v48, %v403_v12  ;;  %v768_v40 = vadd.f32 %v767_v59, %v3416_v62  ;;  %v860_v62 = vld [vmem:[#allocation2 + $0x1b1] sm:$0xff]  ;;  %v861_v59 = vld [vmem:[#allocation2 + $0x1c9] sm:$0xff] }
 0x13a   : > { %509 = vst [vmem:[#allocation2 + $0x210] sm:$0xff] %v3618_v28  ;;  %v3643_v12 = vld [vmem:[#allocation2 + $0x1e8] sm:$0xff] }
 0x13b   : > { %v3613_v13 = vadd.f32 %v1314_v36, %v1198_v53  ;;  %814 = vmatmul.f32.gmra.mxu1 %v1051_v17  ;;  %976 = vmatmul.f32.gmra.mxu2 %v859_v3 }
 0x13d   : > { %1170 = vmatmul.f32.gmra.mxu3 %v1053_v6 }
 0x13e   : > { %v929_v26 = vpop.f32.mrf.mxu2  ;;  %v1317_v17 = vpop.f32.mrf.mxu0 }
 0x13f   : > { %v1005_v43 = vadd.f32 %v929_v26, %v768_v40  ;;  %v3645_v26 = vld [vmem:[#allocation2 + $0x1d1] sm:$0xff] }
 0x140   : > { %v770_v5 = vpop.f32.mrf.mxu1  ;;  %v1123_v22 = vpop.f32.mrf.mxu3 }
 0x141   : > { %v1199_v55 = vadd.f32 %v1123_v22, %v1005_v43  ;;  %1364 = vmatmul.f32.gmra.mxu0 %v3625_v21  ;;  %v771_v31 = vadd.f32 %v770_v5, %v3434_v9  ;;  %v1056_v43 = vld [vmem:[#allocation2 + $0x1ef] sm:$0xff] }
 0x142   : > { %v3652_v22 = vld [vmem:[#allocation2 + $0x1f0] sm:$0xff] }
 0x143   : > { %v3631_v33 = vadd.f32 %v1317_v17, %v1199_v55  ;;  %817 = vmatmul.f32.gmra.mxu1 %v1052_v46  ;;  %979 = vmatmul.f32.gmra.mxu2 %v860_v62  ;;  %v1055_v46 = vld [vmem:[#allocation2 + $0x1e7] sm:$0xff] }
 0x145   : > { %1173 = vmatmul.f32.gmra.mxu3 %v1054_v30 }
 0x146   : > { %v932_v7 = vpop.f32.mrf.mxu2  ;;  %v1320_v56 = vpop.f32.mrf.mxu0 }
 0x147   : > { %v1006_v36 = vadd.f32 %v932_v7, %v771_v31 }
 0x148   : > { %v773_v38 = vpop.f32.mrf.mxu1  ;;  %v1126_v58 = vpop.f32.mrf.mxu3 }
 0x149   : > { %v1200_v2 = vadd.f32 %v1126_v58, %v1006_v36  ;;  %1367 = vmatmul.f32.gmra.mxu0 %v3637_v45  ;;  %v774_v9 = vadd.f32 %v773_v38, %v3446_v18 }
 0x14b   : > { %v3640_v3 = vadd.f32 %v1320_v56, %v1200_v2  ;;  %820 = vmatmul.f32.gmra.mxu1 %v1053_v6  ;;  %982 = vmatmul.f32.gmra.mxu2 %v861_v59  ;;  %v1057_v56 = vld [vmem:[#allocation2 + $0x207] sm:$0xff] }
 0x14d   : > { %1176 = vmatmul.f32.gmra.mxu3 %v1055_v46 }
 0x14e   : > { %v935_v48 = vpop.f32.mrf.mxu2  ;;  %v1323_v53 = vpop.f32.mrf.mxu0 }
 0x14f   : > { %v1007_v14 = vadd.f32 %v935_v48, %v774_v9  ;;  %v3661_v9 = vld [vmem:[#allocation2 + $0x1f1] sm:$0xff] }
 0x150   : > { %v776_v40 = vpop.f32.mrf.mxu1  ;;  %v1129_v1 = vpop.f32.mrf.mxu3 }
 0x151   : > { %v1201_v17 = vadd.f32 %v1129_v1, %v1007_v14  ;;  %1370 = vmatmul.f32.gmra.mxu0 %v3643_v12  ;;  %v777_v18 = vadd.f32 %v776_v40, %v3464_v23 }
 0x153   : > { %v3648_v52 = vadd.f32 %v1323_v53, %v1201_v17  ;;  %823 = vmatmul.f32.gmra.mxu1 %v1054_v30  ;;  %985 = vmatmul.f32.gmra.mxu2 %v3645_v26  ;;  %v3664_v53 = vld [vmem:[#allocation2 + $0x20f] sm:$0xff] }
 0x155   : > { %1179 = vmatmul.f32.gmra.mxu3 %v1056_v43 }
 0x156   : > { %v938_v6 = vpop.f32.mrf.mxu2  ;;  %v1326_v5 = vpop.f32.mrf.mxu0 }
 0x157   : > { %v1008_v62 = vadd.f32 %v938_v6, %v777_v18  ;;  %v1415_v6 = vld [vmem:[#allocation2 + $0x29] sm:$0xff] }
 0x158   : > { %v779_v55 = vpop.f32.mrf.mxu1  ;;  %v1132_v31 = vpop.f32.mrf.mxu3 }
 0x159   : > { %v1202_v7 = vadd.f32 %v1132_v31, %v1008_v62  ;;  %1373 = vmatmul.f32.gmra.mxu0 %v3652_v22  ;;  %v780_v23 = vadd.f32 %v779_v55, %v3476_v27 }
 0x15b   : > { %v3657_v36 = vadd.f32 %v1326_v5, %v1202_v7  ;;  %826 = vmatmul.f32.gmra.mxu1 %v1055_v46  ;;  %988 = vmatmul.f32.gmra.mxu2 %v3654_v51  ;;  %v1610_v5 = vld [vmem:[#allocation2 + $0x47] sm:$0xff] }
 0x15c   : > { %v1998_v7 = vld [vmem:[#allocation2 + $0x49] sm:$0xff] }
 0x15d   : > { %1182 = vmatmul.f32.gmra.mxu3 %v1057_v56 }
 0x15e   : > { %v941_v30 = vpop.f32.mrf.mxu2  ;;  %v1329_v38 = vpop.f32.mrf.mxu0 }
 0x15f   : > { %v1009_v58 = vadd.f32 %v941_v30, %v780_v23 }
 0x160   : > { %v782_v59 = vpop.f32.mrf.mxu1  ;;  %v1135_v2 = vpop.f32.mrf.mxu3 }
 0x161   : > { %v1203_v48 = vadd.f32 %v1135_v2, %v1009_v58  ;;  %1376 = vmatmul.f32.gmra.mxu0 %v3602_v34  ;;  %v783_v27 = vadd.f32 %v782_v59, %v3494_v41  ;;  %v1804_v34 = vld [vmem:[#allocation2 + $0x48] sm:$0xff]  ;;  %v1805_v2 = vld [vmem:[#allocation2 + $0x50] sm:$0xff] }
 0x162   : > { %v1611_v58 = vld [vmem:[#allocation2 + $0x4f] sm:$0xff] }
 0x163   : > { %v3666_v14 = vadd.f32 %v1329_v38, %v1203_v48  ;;  %829 = vmatmul.f32.gmra.mxu1 %v1056_v43  ;;  %991 = vmatmul.f32.gmra.mxu2 %v3661_v9  ;;  %v1416_v38 = vld [vmem:[#allocation2 + $0x31] sm:$0xff] }
 0x165   : > { %1185 = vmatmul.f32.gmra.mxu3 %v3664_v53 }
 0x166   : > { %v944_v46 = vpop.f32.mrf.mxu2  ;;  %v1332_v40 = vpop.f32.mrf.mxu0 }
 0x167   : > { %v1010_v1 = vadd.f32 %v944_v46, %v783_v27  ;;  %v1999_v46 = vld [vmem:[#allocation2 + $0x51] sm:$0xff] }
 0x168   : > { %v785_v17 = vpop.f32.mrf.mxu1  ;;  %v1138_v18 = vpop.f32.mrf.mxu3 }
 0x169   : > { %v1204_v62 = vadd.f32 %v1138_v18, %v1010_v1  ;;  %1379 = vmatmul.f32.gmra.mxu0 %v3618_v28  ;;  %v786_v43 = vadd.f32 %v785_v17, %v3397_v49  ;;  %v1612_v18 = vld [vmem:[#allocation2 + $0x67] sm:$0xff] }
 0x16b   : > { %v3672_v55 = vadd.f32 %v1332_v40, %v1204_v62  ;;  %1480 = vmatmul.f32.vlgmr.msra.gmra.mxu1 %v1415_v6  ;;  %1675 = vmatmul.f32.vlgmr.msra.gmra.mxu2 %v1610_v5  ;;  %v1806_v5 = vld [vmem:[#allocation2 + $0x68] sm:$0xff] }
 0x16d   : > { %1869 = vmatmul.f32.vlgmr.msra.gmra.mxu3 %v1804_v34 }
 0x16e   : > { %v947_v41 = vpop.f32.mrf.mxu2  ;;  %v1335_v31 = vpop.f32.mrf.mxu0 }
 0x16f   : > { %v1011_v56 = vadd.f32 %v947_v41, %v786_v43  ;;  %v2000_v41 = vld [vmem:[#allocation2 + $0x69] sm:$0xff] }
 0x170   : > { %v788_v23 = vpop.f32.mrf.mxu1  ;;  %v1141_v30 = vpop.f32.mrf.mxu3 }
 0x171   : > { %v1205_v59 = vadd.f32 %v1141_v30, %v1011_v56  ;;  %2063 = vmatmul.f32.vlgmr.msra.gmra.mxu0 %v1998_v7  ;;  %v789_v48 = vadd.f32 %v788_v23, %v3412_v60  ;;  %v1613_v30 = vld [vmem:[#allocation2 + $0x6f] sm:$0xff] }
 0x173   : > { %v3675_v28 = vadd.f32 %v1335_v31, %v1205_v59  ;;  %1483 = vmatmul.f32.gmra.mxu1 %v1416_v38  ;;  %1678 = vmatmul.f32.gmra.mxu2 %v1611_v58  ;;  %v1807_v58 = vld [vmem:[#allocation2 + $0x70] sm:$0xff] }
 0x175   : > { %1872 = vmatmul.f32.gmra.mxu3 %v1805_v2 }
 0x176   : > { %v950_v49 = vpop.f32.mrf.mxu2  ;;  %v1338_v27 = vpop.f32.mrf.mxu0 }
 0x177   : > { %v1012_v40 = vadd.f32 %v950_v49, %v789_v48  ;;  %v2001_v48 = vld [vmem:[#allocation2 + $0x71] sm:$0xff] }
 0x178   : > { %v791_v1 = vpop.f32.mrf.mxu1  ;;  %v1144_v17 = vpop.f32.mrf.mxu3 }
 0x179   : > { %v1206_v6 = vadd.f32 %v1144_v17, %v1012_v40  ;;  %2066 = vmatmul.f32.gmra.mxu0 %v1999_v46  ;;  %v792_v34 = vadd.f32 %v791_v1, %v3427_v4  ;;  %v1614_v1 = vld [vmem:[#allocation2 + $0x87] sm:$0xff] }
 0x17b   : > { %v3678_v62 = vadd.f32 %v1338_v27, %v1206_v6  ;;  %1486 = vmatmul.f32.gmra.mxu1 %v1998_v7  ;;  %1681 = vmatmul.f32.gmra.mxu2 %v1612_v18  ;;  %v1808_v18 = vld [vmem:[#allocation2 + $0x88] sm:$0xff] }
 0x17d   : > { %1875 = vmatmul.f32.gmra.mxu3 %v1806_v5 }
 0x17e   : > { %v953_v43 = vpop.f32.mrf.mxu2  ;;  %v1341_v60 = vpop.f32.mrf.mxu0 }
 0x17f   : > { %v1013_v31 = vadd.f32 %v953_v43, %v792_v34  ;;  %v2002_v34 = vld [vmem:[#allocation2 + $0x89] sm:$0xff] }
 0x180   : > { %v794_v56 = vpop.f32.mrf.mxu1  ;;  %v1147_v23 = vpop.f32.mrf.mxu3 }
 0x181   : > { %v1207_v38 = vadd.f32 %v1147_v23, %v1013_v31  ;;  %2069 = vmatmul.f32.gmra.mxu0 %v2000_v41  ;;  %v795_v7 = vadd.f32 %v794_v56, %v3442_v15  ;;  %v1615_v56 = vld [vmem:[#allocation2 + $0x8f] sm:$0xff] }
 0x183   : > { %v3681_v59 = vadd.f32 %v1341_v60, %v1207_v38  ;;  %1489 = vmatmul.f32.gmra.mxu1 %v1999_v46  ;;  %1684 = vmatmul.f32.gmra.mxu2 %v1613_v30  ;;  %v1809_v30 = vld [vmem:[#allocation2 + $0x90] sm:$0xff] }
 0x185   : > { %1878 = vmatmul.f32.gmra.mxu3 %v1807_v58 }
 0x186   : > { %v956_v2 = vpop.f32.mrf.mxu2  ;;  %v1344_v4 = vpop.f32.mrf.mxu0 }
 0x187   : > { %v1014_v49 = vadd.f32 %v956_v2, %v795_v7  ;;  %v2003_v7 = vld [vmem:[#allocation2 + $0x91] sm:$0xff] }
 0x188   : > { %v797_v27 = vpop.f32.mrf.mxu1  ;;  %v1150_v40 = vpop.f32.mrf.mxu3 }
 0x189   : > { %v1208_v17 = vadd.f32 %v1150_v40, %v1014_v49  ;;  %2072 = vmatmul.f32.gmra.mxu0 %v2001_v48  ;;  %v798_v46 = vadd.f32 %v797_v27, %v3457_v35  ;;  %v1616_v27 = vld [vmem:[#allocation2 + $0xa7] sm:$0xff] }
 0x18b   : > { %v3684_v6 = vadd.f32 %v1344_v4, %v1208_v17  ;;  %1492 = vmatmul.f32.gmra.mxu1 %v2000_v41  ;;  %1687 = vmatmul.f32.gmra.mxu2 %v1614_v1  ;;  %v1810_v1 = vld [vmem:[#allocation2 + $0xa8] sm:$0xff] }
 0x18d   : > { %1881 = vmatmul.f32.gmra.mxu3 %v1808_v18 }
 0x18e   : > { %v959_v5 = vpop.f32.mrf.mxu2  ;;  %v1347_v15 = vpop.f32.mrf.mxu0 }
 0x18f   : > { %v1015_v43 = vadd.f32 %v959_v5, %v798_v46  ;;  %v2004_v46 = vld [vmem:[#allocation2 + $0xa9] sm:$0xff] }
 0x190   : > { %v800_v60 = vpop.f32.mrf.mxu1  ;;  %v1153_v31 = vpop.f32.mrf.mxu3 }
 0x191   : > { %v1209_v23 = vadd.f32 %v1153_v31, %v1015_v43  ;;  %2075 = vmatmul.f32.gmra.mxu0 %v2002_v34  ;;  %v801_v41 = vadd.f32 %v800_v60, %v3472_v10  ;;  %v1617_v60 = vld [vmem:[#allocation2 + $0xaf] sm:$0xff] }
 0x193   : > { %v3687_v38 = vadd.f32 %v1347_v15, %v1209_v23  ;;  %1495 = vmatmul.f32.gmra.mxu1 %v2001_v48  ;;  %1690 = vmatmul.f32.gmra.mxu2 %v1615_v56  ;;  %v1811_v56 = vld [vmem:[#allocation2 + $0xb0] sm:$0xff] }
 0x195   : > { %1884 = vmatmul.f32.gmra.mxu3 %v1809_v30 }
 0x196   : > { %v962_v58 = vpop.f32.mrf.mxu2  ;;  %v1350_v35 = vpop.f32.mrf.mxu0 }
 0x197   : > { %v1016_v2 = vadd.f32 %v962_v58, %v801_v41  ;;  %v2005_v41 = vld [vmem:[#allocation2 + $0xb1] sm:$0xff] }
 0x198   : > { %v803_v4 = vpop.f32.mrf.mxu1  ;;  %v1156_v49 = vpop.f32.mrf.mxu3 }
 0x199   : > { %v1210_v40 = vadd.f32 %v1156_v49, %v1016_v2  ;;  %2078 = vmatmul.f32.gmra.mxu0 %v2003_v7  ;;  %v804_v48 = vadd.f32 %v803_v4, %v3487_v37  ;;  %v1618_v4 = vld [vmem:[#allocation2 + $0xc7] sm:$0xff] }
 0x19b   : > { %v3690_v17 = vadd.f32 %v1350_v35, %v1210_v40  ;;  %1498 = vmatmul.f32.gmra.mxu1 %v2002_v34  ;;  %1693 = vmatmul.f32.gmra.mxu2 %v1616_v27  ;;  %v1812_v27 = vld [vmem:[#allocation2 + $0xc8] sm:$0xff] }
 0x19d   : > { %1887 = vmatmul.f32.gmra.mxu3 %v1810_v1 }
 0x19e   : > { %v965_v18 = vpop.f32.mrf.mxu2  ;;  %v1353_v10 = vpop.f32.mrf.mxu0 }
 0x19f   : > { %v1017_v5 = vadd.f32 %v965_v18, %v804_v48  ;;  %v2006_v48 = vld [vmem:[#allocation2 + $0xc9] sm:$0xff] }
 0x1a0   : > { %v806_v15 = vpop.f32.mrf.mxu1  ;;  %v1159_v43 = vpop.f32.mrf.mxu3 }
 0x1a1   : > { %v1211_v31 = vadd.f32 %v1159_v43, %v1017_v5  ;;  %2081 = vmatmul.f32.gmra.mxu0 %v2004_v46  ;;  %v807_v34 = vadd.f32 %v806_v15, %v3501_v47  ;;  %v1619_v15 = vld [vmem:[#allocation2 + $0xcf] sm:$0xff] }
 0x1a3   : > { %v3693_v23 = vadd.f32 %v1353_v10, %v1211_v31  ;;  %1501 = vmatmul.f32.gmra.mxu1 %v2003_v7  ;;  %1696 = vmatmul.f32.gmra.mxu2 %v1617_v60  ;;  %v1813_v60 = vld [vmem:[#allocation2 + $0xd0] sm:$0xff] }
 0x1a5   : > { %1890 = vmatmul.f32.gmra.mxu3 %v1811_v56 }
 0x1a6   : > { %v968_v30 = vpop.f32.mrf.mxu2  ;;  %v1356_v37 = vpop.f32.mrf.mxu0 }
 0x1a7   : > { %v1018_v58 = vadd.f32 %v968_v30, %v807_v34  ;;  %v2007_v34 = vld [vmem:[#allocation2 + $0xd1] sm:$0xff] }
 0x1a8   : > { %v809_v35 = vpop.f32.mrf.mxu1  ;;  %v1162_v2 = vpop.f32.mrf.mxu3 }
 0x1a9   : > { %v1212_v49 = vadd.f32 %v1162_v2, %v1018_v58  ;;  %2084 = vmatmul.f32.gmra.mxu0 %v2005_v41  ;;  %v810_v7 = vadd.f32 %v809_v35, %v3406_v54  ;;  %v1620_v35 = vld [vmem:[#allocation2 + $0xe7] sm:$0xff] }
 0x1ab   : > { %v3696_v40 = vadd.f32 %v1356_v37, %v1212_v49  ;;  %1504 = vmatmul.f32.gmra.mxu1 %v2004_v46  ;;  %1699 = vmatmul.f32.gmra.mxu2 %v1618_v4  ;;  %v1814_v4 = vld [vmem:[#allocation2 + $0xe8] sm:$0xff] }
 0x1ad   : > { %1893 = vmatmul.f32.gmra.mxu3 %v1812_v27 }
 0x1ae   : > { %v971_v1 = vpop.f32.mrf.mxu2  ;;  %v1359_v47 = vpop.f32.mrf.mxu0 }
 0x1af   : > { %v1019_v18 = vadd.f32 %v971_v1, %v810_v7  ;;  %v2008_v7 = vld [vmem:[#allocation2 + $0xe9] sm:$0xff] }
 0x1b0   : > { %v812_v10 = vpop.f32.mrf.mxu1  ;;  %v1165_v5 = vpop.f32.mrf.mxu3 }
 0x1b1   : > { %v1213_v43 = vadd.f32 %v1165_v5, %v1019_v18  ;;  %2087 = vmatmul.f32.gmra.mxu0 %v2006_v48  ;;  %v813_v46 = vadd.f32 %v812_v10, %v3418_v63  ;;  %v1621_v10 = vld [vmem:[#allocation2 + $0xef] sm:$0xff] }
 0x1b3   : > { %v3699_v31 = vadd.f32 %v1359_v47, %v1213_v43  ;;  %1507 = vmatmul.f32.gmra.mxu1 %v2005_v41  ;;  %1702 = vmatmul.f32.gmra.mxu2 %v1619_v15  ;;  %v1815_v15 = vld [vmem:[#allocation2 + $0xf0] sm:$0xff] }
 0x1b5   : > { %1896 = vmatmul.f32.gmra.mxu3 %v1813_v60 }
 0x1b6   : > { %v974_v56 = vpop.f32.mrf.mxu2  ;;  %v1362_v54 = vpop.f32.mrf.mxu0 }
 0x1b7   : > { %v1020_v30 = vadd.f32 %v974_v56, %v813_v46  ;;  %v2009_v46 = vld [vmem:[#allocation2 + $0xf1] sm:$0xff] }
 0x1b8   : > { %v815_v37 = vpop.f32.mrf.mxu1  ;;  %v1168_v58 = vpop.f32.mrf.mxu3 }
 0x1b9   : > { %v1214_v2 = vadd.f32 %v1168_v58, %v1020_v30  ;;  %2090 = vmatmul.f32.gmra.mxu0 %v2007_v34  ;;  %v816_v41 = vadd.f32 %v815_v37, %v3436_v11  ;;  %v1622_v37 = vld [vmem:[#allocation2 + $0x107] sm:$0xff] }
 0x1bb   : > { %v3702_v49 = vadd.f32 %v1362_v54, %v1214_v2  ;;  %1510 = vmatmul.f32.gmra.mxu1 %v2006_v48  ;;  %1705 = vmatmul.f32.gmra.mxu2 %v1620_v35  ;;  %v1816_v35 = vld [vmem:[#allocation2 + $0x108] sm:$0xff] }
 0x1bd   : > { %1899 = vmatmul.f32.gmra.mxu3 %v1814_v4 }
 0x1be   : > { %v977_v27 = vpop.f32.mrf.mxu2  ;;  %v1365_v63 = vpop.f32.mrf.mxu0 }
 0x1bf   : > { %v1021_v1 = vadd.f32 %v977_v27, %v816_v41  ;;  %v2010_v41 = vld [vmem:[#allocation2 + $0x109] sm:$0xff] }
 0x1c0   : > { %v818_v47 = vpop.f32.mrf.mxu1  ;;  %v1171_v18 = vpop.f32.mrf.mxu3 }
 0x1c1   : > { %v1215_v5 = vadd.f32 %v1171_v18, %v1021_v1  ;;  %2093 = vmatmul.f32.gmra.mxu0 %v2008_v7  ;;  %v819_v48 = vadd.f32 %v818_v47, %v3448_v19  ;;  %v1623_v47 = vld [vmem:[#allocation2 + $0x10f] sm:$0xff] }
 0x1c3   : > { %v3705_v43 = vadd.f32 %v1365_v63, %v1215_v5  ;;  %1513 = vmatmul.f32.gmra.mxu1 %v2007_v34  ;;  %1708 = vmatmul.f32.gmra.mxu2 %v1621_v10  ;;  %v1817_v10 = vld [vmem:[#allocation2 + $0x110] sm:$0xff] }
 0x1c5   : > { %1902 = vmatmul.f32.gmra.mxu3 %v1815_v15 }
 0x1c6   : > { %v980_v60 = vpop.f32.mrf.mxu2  ;;  %v1368_v11 = vpop.f32.mrf.mxu0 }
 0x1c7   : > { %v1022_v56 = vadd.f32 %v980_v60, %v819_v48  ;;  %v2011_v48 = vld [vmem:[#allocation2 + $0x111] sm:$0xff] }
 0x1c8   : > { %v821_v54 = vpop.f32.mrf.mxu1  ;;  %v1174_v30 = vpop.f32.mrf.mxu3 }
 0x1c9   : > { %v1216_v58 = vadd.f32 %v1174_v30, %v1022_v56  ;;  %2096 = vmatmul.f32.gmra.mxu0 %v2009_v46  ;;  %v822_v34 = vadd.f32 %v821_v54, %v3466_v24  ;;  %v1624_v54 = vld [vmem:[#allocation2 + $0x127] sm:$0xff] }
 0x1cb   : > { %v3708_v2 = vadd.f32 %v1368_v11, %v1216_v58  ;;  %1516 = vmatmul.f32.gmra.mxu1 %v2008_v7  ;;  %1711 = vmatmul.f32.gmra.mxu2 %v1622_v37  ;;  %v1818_v37 = vld [vmem:[#allocation2 + $0x128] sm:$0xff] }
 0x1cd   : > { %1905 = vmatmul.f32.gmra.mxu3 %v1816_v35 }
 0x1ce   : > { %v983_v4 = vpop.f32.mrf.mxu2  ;;  %v1371_v19 = vpop.f32.mrf.mxu0 }
 0x1cf   : > { %v1023_v27 = vadd.f32 %v983_v4, %v822_v34  ;;  %v2012_v34 = vld [vmem:[#allocation2 + $0x129] sm:$0xff] }
 0x1d0   : > { %v824_v63 = vpop.f32.mrf.mxu1  ;;  %v1177_v1 = vpop.f32.mrf.mxu3 }
 0x1d1   : > { %v1217_v18 = vadd.f32 %v1177_v1, %v1023_v27  ;;  %2099 = vmatmul.f32.gmra.mxu0 %v2010_v41  ;;  %v825_v7 = vadd.f32 %v824_v63, %v3478_v29  ;;  %v1625_v63 = vld [vmem:[#allocation2 + $0x12f] sm:$0xff] }
 0x1d3   : > { %v3711_v5 = vadd.f32 %v1371_v19, %v1217_v18  ;;  %1519 = vmatmul.f32.gmra.mxu1 %v2009_v46  ;;  %1714 = vmatmul.f32.gmra.mxu2 %v1623_v47  ;;  %v1819_v47 = vld [vmem:[#allocation2 + $0x130] sm:$0xff] }
 0x1d5   : > { %1908 = vmatmul.f32.gmra.mxu3 %v1817_v10 }
 0x1d6   : > { %v986_v15 = vpop.f32.mrf.mxu2  ;;  %v1374_v24 = vpop.f32.mrf.mxu0 }
 0x1d7   : > { %v1024_v60 = vadd.f32 %v986_v15, %v825_v7  ;;  %v2013_v7 = vld [vmem:[#allocation2 + $0x131] sm:$0xff] }
 0x1d8   : > { %v827_v11 = vpop.f32.mrf.mxu1  ;;  %v1180_v56 = vpop.f32.mrf.mxu3 }
 0x1d9   : > { %v1218_v30 = vadd.f32 %v1180_v56, %v1024_v60  ;;  %2102 = vmatmul.f32.gmra.mxu0 %v2011_v48  ;;  %v828_v46 = vadd.f32 %v827_v11, %v3496_v42  ;;  %v1626_v11 = vld [vmem:[#allocation2 + $0x147] sm:$0xff] }
 0x1db   : > { %v3714_v58 = vadd.f32 %v1374_v24, %v1218_v30  ;;  %1522 = vmatmul.f32.gmra.mxu1 %v2010_v41  ;;  %1717 = vmatmul.f32.gmra.mxu2 %v1624_v54  ;;  %v1820_v54 = vld [vmem:[#allocation2 + $0x148] sm:$0xff] }
 0x1dd   : > { %1911 = vmatmul.f32.gmra.mxu3 %v1818_v37 }
 0x1de   : > { %v989_v35 = vpop.f32.mrf.mxu2  ;;  %v1377_v29 = vpop.f32.mrf.mxu0 }
 0x1df   : > { %v1025_v4 = vadd.f32 %v989_v35, %v828_v46  ;;  %v2014_v46 = vld [vmem:[#allocation2 + $0x149] sm:$0xff] }
 0x1e0   : > { %v830_v19 = vpop.f32.mrf.mxu1  ;;  %v1183_v27 = vpop.f32.mrf.mxu3 }
 0x1e1   : > { %v1219_v1 = vadd.f32 %v1183_v27, %v1025_v4  ;;  %2105 = vmatmul.f32.gmra.mxu0 %v2012_v34  ;;  %v831_v41 = vadd.f32 %v830_v19, %v3505_v57  ;;  %v1627_v19 = vld [vmem:[#allocation2 + $0x14f] sm:$0xff] }
 0x1e3   : > { %v3717_v18 = vadd.f32 %v1377_v29, %v1219_v1  ;;  %1525 = vmatmul.f32.gmra.mxu1 %v2011_v48  ;;  %1720 = vmatmul.f32.gmra.mxu2 %v1625_v63 }
 0x1e5   : > { %1914 = vmatmul.f32.gmra.mxu3 %v1819_v47 }
 0x1e6   : > { %v992_v10 = vpop.f32.mrf.mxu2  ;;  %v1380_v42 = vpop.f32.mrf.mxu0 }
 0x1e7   : > { %v1026_v15 = vadd.f32 %v992_v10, %v831_v41  ;;  %v2015_v41 = vld [vmem:[#allocation2 + $0x151] sm:$0xff] }
 0x1e8   : > { %v1186_v24 = vpop.f32.mrf.mxu3  ;;  %v1481_v60 = vpop.f32.mrf.mxu1 }
 0x1e9   : > { %v1220_v56 = vadd.f32 %v1186_v24, %v1026_v15  ;;  %2108 = vmatmul.f32.gmra.mxu0 %v2013_v7  ;;  %v1577_v48 = vadd.f32 %v1481_v60, %v3517_v25  ;;  %v1628_v24 = vld [vmem:[#allocation2 + $0x167] sm:$0xff] }
 0x1eb   : > { %v3720_v30 = vadd.f32 %v1380_v42, %v1220_v56  ;;  %1528 = vmatmul.f32.gmra.mxu1 %v2012_v34  ;;  %1723 = vmatmul.f32.gmra.mxu2 %v1626_v11  ;;  %v1821_v34 = vld [vmem:[#allocation2 + $0x150] sm:$0xff]  ;;  %v1822_v11 = vld [vmem:[#allocation2 + $0x168] sm:$0xff] }
 0x1ed   : > { %1917 = vmatmul.f32.gmra.mxu3 %v1820_v54 }
 0x1ee   : > { %v1676_v57 = vpop.f32.mrf.mxu2  ;;  %v2064_v37 = vpop.f32.mrf.mxu0 }
 0x1ef   : > { %v1772_v35 = vadd.f32 %v1676_v57, %v1577_v48  ;;  %v2016_v48 = vld [vmem:[#allocation2 + $0x169] sm:$0xff] }
 0x1f0   : > { %v1484_v29 = vpop.f32.mrf.mxu1  ;;  %v1870_v4 = vpop.f32.mrf.mxu3 }
 0x1f1   : > { %v1966_v27 = vadd.f32 %v1870_v4, %v1772_v35  ;;  %2111 = vmatmul.f32.gmra.mxu0 %v2014_v46  ;;  %v1578_v25 = vadd.f32 %v1484_v29, %v3523_v44  ;;  %v1629_v29 = vld [vmem:[#allocation2 + $0x16f] sm:$0xff] }
 0x1f3   : > { %v3730_v63 = vadd.f32 %v2064_v37, %v1966_v27  ;;  %1531 = vmatmul.f32.gmra.mxu1 %v2013_v7  ;;  %1726 = vmatmul.f32.gmra.mxu2 %v1627_v19  ;;  %v1823_v19 = vld [vmem:[#allocation2 + $0x170] sm:$0xff] }
 0x1f5   : > { %2192 = vst [vmem:[%s3728_s25] sm:$0xff] %v3730_v63  ;;  %1920 = vmatmul.f32.gmra.mxu3 %v1821_v34 }
 0x1f6   : > { %v1679_v1 = vpop.f32.mrf.mxu2  ;;  %v2067_v47 = vpop.f32.mrf.mxu0 }
 0x1f7   : > { %v1773_v10 = vadd.f32 %v1679_v1, %v1578_v25  ;;  %v2017_v25 = vld [vmem:[#allocation2 + $0x171] sm:$0xff] }
 0x1f8   : > { %v1487_v42 = vpop.f32.mrf.mxu1  ;;  %v1873_v15 = vpop.f32.mrf.mxu3 }
 0x1f9   : > { %v1967_v60 = vadd.f32 %v1873_v15, %v1773_v10  ;;  %2114 = vmatmul.f32.gmra.mxu0 %v2015_v41  ;;  %v1579_v44 = vadd.f32 %v1487_v42, %v3536_v20  ;;  %v1630_v42 = vld [vmem:[#allocation2 + $0x187] sm:$0xff] }
 0x1fb   : > { %v3735_v56 = vadd.f32 %v2067_v47, %v1967_v60  ;;  %1534 = vmatmul.f32.gmra.mxu1 %v2014_v46  ;;  %1729 = vmatmul.f32.gmra.mxu2 %v1628_v24  ;;  %v1824_v24 = vld [vmem:[#allocation2 + $0x188] sm:$0xff] }
 0x1fd   : > { %2193 = vst [vmem:[%s3728_s25 + $0x8] sm:$0xff] %v3735_v56  ;;  %1923 = vmatmul.f32.gmra.mxu3 %v1822_v11 }
 0x1fe   : > { %v1682_v7 = vpop.f32.mrf.mxu2  ;;  %v2070_v54 = vpop.f32.mrf.mxu0 }
 0x1ff   : > { %v1774_v57 = vadd.f32 %v1682_v7, %v1579_v44  ;;  %v2018_v44 = vld [vmem:[#allocation2 + $0x189] sm:$0xff] }
 0x200   : > { %v1490_v37 = vpop.f32.mrf.mxu1  ;;  %v1876_v35 = vpop.f32.mrf.mxu3 }
 0x201   : > { %v1968_v4 = vadd.f32 %v1876_v35, %v1774_v57  ;;  %2117 = vmatmul.f32.gmra.mxu0 %v2016_v48  ;;  %v1580_v20 = vadd.f32 %v1490_v37, %v3543_v50  ;;  %v1631_v37 = vld [vmem:[#allocation2 + $0x18f] sm:$0xff] }
 0x203   : > { %v3740_v27 = vadd.f32 %v2070_v54, %v1968_v4  ;;  %1537 = vmatmul.f32.gmra.mxu1 %v2015_v41  ;;  %1732 = vmatmul.f32.gmra.mxu2 %v1629_v29  ;;  %v1825_v29 = vld [vmem:[#allocation2 + $0x190] sm:$0xff] }
 0x205   : > { %2194 = vst [vmem:[%s3728_s25 + $0x10] sm:$0xff] %v3740_v27  ;;  %1926 = vmatmul.f32.gmra.mxu3 %v1823_v19 }
 0x206   : > { %v1685_v46 = vpop.f32.mrf.mxu2  ;;  %v2073_v34 = vpop.f32.mrf.mxu0 }
 0x207   : > { %v1775_v1 = vadd.f32 %v1685_v46, %v1580_v20  ;;  %v2019_v20 = vld [vmem:[#allocation2 + $0x191] sm:$0xff] }
 0x208   : > { %v1493_v47 = vpop.f32.mrf.mxu1  ;;  %v1879_v10 = vpop.f32.mrf.mxu3 }
 0x209   : > { %v1969_v15 = vadd.f32 %v1879_v10, %v1775_v1  ;;  %2120 = vmatmul.f32.gmra.mxu0 %v2017_v25  ;;  %v1581_v50 = vadd.f32 %v1493_v47, %v3556_v32  ;;  %v1632_v47 = vld [vmem:[#allocation2 + $0x1a7] sm:$0xff] }
 0x20b   : > { %v3745_v60 = vadd.f32 %v2073_v34, %v1969_v15  ;;  %1540 = vmatmul.f32.gmra.mxu1 %v2016_v48  ;;  %1735 = vmatmul.f32.gmra.mxu2 %v1630_v42  ;;  %v1826_v42 = vld [vmem:[#allocation2 + $0x1a8] sm:$0xff] }
 0x20d   : > { %2195 = vst [vmem:[%s3728_s25 + $0x18] sm:$0xff] %v3745_v60  ;;  %1929 = vmatmul.f32.gmra.mxu3 %v1824_v24 }
 0x20e   : > { %v1688_v41 = vpop.f32.mrf.mxu2  ;;  %v2076_v11 = vpop.f32.mrf.mxu0 }
 0x20f   : > { %v1776_v7 = vadd.f32 %v1688_v41, %v1581_v50  ;;  %v2020_v50 = vld [vmem:[#allocation2 + $0x1a9] sm:$0xff] }
 0x210   : > { %v1496_v54 = vpop.f32.mrf.mxu1  ;;  %v1882_v57 = vpop.f32.mrf.mxu3 }
 0x211   : > { %v1970_v35 = vadd.f32 %v1882_v57, %v1776_v7  ;;  %2123 = vmatmul.f32.gmra.mxu0 %v2018_v44  ;;  %v1582_v32 = vadd.f32 %v1496_v54, %v3563_v8  ;;  %v1633_v54 = vld [vmem:[#allocation2 + $0x1af] sm:$0xff] }
 0x213   : > { %v3750_v4 = vadd.f32 %v2076_v11, %v1970_v35  ;;  %1543 = vmatmul.f32.gmra.mxu1 %v2017_v25  ;;  %1738 = vmatmul.f32.gmra.mxu2 %v1631_v37 }
 0x215   : > { %2196 = vst [vmem:[%s3728_s25 + $0x20] sm:$0xff] %v3750_v4  ;;  %1932 = vmatmul.f32.gmra.mxu3 %v1825_v29  ;;  %v2021_v29 = vld [vmem:[#allocation2 + $0x1b1] sm:$0xff] }
 0x216   : > { %v1691_v48 = vpop.f32.mrf.mxu2  ;;  %v2079_v19 = vpop.f32.mrf.mxu0 }
 0x217   : > { %v1777_v46 = vadd.f32 %v1691_v48, %v1582_v32 }
 0x218   : > { %v1499_v34 = vpop.f32.mrf.mxu1  ;;  %v1885_v1 = vpop.f32.mrf.mxu3 }
 0x219   : > { %v1971_v10 = vadd.f32 %v1885_v1, %v1777_v46  ;;  %2126 = vmatmul.f32.gmra.mxu0 %v2019_v20  ;;  %v1583_v8 = vadd.f32 %v1499_v34, %v3575_v39  ;;  %v1634_v46 = vld [vmem:[#allocation2 + $0x1c7] sm:$0xff] }
 0x21b   : > { %v3755_v15 = vadd.f32 %v2079_v19, %v1971_v10  ;;  %1546 = vmatmul.f32.gmra.mxu1 %v2018_v44  ;;  %1741 = vmatmul.f32.gmra.mxu2 %v1632_v47  ;;  %v2022_v47 = vld [vmem:[#allocation2 + $0x1c9] sm:$0xff] }
 0x21d   : > { %2197 = vst [vmem:[%s3728_s25 + $0x28] sm:$0xff] %v3755_v15  ;;  %1935 = vmatmul.f32.gmra.mxu3 %v1826_v42 }
 0x21e   : > { %v1694_v25 = vpop.f32.mrf.mxu2  ;;  %v2082_v24 = vpop.f32.mrf.mxu0 }
 0x21f   : > { %v1778_v41 = vadd.f32 %v1694_v25, %v1583_v8  ;;  %v1635_v25 = vld [vmem:[#allocation2 + $0x1cf] sm:$0xff] }
 0x220   : > { %v1502_v11 = vpop.f32.mrf.mxu1  ;;  %v1888_v7 = vpop.f32.mrf.mxu3 }
 0x221   : > { %v1972_v57 = vadd.f32 %v1888_v7, %v1778_v41  ;;  %2129 = vmatmul.f32.gmra.mxu0 %v2020_v50  ;;  %v1584_v44 = vadd.f32 %v1502_v11, %v3581_v0 }
 0x223   : > { %v3760_v37 = vadd.f32 %v2082_v24, %v1972_v57  ;;  %1549 = vmatmul.f32.gmra.mxu1 %v2019_v20  ;;  %1744 = vmatmul.f32.gmra.mxu2 %v1633_v54  ;;  %v1636_v57 = vld [vmem:[#allocation2 + $0x1e7] sm:$0xff] }
 0x225   : > { %2198 = vst [vmem:[%s3728_s25 + $0x30] sm:$0xff] %v3760_v37  ;;  %1938 = vmatmul.f32.gmra.mxu3 %v3610_v61 }
 0x226   : > { %v1697_v39 = vpop.f32.mrf.mxu2  ;;  %v2085_v35 = vpop.f32.mrf.mxu0 }
 0x227   : > { %v1779_v32 = vadd.f32 %v1697_v39, %v1584_v44 }
 0x228   : > { %v1505_v48 = vpop.f32.mrf.mxu1  ;;  %v1891_v19 = vpop.f32.mrf.mxu3 }
 0x229   : > { %v1973_v34 = vadd.f32 %v1891_v19, %v1779_v32  ;;  %2132 = vmatmul.f32.gmra.mxu0 %v2021_v29  ;;  %v1585_v0 = vadd.f32 %v1505_v48, %v3600_v16  ;;  %v1442_v19 = vld [vmem:[#allocation2 + $0x1d1] sm:$0xff] }
 0x22b   : > { %v3766_v1 = vadd.f32 %v2085_v35, %v1973_v34  ;;  %1552 = vmatmul.f32.gmra.mxu1 %v2020_v50  ;;  %1747 = vmatmul.f32.gmra.mxu2 %v1634_v46  ;;  %v1637_v46 = vld [vmem:[#allocation2 + $0x1ef] sm:$0xff] }
 0x22d   : > { %2199 = vst [vmem:[%s3728_s25 + $0x38] sm:$0xff] %v3766_v1  ;;  %1941 = vmatmul.f32.gmra.mxu3 %v3625_v21 }
 0x22e   : > { %v1700_v61 = vpop.f32.mrf.mxu2  ;;  %v2088_v20 = vpop.f32.mrf.mxu0 }
 0x22f   : > { %v1780_v10 = vadd.f32 %v1700_v61, %v1585_v0 }
 0x230   : > { %v1508_v42 = vpop.f32.mrf.mxu1  ;;  %v1894_v8 = vpop.f32.mrf.mxu3 }
 0x231   : > { %v1974_v24 = vadd.f32 %v1894_v8, %v1780_v10  ;;  %2135 = vmatmul.f32.gmra.mxu0 %v2022_v47  ;;  %v1586_v16 = vadd.f32 %v1508_v42, %v3613_v13  ;;  %v1443_v10 = vld [vmem:[#allocation2 + $0x1e9] sm:$0xff] }
 0x232   : > { %v1638_v42 = vld [vmem:[#allocation2 + $0x207] sm:$0xff] }
 0x233   : > { %v3772_v41 = vadd.f32 %v2088_v20, %v1974_v24  ;;  %1555 = vmatmul.f32.gmra.mxu1 %v2021_v29  ;;  %1750 = vmatmul.f32.gmra.mxu2 %v1635_v25 }
 0x235   : > { %2200 = vst [vmem:[%s3728_s25 + $0x40] sm:$0xff] %v3772_v41  ;;  %1944 = vmatmul.f32.gmra.mxu3 %v3637_v45 }
 0x236   : > { %v1703_v21 = vpop.f32.mrf.mxu2  ;;  %v2091_v50 = vpop.f32.mrf.mxu0 }
 0x237   : > { %v1781_v11 = vadd.f32 %v1703_v21, %v1586_v16  ;;  %v2026_v16 = vld [vmem:[#allocation2 + $0x209] sm:$0xff] }
 0x238   : > { %v1511_v7 = vpop.f32.mrf.mxu1  ;;  %v1897_v54 = vpop.f32.mrf.mxu3 }
 0x239   : > { %v1975_v44 = vadd.f32 %v1897_v54, %v1781_v11  ;;  %2138 = vmatmul.f32.gmra.mxu0 %v3645_v26  ;;  %v1587_v35 = vadd.f32 %v1511_v7, %v3631_v33  ;;  %v1444_v7 = vld [vmem:[#allocation2 + $0x1f1] sm:$0xff] }
 0x23b   : > { %v3779_v39 = vadd.f32 %v2091_v50, %v1975_v44  ;;  %1558 = vmatmul.f32.gmra.mxu1 %v2022_v47  ;;  %1753 = vmatmul.f32.gmra.mxu2 %v1636_v57  ;;  %v2664_v57 = vld [vmem:[#allocation2 + $0x210] sm:$0xff] }
 0x23d   : > { %2201 = vst [vmem:[%s3728_s25 + $0x48] sm:$0xff] %v3779_v39  ;;  %1947 = vmatmul.f32.gmra.mxu3 %v3643_v12 }
 0x23e   : > { %v1706_v13 = vpop.f32.mrf.mxu2  ;;  %v2094_v45 = vpop.f32.mrf.mxu0 }
 0x23f   : > { %v1782_v29 = vadd.f32 %v1706_v13, %v1587_v35  ;;  %v2027_v13 = vld [vmem:[#allocation2 + $0x211] sm:$0xff] }
 0x240   : > { %v1514_v32 = vpop.f32.mrf.mxu1  ;;  %v1900_v48 = vpop.f32.mrf.mxu3 }
 0x241   : > { %v1976_v34 = vadd.f32 %v1900_v48, %v1782_v29  ;;  %2141 = vmatmul.f32.gmra.mxu0 %v3654_v51  ;;  %v1588_v33 = vadd.f32 %v1514_v32, %v3640_v3  ;;  %v1832_v51 = vld [vmem:[#allocation2 + $0x208] sm:$0xff] }
 0x242   : > { %v1640_v48 = vld [vmem:[#allocation2 + $0x227] sm:$0xff] }
 0x243   : > { %v3786_v26 = vadd.f32 %v2094_v45, %v1976_v34  ;;  %1561 = vmatmul.f32.gmra.mxu1 %v1442_v19  ;;  %1756 = vmatmul.f32.gmra.mxu2 %v1637_v46 }
 0x245   : > { %2202 = vst [vmem:[%s3728_s25 + $0x50] sm:$0xff] %v3786_v26  ;;  %1950 = vmatmul.f32.gmra.mxu3 %v3652_v22 }
 0x246   : > { %v1709_v12 = vpop.f32.mrf.mxu2  ;;  %v2097_v0 = vpop.f32.mrf.mxu0 }
 0x247   : > { %v1783_v61 = vadd.f32 %v1709_v12, %v1588_v33  ;;  %v2028_v12 = vld [vmem:[#allocation2 + $0x229] sm:$0xff] }
 0x248   : > { %v1517_v20 = vpop.f32.mrf.mxu1  ;;  %v1903_v47 = vpop.f32.mrf.mxu3 }
 0x249   : > { %v1977_v8 = vadd.f32 %v1903_v47, %v1783_v61  ;;  %2144 = vmatmul.f32.gmra.mxu0 %v3661_v9  ;;  %v1589_v3 = vadd.f32 %v1517_v20, %v3648_v52  ;;  %v1641_v47 = vld [vmem:[#allocation2 + $0x22f] sm:$0xff] }
 0x24b   : > { %v3793_v25 = vadd.f32 %v2097_v0, %v1977_v8  ;;  %1564 = vmatmul.f32.gmra.mxu1 %v1443_v10  ;;  %1759 = vmatmul.f32.gmra.mxu2 %v1638_v42 }
 0x24d   : > { %2203 = vst [vmem:[%s3728_s25 + $0x58] sm:$0xff] %v3793_v25  ;;  %1953 = vmatmul.f32.gmra.mxu3 %v1832_v51 }
 0x24e   : > { %v1712_v22 = vpop.f32.mrf.mxu2  ;;  %v2100_v24 = vpop.f32.mrf.mxu0 }
 0x24f   : > { %v1784_v21 = vadd.f32 %v1712_v22, %v1589_v3  ;;  %v2029_v3 = vld [vmem:[#allocation2 + $0x231] sm:$0xff] }
 0x250   : > { %v1520_v50 = vpop.f32.mrf.mxu1  ;;  %v1906_v11 = vpop.f32.mrf.mxu3 }
 0x251   : > { %v1978_v54 = vadd.f32 %v1906_v11, %v1784_v21  ;;  %2147 = vmatmul.f32.gmra.mxu0 %v2026_v16  ;;  %v1590_v52 = vadd.f32 %v1520_v50, %v3657_v36 }
 0x253   : > { %v3798_v9 = vadd.f32 %v2100_v24, %v1978_v54  ;;  %1567 = vmatmul.f32.gmra.mxu1 %v1444_v7  ;;  %1762 = vmatmul.f32.gmra.mxu2 %v3664_v53  ;;  %v2665_v53 = vld [vmem:[#allocation2 + $0x8] sm:$0xff] }
 0x255   : > { %2204 = vst [vmem:[%s3728_s25 + $0x60] sm:$0xff] %v3798_v9  ;;  %1956 = vmatmul.f32.gmra.mxu3 %v2664_v57 }
 0x256   : > { %v1715_v44 = vpop.f32.mrf.mxu2  ;;  %v2103_v35 = vpop.f32.mrf.mxu0 }
 0x257   : > { %v1785_v45 = vadd.f32 %v1715_v44, %v1590_v52 }
 0x258   : > { %v1523_v29 = vpop.f32.mrf.mxu1  ;;  %v1909_v32 = vpop.f32.mrf.mxu3 }
 0x259   : > { %v1979_v19 = vadd.f32 %v1909_v32, %v1785_v45  ;;  %2150 = vmatmul.f32.gmra.mxu0 %v2027_v13  ;;  %v1591_v36 = vadd.f32 %v1523_v29, %v3666_v14 }
 0x25b   : > { %v3804_v46 = vadd.f32 %v2103_v35, %v1979_v19  ;;  %1570 = vmatmul.f32.gmra.mxu1 %v2026_v16  ;;  %1765 = vmatmul.f32.gmra.mxu2 %v1640_v48 }
 0x25d   : > { %2205 = vst [vmem:[%s3728_s25 + $0x68] sm:$0xff] %v3804_v46  ;;  %1959 = vmatmul.f32.gmra.mxu3 %v2665_v53 }
 0x25e   : > { %v1718_v34 = vpop.f32.mrf.mxu2  ;;  %v2106_v33 = vpop.f32.mrf.mxu0 }
 0x25f   : > { %v1786_v0 = vadd.f32 %v1718_v34, %v1591_v36 }
 0x260   : > { %v1526_v61 = vpop.f32.mrf.mxu1  ;;  %v1912_v20 = vpop.f32.mrf.mxu3 }
 0x261   : > { %v1980_v10 = vadd.f32 %v1912_v20, %v1786_v0  ;;  %2153 = vmatmul.f32.gmra.mxu0 %v2028_v12  ;;  %v1592_v14 = vadd.f32 %v1526_v61, %v3672_v55 }
 0x263   : > { %v3809_v42 = vadd.f32 %v2106_v33, %v1980_v10  ;;  %1573 = vmatmul.f32.gmra.mxu1 %v2027_v13  ;;  %1768 = vmatmul.f32.gmra.mxu2 %v1641_v47 }
 0x265   : > { %2206 = vst [vmem:[%s3728_s25 + $0x70] sm:$0xff] %v3809_v42  ;;  %1962 = vmatmul.f32.gmra.mxu3 %v2665_v53 }
 0x266   : > { %v1721_v8 = vpop.f32.mrf.mxu2  ;;  %v2109_v51 = vpop.f32.mrf.mxu0 }
 0x267   : > { %v1787_v22 = vadd.f32 %v1721_v8, %v1592_v14 }
 0x268   : > { %v1529_v24 = vpop.f32.mrf.mxu1  ;;  %v1915_v16 = vpop.f32.mrf.mxu3 }
 0x269   : > { %v1981_v21 = vadd.f32 %v1915_v16, %v1787_v22  ;;  %2156 = vmatmul.f32.gmra.mxu0 %v2029_v3  ;;  %v1593_v11 = vadd.f32 %v1529_v24, %v3675_v28 }
 0x26b   : > { %v3814_v50 = vadd.f32 %v2109_v51, %v1981_v21 }
 0x26d   : > { %2207 = vst [vmem:[%s3728_s25 + $0x78] sm:$0xff] %v3814_v50 }
 0x26e   : > { %v1724_v7 = vpop.f32.mrf.mxu2  ;;  %v2112_v55 = vpop.f32.mrf.mxu0 }
 0x26f   : > { %v1788_v54 = vadd.f32 %v1724_v7, %v1593_v11 }
 0x270   : > { %v1532_v52 = vpop.f32.mrf.mxu1  ;;  %v1918_v57 = vpop.f32.mrf.mxu3 }
 0x271   : > { %v1982_v44 = vadd.f32 %v1918_v57, %v1788_v54  ;;  %v1594_v13 = vadd.f32 %v1532_v52, %v3678_v62 }
 0x273   : > { %v3819_v35 = vadd.f32 %v2112_v55, %v1982_v44 }
 0x275   : > { %2208 = vst [vmem:[%s3728_s25 + $0x80] sm:$0xff] %v3819_v35 }
 0x276   : > { %v1727_v45 = vpop.f32.mrf.mxu2  ;;  %v2115_v29 = vpop.f32.mrf.mxu0 }
 0x277   : > { %v1789_v32 = vadd.f32 %v1727_v45, %v1594_v13 }
 0x278   : > { %v1535_v28 = vpop.f32.mrf.mxu1  ;;  %v1921_v48 = vpop.f32.mrf.mxu3 }
 0x279   : > { %v1983_v19 = vadd.f32 %v1921_v48, %v1789_v32  ;;  %v1595_v53 = vadd.f32 %v1535_v28, %v3681_v59 }
 0x27b   : > { %v3824_v36 = vadd.f32 %v2115_v29, %v1983_v19  ;;  %v2224_v29 = vadd.f32 %v3735_v56, %v3730_v63 }
 0x27d   : > { %2209 = vst [vmem:[%s3728_s25 + $0x88] sm:$0xff] %v3824_v36  ;;  %v2225_v28 = vadd.f32 %v2224_v29, %v3740_v27 }
 0x27e   : > { %v1730_v34 = vpop.f32.mrf.mxu2  ;;  %v2118_v33 = vpop.f32.mrf.mxu0 }
 0x27f   : > { %v1790_v12 = vadd.f32 %v1730_v34, %v1595_v53  ;;  %v2226_v19 = vadd.f32 %v2225_v28, %v3745_v60 }
 0x280   : > { %v1538_v62 = vpop.f32.mrf.mxu1  ;;  %v1924_v0 = vpop.f32.mrf.mxu3 }
 0x281   : > { %v1984_v61 = vadd.f32 %v1924_v0, %v1790_v12  ;;  %v1596_v47 = vadd.f32 %v1538_v62, %v3684_v6 }
 0x283   : > { %v3829_v20 = vadd.f32 %v2118_v33, %v1984_v61  ;;  %v2227_v33 = vadd.f32 %v2226_v19, %v3750_v4 }
 0x285   : > { %2210 = vst [vmem:[%s3728_s25 + $0x90] sm:$0xff] %v3829_v20  ;;  %v2228_v61 = vadd.f32 %v2227_v33, %v3755_v15 }
 0x286   : > { %v1733_v10 = vpop.f32.mrf.mxu2  ;;  %v2121_v14 = vpop.f32.mrf.mxu0 }
 0x287   : > { %v1791_v8 = vadd.f32 %v1733_v10, %v1596_v47  ;;  %v2229_v10 = vadd.f32 %v2228_v61, %v3760_v37 }
 0x288   : > { %v1541_v59 = vpop.f32.mrf.mxu1  ;;  %v1927_v51 = vpop.f32.mrf.mxu3 }
 0x289   : > { %v1985_v3 = vadd.f32 %v1927_v51, %v1791_v8  ;;  %v1597_v24 = vadd.f32 %v1541_v59, %v3687_v38  ;;  %v2230_v8 = vadd.f32 %v2229_v10, %v3766_v1 }
 0x28b   : > { %v3834_v22 = vadd.f32 %v2121_v14, %v1985_v3  ;;  %v2231_v3 = vadd.f32 %v2230_v8, %v3772_v41 }
 0x28d   : > { %2211 = vst [vmem:[%s3728_s25 + $0x98] sm:$0xff] %v3834_v22 }
 0x28e   : > { %v1736_v16 = vpop.f32.mrf.mxu2  ;;  %v2124_v21 = vpop.f32.mrf.mxu0 }
 0x28f   : > { %v1792_v11 = vadd.f32 %v1736_v16, %v1597_v24 }
 0x290   : > { %v1544_v7 = vpop.f32.mrf.mxu1  ;;  %v1930_v6 = vpop.f32.mrf.mxu3 }
 0x291   : > { %v1986_v55 = vadd.f32 %v1930_v6, %v1792_v11  ;;  %v1598_v52 = vadd.f32 %v1544_v7, %v3690_v17  ;;  %v2232_v11 = vadd.f32 %v2231_v3, %v3779_v39 }
 0x293   : > { %v3839_v54 = vadd.f32 %v2124_v21, %v1986_v55  ;;  %v2233_v6 = vadd.f32 %v2232_v11, %v3786_v26 }
 0x295   : > { %2212 = vst [vmem:[%s3728_s25 + $0xa0] sm:$0xff] %v3839_v54 }
 0x296   : > { %v1739_v57 = vpop.f32.mrf.mxu2  ;;  %v2127_v44 = vpop.f32.mrf.mxu0 }
 0x297   : > { %v1793_v13 = vadd.f32 %v1739_v57, %v1598_v52  ;;  %v2234_v52 = vadd.f32 %v2233_v6, %v3793_v25 }
 0x298   : > { %v1547_v45 = vpop.f32.mrf.mxu1  ;;  %v1933_v38 = vpop.f32.mrf.mxu3 }
 0x299   : > { %v1987_v32 = vadd.f32 %v1933_v38, %v1793_v13  ;;  %v1599_v17 = vadd.f32 %v1547_v45, %v3693_v23  ;;  %v2235_v13 = vadd.f32 %v2234_v52, %v3798_v9 }
 0x29b   : > { %v3847_v48 = vadd.f32 %v2127_v44, %v1987_v32  ;;  %v2236_v32 = vadd.f32 %v2235_v13, %v3804_v46 }
 0x29d   : > { %2213 = vst [vmem:[%s3728_s25 + $0xa8] sm:$0xff] %v3847_v48  ;;  %v2237_v19 = vadd.f32 %v2236_v32, %v3809_v42 }
 0x29e   : > { %v1742_v53 = vpop.f32.mrf.mxu2  ;;  %v2130_v34 = vpop.f32.mrf.mxu0 }
 0x29f   : > { %v1794_v12 = vadd.f32 %v1742_v53, %v1599_v17  ;;  %v2238_v53 = vadd.f32 %v2237_v19, %v3814_v50 }
 0x2a0   : > { %v1550_v62 = vpop.f32.mrf.mxu1  ;;  %v1936_v0 = vpop.f32.mrf.mxu3 }
 0x2a1   : > { %v1988_v47 = vadd.f32 %v1936_v0, %v1794_v12  ;;  %v1600_v23 = vadd.f32 %v1550_v62, %v3696_v40  ;;  %v2239_v12 = vadd.f32 %v2238_v53, %v3819_v35 }
 0x2a3   : > { %v3856_v14 = vadd.f32 %v2130_v34, %v1988_v47  ;;  %v2240_v47 = vadd.f32 %v2239_v12, %v3824_v36 }
 0x2a5   : > { %2214 = vst [vmem:[%s3728_s25 + $0xb0] sm:$0xff] %v3856_v14  ;;  %v2241_v8 = vadd.f32 %v2240_v47, %v3829_v20 }
 0x2a6   : > { %v1745_v59 = vpop.f32.mrf.mxu2  ;;  %v2133_v51 = vpop.f32.mrf.mxu0 }
 0x2a7   : > { %v1795_v24 = vadd.f32 %v1745_v59, %v1600_v23  ;;  %v2242_v59 = vadd.f32 %v2241_v8, %v3834_v22 }
 0x2a8   : > { %v1553_v16 = vpop.f32.mrf.mxu1  ;;  %v1939_v21 = vpop.f32.mrf.mxu3 }
 0x2a9   : > { %v1989_v7 = vadd.f32 %v1939_v21, %v1795_v24  ;;  %v1601_v40 = vadd.f32 %v1553_v16, %v3699_v31  ;;  %v2243_v24 = vadd.f32 %v2242_v59, %v3839_v54 }
 0x2ab   : > { %v3865_v55 = vadd.f32 %v2133_v51, %v1989_v7  ;;  %v2244_v7 = vadd.f32 %v2243_v24, %v3847_v48 }
 0x2ad   : > { %2215 = vst [vmem:[%s3728_s25 + $0xb8] sm:$0xff] %v3865_v55  ;;  %v2245_v52 = vadd.f32 %v2244_v7, %v3856_v14 }
 0x2ae   : > { %v1748_v57 = vpop.f32.mrf.mxu2  ;;  %v2136_v44 = vpop.f32.mrf.mxu0 }
 0x2af   : > { %v1796_v45 = vadd.f32 %v1748_v57, %v1601_v40  ;;  %v2246_v57 = vadd.f32 %v2245_v52, %v3865_v55 }
 0x2b0   : > { %v1556_v38 = vpop.f32.mrf.mxu1  ;;  %v1942_v29 = vpop.f32.mrf.mxu3 }
 0x2b1   : > { %v1990_v28 = vadd.f32 %v1942_v29, %v1796_v45  ;;  %v1602_v31 = vadd.f32 %v1556_v38, %v3702_v49 }
 0x2b3   : > { %v3874_v17 = vadd.f32 %v2136_v44, %v1990_v28 }
 0x2b5   : > { %2216 = vst [vmem:[%s3728_s25 + $0xc0] sm:$0xff] %v3874_v17  ;;  %v2247_v45 = vadd.f32 %v2246_v57, %v3874_v17 }
 0x2b6   : > { %v1751_v34 = vpop.f32.mrf.mxu2  ;;  %v2139_v33 = vpop.f32.mrf.mxu0 }
 0x2b7   : > { %v1797_v62 = vadd.f32 %v1751_v34, %v1602_v31 }
 0x2b8   : > { %v1559_v0 = vpop.f32.mrf.mxu1  ;;  %v1945_v61 = vpop.f32.mrf.mxu3 }
 0x2b9   : > { %v1991_v10 = vadd.f32 %v1945_v61, %v1797_v62  ;;  %v1603_v49 = vadd.f32 %v1559_v0, %v3705_v43 }
 0x2bb   : > { %v3883_v23 = vadd.f32 %v2139_v33, %v1991_v10 }
 0x2bd   : > { %2217 = vst [vmem:[%s3728_s25 + $0xc8] sm:$0xff] %v3883_v23  ;;  %v2248_v28 = vadd.f32 %v2247_v45, %v3883_v23 }
 0x2be   : > { %v1754_v51 = vpop.f32.mrf.mxu2  ;;  %v2142_v3 = vpop.f32.mrf.mxu0 }
 0x2bf   : > { %v1798_v16 = vadd.f32 %v1754_v51, %v1603_v49 }
 0x2c0   : > { %v1562_v21 = vpop.f32.mrf.mxu1  ;;  %v1948_v11 = vpop.f32.mrf.mxu3 }
 0x2c1   : > { %v1992_v6 = vadd.f32 %v1948_v11, %v1798_v16  ;;  %v1604_v43 = vadd.f32 %v1562_v21, %v3708_v2 }
 0x2c3   : > { %v3892_v40 = vadd.f32 %v2142_v3, %v1992_v6 }
 0x2c5   : > { %2218 = vst [vmem:[%s3728_s25 + $0xd0] sm:$0xff] %v3892_v40  ;;  %v2249_v53 = vadd.f32 %v2248_v28, %v3892_v40 }
 0x2c6   : > { %v1757_v44 = vpop.f32.mrf.mxu2  ;;  %v2145_v13 = vpop.f32.mrf.mxu0 }
 0x2c7   : > { %v1799_v38 = vadd.f32 %v1757_v44, %v1604_v43  ;;  %v2675_v43 = vmov 256.0  }
 0x2c8   : > { %v1565_v29 = vpop.f32.mrf.mxu1  ;;  %v1951_v32 = vpop.f32.mrf.mxu3  ;;  %2660 = vrcp.f32 %v2675_v43 }
 0x2c9   : > { %v1993_v19 = vadd.f32 %v1951_v32, %v1799_v38  ;;  %v1605_v34 = vadd.f32 %v1565_v29, %v3711_v5 }
 0x2cb   : > { %v2187_v31 = vadd.f32 %v2145_v13, %v1993_v19 }
 0x2cd   : > { %2219 = vst [vmem:[%s3728_s25 + $0xd8] sm:$0xff] %v2187_v31  ;;  %v2250_v2 = vadd.f32 %v2249_v53, %v2187_v31 }
 0x2ce   : > { %v1760_v33 = vpop.f32.mrf.mxu2  ;;  %v2148_v12 = vpop.f32.mrf.mxu0 }
 0x2cf   : > { %v1800_v62 = vadd.f32 %v1760_v33, %v1605_v34  ;;  %v2661_v38 = vpop.eup %2660 }
 0x2d0   : > { %v1568_v0 = vpop.f32.mrf.mxu1  ;;  %v1954_v61 = vpop.f32.mrf.mxu3  ;;  %v2262_v34 = vmul.f32 256.0, %v2661_v38  ;;  %vm2266_vm0 = vweird.f32 %v2661_v38 }
 0x2d1   : > { %v1994_v47 = vadd.f32 %v1954_v61, %v1800_v62  ;;  %v1606_v8 = vadd.f32 %v1568_v0, %v3714_v58 }
 0x2d3   : > { %v2188_v10 = vadd.f32 %v2148_v12, %v1994_v47  ;;  %v2263_v12 = vsub.f32 1.0, %v2262_v34 }
 0x2d5   : > { %2220 = vst [vmem:[%s3728_s25 + $0xe0] sm:$0xff] %v2188_v10  ;;  %v2251_v59 = vadd.f32 %v2250_v2, %v2188_v10  ;;  %v2264_v61 = vmul.f32 %v2661_v38, %v2263_v12 }
 0x2d6   : > { %v1763_v49 = vpop.f32.mrf.mxu2  ;;  %v2151_v51 = vpop.f32.mrf.mxu0 }
 0x2d7   : > { %v1801_v3 = vadd.f32 %v1763_v49, %v1606_v8 }
 0x2d8   : > { %v1571_v24 = vpop.f32.mrf.mxu1  ;;  %v1957_v16 = vpop.f32.mrf.mxu3 }
 0x2d9   : > { %v1995_v5 = vadd.f32 %v1957_v16, %v1801_v3  ;;  %v1607_v11 = vadd.f32 %v1571_v24, %v3717_v18 }
 0x2db   : > { %v2189_v21 = vadd.f32 %v2151_v51, %v1995_v5 }
 0x2dd   : > { %2221 = vst [vmem:[%s3728_s25 + $0xe8] sm:$0xff] %v2189_v21  ;;  %v2252_v7 = vadd.f32 %v2251_v59, %v2189_v21  ;;  %v2265_v59 = vadd.f32 %v2661_v38, %v2264_v61 }
 0x2de   : > { %v1766_v6 = vpop.f32.mrf.mxu2  ;;  %v2154_v52 = vpop.f32.mrf.mxu0 }
 0x2df   : > { %v1802_v57 = vadd.f32 %v1766_v6, %v1607_v11  ;;  %v2267_v51 = vsel %vm2266_vm0, %v2661_v38, %v2265_v59 }
 0x2e0   : > { %v1960_v58 = vpop.f32.mrf.mxu3  ;;  %v1574_v13 = vpop.f32.mrf.mxu1 }
 0x2e1   : > { %v1996_v44 = vadd.f32 %v1960_v58, %v1802_v57  ;;  %v1608_v29 = vadd.f32 %v1574_v13, %v3720_v30 }
 0x2e3   : > { %v2190_v45 = vadd.f32 %v2154_v52, %v1996_v44 }
 0x2e5   : > { %2222 = vst [vmem:[%s3728_s25 + $0xf0] sm:$0xff] %v2190_v45  ;;  %v2253_v32 = vadd.f32 %v2252_v7, %v2190_v45 }
 0x2e6   : > { %v1769_v28 = vpop.f32.mrf.mxu2  ;;  %v2157_v53 = vpop.f32.mrf.mxu0 }
 0x2e7   : > { %v1803_v19 = vadd.f32 %v1769_v28, %v1608_v29 }
 0x2e8   : > { %v1963_v18 = vpop.f32.mrf.mxu3 }
 0x2e9   : > { %v1997_v2 = vadd.f32 %v1963_v18, %v1803_v19 }
 0x2eb   : > { %v2191_v33 = vadd.f32 %v2157_v53, %v1997_v2 }
 0x2ed   : > { %2223 = vst [vmem:[%s3728_s25 + $0xf8] sm:$0xff] %v2191_v33  ;;  %v2254_v62 = vadd.f32 %v2253_v32, %v2191_v33 }
 0x2ef   : > { %v2255_v0 = vrot.slane %v2254_v62, 4 }
 0x2f1   : > { %v2256_v47 = vadd.f32 %v2255_v0, %v2254_v62 }
 0x2f3   : > { %v2257_v8 = vrot.slane %v2256_v47, 2 }
 0x2f5   : > { %v2258_v49 = vadd.f32 %v2257_v8, %v2256_v47 }
 0x2f7   : > { %v2259_v30 = vrot.slane %v2258_v49, 1 }
 0x2f9   : > { %v2260_v3 = vadd.f32 %v2259_v30, %v2258_v49 }
 0x2fb   : > { %v3916_v24 = vmul.f32 %v2267_v51, %v2260_v3 }
 0x2fd   : > { %2370 = vst [vmem:[%s3914_s29] sm:$0x1] %v3916_v24  ;;  %v3922_v16 = vsub.f32 %v3892_v40, %v3916_v24  ;;  %v3925_v5 = vsub.f32 %v2187_v31, %v3916_v24  ;;  %v3928_v11 = vsub.f32 %v2188_v10, %v3916_v24  ;;  %v3931_v7 = vsub.f32 %v2189_v21, %v3916_v24 }
 0x2fe   : > { %v3934_v6 = vsub.f32 %v2190_v45, %v3916_v24  ;;  %v3937_v52 = vsub.f32 %v2191_v33, %v3916_v24  ;;  %v2269_v57 = vsub.f32 %v3730_v63, %v3916_v24  ;;  %v2270_v40 = vsub.f32 %v3735_v56, %v3916_v24 }
 0x2ff   : > { %v2271_v31 = vsub.f32 %v3740_v27, %v3916_v24  ;;  %v2272_v21 = vsub.f32 %v3745_v60, %v3916_v24  ;;  %v2273_v58 = vsub.f32 %v3750_v4, %v3916_v24  ;;  %v2274_v45 = vsub.f32 %v3755_v15, %v3916_v24 }
 0x300   : > { %v2301_v10 = vmul.f32 %v2269_v57, %v2269_v57  ;;  %v2302_v43 = vmul.f32 %v2270_v40, %v2270_v40  ;;  %v2275_v56 = vsub.f32 %v3760_v37, %v3916_v24  ;;  %v2276_v32 = vsub.f32 %v3766_v1, %v3916_v24 }
 0x301   : > { %v2303_v44 = vmul.f32 %v2271_v31, %v2271_v31  ;;  %v2304_v63 = vmul.f32 %v2272_v21, %v2272_v21  ;;  %v2305_v29 = vmul.f32 %v2273_v58, %v2273_v58  ;;  %v2306_v28 = vmul.f32 %v2274_v45, %v2274_v45 }
 0x302   : > { %v2333_v13 = vadd.f32 %v2302_v43, %v2301_v10  ;;  %v2277_v4 = vsub.f32 %v3772_v41, %v3916_v24  ;;  %v2307_v19 = vmul.f32 %v2275_v56, %v2275_v56  ;;  %v2278_v15 = vsub.f32 %v3779_v39, %v3916_v24 }
 0x303   : > { %v2308_v53 = vmul.f32 %v2276_v32, %v2276_v32  ;;  %v2279_v37 = vsub.f32 %v3786_v26, %v3916_v24  ;;  %v2280_v1 = vsub.f32 %v3793_v25, %v3916_v24  ;;  %v2281_v41 = vsub.f32 %v3798_v9, %v3916_v24 }
 0x304   : > { %v2334_v38 = vadd.f32 %v2333_v13, %v2303_v44  ;;  %v2309_v2 = vmul.f32 %v2277_v4, %v2277_v4  ;;  %v2310_v12 = vmul.f32 %v2278_v15, %v2278_v15  ;;  %v2282_v39 = vsub.f32 %v3804_v46, %v3916_v24 }
 0x305   : > { %v2311_v0 = vmul.f32 %v2279_v37, %v2279_v37  ;;  %v2312_v47 = vmul.f32 %v2280_v1, %v2280_v1  ;;  %v2283_v26 = vsub.f32 %v3809_v42, %v3916_v24  ;;  %v2313_v59 = vmul.f32 %v2281_v41, %v2281_v41 }
 0x306   : > { %v2335_v27 = vadd.f32 %v2334_v38, %v2304_v63  ;;  %v2284_v25 = vsub.f32 %v3814_v50, %v3916_v24  ;;  %v2314_v30 = vmul.f32 %v2282_v39, %v2282_v39  ;;  %v2285_v9 = vsub.f32 %v3819_v35, %v3916_v24 }
 0x307   : > { %v2315_v3 = vmul.f32 %v2283_v26, %v2283_v26  ;;  %v2286_v46 = vsub.f32 %v3824_v36, %v3916_v24  ;;  %v2287_v42 = vsub.f32 %v3829_v20, %v3916_v24  ;;  %v2288_v50 = vsub.f32 %v3834_v22, %v3916_v24 }
 0x308   : > { %v2336_v60 = vadd.f32 %v2335_v27, %v2305_v29  ;;  %v2316_v40 = vmul.f32 %v2284_v25, %v2284_v25  ;;  %v2317_v10 = vmul.f32 %v2285_v9, %v2285_v9  ;;  %v2289_v35 = vsub.f32 %v3839_v54, %v3916_v24 }
 0x309   : > { %v2318_v21 = vmul.f32 %v2286_v46, %v2286_v46  ;;  %v2319_v44 = vmul.f32 %v2287_v42, %v2287_v42  ;;  %v2290_v36 = vsub.f32 %v3847_v48, %v3916_v24  ;;  %v2320_v45 = vmul.f32 %v2288_v50, %v2288_v50 }
 0x30a   : > { %v2337_v18 = vadd.f32 %v2336_v60, %v2306_v28  ;;  %v2291_v20 = vsub.f32 %v3856_v14, %v3916_v24  ;;  %v2321_v38 = vmul.f32 %v2289_v35, %v2289_v35  ;;  %v2292_v22 = vsub.f32 %v3865_v55, %v3916_v24 }
 0x30b   : > { %v2322_v29 = vmul.f32 %v2290_v36, %v2290_v36  ;;  %v2293_v54 = vsub.f32 %v3874_v17, %v3916_v24  ;;  %v2294_v48 = vsub.f32 %v3883_v23, %v3916_v24  ;;  %v2329_v17 = vmul.f32 %v3928_v11, %v3928_v11 }
 0x30c   : > { %v2338_v34 = vadd.f32 %v2337_v18, %v2307_v19  ;;  %v2323_v32 = vmul.f32 %v2291_v20, %v2291_v20  ;;  %v2324_v60 = vmul.f32 %v2292_v22, %v2292_v22  ;;  %v2330_v23 = vmul.f32 %v3931_v7, %v3931_v7 }
 0x30d   : > { %v2325_v19 = vmul.f32 %v2293_v54, %v2293_v54  ;;  %v2326_v14 = vmul.f32 %v2294_v48, %v2294_v48 }
 0x30e   : > { %v2339_v33 = vadd.f32 %v2338_v34, %v2308_v53  ;;  %v2327_v53 = vmul.f32 %v3922_v16, %v3922_v16  ;;  %v2328_v34 = vmul.f32 %v3925_v5, %v3925_v5  ;;  %v2332_v16 = vmul.f32 %v3937_v52, %v3937_v52 }
 0x310   : > { %v2340_v62 = vadd.f32 %v2339_v33, %v2309_v2  ;;  %v2331_v33 = vmul.f32 %v3934_v6, %v3934_v6 }
 0x312   : > { %v2341_v61 = vadd.f32 %v2340_v62, %v2310_v12 }
 0x314   : > { %v2342_v8 = vadd.f32 %v2341_v61, %v2311_v0 }
 0x316   : > { %v2343_v49 = vadd.f32 %v2342_v8, %v2312_v47 }
 0x318   : > { %v2344_v51 = vadd.f32 %v2343_v49, %v2313_v59 }
 0x31a   : > { %v2345_v57 = vadd.f32 %v2344_v51, %v2314_v30 }
 0x31c   : > { %v2346_v31 = vadd.f32 %v2345_v57, %v2315_v3 }
 0x31e   : > { %v2347_v43 = vadd.f32 %v2346_v31, %v2316_v40 }
 0x320   : > { %v2348_v58 = vadd.f32 %v2347_v43, %v2317_v10 }
 0x322   : > { %v2349_v13 = vadd.f32 %v2348_v58, %v2318_v21 }
 0x324   : > { %v2350_v63 = vadd.f32 %v2349_v13, %v2319_v44 }
 0x326   : > { %v2351_v56 = vadd.f32 %v2350_v63, %v2320_v45 }
 0x328   : > { %v2352_v27 = vadd.f32 %v2351_v56, %v2321_v38 }
 0x32a   : > { %v2353_v28 = vadd.f32 %v2352_v27, %v2322_v29 }
 0x32c   : > { %v2354_v4 = vadd.f32 %v2353_v28, %v2323_v32 }
 0x32e   : > { %v2355_v18 = vadd.f32 %v2354_v4, %v2324_v60 }
 0x330   : > { %v2356_v15 = vadd.f32 %v2355_v18, %v2325_v19 }
 0x332   : > { %v2357_v55 = vadd.f32 %v2356_v15, %v2326_v14 }
 0x334   : > { %v2358_v37 = vadd.f32 %v2357_v55, %v2327_v53 }
 0x336   : > { %v2359_v2 = vadd.f32 %v2358_v37, %v2328_v34 }
 0x338   : > { %v2360_v24 = vadd.f32 %v2359_v2, %v2329_v17 }
 0x33a   : > { %v2361_v1 = vadd.f32 %v2360_v24, %v2330_v23 }
 0x33c   : > { %v2362_v12 = vadd.f32 %v2361_v1, %v2331_v33 }
 0x33e   : > { %v2363_v62 = vadd.f32 %v2362_v12, %v2332_v16 }
 0x340   : > { %v2364_v5 = vrot.slane %v2363_v62, 4 }
 0x342   : > { %v2365_v41 = vadd.f32 %v2364_v5, %v2363_v62 }
 0x344   : > { %v2366_v0 = vrot.slane %v2365_v41, 2 }
 0x346   : > { %v2367_v61 = vadd.f32 %v2366_v0, %v2365_v41 }
 0x348   : > { %v2368_v39 = vrot.slane %v2367_v61, 1 }
 0x34a   : > { %v2369_v11 = vadd.f32 %v2368_v39, %v2367_v61 }
 0x34c   : > { %2371 = vst [vmem:[%s3914_s29 + $0x1] sm:$0x1] %v2369_v11 }
 0x34d PF: > { %s16_s18 = sadd.s32 1, %s2672_s18  }
 0x34e   : > { %p13_p4 = scmp.ge.s32.totalorder %s16_s18, 4  }
 0x350   :  { %15 = sbr.rel (!%p13_p4) target bundleno = 1 (0x1), region = 89 }

</bundles_post_ra>
